<compile_context>
chip_gen: v7x
topology: tpu7x:2x2x1
jax: 0.10.0
libtpu: 0.0.40
codegen_flags: <defaults>
</compile_context>

<pallas_src>
import functools
import numpy as np
import jax
import jax.numpy as jnp
from jax import lax
from jax.experimental import pallas as pl
from jax.experimental.pallas import tpu as pltpu

EPS = 1e-5


# ----------------------------- glue: constant matrices -----------------------
def _bilinear_matrix(out_size, in_size):
    """Bilinear interpolation matrix (align_corners=True), shape (out, in)."""
    A = np.zeros((out_size, in_size), dtype=np.float32)
    if in_size == 1:
        A[:, 0] = 1.0
        return A
    for o in range(out_size):
        src = o * (in_size - 1) / (out_size - 1)
        i0 = min(int(np.floor(src)), in_size - 2)
        f = src - i0
        A[o, i0] = 1.0 - f
        A[o, i0 + 1] = f
    return A


def _up_pad_matrix(in_size, target_size):
    """Upsample-by-2 (align_corners=True) then F.pad to target, as a matrix."""
    up_size = 2 * in_size
    A = _bilinear_matrix(up_size, in_size)
    diff = target_size - up_size
    assert diff >= 0, "Up expects x2 spatial >= upsampled x1 spatial"
    lo = diff // 2
    P = np.zeros((target_size, in_size), dtype=np.float32)
    P[lo:lo + up_size, :] = A
    return P


def _shift1d(size, d):
    """S[r, i] = 1 iff r == i + d  (so  (x @ S)[i] = x[i+d], 0 if OOB)."""
    S = np.zeros((size, size), dtype=np.float32)
    for i in range(size):
        r = i + d
        if 0 <= r < size:
            S[r, i] = 1.0
    return S


def _make_glue(N, H1, W1, H2, W2):
    Ph = _up_pad_matrix(H1, H2)                       # (H2, H1)
    Pw = _up_pad_matrix(W1, W2)                       # (W2, W1)
    Mt = np.kron(Ph, Pw).T                            # (H1*W1, H2*W2)
    up_big = np.kron(np.eye(N, dtype=np.float32), Mt)  # (N*H1W1, N*H2W2)
    HW2 = H2 * W2
    S = np.zeros((9, HW2, HW2), dtype=np.float32)
    for dy in range(3):
        for dx in range(3):
            S[dy * 3 + dx] = np.kron(_shift1d(H2, dy - 1), _shift1d(W2, dx - 1))
    return up_big, S


# ----------------------------------- kernel ----------------------------------
def _up_kernel(x1_ref, x2_ref, up_ref, s_ref,
               w1_ref, g1_ref, b1_ref, w2_ref, g2_ref, b2_ref,
               out_ref, xcat_ref, p1_ref, p2_ref,
               *, N, C1, C2, Cmid, HW2):
    Cin = C1 + C2
    f32 = jnp.float32

    # ---- bilinear upsample (align_corners=True) + F.pad: one MXU matmul -----
    # (C1, N*H1W1) @ (N*H1W1, N*HW2) -> (C1, N*HW2)
    x1_up = jnp.dot(x1_ref[...], up_ref[...], preferred_element_type=f32)

    # ---- torch.cat([x2, x1_up], dim=1) in channel-row layout ----------------
    xcat_ref[0:C2, :] = x2_ref[...]
    xcat_ref[C2:Cin, :] = x1_up

    def conv3x3_bn_sigmoid(x, c_in, p_ref, w_ref, g_ref, b_ref):
        # im2col: 9 shifted/zero-padded taps via MXU matmuls against constant
        # shift matrices (boundary zeros baked in -> no halo, no zeroing).
        for k in range(9):
            sk = s_ref[k]                                   # (HW2, HW2)
            for n in range(N):
                blk = x[:, n * HW2:(n + 1) * HW2]           # (c_in, HW2)
                p_ref[k * c_in:(k + 1) * c_in, n * HW2:(n + 1) * HW2] = (
                    jnp.dot(blk, sk, preferred_element_type=f32))
        # One MXU matmul for the whole convolution.
        y = jnp.dot(w_ref[...], p_ref[...], preferred_element_type=f32)  # (c_out, N*HW2)
        # BatchNorm2d (training-mode batch stats, biased var) fused scale/shift.
        m = jnp.mean(y, axis=1, keepdims=True)
        v = jnp.mean(y * y, axis=1, keepdims=True) - m * m
        s = g_ref[...] * lax.rsqrt(v + EPS)
        t = b_ref[...] - m * s
        z = y * s + t
        return 1.0 / (1.0 + jnp.exp(-z))                    # sigmoid

    a1 = conv3x3_bn_sigmoid(xcat_ref, Cin, p1_ref, w1_ref, g1_ref, b1_ref)
    out_ref[...] = conv3x3_bn_sigmoid(a1, Cmid, p2_ref, w2_ref, g2_ref, b2_ref)


# --------------------------------- wrapper -----------------------------------
def up_forward(x1, x2, params):
    N, C1, H1, W1 = x1.shape
    N2, C2, H2, W2 = x2.shape
    assert N == N2
    w1, g1, b1, w2, g2, b2 = params
    Cmid, Cout = g1.shape[0], g2.shape[0]
    Cin = C1 + C2
    assert w1.shape == (Cmid, Cin, 3, 3) and w2.shape == (Cout, Cmid, 3, 3)
    HW1, HW2 = H1 * W1, H2 * W2

    up_big_np, s_np = _make_glue(N, H1, W1, H2, W2)
    up_big = jnp.asarray(up_big_np)                      # (N*HW1, N*HW2)
    s_all = jnp.asarray(s_np)                            # (9, HW2, HW2)

    # Layout plumbing (outside the kernel): channel-row, lane-dense slabs.
    x1_cn = jnp.transpose(x1, (1, 0, 2, 3)).reshape(C1, N * HW1)
    x2_cn = jnp.transpose(x2, (1, 0, 2, 3)).reshape(C2, N * HW2)
    w1m = jnp.transpose(w1, (0, 2, 3, 1)).reshape(Cmid, 9 * Cin)
    w2m = jnp.transpose(w2, (0, 2, 3, 1)).reshape(Cout, 9 * Cmid)
    g1c, b1c = g1.reshape(Cmid, 1), b1.reshape(Cmid, 1)
    g2c, b2c = g2.reshape(Cout, 1), b2.reshape(Cout, 1)

    kernel = functools.partial(_up_kernel, N=N, C1=C1, C2=C2, Cmid=Cmid, HW2=HW2)
    vmem = pl.BlockSpec(memory_space=pltpu.MemorySpace.VMEM)

    out_cn = pl.pallas_call(
        kernel,
        out_shape=jax.ShapeDtypeStruct((Cout, N * HW2), jnp.float32),
        in_specs=[vmem] * 10,
        out_specs=vmem,
        scratch_shapes=[
            pltpu.VMEM((Cin, N * HW2), jnp.float32),        # concat slab
            pltpu.VMEM((9 * Cin, N * HW2), jnp.float32),    # conv1 patches
            pltpu.VMEM((9 * Cmid, N * HW2), jnp.float32),   # conv2 patches
        ],
    )(x1_cn, x2_cn, up_big, s_all, w1m, g1c, b1c, w2m, g2c, b2c)

    # Lane-dense kernel output back to NCHW (layout plumbing).
    return jnp.transpose(out_cn.reshape(Cout, N, H2, W2), (1, 0, 2, 3))


# ----------------------------- pure-JAX reference ----------------------------
def _sigmoid(z):
    return 1.0 / (1.0 + jnp.exp(-z))


def up_reference(x1, x2, params, Ah, Aw):
    w1, g1, b1, w2, g2, b2 = params
    u = jnp.einsum('oh,nchw->ncow', Ah, x1)
    u = jnp.einsum('pw,ncow->ncop', Aw, u)
    x = jnp.concatenate([x2, u], axis=1)

    def conv_bn_sig(x, w, g, b):
        y = lax.conv_general_dilated(x, w, window_strides=(1, 1),
                                     padding=((1, 1), (1, 1)),
                                     dimension_numbers=('NCHW', 'OIHW', 'NCHW'))
        m = jnp.mean(y, axis=(0, 2, 3), keepdims=True)
        v = jnp.mean((y - m) ** 2, axis=(0, 2, 3), keepdims=True)
        z = (y - m) / jnp.sqrt(v + EPS) * g[None, :, None, None] + b[None, :, None, None]
        return _sigmoid(z)

    return conv_bn_sig(conv_bn_sig(x, w1, g1, b1), w2, g2, b2)


# ------------------------------------ main ------------------------------------
if __name__ == "__main__":
    key = jax.random.PRNGKey(0)
    # Up(in_channels=8, out_channels=4, bilinear=True): x1 has 4 ch @ 8x8,
    # x2 has 4 ch @ 16x16, concat -> 8 ch, DoubleConv(8 -> 4).
    N, C1, C2 = 2, 4, 4
    Cmid = Cout = 4
    H1 = W1 = 8
    H2 = W2 = 16
    Cin = C1 + C2

    ks = jax.random.split(key, 8)
    x1 = jax.random.normal(ks[0], (N, C1, H1, W1), jnp.float32)
    x2 = jax.random.normal(ks[1], (N, C2, H2, W2), jnp.float32)
    w1 = jax.random.normal(ks[2], (Cmid, Cin, 3, 3), jnp.float32) / np.sqrt(Cin * 9)
    w2 = jax.random.normal(ks[3], (Cout, Cmid, 3, 3), jnp.float32) / np.sqrt(Cmid * 9)
    g1 = 1.0 + 0.1 * jax.random.normal(ks[4], (Cmid,), jnp.float32)
    b1 = 0.1 * jax.random.normal(ks[5], (Cmid,), jnp.float32)
    g2 = 1.0 + 0.1 * jax.random.normal(ks[6], (Cout,), jnp.float32)
    b2 = 0.1 * jax.random.normal(ks[7], (Cout,), jnp.float32)
    params = (w1, g1, b1, w2, g2, b2)

    out = up_forward(x1, x2, params)
    out = jax.block_until_ready(out)
    assert out.shape == (N, Cout, H2, W2)

    Ah = jnp.asarray(_up_pad_matrix(H1, H2))
    Aw = jnp.asarray(_up_pad_matrix(W1, W2))
    ref = jax.block_until_ready(up_reference(x1, x2, params, Ah, Aw))
    err = float(jnp.max(jnp.abs(out - ref)))
    assert jnp.allclose(out, ref, atol=2e-2, rtol=2e-2), f"max abs err {err}"

    print("KERNEL_OK")
</pallas_src>

<mosaic_0001>
module attributes {stable_mosaic.version = 11 : i64} {
  func.func @_up_kernel(%arg0: memref<4x128xf32, #tpu.memory_space<vmem>>, %arg1: memref<4x512xf32, #tpu.memory_space<vmem>>, %arg2: memref<128x512xf32, #tpu.memory_space<vmem>>, %arg3: memref<9x256x256xf32, #tpu.memory_space<vmem>>, %arg4: memref<4x72xf32, #tpu.memory_space<vmem>>, %arg5: memref<4x1xf32, #tpu.memory_space<vmem>>, %arg6: memref<4x1xf32, #tpu.memory_space<vmem>>, %arg7: memref<4x36xf32, #tpu.memory_space<vmem>>, %arg8: memref<4x1xf32, #tpu.memory_space<vmem>>, %arg9: memref<4x1xf32, #tpu.memory_space<vmem>>, %arg10: memref<4x512xf32, #tpu.memory_space<vmem>>, %arg11: memref<8x512xf32, #tpu.memory_space<vmem>>, %arg12: memref<72x512xf32, #tpu.memory_space<vmem>>, %arg13: memref<36x512xf32, #tpu.memory_space<vmem>>) attributes {dimension_semantics = [], scalar_prefetch = 0 : i64, scratch_operands = 3 : i64, tpu.core_type = #tpu.core_type<tc>} {
    %c0 = arith.constant 0 : index
    %c0_0 = arith.constant 0 : index
    %0 = vector.load %arg0[%c0, %c0_0] : memref<4x128xf32, #tpu.memory_space<vmem>>, vector<4x128xf32>
    %c0_1 = arith.constant 0 : index
    %c0_2 = arith.constant 0 : index
    %1 = vector.load %arg2[%c0_1, %c0_2] : memref<128x512xf32, #tpu.memory_space<vmem>>, vector<128x512xf32>
    %cst = arith.constant dense<0.000000e+00> : vector<4x512xf32>
    %2 = tpu.matmul %0, %1, %cst {dimension_numbers = #tpu.dot_dimension_numbers<[1], [0], [0], [1], [0, 0, 1, 1], [], []>} : vector<4x128xf32>, vector<128x512xf32>, vector<4x512xf32> -> vector<4x512xf32>
    %c0_3 = arith.constant 0 : index
    %c0_4 = arith.constant 0 : index
    %3 = vector.load %arg1[%c0_3, %c0_4] : memref<4x512xf32, #tpu.memory_space<vmem>>, vector<4x512xf32>
    %c0_5 = arith.constant 0 : index
    %c0_6 = arith.constant 0 : index
    %4 = vector.load %arg11[%c0_5, %c0_6] : memref<8x512xf32, #tpu.memory_space<vmem>>, vector<4x512xf32>
    tpu.vector_store %arg11[%c0_5, %c0_6], %3 {strides = array<i32>} : memref<8x512xf32, #tpu.memory_space<vmem>>, vector<4x512xf32>,
    %c4 = arith.constant 4 : index
    %c0_7 = arith.constant 0 : index
    %5 = vector.load %arg11[%c4, %c0_7] : memref<8x512xf32, #tpu.memory_space<vmem>>, vector<4x512xf32>
    tpu.vector_store %arg11[%c4, %c0_7], %2 {strides = array<i32>} : memref<8x512xf32, #tpu.memory_space<vmem>>, vector<4x512xf32>,
    %c0_8 = arith.constant 0 : index
    %c0_9 = arith.constant 0 : index
    %c0_10 = arith.constant 0 : index
    %6 = vector.load %arg3[%c0_8, %c0_9, %c0_10] : memref<9x256x256xf32, #tpu.memory_space<vmem>>, vector<1x256x256xf32>
    %7 = vector.shape_cast %6 : vector<1x256x256xf32> to vector<256x256xf32>
    %c0_11 = arith.constant 0 : index
    %c0_12 = arith.constant 0 : index
    %8 = vector.load %arg11[%c0_11, %c0_12] : memref<8x512xf32, #tpu.memory_space<vmem>>, vector<8x256xf32>
    %cst_13 = arith.constant dense<0.000000e+00> : vector<8x256xf32>
    %9 = tpu.matmul %8, %7, %cst_13 {dimension_numbers = #tpu.dot_dimension_numbers<[1], [0], [0], [1], [0, 0, 1, 1], [], []>} : vector<8x256xf32>, vector<256x256xf32>, vector<8x256xf32> -> vector<8x256xf32>
    %c0_14 = arith.constant 0 : index
    %c0_15 = arith.constant 0 : index
    %10 = vector.load %arg12[%c0_14, %c0_15] : memref<72x512xf32, #tpu.memory_space<vmem>>, vector<8x256xf32>
    tpu.vector_store %arg12[%c0_14, %c0_15], %9 {strides = array<i32>} : memref<72x512xf32, #tpu.memory_space<vmem>>, vector<8x256xf32>,
    %c0_16 = arith.constant 0 : index
    %c256 = arith.constant 256 : index
    %11 = vector.load %arg11[%c0_16, %c256] : memref<8x512xf32, #tpu.memory_space<vmem>>, vector<8x256xf32>
    %cst_17 = arith.constant dense<0.000000e+00> : vector<8x256xf32>
    %12 = tpu.matmul %11, %7, %cst_17 {dimension_numbers = #tpu.dot_dimension_numbers<[1], [0], [0], [1], [0, 0, 1, 1], [], []>} : vector<8x256xf32>, vector<256x256xf32>, vector<8x256xf32> -> vector<8x256xf32>
    %c0_18 = arith.constant 0 : index
    %c256_19 = arith.constant 256 : index
    %13 = vector.load %arg12[%c0_18, %c256_19] : memref<72x512xf32, #tpu.memory_space<vmem>>, vector<8x256xf32>
    tpu.vector_store %arg12[%c0_18, %c256_19], %12 {strides = array<i32>} : memref<72x512xf32, #tpu.memory_space<vmem>>, vector<8x256xf32>,
    %c1 = arith.constant 1 : index
    %c0_20 = arith.constant 0 : index
    %c0_21 = arith.constant 0 : index
    %14 = vector.load %arg3[%c1, %c0_20, %c0_21] : memref<9x256x256xf32, #tpu.memory_space<vmem>>, vector<1x256x256xf32>
    %15 = vector.shape_cast %14 : vector<1x256x256xf32> to vector<256x256xf32>
    %c0_22 = arith.constant 0 : index
    %c0_23 = arith.constant 0 : index
    %16 = vector.load %arg11[%c0_22, %c0_23] : memref<8x512xf32, #tpu.memory_space<vmem>>, vector<8x256xf32>
    %cst_24 = arith.constant dense<0.000000e+00> : vector<8x256xf32>
    %17 = tpu.matmul %16, %15, %cst_24 {dimension_numbers = #tpu.dot_dimension_numbers<[1], [0], [0], [1], [0, 0, 1, 1], [], []>} : vector<8x256xf32>, vector<256x256xf32>, vector<8x256xf32> -> vector<8x256xf32>
    %c8 = arith.constant 8 : index
    %c0_25 = arith.constant 0 : index
    %18 = vector.load %arg12[%c8, %c0_25] : memref<72x512xf32, #tpu.memory_space<vmem>>, vector<8x256xf32>
    tpu.vector_store %arg12[%c8, %c0_25], %17 {strides = array<i32>} : memref<72x512xf32, #tpu.memory_space<vmem>>, vector<8x256xf32>,
    %c0_26 = arith.constant 0 : index
    %c256_27 = arith.constant 256 : index
    %19 = vector.load %arg11[%c0_26, %c256_27] : memref<8x512xf32, #tpu.memory_space<vmem>>, vector<8x256xf32>
    %cst_28 = arith.constant dense<0.000000e+00> : vector<8x256xf32>
    %20 = tpu.matmul %19, %15, %cst_28 {dimension_numbers = #tpu.dot_dimension_numbers<[1], [0], [0], [1], [0, 0, 1, 1], [], []>} : vector<8x256xf32>, vector<256x256xf32>, vector<8x256xf32> -> vector<8x256xf32>
    %c8_29 = arith.constant 8 : index
    %c256_30 = arith.constant 256 : index
    %21 = vector.load %arg12[%c8_29, %c256_30] : memref<72x512xf32, #tpu.memory_space<vmem>>, vector<8x256xf32>
    tpu.vector_store %arg12[%c8_29, %c256_30], %20 {strides = array<i32>} : memref<72x512xf32, #tpu.memory_space<vmem>>, vector<8x256xf32>,
    %c2 = arith.constant 2 : index
    %c0_31 = arith.constant 0 : index
    %c0_32 = arith.constant 0 : index
    %22 = vector.load %arg3[%c2, %c0_31, %c0_32] : memref<9x256x256xf32, #tpu.memory_space<vmem>>, vector<1x256x256xf32>
    %23 = vector.shape_cast %22 : vector<1x256x256xf32> to vector<256x256xf32>
    %c0_33 = arith.constant 0 : index
    %c0_34 = arith.constant 0 : index
    %24 = vector.load %arg11[%c0_33, %c0_34] : memref<8x512xf32, #tpu.memory_space<vmem>>, vector<8x256xf32>
    %cst_35 = arith.constant dense<0.000000e+00> : vector<8x256xf32>
    %25 = tpu.matmul %24, %23, %cst_35 {dimension_numbers = #tpu.dot_dimension_numbers<[1], [0], [0], [1], [0, 0, 1, 1], [], []>} : vector<8x256xf32>, vector<256x256xf32>, vector<8x256xf32> -> vector<8x256xf32>
    %c16 = arith.constant 16 : index
    %c0_36 = arith.constant 0 : index
    %26 = vector.load %arg12[%c16, %c0_36] : memref<72x512xf32, #tpu.memory_space<vmem>>, vector<8x256xf32>
    tpu.vector_store %arg12[%c16, %c0_36], %25 {strides = array<i32>} : memref<72x512xf32, #tpu.memory_space<vmem>>, vector<8x256xf32>,
    %c0_37 = arith.constant 0 : index
    %c256_38 = arith.constant 256 : index
    %27 = vector.load %arg11[%c0_37, %c256_38] : memref<8x512xf32, #tpu.memory_space<vmem>>, vector<8x256xf32>
    %cst_39 = arith.constant dense<0.000000e+00> : vector<8x256xf32>
    %28 = tpu.matmul %27, %23, %cst_39 {dimension_numbers = #tpu.dot_dimension_numbers<[1], [0], [0], [1], [0, 0, 1, 1], [], []>} : vector<8x256xf32>, vector<256x256xf32>, vector<8x256xf32> -> vector<8x256xf32>
    %c16_40 = arith.constant 16 : index
    %c256_41 = arith.constant 256 : index
    %29 = vector.load %arg12[%c16_40, %c256_41] : memref<72x512xf32, #tpu.memory_space<vmem>>, vector<8x256xf32>
    tpu.vector_store %arg12[%c16_40, %c256_41], %28 {strides = array<i32>} : memref<72x512xf32, #tpu.memory_space<vmem>>, vector<8x256xf32>,
    %c3 = arith.constant 3 : index
    %c0_42 = arith.constant 0 : index
    %c0_43 = arith.constant 0 : index
    %30 = vector.load %arg3[%c3, %c0_42, %c0_43] : memref<9x256x256xf32, #tpu.memory_space<vmem>>, vector<1x256x256xf32>
    %31 = vector.shape_cast %30 : vector<1x256x256xf32> to vector<256x256xf32>
    %c0_44 = arith.constant 0 : index
    %c0_45 = arith.constant 0 : index
    %32 = vector.load %arg11[%c0_44, %c0_45] : memref<8x512xf32, #tpu.memory_space<vmem>>, vector<8x256xf32>
    %cst_46 = arith.constant dense<0.000000e+00> : vector<8x256xf32>
    %33 = tpu.matmul %32, %31, %cst_46 {dimension_numbers = #tpu.dot_dimension_numbers<[1], [0], [0], [1], [0, 0, 1, 1], [], []>} : vector<8x256xf32>, vector<256x256xf32>, vector<8x256xf32> -> vector<8x256xf32>
    %c24 = arith.constant 24 : index
    %c0_47 = arith.constant 0 : index
    %34 = vector.load %arg12[%c24, %c0_47] : memref<72x512xf32, #tpu.memory_space<vmem>>, vector<8x256xf32>
    tpu.vector_store %arg12[%c24, %c0_47], %33 {strides = array<i32>} : memref<72x512xf32, #tpu.memory_space<vmem>>, vector<8x256xf32>,
    %c0_48 = arith.constant 0 : index
    %c256_49 = arith.constant 256 : index
    %35 = vector.load %arg11[%c0_48, %c256_49] : memref<8x512xf32, #tpu.memory_space<vmem>>, vector<8x256xf32>
    %cst_50 = arith.constant dense<0.000000e+00> : vector<8x256xf32>
    %36 = tpu.matmul %35, %31, %cst_50 {dimension_numbers = #tpu.dot_dimension_numbers<[1], [0], [0], [1], [0, 0, 1, 1], [], []>} : vector<8x256xf32>, vector<256x256xf32>, vector<8x256xf32> -> vector<8x256xf32>
    %c24_51 = arith.constant 24 : index
    %c256_52 = arith.constant 256 : index
    %37 = vector.load %arg12[%c24_51, %c256_52] : memref<72x512xf32, #tpu.memory_space<vmem>>, vector<8x256xf32>
    tpu.vector_store %arg12[%c24_51, %c256_52], %36 {strides = array<i32>} : memref<72x512xf32, #tpu.memory_space<vmem>>, vector<8x256xf32>,
    %c4_53 = arith.constant 4 : index
    %c0_54 = arith.constant 0 : index
    %c0_55 = arith.constant 0 : index
    %38 = vector.load %arg3[%c4_53, %c0_54, %c0_55] : memref<9x256x256xf32, #tpu.memory_space<vmem>>, vector<1x256x256xf32>
    %39 = vector.shape_cast %38 : vector<1x256x256xf32> to vector<256x256xf32>
    %c0_56 = arith.constant 0 : index
    %c0_57 = arith.constant 0 : index
    %40 = vector.load %arg11[%c0_56, %c0_57] : memref<8x512xf32, #tpu.memory_space<vmem>>, vector<8x256xf32>
    %cst_58 = arith.constant dense<0.000000e+00> : vector<8x256xf32>
    %41 = tpu.matmul %40, %39, %cst_58 {dimension_numbers = #tpu.dot_dimension_numbers<[1], [0], [0], [1], [0, 0, 1, 1], [], []>} : vector<8x256xf32>, vector<256x256xf32>, vector<8x256xf32> -> vector<8x256xf32>
    %c32 = arith.constant 32 : index
    %c0_59 = arith.constant 0 : index
    %42 = vector.load %arg12[%c32, %c0_59] : memref<72x512xf32, #tpu.memory_space<vmem>>, vector<8x256xf32>
    tpu.vector_store %arg12[%c32, %c0_59], %41 {strides = array<i32>} : memref<72x512xf32, #tpu.memory_space<vmem>>, vector<8x256xf32>,
    %c0_60 = arith.constant 0 : index
    %c256_61 = arith.constant 256 : index
    %43 = vector.load %arg11[%c0_60, %c256_61] : memref<8x512xf32, #tpu.memory_space<vmem>>, vector<8x256xf32>
    %cst_62 = arith.constant dense<0.000000e+00> : vector<8x256xf32>
    %44 = tpu.matmul %43, %39, %cst_62 {dimension_numbers = #tpu.dot_dimension_numbers<[1], [0], [0], [1], [0, 0, 1, 1], [], []>} : vector<8x256xf32>, vector<256x256xf32>, vector<8x256xf32> -> vector<8x256xf32>
    %c32_63 = arith.constant 32 : index
    %c256_64 = arith.constant 256 : index
    %45 = vector.load %arg12[%c32_63, %c256_64] : memref<72x512xf32, #tpu.memory_space<vmem>>, vector<8x256xf32>
    tpu.vector_store %arg12[%c32_63, %c256_64], %44 {strides = array<i32>} : memref<72x512xf32, #tpu.memory_space<vmem>>, vector<8x256xf32>,
    %c5 = arith.constant 5 : index
    %c0_65 = arith.constant 0 : index
    %c0_66 = arith.constant 0 : index
    %46 = vector.load %arg3[%c5, %c0_65, %c0_66] : memref<9x256x256xf32, #tpu.memory_space<vmem>>, vector<1x256x256xf32>
    %47 = vector.shape_cast %46 : vector<1x256x256xf32> to vector<256x256xf32>
    %c0_67 = arith.constant 0 : index
    %c0_68 = arith.constant 0 : index
    %48 = vector.load %arg11[%c0_67, %c0_68] : memref<8x512xf32, #tpu.memory_space<vmem>>, vector<8x256xf32>
    %cst_69 = arith.constant dense<0.000000e+00> : vector<8x256xf32>
    %49 = tpu.matmul %48, %47, %cst_69 {dimension_numbers = #tpu.dot_dimension_numbers<[1], [0], [0], [1], [0, 0, 1, 1], [], []>} : vector<8x256xf32>, vector<256x256xf32>, vector<8x256xf32> -> vector<8x256xf32>
    %c40 = arith.constant 40 : index
    %c0_70 = arith.constant 0 : index
    %50 = vector.load %arg12[%c40, %c0_70] : memref<72x512xf32, #tpu.memory_space<vmem>>, vector<8x256xf32>
    tpu.vector_store %arg12[%c40, %c0_70], %49 {strides = array<i32>} : memref<72x512xf32, #tpu.memory_space<vmem>>, vector<8x256xf32>,
    %c0_71 = arith.constant 0 : index
    %c256_72 = arith.constant 256 : index
    %51 = vector.load %arg11[%c0_71, %c256_72] : memref<8x512xf32, #tpu.memory_space<vmem>>, vector<8x256xf32>
    %cst_73 = arith.constant dense<0.000000e+00> : vector<8x256xf32>
    %52 = tpu.matmul %51, %47, %cst_73 {dimension_numbers = #tpu.dot_dimension_numbers<[1], [0], [0], [1], [0, 0, 1, 1], [], []>} : vector<8x256xf32>, vector<256x256xf32>, vector<8x256xf32> -> vector<8x256xf32>
    %c40_74 = arith.constant 40 : index
    %c256_75 = arith.constant 256 : index
    %53 = vector.load %arg12[%c40_74, %c256_75] : memref<72x512xf32, #tpu.memory_space<vmem>>, vector<8x256xf32>
    tpu.vector_store %arg12[%c40_74, %c256_75], %52 {strides = array<i32>} : memref<72x512xf32, #tpu.memory_space<vmem>>, vector<8x256xf32>,
    %c6 = arith.constant 6 : index
    %c0_76 = arith.constant 0 : index
    %c0_77 = arith.constant 0 : index
    %54 = vector.load %arg3[%c6, %c0_76, %c0_77] : memref<9x256x256xf32, #tpu.memory_space<vmem>>, vector<1x256x256xf32>
    %55 = vector.shape_cast %54 : vector<1x256x256xf32> to vector<256x256xf32>
    %c0_78 = arith.constant 0 : index
    %c0_79 = arith.constant 0 : index
    %56 = vector.load %arg11[%c0_78, %c0_79] : memref<8x512xf32, #tpu.memory_space<vmem>>, vector<8x256xf32>
    %cst_80 = arith.constant dense<0.000000e+00> : vector<8x256xf32>
    %57 = tpu.matmul %56, %55, %cst_80 {dimension_numbers = #tpu.dot_dimension_numbers<[1], [0], [0], [1], [0, 0, 1, 1], [], []>} : vector<8x256xf32>, vector<256x256xf32>, vector<8x256xf32> -> vector<8x256xf32>
    %c48 = arith.constant 48 : index
    %c0_81 = arith.constant 0 : index
    %58 = vector.load %arg12[%c48, %c0_81] : memref<72x512xf32, #tpu.memory_space<vmem>>, vector<8x256xf32>
    tpu.vector_store %arg12[%c48, %c0_81], %57 {strides = array<i32>} : memref<72x512xf32, #tpu.memory_space<vmem>>, vector<8x256xf32>,
    %c0_82 = arith.constant 0 : index
    %c256_83 = arith.constant 256 : index
    %59 = vector.load %arg11[%c0_82, %c256_83] : memref<8x512xf32, #tpu.memory_space<vmem>>, vector<8x256xf32>
    %cst_84 = arith.constant dense<0.000000e+00> : vector<8x256xf32>
    %60 = tpu.matmul %59, %55, %cst_84 {dimension_numbers = #tpu.dot_dimension_numbers<[1], [0], [0], [1], [0, 0, 1, 1], [], []>} : vector<8x256xf32>, vector<256x256xf32>, vector<8x256xf32> -> vector<8x256xf32>
    %c48_85 = arith.constant 48 : index
    %c256_86 = arith.constant 256 : index
    %61 = vector.load %arg12[%c48_85, %c256_86] : memref<72x512xf32, #tpu.memory_space<vmem>>, vector<8x256xf32>
    tpu.vector_store %arg12[%c48_85, %c256_86], %60 {strides = array<i32>} : memref<72x512xf32, #tpu.memory_space<vmem>>, vector<8x256xf32>,
    %c7 = arith.constant 7 : index
    %c0_87 = arith.constant 0 : index
    %c0_88 = arith.constant 0 : index
    %62 = vector.load %arg3[%c7, %c0_87, %c0_88] : memref<9x256x256xf32, #tpu.memory_space<vmem>>, vector<1x256x256xf32>
    %63 = vector.shape_cast %62 : vector<1x256x256xf32> to vector<256x256xf32>
    %c0_89 = arith.constant 0 : index
    %c0_90 = arith.constant 0 : index
    %64 = vector.load %arg11[%c0_89, %c0_90] : memref<8x512xf32, #tpu.memory_space<vmem>>, vector<8x256xf32>
    %cst_91 = arith.constant dense<0.000000e+00> : vector<8x256xf32>
    %65 = tpu.matmul %64, %63, %cst_91 {dimension_numbers = #tpu.dot_dimension_numbers<[1], [0], [0], [1], [0, 0, 1, 1], [], []>} : vector<8x256xf32>, vector<256x256xf32>, vector<8x256xf32> -> vector<8x256xf32>
    %c56 = arith.constant 56 : index
    %c0_92 = arith.constant 0 : index
    %66 = vector.load %arg12[%c56, %c0_92] : memref<72x512xf32, #tpu.memory_space<vmem>>, vector<8x256xf32>
    tpu.vector_store %arg12[%c56, %c0_92], %65 {strides = array<i32>} : memref<72x512xf32, #tpu.memory_space<vmem>>, vector<8x256xf32>,
    %c0_93 = arith.constant 0 : index
    %c256_94 = arith.constant 256 : index
    %67 = vector.load %arg11[%c0_93, %c256_94] : memref<8x512xf32, #tpu.memory_space<vmem>>, vector<8x256xf32>
    %cst_95 = arith.constant dense<0.000000e+00> : vector<8x256xf32>
    %68 = tpu.matmul %67, %63, %cst_95 {dimension_numbers = #tpu.dot_dimension_numbers<[1], [0], [0], [1], [0, 0, 1, 1], [], []>} : vector<8x256xf32>, vector<256x256xf32>, vector<8x256xf32> -> vector<8x256xf32>
    %c56_96 = arith.constant 56 : index
    %c256_97 = arith.constant 256 : index
    %69 = vector.load %arg12[%c56_96, %c256_97] : memref<72x512xf32, #tpu.memory_space<vmem>>, vector<8x256xf32>
    tpu.vector_store %arg12[%c56_96, %c256_97], %68 {strides = array<i32>} : memref<72x512xf32, #tpu.memory_space<vmem>>, vector<8x256xf32>,
    %c8_98 = arith.constant 8 : index
    %c0_99 = arith.constant 0 : index
    %c0_100 = arith.constant 0 : index
    %70 = vector.load %arg3[%c8_98, %c0_99, %c0_100] : memref<9x256x256xf32, #tpu.memory_space<vmem>>, vector<1x256x256xf32>
    %71 = vector.shape_cast %70 : vector<1x256x256xf32> to vector<256x256xf32>
    %c0_101 = arith.constant 0 : index
    %c0_102 = arith.constant 0 : index
    %72 = vector.load %arg11[%c0_101, %c0_102] : memref<8x512xf32, #tpu.memory_space<vmem>>, vector<8x256xf32>
    %cst_103 = arith.constant dense<0.000000e+00> : vector<8x256xf32>
    %73 = tpu.matmul %72, %71, %cst_103 {dimension_numbers = #tpu.dot_dimension_numbers<[1], [0], [0], [1], [0, 0, 1, 1], [], []>} : vector<8x256xf32>, vector<256x256xf32>, vector<8x256xf32> -> vector<8x256xf32>
    %c64 = arith.constant 64 : index
    %c0_104 = arith.constant 0 : index
    %74 = vector.load %arg12[%c64, %c0_104] : memref<72x512xf32, #tpu.memory_space<vmem>>, vector<8x256xf32>
    tpu.vector_store %arg12[%c64, %c0_104], %73 {strides = array<i32>} : memref<72x512xf32, #tpu.memory_space<vmem>>, vector<8x256xf32>,
    %c0_105 = arith.constant 0 : index
    %c256_106 = arith.constant 256 : index
    %75 = vector.load %arg11[%c0_105, %c256_106] : memref<8x512xf32, #tpu.memory_space<vmem>>, vector<8x256xf32>
    %cst_107 = arith.constant dense<0.000000e+00> : vector<8x256xf32>
    %76 = tpu.matmul %75, %71, %cst_107 {dimension_numbers = #tpu.dot_dimension_numbers<[1], [0], [0], [1], [0, 0, 1, 1], [], []>} : vector<8x256xf32>, vector<256x256xf32>, vector<8x256xf32> -> vector<8x256xf32>
    %c64_108 = arith.constant 64 : index
    %c256_109 = arith.constant 256 : index
    %77 = vector.load %arg12[%c64_108, %c256_109] : memref<72x512xf32, #tpu.memory_space<vmem>>, vector<8x256xf32>
    tpu.vector_store %arg12[%c64_108, %c256_109], %76 {strides = array<i32>} : memref<72x512xf32, #tpu.memory_space<vmem>>, vector<8x256xf32>,
    %c0_110 = arith.constant 0 : index
    %c0_111 = arith.constant 0 : index
    %78 = vector.load %arg4[%c0_110, %c0_111] : memref<4x72xf32, #tpu.memory_space<vmem>>, vector<4x72xf32>
    %c0_112 = arith.constant 0 : index
    %c0_113 = arith.constant 0 : index
    %79 = vector.load %arg12[%c0_112, %c0_113] : memref<72x512xf32, #tpu.memory_space<vmem>>, vector<72x512xf32>
    %cst_114 = arith.constant dense<0.000000e+00> : vector<4x512xf32>
    %80 = tpu.matmul %78, %79, %cst_114 {dimension_numbers = #tpu.dot_dimension_numbers<[1], [0], [0], [1], [0, 0, 1, 1], [], []>} : vector<4x72xf32>, vector<72x512xf32>, vector<4x512xf32> -> vector<4x512xf32>
    %cst_115 = arith.constant dense<0.000000e+00> : vector<4xf32>
    %81 = vector.multi_reduction <add>, %80, %cst_115 [1] : vector<4x512xf32> to vector<4xf32>
    %82 = vector.shape_cast %81 : vector<4xf32> to vector<4x1xf32>
    %cst_116 = arith.constant 5.120000e+02 : f32
    %83 = vector.broadcast %cst_116 : f32 to vector<4x1xf32>
    %84 = arith.divf %82, %83 : vector<4x1xf32>
    %85 = arith.mulf %80, %80 : vector<4x512xf32>
    %cst_117 = arith.constant dense<0.000000e+00> : vector<4xf32>
    %86 = vector.multi_reduction <add>, %85, %cst_117 [1] : vector<4x512xf32> to vector<4xf32>
    %87 = vector.shape_cast %86 : vector<4xf32> to vector<4x1xf32>
    %cst_118 = arith.constant 5.120000e+02 : f32
    %88 = vector.broadcast %cst_118 : f32 to vector<4x1xf32>
    %89 = arith.divf %87, %88 : vector<4x1xf32>
    %90 = arith.mulf %84, %84 : vector<4x1xf32>
    %91 = arith.subf %89, %90 : vector<4x1xf32>
    %c0_119 = arith.constant 0 : index
    %c0_120 = arith.constant 0 : index
    %92 = vector.load %arg5[%c0_119, %c0_120] : memref<4x1xf32, #tpu.memory_space<vmem>>, vector<4x1xf32>
    %cst_121 = arith.constant 9.99999974E-6 : f32
    %93 = vector.broadcast %cst_121 : f32 to vector<4x1xf32>
    %94 = arith.addf %91, %93 : vector<4x1xf32>
    %95 = math.rsqrt %94 : vector<4x1xf32>
    %96 = arith.mulf %92, %95 : vector<4x1xf32>
    %c0_122 = arith.constant 0 : index
    %c0_123 = arith.constant 0 : index
    %97 = vector.load %arg6[%c0_122, %c0_123] : memref<4x1xf32, #tpu.memory_space<vmem>>, vector<4x1xf32>
    %98 = arith.mulf %84, %96 : vector<4x1xf32>
    %99 = arith.subf %97, %98 : vector<4x1xf32>
    %100 = vector.broadcast %96 : vector<4x1xf32> to vector<4x512xf32>
    %101 = arith.mulf %80, %100 : vector<4x512xf32>
    %102 = vector.broadcast %99 : vector<4x1xf32> to vector<4x512xf32>
    %103 = arith.addf %101, %102 : vector<4x512xf32>
    %cst_124 = arith.constant 0.000000e+00 : f32
    %104 = vector.broadcast %cst_124 : f32 to vector<4x512xf32>
    %105 = arith.subf %104, %103 : vector<4x512xf32>
    %106 = math.exp %105 : vector<4x512xf32>
    %cst_125 = arith.constant 1.000000e+00 : f32
    %107 = vector.broadcast %cst_125 : f32 to vector<4x512xf32>
    %108 = arith.addf %107, %106 : vector<4x512xf32>
    %cst_126 = arith.constant 1.000000e+00 : f32
    %109 = vector.broadcast %cst_126 : f32 to vector<4x512xf32>
    %110 = arith.divf %109, %108 : vector<4x512xf32>
    %c0_127 = arith.constant 0 : index
    %c0_128 = arith.constant 0 : index
    %c0_129 = arith.constant 0 : index
    %111 = vector.load %arg3[%c0_127, %c0_128, %c0_129] : memref<9x256x256xf32, #tpu.memory_space<vmem>>, vector<1x256x256xf32>
    %112 = vector.shape_cast %111 : vector<1x256x256xf32> to vector<256x256xf32>
    %113 = vector.extract_strided_slice %110 {offsets = [0, 0], sizes = [4, 256], strides = [1, 1]} : vector<4x512xf32> to vector<4x256xf32>
    %cst_130 = arith.constant dense<0.000000e+00> : vector<4x256xf32>
    %114 = tpu.matmul %113, %112, %cst_130 {dimension_numbers = #tpu.dot_dimension_numbers<[1], [0], [0], [1], [0, 0, 1, 1], [], []>} : vector<4x256xf32>, vector<256x256xf32>, vector<4x256xf32> -> vector<4x256xf32>
    %c0_131 = arith.constant 0 : index
    %c0_132 = arith.constant 0 : index
    %115 = vector.load %arg13[%c0_131, %c0_132] : memref<36x512xf32, #tpu.memory_space<vmem>>, vector<4x256xf32>
    tpu.vector_store %arg13[%c0_131, %c0_132], %114 {strides = array<i32>} : memref<36x512xf32, #tpu.memory_space<vmem>>, vector<4x256xf32>,
    %116 = vector.extract_strided_slice %110 {offsets = [0, 256], sizes = [4, 256], strides = [1, 1]} : vector<4x512xf32> to vector<4x256xf32>
    %cst_133 = arith.constant dense<0.000000e+00> : vector<4x256xf32>
    %117 = tpu.matmul %116, %112, %cst_133 {dimension_numbers = #tpu.dot_dimension_numbers<[1], [0], [0], [1], [0, 0, 1, 1], [], []>} : vector<4x256xf32>, vector<256x256xf32>, vector<4x256xf32> -> vector<4x256xf32>
    %c0_134 = arith.constant 0 : index
    %c256_135 = arith.constant 256 : index
    %118 = vector.load %arg13[%c0_134, %c256_135] : memref<36x512xf32, #tpu.memory_space<vmem>>, vector<4x256xf32>
    tpu.vector_store %arg13[%c0_134, %c256_135], %117 {strides = array<i32>} : memref<36x512xf32, #tpu.memory_space<vmem>>, vector<4x256xf32>,
    %c1_136 = arith.constant 1 : index
    %c0_137 = arith.constant 0 : index
    %c0_138 = arith.constant 0 : index
    %119 = vector.load %arg3[%c1_136, %c0_137, %c0_138] : memref<9x256x256xf32, #tpu.memory_space<vmem>>, vector<1x256x256xf32>
    %120 = vector.shape_cast %119 : vector<1x256x256xf32> to vector<256x256xf32>
    %121 = vector.extract_strided_slice %110 {offsets = [0, 0], sizes = [4, 256], strides = [1, 1]} : vector<4x512xf32> to vector<4x256xf32>
    %cst_139 = arith.constant dense<0.000000e+00> : vector<4x256xf32>
    %122 = tpu.matmul %121, %120, %cst_139 {dimension_numbers = #tpu.dot_dimension_numbers<[1], [0], [0], [1], [0, 0, 1, 1], [], []>} : vector<4x256xf32>, vector<256x256xf32>, vector<4x256xf32> -> vector<4x256xf32>
    %c4_140 = arith.constant 4 : index
    %c0_141 = arith.constant 0 : index
    %123 = vector.load %arg13[%c4_140, %c0_141] : memref<36x512xf32, #tpu.memory_space<vmem>>, vector<4x256xf32>
    tpu.vector_store %arg13[%c4_140, %c0_141], %122 {strides = array<i32>} : memref<36x512xf32, #tpu.memory_space<vmem>>, vector<4x256xf32>,
    %124 = vector.extract_strided_slice %110 {offsets = [0, 256], sizes = [4, 256], strides = [1, 1]} : vector<4x512xf32> to vector<4x256xf32>
    %cst_142 = arith.constant dense<0.000000e+00> : vector<4x256xf32>
    %125 = tpu.matmul %124, %120, %cst_142 {dimension_numbers = #tpu.dot_dimension_numbers<[1], [0], [0], [1], [0, 0, 1, 1], [], []>} : vector<4x256xf32>, vector<256x256xf32>, vector<4x256xf32> -> vector<4x256xf32>
    %c4_143 = arith.constant 4 : index
    %c256_144 = arith.constant 256 : index
    %126 = vector.load %arg13[%c4_143, %c256_144] : memref<36x512xf32, #tpu.memory_space<vmem>>, vector<4x256xf32>
    tpu.vector_store %arg13[%c4_143, %c256_144], %125 {strides = array<i32>} : memref<36x512xf32, #tpu.memory_space<vmem>>, vector<4x256xf32>,
    %c2_145 = arith.constant 2 : index
    %c0_146 = arith.constant 0 : index
    %c0_147 = arith.constant 0 : index
    %127 = vector.load %arg3[%c2_145, %c0_146, %c0_147] : memref<9x256x256xf32, #tpu.memory_space<vmem>>, vector<1x256x256xf32>
    %128 = vector.shape_cast %127 : vector<1x256x256xf32> to vector<256x256xf32>
    %129 = vector.extract_strided_slice %110 {offsets = [0, 0], sizes = [4, 256], strides = [1, 1]} : vector<4x512xf32> to vector<4x256xf32>
    %cst_148 = arith.constant dense<0.000000e+00> : vector<4x256xf32>
    %130 = tpu.matmul %129, %128, %cst_148 {dimension_numbers = #tpu.dot_dimension_numbers<[1], [0], [0], [1], [0, 0, 1, 1], [], []>} : vector<4x256xf32>, vector<256x256xf32>, vector<4x256xf32> -> vector<4x256xf32>
    %c8_149 = arith.constant 8 : index
    %c0_150 = arith.constant 0 : index
    %131 = vector.load %arg13[%c8_149, %c0_150] : memref<36x512xf32, #tpu.memory_space<vmem>>, vector<4x256xf32>
    tpu.vector_store %arg13[%c8_149, %c0_150], %130 {strides = array<i32>} : memref<36x512xf32, #tpu.memory_space<vmem>>, vector<4x256xf32>,
    %132 = vector.extract_strided_slice %110 {offsets = [0, 256], sizes = [4, 256], strides = [1, 1]} : vector<4x512xf32> to vector<4x256xf32>
    %cst_151 = arith.constant dense<0.000000e+00> : vector<4x256xf32>
    %133 = tpu.matmul %132, %128, %cst_151 {dimension_numbers = #tpu.dot_dimension_numbers<[1], [0], [0], [1], [0, 0, 1, 1], [], []>} : vector<4x256xf32>, vector<256x256xf32>, vector<4x256xf32> -> vector<4x256xf32>
    %c8_152 = arith.constant 8 : index
    %c256_153 = arith.constant 256 : index
    %134 = vector.load %arg13[%c8_152, %c256_153] : memref<36x512xf32, #tpu.memory_space<vmem>>, vector<4x256xf32>
    tpu.vector_store %arg13[%c8_152, %c256_153], %133 {strides = array<i32>} : memref<36x512xf32, #tpu.memory_space<vmem>>, vector<4x256xf32>,
    %c3_154 = arith.constant 3 : index
    %c0_155 = arith.constant 0 : index
    %c0_156 = arith.constant 0 : index
    %135 = vector.load %arg3[%c3_154, %c0_155, %c0_156] : memref<9x256x256xf32, #tpu.memory_space<vmem>>, vector<1x256x256xf32>
    %136 = vector.shape_cast %135 : vector<1x256x256xf32> to vector<256x256xf32>
    %137 = vector.extract_strided_slice %110 {offsets = [0, 0], sizes = [4, 256], strides = [1, 1]} : vector<4x512xf32> to vector<4x256xf32>
    %cst_157 = arith.constant dense<0.000000e+00> : vector<4x256xf32>
    %138 = tpu.matmul %137, %136, %cst_157 {dimension_numbers = #tpu.dot_dimension_numbers<[1], [0], [0], [1], [0, 0, 1, 1], [], []>} : vector<4x256xf32>, vector<256x256xf32>, vector<4x256xf32> -> vector<4x256xf32>
    %c12 = arith.constant 12 : index
    %c0_158 = arith.constant 0 : index
    %139 = vector.load %arg13[%c12, %c0_158] : memref<36x512xf32, #tpu.memory_space<vmem>>, vector<4x256xf32>
    tpu.vector_store %arg13[%c12, %c0_158], %138 {strides = array<i32>} : memref<36x512xf32, #tpu.memory_space<vmem>>, vector<4x256xf32>,
    %140 = vector.extract_strided_slice %110 {offsets = [0, 256], sizes = [4, 256], strides = [1, 1]} : vector<4x512xf32> to vector<4x256xf32>
    %cst_159 = arith.constant dense<0.000000e+00> : vector<4x256xf32>
    %141 = tpu.matmul %140, %136, %cst_159 {dimension_numbers = #tpu.dot_dimension_numbers<[1], [0], [0], [1], [0, 0, 1, 1], [], []>} : vector<4x256xf32>, vector<256x256xf32>, vector<4x256xf32> -> vector<4x256xf32>
    %c12_160 = arith.constant 12 : index
    %c256_161 = arith.constant 256 : index
    %142 = vector.load %arg13[%c12_160, %c256_161] : memref<36x512xf32, #tpu.memory_space<vmem>>, vector<4x256xf32>
    tpu.vector_store %arg13[%c12_160, %c256_161], %141 {strides = array<i32>} : memref<36x512xf32, #tpu.memory_space<vmem>>, vector<4x256xf32>,
    %c4_162 = arith.constant 4 : index
    %c0_163 = arith.constant 0 : index
    %c0_164 = arith.constant 0 : index
    %143 = vector.load %arg3[%c4_162, %c0_163, %c0_164] : memref<9x256x256xf32, #tpu.memory_space<vmem>>, vector<1x256x256xf32>
    %144 = vector.shape_cast %143 : vector<1x256x256xf32> to vector<256x256xf32>
    %145 = vector.extract_strided_slice %110 {offsets = [0, 0], sizes = [4, 256], strides = [1, 1]} : vector<4x512xf32> to vector<4x256xf32>
    %cst_165 = arith.constant dense<0.000000e+00> : vector<4x256xf32>
    %146 = tpu.matmul %145, %144, %cst_165 {dimension_numbers = #tpu.dot_dimension_numbers<[1], [0], [0], [1], [0, 0, 1, 1], [], []>} : vector<4x256xf32>, vector<256x256xf32>, vector<4x256xf32> -> vector<4x256xf32>
    %c16_166 = arith.constant 16 : index
    %c0_167 = arith.constant 0 : index
    %147 = vector.load %arg13[%c16_166, %c0_167] : memref<36x512xf32, #tpu.memory_space<vmem>>, vector<4x256xf32>
    tpu.vector_store %arg13[%c16_166, %c0_167], %146 {strides = array<i32>} : memref<36x512xf32, #tpu.memory_space<vmem>>, vector<4x256xf32>,
    %148 = vector.extract_strided_slice %110 {offsets = [0, 256], sizes = [4, 256], strides = [1, 1]} : vector<4x512xf32> to vector<4x256xf32>
    %cst_168 = arith.constant dense<0.000000e+00> : vector<4x256xf32>
    %149 = tpu.matmul %148, %144, %cst_168 {dimension_numbers = #tpu.dot_dimension_numbers<[1], [0], [0], [1], [0, 0, 1, 1], [], []>} : vector<4x256xf32>, vector<256x256xf32>, vector<4x256xf32> -> vector<4x256xf32>
    %c16_169 = arith.constant 16 : index
    %c256_170 = arith.constant 256 : index
    %150 = vector.load %arg13[%c16_169, %c256_170] : memref<36x512xf32, #tpu.memory_space<vmem>>, vector<4x256xf32>
    tpu.vector_store %arg13[%c16_169, %c256_170], %149 {strides = array<i32>} : memref<36x512xf32, #tpu.memory_space<vmem>>, vector<4x256xf32>,
    %c5_171 = arith.constant 5 : index
    %c0_172 = arith.constant 0 : index
    %c0_173 = arith.constant 0 : index
    %151 = vector.load %arg3[%c5_171, %c0_172, %c0_173] : memref<9x256x256xf32, #tpu.memory_space<vmem>>, vector<1x256x256xf32>
    %152 = vector.shape_cast %151 : vector<1x256x256xf32> to vector<256x256xf32>
    %153 = vector.extract_strided_slice %110 {offsets = [0, 0], sizes = [4, 256], strides = [1, 1]} : vector<4x512xf32> to vector<4x256xf32>
    %cst_174 = arith.constant dense<0.000000e+00> : vector<4x256xf32>
    %154 = tpu.matmul %153, %152, %cst_174 {dimension_numbers = #tpu.dot_dimension_numbers<[1], [0], [0], [1], [0, 0, 1, 1], [], []>} : vector<4x256xf32>, vector<256x256xf32>, vector<4x256xf32> -> vector<4x256xf32>
    %c20 = arith.constant 20 : index
    %c0_175 = arith.constant 0 : index
    %155 = vector.load %arg13[%c20, %c0_175] : memref<36x512xf32, #tpu.memory_space<vmem>>, vector<4x256xf32>
    tpu.vector_store %arg13[%c20, %c0_175], %154 {strides = array<i32>} : memref<36x512xf32, #tpu.memory_space<vmem>>, vector<4x256xf32>,
    %156 = vector.extract_strided_slice %110 {offsets = [0, 256], sizes = [4, 256], strides = [1, 1]} : vector<4x512xf32> to vector<4x256xf32>
    %cst_176 = arith.constant dense<0.000000e+00> : vector<4x256xf32>
    %157 = tpu.matmul %156, %152, %cst_176 {dimension_numbers = #tpu.dot_dimension_numbers<[1], [0], [0], [1], [0, 0, 1, 1], [], []>} : vector<4x256xf32>, vector<256x256xf32>, vector<4x256xf32> -> vector<4x256xf32>
    %c20_177 = arith.constant 20 : index
    %c256_178 = arith.constant 256 : index
    %158 = vector.load %arg13[%c20_177, %c256_178] : memref<36x512xf32, #tpu.memory_space<vmem>>, vector<4x256xf32>
    tpu.vector_store %arg13[%c20_177, %c256_178], %157 {strides = array<i32>} : memref<36x512xf32, #tpu.memory_space<vmem>>, vector<4x256xf32>,
    %c6_179 = arith.constant 6 : index
    %c0_180 = arith.constant 0 : index
    %c0_181 = arith.constant 0 : index
    %159 = vector.load %arg3[%c6_179, %c0_180, %c0_181] : memref<9x256x256xf32, #tpu.memory_space<vmem>>, vector<1x256x256xf32>
    %160 = vector.shape_cast %159 : vector<1x256x256xf32> to vector<256x256xf32>
    %161 = vector.extract_strided_slice %110 {offsets = [0, 0], sizes = [4, 256], strides = [1, 1]} : vector<4x512xf32> to vector<4x256xf32>
    %cst_182 = arith.constant dense<0.000000e+00> : vector<4x256xf32>
    %162 = tpu.matmul %161, %160, %cst_182 {dimension_numbers = #tpu.dot_dimension_numbers<[1], [0], [0], [1], [0, 0, 1, 1], [], []>} : vector<4x256xf32>, vector<256x256xf32>, vector<4x256xf32> -> vector<4x256xf32>
    %c24_183 = arith.constant 24 : index
    %c0_184 = arith.constant 0 : index
    %163 = vector.load %arg13[%c24_183, %c0_184] : memref<36x512xf32, #tpu.memory_space<vmem>>, vector<4x256xf32>
    tpu.vector_store %arg13[%c24_183, %c0_184], %162 {strides = array<i32>} : memref<36x512xf32, #tpu.memory_space<vmem>>, vector<4x256xf32>,
    %164 = vector.extract_strided_slice %110 {offsets = [0, 256], sizes = [4, 256], strides = [1, 1]} : vector<4x512xf32> to vector<4x256xf32>
    %cst_185 = arith.constant dense<0.000000e+00> : vector<4x256xf32>
    %165 = tpu.matmul %164, %160, %cst_185 {dimension_numbers = #tpu.dot_dimension_numbers<[1], [0], [0], [1], [0, 0, 1, 1], [], []>} : vector<4x256xf32>, vector<256x256xf32>, vector<4x256xf32> -> vector<4x256xf32>
    %c24_186 = arith.constant 24 : index
    %c256_187 = arith.constant 256 : index
    %166 = vector.load %arg13[%c24_186, %c256_187] : memref<36x512xf32, #tpu.memory_space<vmem>>, vector<4x256xf32>
    tpu.vector_store %arg13[%c24_186, %c256_187], %165 {strides = array<i32>} : memref<36x512xf32, #tpu.memory_space<vmem>>, vector<4x256xf32>,
    %c7_188 = arith.constant 7 : index
    %c0_189 = arith.constant 0 : index
    %c0_190 = arith.constant 0 : index
    %167 = vector.load %arg3[%c7_188, %c0_189, %c0_190] : memref<9x256x256xf32, #tpu.memory_space<vmem>>, vector<1x256x256xf32>
    %168 = vector.shape_cast %167 : vector<1x256x256xf32> to vector<256x256xf32>
    %169 = vector.extract_strided_slice %110 {offsets = [0, 0], sizes = [4, 256], strides = [1, 1]} : vector<4x512xf32> to vector<4x256xf32>
    %cst_191 = arith.constant dense<0.000000e+00> : vector<4x256xf32>
    %170 = tpu.matmul %169, %168, %cst_191 {dimension_numbers = #tpu.dot_dimension_numbers<[1], [0], [0], [1], [0, 0, 1, 1], [], []>} : vector<4x256xf32>, vector<256x256xf32>, vector<4x256xf32> -> vector<4x256xf32>
    %c28 = arith.constant 28 : index
    %c0_192 = arith.constant 0 : index
    %171 = vector.load %arg13[%c28, %c0_192] : memref<36x512xf32, #tpu.memory_space<vmem>>, vector<4x256xf32>
    tpu.vector_store %arg13[%c28, %c0_192], %170 {strides = array<i32>} : memref<36x512xf32, #tpu.memory_space<vmem>>, vector<4x256xf32>,
    %172 = vector.extract_strided_slice %110 {offsets = [0, 256], sizes = [4, 256], strides = [1, 1]} : vector<4x512xf32> to vector<4x256xf32>
    %cst_193 = arith.constant dense<0.000000e+00> : vector<4x256xf32>
    %173 = tpu.matmul %172, %168, %cst_193 {dimension_numbers = #tpu.dot_dimension_numbers<[1], [0], [0], [1], [0, 0, 1, 1], [], []>} : vector<4x256xf32>, vector<256x256xf32>, vector<4x256xf32> -> vector<4x256xf32>
    %c28_194 = arith.constant 28 : index
    %c256_195 = arith.constant 256 : index
    %174 = vector.load %arg13[%c28_194, %c256_195] : memref<36x512xf32, #tpu.memory_space<vmem>>, vector<4x256xf32>
    tpu.vector_store %arg13[%c28_194, %c256_195], %173 {strides = array<i32>} : memref<36x512xf32, #tpu.memory_space<vmem>>, vector<4x256xf32>,
    %c8_196 = arith.constant 8 : index
    %c0_197 = arith.constant 0 : index
    %c0_198 = arith.constant 0 : index
    %175 = vector.load %arg3[%c8_196, %c0_197, %c0_198] : memref<9x256x256xf32, #tpu.memory_space<vmem>>, vector<1x256x256xf32>
    %176 = vector.shape_cast %175 : vector<1x256x256xf32> to vector<256x256xf32>
    %177 = vector.extract_strided_slice %110 {offsets = [0, 0], sizes = [4, 256], strides = [1, 1]} : vector<4x512xf32> to vector<4x256xf32>
    %cst_199 = arith.constant dense<0.000000e+00> : vector<4x256xf32>
    %178 = tpu.matmul %177, %176, %cst_199 {dimension_numbers = #tpu.dot_dimension_numbers<[1], [0], [0], [1], [0, 0, 1, 1], [], []>} : vector<4x256xf32>, vector<256x256xf32>, vector<4x256xf32> -> vector<4x256xf32>
    %c32_200 = arith.constant 32 : index
    %c0_201 = arith.constant 0 : index
    %179 = vector.load %arg13[%c32_200, %c0_201] : memref<36x512xf32, #tpu.memory_space<vmem>>, vector<4x256xf32>
    tpu.vector_store %arg13[%c32_200, %c0_201], %178 {strides = array<i32>} : memref<36x512xf32, #tpu.memory_space<vmem>>, vector<4x256xf32>,
    %180 = vector.extract_strided_slice %110 {offsets = [0, 256], sizes = [4, 256], strides = [1, 1]} : vector<4x512xf32> to vector<4x256xf32>
    %cst_202 = arith.constant dense<0.000000e+00> : vector<4x256xf32>
    %181 = tpu.matmul %180, %176, %cst_202 {dimension_numbers = #tpu.dot_dimension_numbers<[1], [0], [0], [1], [0, 0, 1, 1], [], []>} : vector<4x256xf32>, vector<256x256xf32>, vector<4x256xf32> -> vector<4x256xf32>
    %c32_203 = arith.constant 32 : index
    %c256_204 = arith.constant 256 : index
    %182 = vector.load %arg13[%c32_203, %c256_204] : memref<36x512xf32, #tpu.memory_space<vmem>>, vector<4x256xf32>
    tpu.vector_store %arg13[%c32_203, %c256_204], %181 {strides = array<i32>} : memref<36x512xf32, #tpu.memory_space<vmem>>, vector<4x256xf32>,
    %c0_205 = arith.constant 0 : index
    %c0_206 = arith.constant 0 : index
    %183 = vector.load %arg7[%c0_205, %c0_206] : memref<4x36xf32, #tpu.memory_space<vmem>>, vector<4x36xf32>
    %c0_207 = arith.constant 0 : index
    %c0_208 = arith.constant 0 : index
    %184 = vector.load %arg13[%c0_207, %c0_208] : memref<36x512xf32, #tpu.memory_space<vmem>>, vector<36x512xf32>
    %cst_209 = arith.constant dense<0.000000e+00> : vector<4x512xf32>
    %185 = tpu.matmul %183, %184, %cst_209 {dimension_numbers = #tpu.dot_dimension_numbers<[1], [0], [0], [1], [0, 0, 1, 1], [], []>} : vector<4x36xf32>, vector<36x512xf32>, vector<4x512xf32> -> vector<4x512xf32>
    %cst_210 = arith.constant dense<0.000000e+00> : vector<4xf32>
    %186 = vector.multi_reduction <add>, %185, %cst_210 [1] : vector<4x512xf32> to vector<4xf32>
    %187 = vector.shape_cast %186 : vector<4xf32> to vector<4x1xf32>
    %cst_211 = arith.constant 5.120000e+02 : f32
    %188 = vector.broadcast %cst_211 : f32 to vector<4x1xf32>
    %189 = arith.divf %187, %188 : vector<4x1xf32>
    %190 = arith.mulf %185, %185 : vector<4x512xf32>
    %cst_212 = arith.constant dense<0.000000e+00> : vector<4xf32>
    %191 = vector.multi_reduction <add>, %190, %cst_212 [1] : vector<4x512xf32> to vector<4xf32>
    %192 = vector.shape_cast %191 : vector<4xf32> to vector<4x1xf32>
    %cst_213 = arith.constant 5.120000e+02 : f32
    %193 = vector.broadcast %cst_213 : f32 to vector<4x1xf32>
    %194 = arith.divf %192, %193 : vector<4x1xf32>
    %195 = arith.mulf %189, %189 : vector<4x1xf32>
    %196 = arith.subf %194, %195 : vector<4x1xf32>
    %c0_214 = arith.constant 0 : index
    %c0_215 = arith.constant 0 : index
    %197 = vector.load %arg8[%c0_214, %c0_215] : memref<4x1xf32, #tpu.memory_space<vmem>>, vector<4x1xf32>
    %cst_216 = arith.constant 9.99999974E-6 : f32
    %198 = vector.broadcast %cst_216 : f32 to vector<4x1xf32>
    %199 = arith.addf %196, %198 : vector<4x1xf32>
    %200 = math.rsqrt %199 : vector<4x1xf32>
    %201 = arith.mulf %197, %200 : vector<4x1xf32>
    %c0_217 = arith.constant 0 : index
    %c0_218 = arith.constant 0 : index
    %202 = vector.load %arg9[%c0_217, %c0_218] : memref<4x1xf32, #tpu.memory_space<vmem>>, vector<4x1xf32>
    %203 = arith.mulf %189, %201 : vector<4x1xf32>
    %204 = arith.subf %202, %203 : vector<4x1xf32>
    %205 = vector.broadcast %201 : vector<4x1xf32> to vector<4x512xf32>
    %206 = arith.mulf %185, %205 : vector<4x512xf32>
    %207 = vector.broadcast %204 : vector<4x1xf32> to vector<4x512xf32>
    %208 = arith.addf %206, %207 : vector<4x512xf32>
    %cst_219 = arith.constant 0.000000e+00 : f32
    %209 = vector.broadcast %cst_219 : f32 to vector<4x512xf32>
    %210 = arith.subf %209, %208 : vector<4x512xf32>
    %211 = math.exp %210 : vector<4x512xf32>
    %cst_220 = arith.constant 1.000000e+00 : f32
    %212 = vector.broadcast %cst_220 : f32 to vector<4x512xf32>
    %213 = arith.addf %212, %211 : vector<4x512xf32>
    %cst_221 = arith.constant 1.000000e+00 : f32
    %214 = vector.broadcast %cst_221 : f32 to vector<4x512xf32>
    %215 = arith.divf %214, %213 : vector<4x512xf32>
    %c0_222 = arith.constant 0 : index
    %c0_223 = arith.constant 0 : index
    %216 = vector.load %arg10[%c0_222, %c0_223] : memref<4x512xf32, #tpu.memory_space<vmem>>, vector<4x512xf32>
    tpu.vector_store %arg10[%c0_222, %c0_223], %215 {strides = array<i32>} : memref<4x512xf32, #tpu.memory_space<vmem>>, vector<4x512xf32>,
    return
  }
}

</mosaic_0001>

<bundles_post_ra>
// kernel: tpu_custom_call.1
= control target key start
LH: loop header
LB: loop body
LE: loop exit
PB: predicated region body
PF: predicated region fallthrough
CT: control target
= control target key end

     0   :  { %15 = vsyncpa [#allocation6], 0  ;;  %s7816_s0 = inlined_call_operand.hbm [shape: f32[4,128], index: 0, kind: input, shape index: {}]   ;;  %s7817_s1 = inlined_call_operand.hbm [shape: f32[4,512], index: 1, kind: input, shape index: {}]   ;;  %s7818_s2 = inlined_call_operand.hbm [shape: f32[128,512], index: 2, kind: input, shape index: {}]   ;;  %s7819_s3 = inlined_call_operand.hbm [shape: f32[9,256,256], index: 3, kind: input, shape index: {}]   ;;  %s7820_s4 = inlined_call_operand.hbm [shape: f32[4,72], index: 4, kind: input, shape index: {}]   ;;  %s7821_s5 = inlined_call_operand.vmem [shape: f32[4,1], index: 5, kind: input, shape index: {}]   ;;  %s7822_s6 = inlined_call_operand.vmem [shape: f32[4,1], index: 6, kind: input, shape index: {}]   ;;  %s7823_s7 = inlined_call_operand.hbm [shape: f32[4,36], index: 7, kind: input, shape index: {}]   ;;  %s7824_s8 = inlined_call_operand.vmem [shape: f32[4,1], index: 8, kind: input, shape index: {}]   ;;  %s7825_s9 = inlined_call_operand.vmem [shape: f32[4,1], index: 9, kind: input, shape index: {}]   ;;  %s7826_s10 = inlined_call_operand.hbm [shape: f32[4,512], index: 10, kind: output, shape index: {}]  }
   0x1   :  { %16 = vsyncpa [#allocation9], 0 }
   0x2   :  { %17 = vsyncpa [#allocation12], 0 }
   0x3   :  { %18 = vsyncpa [#allocation15], 0 }
   0x4   :  { %19 = vsyncpa [#allocation7], 0  ;;  %s7400_s13 = smov [#allocation8]   ;;  %s7401_s15 = smov [#allocation11]  }
   0x5   :  { %s36_s14 = sshll.u32 %s7400_s13, 4  ;;  %s57_s16 = sshll.u32 %s7401_s15, 4  ;;  %s37_s14 = int_to_ptr.vmem [resolvable:$true] %s36_s14  ;;  %s7468_s16 = int_to_ptr.vmem [resolvable:$true] %s57_s16 }
   0x6   :  { %s7236_s19 = scalar_lea.hbm %s7817_s1, 256 }
   0x7   :  { %p7237_p0 = scmp.ne.s32.totalorder %s7817_s1, %s7236_s19  ;;  %p7240_p1 = scmp.lt.u32.totalorder %s7236_s19, %s7817_s1 }
   0x9   :  { %p7242_p2 = pnand %p7240_p1, %p7237_p0 }
   0xb   :  { %7245 = shalt.err (!%p7242_p2)
}
   0xc   :  { %s7246_s24 = scalar_lea.vmem %s37_s14, 256  ;;  %p7251_p4 = scmp.lt.s32.totalorder %s37_s14, %s37_s14 }
   0xd   :  { %p7247_p3 = scmp.ne.s32.totalorder %s37_s14, %s7246_s24  ;;  %p7252_p5 = scmp.lt.s32.totalorder %s7246_s24, %s7246_s24 }
   0xf   :  { %p7253_p6 = por %p7252_p5, %p7251_p4 }
  0x11   :  { %p7254_p7 = pnand %p7253_p6, %p7247_p3 }
  0x13   :  { %7257 = shalt.err (!%p7254_p7)
}
  0x14   :  { %39 = dma.hbm_to_vmem [thread:$0]  %s7817_s1, 256, %s37_s14, [#allocation9]  }
  0x15   :  { %s7258_s29 = scalar_lea.hbm %s7819_s3, 73728 }
  0x16   :  { %p7259_p8 = scmp.ne.s32.totalorder %s7819_s3, %s7258_s29  ;;  %p7262_p9 = scmp.lt.u32.totalorder %s7258_s29, %s7819_s3 }
  0x18   :  { %p7264_p10 = pnand %p7262_p9, %p7259_p8 }
  0x1a   :  { %7267 = shalt.err (!%p7264_p10)
}
  0x1b   :  { %s7268_s15 = scalar_lea.vmem %s7468_s16, 73728  ;;  %p7273_p12 = scmp.lt.s32.totalorder %s7468_s16, %s7468_s16 }
  0x1c   :  { %p7269_p11 = scmp.ne.s32.totalorder %s7468_s16, %s7268_s15  ;;  %p7274_p13 = scmp.lt.s32.totalorder %s7268_s15, %s7268_s15 }
  0x1e   :  { %p7275_p0 = por %p7274_p13, %p7273_p12 }
  0x20   :  { %p7276_p1 = pnand %p7275_p0, %p7269_p11 }
  0x22   :  { %7279 = shalt.err (!%p7276_p1)
}
  0x23   :  { %s7402_s1 = smov 256   ;;  %s7403_s14 = smov 16  }
  0x24   :  { %63 = dma.hbm_to_vmem [thread:$0]  %s7819_s3, 73728, %s7468_s16, [#allocation12], %s7402_s1, %s7402_s1, %s7403_s14  }
  0x25   :  { %s7404_s19 = smov [#allocation5]   ;;  %s7405_s21 = smov [#allocation10]  }
  0x26   :  { %s26_s20 = sshll.u32 %s7404_s19, 4  ;;  %s45_s22 = sshll.u32 %s7405_s21, 4  ;;  %s27_s20 = int_to_ptr.vmem [resolvable:$true] %s26_s20  ;;  %s7499_s22 = int_to_ptr.vmem [resolvable:$true] %s45_s22 }
  0x27   :  { %s7280_s25 = scalar_lea.hbm %s7816_s0, 64 }
  0x28   :  { %p7281_p2 = scmp.ne.s32.totalorder %s7816_s0, %s7280_s25  ;;  %p7284_p3 = scmp.lt.u32.totalorder %s7280_s25, %s7816_s0 }
  0x2a   :  { %p7286_p4 = pnand %p7284_p3, %p7281_p2 }
  0x2c   :  { %7289 = shalt.err (!%p7286_p4)
}
  0x2d   :  { %s7290_s3 = scalar_lea.vmem %s27_s20, 64  ;;  %p7295_p6 = scmp.lt.s32.totalorder %s27_s20, %s27_s20 }
  0x2e   :  { %p7291_p5 = scmp.ne.s32.totalorder %s27_s20, %s7290_s3  ;;  %p7296_p7 = scmp.lt.s32.totalorder %s7290_s3, %s7290_s3 }
  0x30   :  { %p7297_p8 = por %p7296_p7, %p7295_p6 }
  0x32   :  { %p7298_p9 = pnand %p7297_p8, %p7291_p5 }
  0x34   :  { %7301 = shalt.err (!%p7298_p9)
}
  0x35   :  { %29 = dma.hbm_to_vmem [thread:$0]  %s7816_s0, 64, %s27_s20, [#allocation6]  }
  0x36   :  { %s7302_s13 = scalar_lea.hbm %s7818_s2, 8192 }
  0x37   :  { %p7303_p10 = scmp.ne.s32.totalorder %s7818_s2, %s7302_s13  ;;  %p7306_p11 = scmp.lt.u32.totalorder %s7302_s13, %s7818_s2 }
  0x39   :  { %p7308_p12 = pnand %p7306_p11, %p7303_p10 }
  0x3b   :  { %7311 = shalt.err (!%p7308_p12)
}
  0x3c   :  { %s7312_s18 = scalar_lea.vmem %s7499_s22, 8192  ;;  %p7317_p0 = scmp.lt.s32.totalorder %s7499_s22, %s7499_s22 }
  0x3d   :  { %p7313_p13 = scmp.ne.s32.totalorder %s7499_s22, %s7312_s18  ;;  %p7318_p1 = scmp.lt.s32.totalorder %s7312_s18, %s7312_s18 }
  0x3f   :  { %p7319_p2 = por %p7318_p1, %p7317_p0 }
  0x41   :  { %p7320_p3 = pnand %p7319_p2, %p7313_p13 }
  0x43   :  { %7323 = shalt.err (!%p7320_p3)
}
  0x44   :  { %s7406_s0 = smov 512   ;;  %s7407_s19 = smov 32  }
  0x45   :  { %51 = dma.hbm_to_vmem [thread:$0]  %s7818_s2, 8192, %s7499_s22, [#allocation9], %s7406_s0, %s7406_s0, %s7407_s19  }
  0x46   :  { %s7408_s23 = smov [#allocation13]   ;;  %s7409_s25 = smov [#allocation14]  }
  0x47   :  { %s70_s24 = sshll.u32 %s7408_s23, 4  ;;  %s84_s26 = sshll.u32 %s7409_s25, 4  ;;  %s71_s24 = int_to_ptr.vmem [resolvable:$true] %s70_s24  ;;  %s85_s26 = int_to_ptr.vmem [resolvable:$true] %s84_s26 }
  0x48   :  { %s7324_s29 = scalar_lea.hbm %s7820_s4, 64 }
  0x49   :  { %p7325_p4 = scmp.ne.s32.totalorder %s7820_s4, %s7324_s29  ;;  %p7328_p5 = scmp.lt.u32.totalorder %s7324_s29, %s7820_s4 }
  0x4b   :  { %p7330_p6 = pnand %p7328_p5, %p7325_p4 }
  0x4d   :  { %7333 = shalt.err (!%p7330_p6)
}
  0x4e   :  { %s7334_s2 = scalar_lea.vmem %s71_s24, 64  ;;  %p7339_p8 = scmp.lt.s32.totalorder %s71_s24, %s71_s24 }
  0x4f   :  { %p7335_p7 = scmp.ne.s32.totalorder %s71_s24, %s7334_s2  ;;  %p7340_p9 = scmp.lt.s32.totalorder %s7334_s2, %s7334_s2 }
  0x51   :  { %p7341_p10 = por %p7340_p9, %p7339_p8 }
  0x53   :  { %p7342_p11 = pnand %p7341_p10, %p7335_p7 }
  0x55   :  { %7345 = shalt.err (!%p7342_p11)
}
  0x56   :  { %73 = dma.hbm_to_vmem [thread:$0]  %s7820_s4, 64, %s71_s24, [#allocation12]  }
  0x57   :  { %s7346_s1 = scalar_lea.hbm %s7823_s7, 64 }
  0x58   :  { %p7347_p12 = scmp.ne.s32.totalorder %s7823_s7, %s7346_s1  ;;  %p7350_p13 = scmp.lt.u32.totalorder %s7346_s1, %s7823_s7 }
  0x5a   :  { %p7352_p0 = pnand %p7350_p13, %p7347_p12 }
  0x5c   :  { %7355 = shalt.err (!%p7352_p0)
}
  0x5d   :  { %s7356_s19 = scalar_lea.vmem %s85_s26, 64  ;;  %p7361_p2 = scmp.lt.s32.totalorder %s85_s26, %s85_s26 }
  0x5e   :  { %p7357_p1 = scmp.ne.s32.totalorder %s85_s26, %s7356_s19  ;;  %p7362_p3 = scmp.lt.s32.totalorder %s7356_s19, %s7356_s19 }
  0x60   :  { %p7363_p4 = por %p7362_p3, %p7361_p2 }
  0x62   :  { %p7364_p5 = pnand %p7363_p4, %p7357_p1 }
  0x64   :  { %7367 = shalt.err (!%p7364_p5)
}
  0x65   :  { %87 = dma.hbm_to_vmem [thread:$0]  %s7823_s7, 64, %s85_s26, [#allocation15]  }
  0x66   :  { %7390 = dma.done.wait [#allocation6], 64  }
  0x67   :  { %7391 = vsyncadd [#allocation6], 4294967232 }
  0x68   :  { %7392 = dma.done.wait [#allocation9], 8448  }
  0x69   :  { %7393 = vsyncadd [#allocation9], 4294958848 }
  0x6a   :  { %7394 = dma.done.wait [#allocation12], 73792  }
  0x6b   :  { %7395 = vsyncadd [#allocation12], 4294893504 }
  0x6c   :  { %7396 = dma.done.wait [#allocation15], 64  }
  0x6d   :  { %7397 = vsyncadd [#allocation15], 4294967232  ;;  %v7410_v0 = vmov 0.0   ;;  %v112_v1 = vld [vmem:[#allocation10 + $0x8] sm:$0xff]  ;;  %v114_v3 = vld [vmem:[#allocation10 + $0x18] sm:$0xff]  ;;  %vm2316_vm0 = vcmask 588800  }
  0x6e   :  { %239 = vmatprep.mubr.f32.mxu0 %v7410_v0  ;;  %310 = vmatprep.mubr.f32.mxu1 %v7410_v0  ;;  %v116_v2 = vld [vmem:[#allocation10 + $0x28] sm:$0xff]  ;;  %v118_v5 = vld [vmem:[#allocation10 + $0x38] sm:$0xff]  ;;  %v111_v6 = vld [vmem:[#allocation10] sm:$0xff]  ;;  %vm2462_vm1 = vcmask 1043456   ;;  %vm4498_vm2 = vcmask 293888  }
  0x6f   :  { %v4767_v4 = vpack.c.bf16 %v116_v2, %v112_v1  ;;  %v115_v7 = vld [vmem:[#allocation10 + $0x20] sm:$0xff]  ;;  %v4799_v8 = vpack.c.bf16 %v118_v5, %v114_v3  ;;  %v113_v10 = vld [vmem:[#allocation10 + $0x10] sm:$0xff]  ;;  %v120_v12 = vld [vmem:[#allocation10 + $0x48] sm:$0xff] }
  0x70   :  { %v4769_v9 = vpack.c.bf16 %v115_v7, %v111_v6  ;;  %v117_v11 = vld [vmem:[#allocation10 + $0x30] sm:$0xff]  ;;  %v124_v14 = vld [vmem:[#allocation10 + $0x68] sm:$0xff]  ;;  %v122_v15 = vld [vmem:[#allocation10 + $0x58] sm:$0xff] }
  0x71   :  { %4768 = vmatprep.subr.bf16.mxu0 %v4767_v4  ;;  %v4801_v13 = vpack.c.bf16 %v117_v11, %v113_v10  ;;  %v126_v16 = vld [vmem:[#allocation10 + $0x78] sm:$0xff]  ;;  %4800 = vmatprep.subr.bf16.mxu1 %v4799_v8  ;;  %v4771_v17 = vpack.c.bf16 %v124_v14, %v120_v12  ;;  %v119_v19 = vld [vmem:[#allocation10 + $0x40] sm:$0xff]  ;;  %v121_v21 = vld [vmem:[#allocation10 + $0x50] sm:$0xff] }
  0x72   :  { %4770 = vmatpush1.bf16.msra.mxu0 %v4769_v9  ;;  %v4803_v18 = vpack.c.bf16 %v126_v16, %v122_v15  ;;  %v123_v20 = vld [vmem:[#allocation10 + $0x60] sm:$0xff]  ;;  %v125_v23 = vld [vmem:[#allocation10 + $0x70] sm:$0xff]  ;;  %v128_v24 = vld [vmem:[#allocation10 + $0x88] sm:$0xff] }
  0x73   :  { %4802 = vmatpush1.bf16.msra.mxu1 %v4801_v13  ;;  %v4773_v22 = vpack.c.bf16 %v123_v20, %v119_v19  ;;  %v132_v25 = vld [vmem:[#allocation10 + $0xa8] sm:$0xff]  ;;  %4772 = vmatprep.subr.bf16.mxu0 %v4771_v17  ;;  %v4805_v26 = vpack.c.bf16 %v125_v23, %v121_v21  ;;  %v130_v28 = vld [vmem:[#allocation10 + $0x98] sm:$0xff]  ;;  %v127_v30 = vld [vmem:[#allocation10 + $0x80] sm:$0xff] }
  0x74   :  { %4804 = vmatprep.subr.bf16.mxu1 %v4803_v18  ;;  %v4775_v27 = vpack.c.bf16 %v132_v25, %v128_v24  ;;  %v134_v29 = vld [vmem:[#allocation10 + $0xb8] sm:$0xff]  ;;  %v131_v32 = vld [vmem:[#allocation10 + $0xa0] sm:$0xff]  ;;  %v129_v33 = vld [vmem:[#allocation10 + $0x90] sm:$0xff] }
  0x75   :  { %v4807_v31 = vpack.c.bf16 %v134_v29, %v130_v28  ;;  %v133_v34 = vld [vmem:[#allocation10 + $0xb0] sm:$0xff]  ;;  %v4777_v35 = vpack.c.bf16 %v131_v32, %v127_v30  ;;  %v136_v36 = vld [vmem:[#allocation10 + $0xc8] sm:$0xff]  ;;  %v138_v38 = vld [vmem:[#allocation10 + $0xd8] sm:$0xff] }
  0x76   :  { %4774 = vmatpush1.bf16.msra.mxu0 %v4773_v22  ;;  %v140_v37 = vld [vmem:[#allocation10 + $0xe8] sm:$0xff]  ;;  %v4809_v39 = vpack.c.bf16 %v133_v34, %v129_v33  ;;  %v142_v41 = vld [vmem:[#allocation10 + $0xf8] sm:$0xff]  ;;  %v135_v42 = vld [vmem:[#allocation10 + $0xc0] sm:$0xff] }
  0x77   :  { %4806 = vmatpush1.bf16.msra.mxu1 %v4805_v26  ;;  %4776 = vmatprep.subr.bf16.mxu0 %v4775_v27  ;;  %v4779_v40 = vpack.c.bf16 %v140_v37, %v136_v36  ;;  %v139_v43 = vld [vmem:[#allocation10 + $0xe0] sm:$0xff]  ;;  %v4811_v44 = vpack.c.bf16 %v142_v41, %v138_v38  ;;  %v137_v45 = vld [vmem:[#allocation10 + $0xd0] sm:$0xff]  ;;  %v144_v47 = vld [vmem:[#allocation10 + $0x108] sm:$0xff] }
  0x78   :  { %4808 = vmatprep.subr.bf16.mxu1 %v4807_v31  ;;  %v141_v46 = vld [vmem:[#allocation10 + $0xf0] sm:$0xff]  ;;  %v148_v48 = vld [vmem:[#allocation10 + $0x128] sm:$0xff]  ;;  %v146_v49 = vld [vmem:[#allocation10 + $0x118] sm:$0xff]  ;;  %v4781_v51 = vpack.c.bf16 %v139_v43, %v135_v42 }
  0x79   :  { %v150_v50 = vld [vmem:[#allocation10 + $0x138] sm:$0xff]  ;;  %v4813_v52 = vpack.c.bf16 %v141_v46, %v137_v45  ;;  %v4783_v53 = vpack.c.bf16 %v148_v48, %v144_v47  ;;  %v143_v54 = vld [vmem:[#allocation10 + $0x100] sm:$0xff]  ;;  %v145_v56 = vld [vmem:[#allocation10 + $0x110] sm:$0xff] }
  0x7a   :  { %4778 = vmatpush1.bf16.msra.mxu0 %v4777_v35  ;;  %v147_v55 = vld [vmem:[#allocation10 + $0x120] sm:$0xff]  ;;  %v4815_v57 = vpack.c.bf16 %v150_v50, %v146_v49  ;;  %v149_v58 = vld [vmem:[#allocation10 + $0x130] sm:$0xff]  ;;  %v152_v59 = vld [vmem:[#allocation10 + $0x148] sm:$0xff] }
  0x7b   :  { %4810 = vmatpush1.bf16.msra.mxu1 %v4809_v39  ;;  %4780 = vmatprep.subr.bf16.mxu0 %v4779_v40  ;;  %v156_v60 = vld [vmem:[#allocation10 + $0x168] sm:$0xff]  ;;  %v154_v61 = vld [vmem:[#allocation10 + $0x158] sm:$0xff]  ;;  %v4785_v63 = vpack.c.bf16 %v147_v55, %v143_v54  ;;  %v4817_v1 = vpack.c.bf16 %v149_v58, %v145_v56  ;;  %v151_v3 = vld [vmem:[#allocation10 + $0x140] sm:$0xff] }
  0x7c   :  { %4812 = vmatprep.subr.bf16.mxu1 %v4811_v44  ;;  %v158_v62 = vld [vmem:[#allocation10 + $0x178] sm:$0xff]  ;;  %v4787_v2 = vpack.c.bf16 %v156_v60, %v152_v59  ;;  %v155_v4 = vld [vmem:[#allocation10 + $0x160] sm:$0xff]  ;;  %v153_v5 = vld [vmem:[#allocation10 + $0x150] sm:$0xff] }
  0x7d   :  { %v4819_v6 = vpack.c.bf16 %v158_v62, %v154_v61  ;;  %v157_v7 = vld [vmem:[#allocation10 + $0x170] sm:$0xff]  ;;  %v160_v8 = vld [vmem:[#allocation10 + $0x188] sm:$0xff]  ;;  %v162_v10 = vld [vmem:[#allocation10 + $0x198] sm:$0xff]  ;;  %v4789_v12 = vpack.c.bf16 %v155_v4, %v151_v3 }
  0x7e   :  { %4782 = vmatpush1.bf16.msra.mxu0 %v4781_v51  ;;  %v164_v9 = vld [vmem:[#allocation10 + $0x1a8] sm:$0xff]  ;;  %v166_v11 = vld [vmem:[#allocation10 + $0x1b8] sm:$0xff]  ;;  %v4821_v13 = vpack.c.bf16 %v157_v7, %v153_v5  ;;  %v159_v15 = vld [vmem:[#allocation10 + $0x180] sm:$0xff] }
  0x7f   :  { %4814 = vmatpush1.bf16.msra.mxu1 %v4813_v52  ;;  %4784 = vmatprep.subr.bf16.mxu0 %v4783_v53  ;;  %v4791_v14 = vpack.c.bf16 %v164_v9, %v160_v8  ;;  %v163_v16 = vld [vmem:[#allocation10 + $0x1a0] sm:$0xff]  ;;  %v161_v17 = vld [vmem:[#allocation10 + $0x190] sm:$0xff]  ;;  %v4823_v18 = vpack.c.bf16 %v166_v11, %v162_v10  ;;  %v168_v20 = vld [vmem:[#allocation10 + $0x1c8] sm:$0xff] }
  0x80   :  { %4816 = vmatprep.subr.bf16.mxu1 %v4815_v57  ;;  %v165_v19 = vld [vmem:[#allocation10 + $0x1b0] sm:$0xff]  ;;  %v172_v21 = vld [vmem:[#allocation10 + $0x1e8] sm:$0xff]  ;;  %v170_v22 = vld [vmem:[#allocation10 + $0x1d8] sm:$0xff]  ;;  %v4793_v24 = vpack.c.bf16 %v163_v16, %v159_v15 }
  0x81   :  { %v174_v23 = vld [vmem:[#allocation10 + $0x1f8] sm:$0xff]  ;;  %v4825_v25 = vpack.c.bf16 %v165_v19, %v161_v17  ;;  %v4795_v26 = vpack.c.bf16 %v172_v21, %v168_v20  ;;  %v167_v27 = vld [vmem:[#allocation10 + $0x1c0] sm:$0xff]  ;;  %v169_v29 = vld [vmem:[#allocation10 + $0x1d0] sm:$0xff] }
  0x82   :  { %4786 = vmatpush1.bf16.msra.mxu0 %v4785_v63  ;;  %v171_v28 = vld [vmem:[#allocation10 + $0x1e0] sm:$0xff]  ;;  %v4827_v30 = vpack.c.bf16 %v174_v23, %v170_v22  ;;  %v173_v31 = vld [vmem:[#allocation10 + $0x1f0] sm:$0xff]  ;;  %v346_v32 = vld [vmem:[#allocation11 + $0x8] sm:$0xff] }
  0x83   :  { %4818 = vmatpush1.bf16.msra.mxu1 %v4817_v1  ;;  %4788 = vmatprep.subr.bf16.mxu0 %v4787_v2  ;;  %v348_v33 = vld [vmem:[#allocation11 + $0x18] sm:$0xff]  ;;  %v4797_v34 = vpack.c.bf16 %v171_v28, %v167_v27  ;;  %v4829_v35 = vpack.c.bf16 %v173_v31, %v169_v29  ;;  %v345_v37 = vld [vmem:[#allocation11] sm:$0xff]  ;;  %v347_v38 = vld [vmem:[#allocation11 + $0x10] sm:$0xff] }
  0x84   :  { %4820 = vmatprep.subr.bf16.mxu1 %v4819_v6  ;;  %v4831_v36 = vpack.c.bf16 %v348_v33, %v346_v32  ;;  %v350_v39 = vld [vmem:[#allocation11 + $0x28] sm:$0xff]  ;;  %v352_v40 = vld [vmem:[#allocation11 + $0x38] sm:$0xff]  ;;  %v4833_v42 = vpack.c.bf16 %v347_v38, %v345_v37  ;;  %v349_v44 = vld [vmem:[#allocation11 + $0x20] sm:$0xff] }
  0x85   :  { %v110_v41 = vld [vmem:[#allocation5] sm:$0xf]  ;;  %v4835_v43 = vpack.c.bf16 %v352_v40, %v350_v39  ;;  %v351_v45 = vld [vmem:[#allocation11 + $0x30] sm:$0xff]  ;;  %v356_v47 = vld [vmem:[#allocation11 + $0x58] sm:$0xff] }
  0x86   :  { %4790 = vmatpush1.bf16.msra.mxu0 %v4789_v12  ;;  %v354_v46 = vld [vmem:[#allocation11 + $0x48] sm:$0xff]  ;;  %v4837_v48 = vpack.c.bf16 %v351_v45, %v349_v44  ;;  %v353_v50 = vld [vmem:[#allocation11 + $0x40] sm:$0xff]  ;;  %v355_v51 = vld [vmem:[#allocation11 + $0x50] sm:$0xff] }
  0x87   :  { %4822 = vmatpush1.bf16.msra.mxu1 %v4821_v13  ;;  %4792 = vmatprep.subr.bf16.mxu0 %v4791_v14  ;;  %v4839_v49 = vpack.c.bf16 %v356_v47, %v354_v46  ;;  %v358_v52 = vld [vmem:[#allocation11 + $0x68] sm:$0xff]  ;;  %v360_v53 = vld [vmem:[#allocation11 + $0x78] sm:$0xff]  ;;  %v4841_v54 = vpack.c.bf16 %v355_v51, %v353_v50  ;;  %v357_v56 = vld [vmem:[#allocation11 + $0x60] sm:$0xff] }
  0x88   :  { %4824 = vmatprep.subr.bf16.mxu1 %v4823_v18  ;;  %v4843_v55 = vpack.c.bf16 %v360_v53, %v358_v52  ;;  %v359_v57 = vld [vmem:[#allocation11 + $0x70] sm:$0xff]  ;;  %v362_v58 = vld [vmem:[#allocation11 + $0x88] sm:$0xff]  ;;  %v364_v59 = vld [vmem:[#allocation11 + $0x98] sm:$0xff] }
  0x89   :  { %v4845_v60 = vpack.c.bf16 %v359_v57, %v357_v56  ;;  %v4847_v61 = vpack.c.bf16 %v364_v59, %v362_v58  ;;  %v361_v62 = vld [vmem:[#allocation11 + $0x80] sm:$0xff]  ;;  %v363_v63 = vld [vmem:[#allocation11 + $0x90] sm:$0xff]  ;;  %v366_v1 = vld [vmem:[#allocation11 + $0xa8] sm:$0xff] }
  0x8a   :  { %4794 = vmatpush1.bf16.msra.mxu0 %v4793_v24  ;;  %v368_v2 = vld [vmem:[#allocation11 + $0xb8] sm:$0xff]  ;;  %v4849_v3 = vpack.c.bf16 %v363_v63, %v361_v62  ;;  %v365_v5 = vld [vmem:[#allocation11 + $0xa0] sm:$0xff]  ;;  %v367_v6 = vld [vmem:[#allocation11 + $0xb0] sm:$0xff] }
  0x8b   :  { %4826 = vmatpush1.bf16.msra.mxu1 %v4825_v25  ;;  %4796 = vmatprep.subr.bf16.mxu0 %v4795_v26  ;;  %v4851_v4 = vpack.c.bf16 %v368_v2, %v366_v1  ;;  %v370_v7 = vld [vmem:[#allocation11 + $0xc8] sm:$0xff]  ;;  %v372_v8 = vld [vmem:[#allocation11 + $0xd8] sm:$0xff]  ;;  %v4853_v9 = vpack.c.bf16 %v367_v6, %v365_v5  ;;  %v369_v11 = vld [vmem:[#allocation11 + $0xc0] sm:$0xff] }
  0x8c   :  { %4828 = vmatprep.subr.bf16.mxu1 %v4827_v30  ;;  %v4855_v10 = vpack.c.bf16 %v372_v8, %v370_v7  ;;  %v371_v12 = vld [vmem:[#allocation11 + $0xd0] sm:$0xff]  ;;  %v374_v13 = vld [vmem:[#allocation11 + $0xe8] sm:$0xff]  ;;  %v376_v14 = vld [vmem:[#allocation11 + $0xf8] sm:$0xff] }
  0x8d   :  { %v4857_v15 = vpack.c.bf16 %v371_v12, %v369_v11  ;;  %v4859_v16 = vpack.c.bf16 %v376_v14, %v374_v13  ;;  %v373_v17 = vld [vmem:[#allocation11 + $0xe0] sm:$0xff]  ;;  %v375_v18 = vld [vmem:[#allocation11 + $0xf0] sm:$0xff]  ;;  %v378_v19 = vld [vmem:[#allocation11 + $0x108] sm:$0xff] }
  0x8e   :  { %4798 = vmatpush1.bf16.msra.mxu0 %v4797_v34  ;;  %v380_v20 = vld [vmem:[#allocation11 + $0x118] sm:$0xff]  ;;  %v4861_v21 = vpack.c.bf16 %v375_v18, %v373_v17  ;;  %v377_v23 = vld [vmem:[#allocation11 + $0x100] sm:$0xff]  ;;  %v379_v24 = vld [vmem:[#allocation11 + $0x110] sm:$0xff] }
  0x8f   :  { %4830 = vmatpush1.bf16.msra.mxu1 %v4829_v35  ;;  %4832 = vmatprep.subr.bf16.mxu0 %v4831_v36  ;;  %v4863_v22 = vpack.c.bf16 %v380_v20, %v378_v19  ;;  %v382_v25 = vld [vmem:[#allocation11 + $0x128] sm:$0xff]  ;;  %v384_v26 = vld [vmem:[#allocation11 + $0x138] sm:$0xff]  ;;  %v4865_v27 = vpack.c.bf16 %v379_v24, %v377_v23  ;;  %v381_v29 = vld [vmem:[#allocation11 + $0x120] sm:$0xff] }
  0x90   :  { %4896 = vmatprep.subr.bf16.mxu1 %v4831_v36  ;;  %v4867_v28 = vpack.c.bf16 %v384_v26, %v382_v25  ;;  %v383_v30 = vld [vmem:[#allocation11 + $0x130] sm:$0xff]  ;;  %v386_v31 = vld [vmem:[#allocation11 + $0x148] sm:$0xff]  ;;  %v388_v32 = vld [vmem:[#allocation11 + $0x158] sm:$0xff] }
  0x91   :  { %240 = vmatmul.mubr.f32.vlgmr.msra.gmra.mrb[0].mxu0 %v110_v41  ;;  %v4869_v33 = vpack.c.bf16 %v383_v30, %v381_v29  ;;  %v4871_v34 = vpack.c.bf16 %v388_v32, %v386_v31  ;;  %v385_v35 = vld [vmem:[#allocation11 + $0x140] sm:$0xff]  ;;  %v387_v36 = vld [vmem:[#allocation11 + $0x150] sm:$0xff]  ;;  %v390_v37 = vld [vmem:[#allocation11 + $0x168] sm:$0xff] }
  0x92   :  { %311 = vmatmul.mubr.f32.vlgmr.msra.gmra.mrb[0].mxu1 %v110_v41  ;;  %4834 = vmatpush1.bf16.msra.mxu0 %v4833_v42  ;;  %v392_v38 = vld [vmem:[#allocation11 + $0x178] sm:$0xff]  ;;  %v4873_v39 = vpack.c.bf16 %v387_v36, %v385_v35  ;;  %v389_v41 = vld [vmem:[#allocation11 + $0x160] sm:$0xff]  ;;  %v398_v50 = vld [vmem:[#allocation11 + $0x1a8] sm:$0xff] }
  0x93   :  { %4898 = vmatpush1.bf16.msra.mxu1 %v4833_v42  ;;  %4836 = vmatprep.subr.bf16.mxu0 %v4835_v43  ;;  %v4875_v40 = vpack.c.bf16 %v392_v38, %v390_v37  ;;  %v391_v42 = vld [vmem:[#allocation11 + $0x170] sm:$0xff]  ;;  %v396_v44 = vld [vmem:[#allocation11 + $0x198] sm:$0xff]  ;;  %v393_v47 = vld [vmem:[#allocation11 + $0x180] sm:$0xff] }
  0x94   :  { %4900 = vmatprep.subr.bf16.mxu1 %v4835_v43  ;;  %v394_v43 = vld [vmem:[#allocation11 + $0x188] sm:$0xff]  ;;  %v4877_v45 = vpack.c.bf16 %v391_v42, %v389_v41  ;;  %v400_v51 = vld [vmem:[#allocation11 + $0x1b8] sm:$0xff]  ;;  %v397_v53 = vld [vmem:[#allocation11 + $0x1a0] sm:$0xff] }
  0x95   :  { %v4879_v46 = vpack.c.bf16 %v396_v44, %v394_v43  ;;  %v4883_v52 = vpack.c.bf16 %v400_v51, %v398_v50  ;;  %v402_v56 = vld [vmem:[#allocation11 + $0x1c8] sm:$0xff]  ;;  %v404_v57 = vld [vmem:[#allocation11 + $0x1d8] sm:$0xff]  ;;  %v317_v58 = vld [vmem:[#allocation8] sm:$0xff] }
  0x96   :  { %4838 = vmatpush1.bf16.msra.mxu0 %v4837_v48  ;;  %v4887_v59 = vpack.c.bf16 %v404_v57, %v402_v56  ;;  %v321_v62 = vcombine.high %v317_v58, %v317_v58  ;;  %325 = vst [vmem:[#allocation2] sm:$0xf] %v317_v58  ;;  %v318_v63 = vld [vmem:[#allocation8 + $0x8] sm:$0xff]  ;;  %v405_v5 = vld [vmem:[#allocation11 + $0x1e0] sm:$0xff]  ;;  %v407_v7 = vld [vmem:[#allocation11 + $0x1f0] sm:$0xff] }
  0x97   :  { %4902 = vmatpush1.bf16.msra.mxu1 %v4837_v48  ;;  %4840 = vmatprep.subr.bf16.mxu0 %v4839_v49  ;;  %v395_v48 = vld [vmem:[#allocation11 + $0x190] sm:$0xff]  ;;  %v322_v2 = vcombine.high %v318_v63, %v318_v63  ;;  %327 = vst [vmem:[#allocation2 + $0x10] sm:$0xf] %v318_v63  ;;  %v4893_v8 = vpack.c.bf16 %v407_v7, %v405_v5  ;;  %v560_v20 = vld [vmem:[#allocation11 + $0x200] sm:$0xff]  ;;  %v567_v23 = vld [vmem:[#allocation11 + $0x238] sm:$0xff] }
  0x98   :  { %4904 = vmatprep.subr.bf16.mxu1 %v4839_v49  ;;  %v4881_v49 = vpack.c.bf16 %v395_v48, %v393_v47  ;;  %326 = vst [vmem:[#allocation2 + $0x8] sm:$0xf] %v321_v62  ;;  %v564_v25 = vld [vmem:[#allocation11 + $0x220] sm:$0xff]  ;;  %v566_v26 = vld [vmem:[#allocation11 + $0x230] sm:$0xff]  ;;  %v569_v29 = vld [vmem:[#allocation11 + $0x248] sm:$0xff] }
  0x99   :  { %328 = vst [vmem:[#allocation2 + $0x18] sm:$0xf] %v322_v2  ;;  %v568_v36 = vld [vmem:[#allocation11 + $0x240] sm:$0xff]  ;;  %v570_v37 = vld [vmem:[#allocation11 + $0x250] sm:$0xff]  ;;  %v573_v38 = vld [vmem:[#allocation11 + $0x268] sm:$0xff] }
  0x9a   :  { %4842 = vmatpush1.bf16.msra.mxu0 %v4841_v54  ;;  %v572_v42 = vld [vmem:[#allocation11 + $0x260] sm:$0xff]  ;;  %v574_v43 = vld [vmem:[#allocation11 + $0x270] sm:$0xff]  ;;  %v577_v44 = vld [vmem:[#allocation11 + $0x288] sm:$0xff] }
  0x9b   :  { %4906 = vmatpush1.bf16.msra.mxu1 %v4841_v54  ;;  %4844 = vmatprep.subr.bf16.mxu0 %v4843_v55  ;;  %v399_v54 = vld [vmem:[#allocation11 + $0x1b0] sm:$0xff]  ;;  %v576_v48 = vld [vmem:[#allocation11 + $0x280] sm:$0xff]  ;;  %v581_v50 = vld [vmem:[#allocation11 + $0x2a8] sm:$0xff] }
  0x9c   :  { %4908 = vmatprep.subr.bf16.mxu1 %v4843_v55  ;;  %v4885_v55 = vpack.c.bf16 %v399_v54, %v397_v53  ;;  %v583_v51 = vld [vmem:[#allocation11 + $0x2b8] sm:$0xff]  ;;  %v580_v54 = vld [vmem:[#allocation11 + $0x2a0] sm:$0xff]  ;;  %v585_v56 = vld [vmem:[#allocation11 + $0x2c8] sm:$0xff] }
  0x9d   :  { %v4979_v53 = vpack.c.bf16 %v583_v51, %v581_v50  ;;  %v587_v57 = vld [vmem:[#allocation11 + $0x2d8] sm:$0xff]  ;;  %v589_v62 = vld [vmem:[#allocation11 + $0x2e8] sm:$0xff]  ;;  %v618_v50 = vld [vmem:[#allocation11 + $0x3d0] sm:$0xff] }
  0x9e   :  { %4846 = vmatpush1.bf16.msra.mxu0 %v4845_v60  ;;  %v591_v63 = vld [vmem:[#allocation11 + $0x2f8] sm:$0xff]  ;;  %v593_v5 = vld [vmem:[#allocation11 + $0x308] sm:$0xff] }
  0x9f   :  { %4910 = vmatpush1.bf16.msra.mxu1 %v4845_v60  ;;  %4848 = vmatprep.subr.bf16.mxu0 %v4847_v61  ;;  %v401_v60 = vld [vmem:[#allocation11 + $0x1c0] sm:$0xff]  ;;  %v4987_v2 = vpack.c.bf16 %v591_v63, %v589_v62  ;;  %v621_v51 = vld [vmem:[#allocation11 + $0x3e8] sm:$0xff]  ;;  %v777_v62 = vld [vmem:[#allocation11 + $0x410] sm:$0xff] }
  0xa0   :  { %4912 = vmatprep.subr.bf16.mxu1 %v4847_v61  ;;  %v403_v61 = vld [vmem:[#allocation11 + $0x1d0] sm:$0xff]  ;;  %v780_v63 = vld [vmem:[#allocation11 + $0x428] sm:$0xff] }
  0xa1   :  { %v4889_v1 = vpack.c.bf16 %v403_v61, %v401_v60  ;;  %v584_v60 = vld [vmem:[#allocation11 + $0x2c0] sm:$0xff]  ;;  %v586_v61 = vld [vmem:[#allocation11 + $0x2d0] sm:$0xff] }
  0xa2   :  { %4850 = vmatpush1.bf16.msra.mxu0 %v4849_v3 }
  0xa3   :  { %4914 = vmatpush1.bf16.msra.mxu1 %v4849_v3  ;;  %4852 = vmatprep.subr.bf16.mxu0 %v4851_v4  ;;  %v406_v3 = vld [vmem:[#allocation11 + $0x1e8] sm:$0xff] }
  0xa4   :  { %4916 = vmatprep.subr.bf16.mxu1 %v4851_v4  ;;  %v408_v4 = vld [vmem:[#allocation11 + $0x1f8] sm:$0xff] }
  0xa5   :  { %v4891_v6 = vpack.c.bf16 %v408_v4, %v406_v3  ;;  %v588_v3 = vld [vmem:[#allocation11 + $0x2e0] sm:$0xff]  ;;  %v590_v4 = vld [vmem:[#allocation11 + $0x2f0] sm:$0xff] }
  0xa6   :  { %4854 = vmatpush1.bf16.msra.mxu0 %v4853_v9  ;;  %v4989_v7 = vpack.c.bf16 %v590_v4, %v588_v3  ;;  %v779_v3 = vld [vmem:[#allocation11 + $0x420] sm:$0xff]  ;;  %v781_v4 = vld [vmem:[#allocation11 + $0x430] sm:$0xff] }
  0xa7   :  { %4918 = vmatpush1.bf16.msra.mxu1 %v4853_v9  ;;  %4856 = vmatprep.subr.bf16.mxu0 %v4855_v10  ;;  %v561_v9 = vld [vmem:[#allocation11 + $0x208] sm:$0xff] }
  0xa8   :  { %4920 = vmatprep.subr.bf16.mxu1 %v4855_v10  ;;  %v563_v10 = vld [vmem:[#allocation11 + $0x218] sm:$0xff] }
  0xa9   :  { %v4959_v11 = vpack.c.bf16 %v563_v10, %v561_v9  ;;  %v592_v9 = vld [vmem:[#allocation11 + $0x300] sm:$0xff]  ;;  %v594_v10 = vld [vmem:[#allocation11 + $0x310] sm:$0xff] }
  0xaa   :  { %4858 = vmatpush1.bf16.msra.mxu0 %v4857_v15 }
  0xab   :  { %4922 = vmatpush1.bf16.msra.mxu1 %v4857_v15  ;;  %4860 = vmatprep.subr.bf16.mxu0 %v4859_v16 }
  0xac   :  { %4924 = vmatprep.subr.bf16.mxu1 %v4859_v16 }
  0xae   :  { %4862 = vmatpush1.bf16.msra.mxu0 %v4861_v21 }
  0xaf   :  { %4926 = vmatpush1.bf16.msra.mxu1 %v4861_v21  ;;  %4864 = vmatprep.subr.bf16.mxu0 %v4863_v22  ;;  %v562_v21 = vld [vmem:[#allocation11 + $0x210] sm:$0xff] }
  0xb0   :  { %4928 = vmatprep.subr.bf16.mxu1 %v4863_v22  ;;  %v565_v22 = vld [vmem:[#allocation11 + $0x228] sm:$0xff]  ;;  %v4961_v24 = vpack.c.bf16 %v562_v21, %v560_v20  ;;  %v600_v21 = vld [vmem:[#allocation11 + $0x340] sm:$0xff] }
  0xb1   :  { %v4963_v32 = vpack.c.bf16 %v567_v23, %v565_v22  ;;  %v602_v22 = vld [vmem:[#allocation11 + $0x350] sm:$0xff]  ;;  %v605_v23 = vld [vmem:[#allocation11 + $0x368] sm:$0xff] }
  0xb2   :  { %4866 = vmatpush1.bf16.msra.mxu0 %v4865_v27 }
  0xb3   :  { %4930 = vmatpush1.bf16.msra.mxu1 %v4865_v27  ;;  %4868 = vmatprep.subr.bf16.mxu0 %v4867_v28 }
  0xb4   :  { %4932 = vmatprep.subr.bf16.mxu1 %v4867_v28 }
  0xb6   :  { %4870 = vmatpush1.bf16.msra.mxu0 %v4869_v33 }
  0xb7   :  { %4934 = vmatpush1.bf16.msra.mxu1 %v4869_v33  ;;  %4872 = vmatprep.subr.bf16.mxu0 %v4871_v34  ;;  %v571_v33 = vld [vmem:[#allocation11 + $0x258] sm:$0xff] }
  0xb8   :  { %4936 = vmatprep.subr.bf16.mxu1 %v4871_v34  ;;  %v4965_v34 = vpack.c.bf16 %v566_v26, %v564_v25  ;;  %v4967_v35 = vpack.c.bf16 %v571_v33, %v569_v29  ;;  %v5001_v25 = vpack.c.bf16 %v602_v22, %v600_v21  ;;  %v604_v29 = vld [vmem:[#allocation11 + $0x360] sm:$0xff]  ;;  %v609_v33 = vld [vmem:[#allocation11 + $0x388] sm:$0xff] }
  0xb9   :  { %v791_v22 = vld [vmem:[#allocation11 + $0x480] sm:$0xff] }
  0xba   :  { %4874 = vmatpush1.bf16.msra.mxu0 %v4873_v39 }
  0xbb   :  { %4938 = vmatpush1.bf16.msra.mxu1 %v4873_v39  ;;  %4876 = vmatprep.subr.bf16.mxu0 %v4875_v40  ;;  %v575_v39 = vld [vmem:[#allocation11 + $0x278] sm:$0xff] }
  0xbc   :  { %4940 = vmatprep.subr.bf16.mxu1 %v4875_v40  ;;  %v4969_v40 = vpack.c.bf16 %v570_v37, %v568_v36  ;;  %v4971_v41 = vpack.c.bf16 %v575_v39, %v573_v38  ;;  %v608_v37 = vld [vmem:[#allocation11 + $0x380] sm:$0xff]  ;;  %v610_v38 = vld [vmem:[#allocation11 + $0x390] sm:$0xff]  ;;  %v613_v39 = vld [vmem:[#allocation11 + $0x3a8] sm:$0xff] }
  0xbe   :  { %4878 = vmatpush1.bf16.msra.mxu0 %v4877_v45 }
  0xbf   :  { %4942 = vmatpush1.bf16.msra.mxu1 %v4877_v45  ;;  %4880 = vmatprep.subr.bf16.mxu0 %v4879_v46  ;;  %v579_v45 = vld [vmem:[#allocation11 + $0x298] sm:$0xff] }
  0xc0   :  { %4944 = vmatprep.subr.bf16.mxu1 %v4879_v46  ;;  %v4973_v46 = vpack.c.bf16 %v574_v43, %v572_v42  ;;  %v4975_v47 = vpack.c.bf16 %v579_v45, %v577_v44  ;;  %v612_v43 = vld [vmem:[#allocation11 + $0x3a0] sm:$0xff]  ;;  %v614_v44 = vld [vmem:[#allocation11 + $0x3b0] sm:$0xff]  ;;  %v617_v45 = vld [vmem:[#allocation11 + $0x3c8] sm:$0xff] }
  0xc2   :  { %4882 = vmatpush1.bf16.msra.mxu0 %v4881_v49 }
  0xc3   :  { %4946 = vmatpush1.bf16.msra.mxu1 %v4881_v49  ;;  %4884 = vmatprep.subr.bf16.mxu0 %v4883_v52  ;;  %v578_v49 = vld [vmem:[#allocation11 + $0x290] sm:$0xff] }
  0xc4   :  { %4948 = vmatprep.subr.bf16.mxu1 %v4883_v52  ;;  %v4977_v52 = vpack.c.bf16 %v578_v49, %v576_v48  ;;  %v616_v49 = vld [vmem:[#allocation11 + $0x3c0] sm:$0xff] }
  0xc6   :  { %4886 = vmatpush1.bf16.msra.mxu0 %v4885_v55 }
  0xc7   :  { %4950 = vmatpush1.bf16.msra.mxu1 %v4885_v55  ;;  %4888 = vmatprep.subr.bf16.mxu0 %v4887_v59  ;;  %v582_v55 = vld [vmem:[#allocation11 + $0x2b0] sm:$0xff] }
  0xc8   :  { %4952 = vmatprep.subr.bf16.mxu1 %v4887_v59  ;;  %v4981_v58 = vpack.c.bf16 %v582_v55, %v580_v54  ;;  %v4983_v59 = vpack.c.bf16 %v587_v57, %v585_v56  ;;  %v620_v55 = vld [vmem:[#allocation11 + $0x3e0] sm:$0xff]  ;;  %v622_v56 = vld [vmem:[#allocation11 + $0x3f0] sm:$0xff]  ;;  %v776_v57 = vld [vmem:[#allocation11 + $0x408] sm:$0xff] }
  0xca   :  { %4890 = vmatpush1.bf16.msra.mxu0 %v4889_v1 }
  0xcb   :  { %4954 = vmatpush1.bf16.msra.mxu1 %v4889_v1  ;;  %4892 = vmatprep.subr.bf16.mxu0 %v4891_v6  ;;  %v4985_v1 = vpack.c.bf16 %v586_v61, %v584_v60  ;;  %v775_v61 = vld [vmem:[#allocation11 + $0x400] sm:$0xff] }
  0xcc   :  { %4956 = vmatprep.subr.bf16.mxu1 %v4891_v6  ;;  %v595_v6 = vld [vmem:[#allocation11 + $0x318] sm:$0xff] }
  0xce   :  { %4894 = vmatpush1.bf16.msra.mxu0 %v4893_v8 }
  0xcf   :  { %4958 = vmatpush1.bf16.msra.mxu1 %v4893_v8  ;;  %4960 = vmatprep.subr.bf16.mxu0 %v4959_v11  ;;  %v4991_v8 = vpack.c.bf16 %v595_v6, %v593_v5  ;;  %v784_v6 = vld [vmem:[#allocation11 + $0x448] sm:$0xff] }
  0xd0   :  { %5024 = vmatprep.subr.bf16.mxu1 %v4959_v11  ;;  %v597_v11 = vld [vmem:[#allocation11 + $0x328] sm:$0xff] }
 0x164   :  { %v241_v12 = vpop.f32.mrb[0].mxu0 }
 0x165   :  { %v333_v13 = vrot.slane %v241_v12, 4  ;;  %v312_v14 = vpop.f32.mrb[0].mxu1  ;;  %v243_v15 = vpop.f32.mrb[1].mxu0  ;;  %v599_v12 = vld [vmem:[#allocation11 + $0x338] sm:$0xff] }
 0x166   :  { %v335_v16 = vrot.slane %v312_v14, 4  ;;  %v334_v17 = vrot.slane %v243_v15, 4  ;;  %v314_v18 = vpop.f32.mrb[1].mxu1  ;;  %v4995_v14 = vpack.c.bf16 %v599_v12, %v597_v11  ;;  %v596_v15 = vld [vmem:[#allocation11 + $0x320] sm:$0xff]  ;;  %v785_v11 = vld [vmem:[#allocation11 + $0x450] sm:$0xff]  ;;  %v788_v12 = vld [vmem:[#allocation11 + $0x468] sm:$0xff] }
 0x167   :  { %341 = vst [vmem:[#allocation2] sm:$0xf0] %v333_v13  ;;  %v336_v19 = vrot.slane %v314_v18, 4  ;;  %v4993_v13 = vpack.c.bf16 %v594_v10, %v592_v9  ;;  %v603_v18 = vld [vmem:[#allocation11 + $0x358] sm:$0xff]  ;;  %v783_v10 = vld [vmem:[#allocation11 + $0x440] sm:$0xff] }
 0x168   :  { %343 = vst [vmem:[#allocation2 + $0x10] sm:$0xf0] %v335_v16  ;;  %342 = vst [vmem:[#allocation2 + $0x8] sm:$0xf0] %v334_v17  ;;  %v598_v16 = vld [vmem:[#allocation11 + $0x330] sm:$0xff]  ;;  %v601_v17 = vld [vmem:[#allocation11 + $0x348] sm:$0xff] }
 0x169   :  { %344 = vst [vmem:[#allocation2 + $0x18] sm:$0xf0] %v336_v19  ;;  %v4997_v19 = vpack.c.bf16 %v598_v16, %v596_v15  ;;  %v4999_v20 = vpack.c.bf16 %v603_v18, %v601_v17  ;;  %v787_v16 = vld [vmem:[#allocation11 + $0x460] sm:$0xff]  ;;  %v789_v17 = vld [vmem:[#allocation11 + $0x470] sm:$0xff]  ;;  %v792_v18 = vld [vmem:[#allocation11 + $0x488] sm:$0xff] }
 0x16e   :  { %v7563_v31 = vld [vmem:[#allocation2] sm:$0xff] }
 0x16f   :  { %v7556_v27 = vld [vmem:[#allocation2 + $0x8] sm:$0xff]  ;;  %v7558_v28 = vld [vmem:[#allocation2 + $0x10] sm:$0xff] }
 0x170   :  { %475 = vmatprep.mubr.f32.mxu0 %v7556_v27  ;;  %v7561_v30 = vld [vmem:[#allocation2 + $0x18] sm:$0xff] }
 0x171   :  { %550 = vmatprep.mubr.f32.mxu1 %v7561_v30  ;;  %476 = vmatmul.mubr.f32.vlgmr.msra.gmra.mrb[2].mxu0 %v7563_v31 }
 0x172   :  { %551 = vmatmul.mubr.f32.vlgmr.msra.gmra.mrb[2].mxu1 %v7558_v28  ;;  %4962 = vmatpush1.bf16.msra.mxu0 %v4961_v24 }
 0x173   :  { %5026 = vmatpush1.bf16.msra.mxu1 %v4961_v24  ;;  %690 = vmatprep.mubr.f32.mxu0 %v7556_v27  ;;  %v607_v24 = vld [vmem:[#allocation11 + $0x378] sm:$0xff] }
 0x174   :  { %765 = vmatprep.mubr.f32.mxu1 %v7561_v30  ;;  %4964 = vmatprep.subr.bf16.mxu0 %v4963_v32  ;;  %v5003_v26 = vpack.c.bf16 %v607_v24, %v605_v23  ;;  %v793_v23 = vld [vmem:[#allocation11 + $0x490] sm:$0xff]  ;;  %v796_v24 = vld [vmem:[#allocation11 + $0x4a8] sm:$0xff] }
 0x175   :  { %5028 = vmatprep.subr.bf16.mxu1 %v4963_v32  ;;  %v606_v32 = vld [vmem:[#allocation11 + $0x370] sm:$0xff] }
 0x176   :  { %4966 = vmatpush1.bf16.msra.mxu0 %v4965_v34 }
 0x177   :  { %5030 = vmatpush1.bf16.msra.mxu1 %v4965_v34  ;;  %4968 = vmatprep.subr.bf16.mxu0 %v4967_v35  ;;  %v611_v34 = vld [vmem:[#allocation11 + $0x398] sm:$0xff] }
 0x178   :  { %5032 = vmatprep.subr.bf16.mxu1 %v4967_v35  ;;  %v5005_v35 = vpack.c.bf16 %v606_v32, %v604_v29  ;;  %v5007_v36 = vpack.c.bf16 %v611_v34, %v609_v33  ;;  %v795_v32 = vld [vmem:[#allocation11 + $0x4a0] sm:$0xff]  ;;  %v797_v33 = vld [vmem:[#allocation11 + $0x4b0] sm:$0xff]  ;;  %v800_v34 = vld [vmem:[#allocation11 + $0x4c8] sm:$0xff] }
 0x17a   :  { %4970 = vmatpush1.bf16.msra.mxu0 %v4969_v40 }
 0x17b   :  { %5034 = vmatpush1.bf16.msra.mxu1 %v4969_v40  ;;  %4972 = vmatprep.subr.bf16.mxu0 %v4971_v41  ;;  %v615_v40 = vld [vmem:[#allocation11 + $0x3b8] sm:$0xff] }
 0x17c   :  { %5036 = vmatprep.subr.bf16.mxu1 %v4971_v41  ;;  %v5009_v41 = vpack.c.bf16 %v610_v38, %v608_v37  ;;  %v5011_v42 = vpack.c.bf16 %v615_v40, %v613_v39  ;;  %v799_v38 = vld [vmem:[#allocation11 + $0x4c0] sm:$0xff]  ;;  %v801_v39 = vld [vmem:[#allocation11 + $0x4d0] sm:$0xff]  ;;  %v804_v40 = vld [vmem:[#allocation11 + $0x4e8] sm:$0xff] }
 0x17e   :  { %4974 = vmatpush1.bf16.msra.mxu0 %v4973_v46 }
 0x17f   :  { %5038 = vmatpush1.bf16.msra.mxu1 %v4973_v46  ;;  %4976 = vmatprep.subr.bf16.mxu0 %v4975_v47  ;;  %v619_v46 = vld [vmem:[#allocation11 + $0x3d8] sm:$0xff] }
 0x180   :  { %5040 = vmatprep.subr.bf16.mxu1 %v4975_v47  ;;  %v5013_v47 = vpack.c.bf16 %v614_v44, %v612_v43  ;;  %v5015_v48 = vpack.c.bf16 %v619_v46, %v617_v45  ;;  %v803_v44 = vld [vmem:[#allocation11 + $0x4e0] sm:$0xff]  ;;  %v805_v45 = vld [vmem:[#allocation11 + $0x4f0] sm:$0xff]  ;;  %v808_v46 = vld [vmem:[#allocation11 + $0x508] sm:$0xff] }
 0x182   :  { %4978 = vmatpush1.bf16.msra.mxu0 %v4977_v52 }
 0x183   :  { %5042 = vmatpush1.bf16.msra.mxu1 %v4977_v52  ;;  %4980 = vmatprep.subr.bf16.mxu0 %v4979_v53  ;;  %v623_v52 = vld [vmem:[#allocation11 + $0x3f8] sm:$0xff] }
 0x184   :  { %5044 = vmatprep.subr.bf16.mxu1 %v4979_v53  ;;  %v5017_v53 = vpack.c.bf16 %v618_v50, %v616_v49  ;;  %v5019_v54 = vpack.c.bf16 %v623_v52, %v621_v51  ;;  %v807_v50 = vld [vmem:[#allocation11 + $0x500] sm:$0xff]  ;;  %v809_v51 = vld [vmem:[#allocation11 + $0x510] sm:$0xff]  ;;  %v812_v52 = vld [vmem:[#allocation11 + $0x528] sm:$0xff] }
 0x186   :  { %4982 = vmatpush1.bf16.msra.mxu0 %v4981_v58 }
 0x187   :  { %5046 = vmatpush1.bf16.msra.mxu1 %v4981_v58  ;;  %4984 = vmatprep.subr.bf16.mxu0 %v4983_v59  ;;  %v778_v58 = vld [vmem:[#allocation11 + $0x418] sm:$0xff] }
 0x188   :  { %5048 = vmatprep.subr.bf16.mxu1 %v4983_v59  ;;  %v5021_v59 = vpack.c.bf16 %v622_v56, %v620_v55  ;;  %v5087_v60 = vpack.c.bf16 %v778_v58, %v776_v57  ;;  %v811_v56 = vld [vmem:[#allocation11 + $0x520] sm:$0xff]  ;;  %v813_v57 = vld [vmem:[#allocation11 + $0x530] sm:$0xff]  ;;  %v816_v58 = vld [vmem:[#allocation11 + $0x548] sm:$0xff] }
 0x18a   :  { %4986 = vmatpush1.bf16.msra.mxu0 %v4985_v1 }
 0x18b   :  { %5050 = vmatpush1.bf16.msra.mxu1 %v4985_v1  ;;  %4988 = vmatprep.subr.bf16.mxu0 %v4987_v2  ;;  %v782_v1 = vld [vmem:[#allocation11 + $0x438] sm:$0xff] }
 0x18c   :  { %5052 = vmatprep.subr.bf16.mxu1 %v4987_v2  ;;  %v5089_v2 = vpack.c.bf16 %v777_v62, %v775_v61  ;;  %v5091_v5 = vpack.c.bf16 %v782_v1, %v780_v63  ;;  %v815_v62 = vld [vmem:[#allocation11 + $0x540] sm:$0xff]  ;;  %v817_v63 = vld [vmem:[#allocation11 + $0x550] sm:$0xff]  ;;  %v820_v1 = vld [vmem:[#allocation11 + $0x568] sm:$0xff] }
 0x18e   :  { %4990 = vmatpush1.bf16.msra.mxu0 %v4989_v7 }
 0x18f   :  { %5054 = vmatpush1.bf16.msra.mxu1 %v4989_v7  ;;  %4992 = vmatprep.subr.bf16.mxu0 %v4991_v8  ;;  %v786_v7 = vld [vmem:[#allocation11 + $0x458] sm:$0xff] }
 0x190   :  { %5056 = vmatprep.subr.bf16.mxu1 %v4991_v8  ;;  %v5093_v8 = vpack.c.bf16 %v781_v4, %v779_v3  ;;  %v5095_v9 = vpack.c.bf16 %v786_v7, %v784_v6  ;;  %v5129_v3 = vpack.c.bf16 %v817_v63, %v815_v62  ;;  %v821_v6 = vld [vmem:[#allocation11 + $0x570] sm:$0xff]  ;;  %v824_v7 = vld [vmem:[#allocation11 + $0x588] sm:$0xff] }
 0x191   :  { %v1008_v62 = vld [vmem:[#allocation11 + $0x690] sm:$0xff]  ;;  %v1011_v63 = vld [vmem:[#allocation11 + $0x6a8] sm:$0xff] }
 0x192   :  { %4994 = vmatpush1.bf16.msra.mxu0 %v4993_v13 }
 0x193   :  { %5058 = vmatpush1.bf16.msra.mxu1 %v4993_v13  ;;  %4996 = vmatprep.subr.bf16.mxu0 %v4995_v14  ;;  %v790_v13 = vld [vmem:[#allocation11 + $0x478] sm:$0xff] }
 0x194   :  { %5060 = vmatprep.subr.bf16.mxu1 %v4995_v14  ;;  %v5097_v14 = vpack.c.bf16 %v785_v11, %v783_v10  ;;  %v5099_v15 = vpack.c.bf16 %v790_v13, %v788_v12  ;;  %v823_v11 = vld [vmem:[#allocation11 + $0x580] sm:$0xff]  ;;  %v825_v12 = vld [vmem:[#allocation11 + $0x590] sm:$0xff]  ;;  %v828_v13 = vld [vmem:[#allocation11 + $0x5a8] sm:$0xff] }
 0x196   :  { %4998 = vmatpush1.bf16.msra.mxu0 %v4997_v19 }
 0x197   :  { %5062 = vmatpush1.bf16.msra.mxu1 %v4997_v19  ;;  %5000 = vmatprep.subr.bf16.mxu0 %v4999_v20  ;;  %v794_v19 = vld [vmem:[#allocation11 + $0x498] sm:$0xff] }
 0x198   :  { %5064 = vmatprep.subr.bf16.mxu1 %v4999_v20  ;;  %v5101_v20 = vpack.c.bf16 %v789_v17, %v787_v16  ;;  %v5103_v21 = vpack.c.bf16 %v794_v19, %v792_v18  ;;  %v827_v17 = vld [vmem:[#allocation11 + $0x5a0] sm:$0xff]  ;;  %v829_v18 = vld [vmem:[#allocation11 + $0x5b0] sm:$0xff]  ;;  %v832_v19 = vld [vmem:[#allocation11 + $0x5c8] sm:$0xff] }
 0x19a   :  { %5002 = vmatpush1.bf16.msra.mxu0 %v5001_v25 }
 0x19b   :  { %5066 = vmatpush1.bf16.msra.mxu1 %v5001_v25  ;;  %5004 = vmatprep.subr.bf16.mxu0 %v5003_v26  ;;  %v798_v25 = vld [vmem:[#allocation11 + $0x4b8] sm:$0xff] }
 0x19c   :  { %5068 = vmatprep.subr.bf16.mxu1 %v5003_v26  ;;  %v5105_v26 = vpack.c.bf16 %v793_v23, %v791_v22  ;;  %v5107_v29 = vpack.c.bf16 %v798_v25, %v796_v24  ;;  %v831_v23 = vld [vmem:[#allocation11 + $0x5c0] sm:$0xff]  ;;  %v833_v24 = vld [vmem:[#allocation11 + $0x5d0] sm:$0xff]  ;;  %v836_v25 = vld [vmem:[#allocation11 + $0x5e8] sm:$0xff] }
 0x19e   :  { %5006 = vmatpush1.bf16.msra.mxu0 %v5005_v35 }
 0x19f   :  { %5070 = vmatpush1.bf16.msra.mxu1 %v5005_v35  ;;  %5008 = vmatprep.subr.bf16.mxu0 %v5007_v36  ;;  %v802_v35 = vld [vmem:[#allocation11 + $0x4d8] sm:$0xff] }
 0x1a0   :  { %5072 = vmatprep.subr.bf16.mxu1 %v5007_v36  ;;  %v5109_v36 = vpack.c.bf16 %v797_v33, %v795_v32  ;;  %v5111_v37 = vpack.c.bf16 %v802_v35, %v800_v34  ;;  %v835_v33 = vld [vmem:[#allocation11 + $0x5e0] sm:$0xff]  ;;  %v837_v34 = vld [vmem:[#allocation11 + $0x5f0] sm:$0xff]  ;;  %v991_v35 = vld [vmem:[#allocation11 + $0x608] sm:$0xff] }
 0x1a2   :  { %5010 = vmatpush1.bf16.msra.mxu0 %v5009_v41 }
 0x1a3   :  { %5074 = vmatpush1.bf16.msra.mxu1 %v5009_v41  ;;  %5012 = vmatprep.subr.bf16.mxu0 %v5011_v42  ;;  %v806_v41 = vld [vmem:[#allocation11 + $0x4f8] sm:$0xff] }
 0x1a4   :  { %5076 = vmatprep.subr.bf16.mxu1 %v5011_v42  ;;  %v5113_v42 = vpack.c.bf16 %v801_v39, %v799_v38  ;;  %v5115_v43 = vpack.c.bf16 %v806_v41, %v804_v40  ;;  %v990_v39 = vld [vmem:[#allocation11 + $0x600] sm:$0xff]  ;;  %v992_v40 = vld [vmem:[#allocation11 + $0x610] sm:$0xff]  ;;  %v995_v41 = vld [vmem:[#allocation11 + $0x628] sm:$0xff] }
 0x1a6   :  { %5014 = vmatpush1.bf16.msra.mxu0 %v5013_v47 }
 0x1a7   :  { %5078 = vmatpush1.bf16.msra.mxu1 %v5013_v47  ;;  %5016 = vmatprep.subr.bf16.mxu0 %v5015_v48  ;;  %v810_v47 = vld [vmem:[#allocation11 + $0x518] sm:$0xff] }
 0x1a8   :  { %5080 = vmatprep.subr.bf16.mxu1 %v5015_v48  ;;  %v5117_v48 = vpack.c.bf16 %v805_v45, %v803_v44  ;;  %v5119_v49 = vpack.c.bf16 %v810_v47, %v808_v46  ;;  %v994_v44 = vld [vmem:[#allocation11 + $0x620] sm:$0xff]  ;;  %v996_v45 = vld [vmem:[#allocation11 + $0x630] sm:$0xff]  ;;  %v999_v47 = vld [vmem:[#allocation11 + $0x648] sm:$0xff] }
 0x1aa   :  { %5018 = vmatpush1.bf16.msra.mxu0 %v5017_v53 }
 0x1ab   :  { %5082 = vmatpush1.bf16.msra.mxu1 %v5017_v53  ;;  %5020 = vmatprep.subr.bf16.mxu0 %v5019_v54  ;;  %v814_v53 = vld [vmem:[#allocation11 + $0x538] sm:$0xff] }
 0x1ac   :  { %5084 = vmatprep.subr.bf16.mxu1 %v5019_v54  ;;  %v5121_v54 = vpack.c.bf16 %v809_v51, %v807_v50  ;;  %v5123_v55 = vpack.c.bf16 %v814_v53, %v812_v52  ;;  %v998_v51 = vld [vmem:[#allocation11 + $0x640] sm:$0xff]  ;;  %v1000_v52 = vld [vmem:[#allocation11 + $0x650] sm:$0xff]  ;;  %v1003_v53 = vld [vmem:[#allocation11 + $0x668] sm:$0xff] }
 0x1ae   :  { %5022 = vmatpush1.bf16.msra.mxu0 %v5021_v59 }
 0x1af   :  { %5086 = vmatpush1.bf16.msra.mxu1 %v5021_v59  ;;  %5088 = vmatprep.subr.bf16.mxu0 %v5087_v60  ;;  %v818_v59 = vld [vmem:[#allocation11 + $0x558] sm:$0xff] }
 0x1b0   :  { %5152 = vmatprep.subr.bf16.mxu1 %v5087_v60  ;;  %v5125_v60 = vpack.c.bf16 %v813_v57, %v811_v56  ;;  %v5127_v61 = vpack.c.bf16 %v818_v59, %v816_v58  ;;  %v1002_v57 = vld [vmem:[#allocation11 + $0x660] sm:$0xff]  ;;  %v1004_v58 = vld [vmem:[#allocation11 + $0x670] sm:$0xff]  ;;  %v1007_v59 = vld [vmem:[#allocation11 + $0x688] sm:$0xff] }
 0x1b1   :  { %691 = vmatmul.mubr.f32.vlgmr.msra.gmra.mrb[4].mxu0 %v7563_v31 }
 0x1b2   :  { %766 = vmatmul.mubr.f32.vlgmr.msra.gmra.mrb[4].mxu1 %v7558_v28  ;;  %5090 = vmatpush1.bf16.msra.mxu0 %v5089_v2 }
 0x1b3   :  { %905 = vmatprep.mubr.f32.mxu0 %v7556_v27  ;;  %5154 = vmatpush1.bf16.msra.mxu1 %v5089_v2  ;;  %v822_v2 = vld [vmem:[#allocation11 + $0x578] sm:$0xff] }
 0x1b4   :  { %980 = vmatprep.mubr.f32.mxu1 %v7561_v30  ;;  %5092 = vmatprep.subr.bf16.mxu0 %v5091_v5  ;;  %v5131_v4 = vpack.c.bf16 %v822_v2, %v820_v1  ;;  %v1013_v1 = vld [vmem:[#allocation11 + $0x6b8] sm:$0xff] }
 0x1b5   :  { %5156 = vmatprep.subr.bf16.mxu1 %v5091_v5  ;;  %v819_v5 = vld [vmem:[#allocation11 + $0x560] sm:$0xff] }
 0x1b6   :  { %5094 = vmatpush1.bf16.msra.mxu0 %v5093_v8 }
 0x1b7   :  { %5158 = vmatpush1.bf16.msra.mxu1 %v5093_v8  ;;  %5096 = vmatprep.subr.bf16.mxu0 %v5095_v9  ;;  %v826_v8 = vld [vmem:[#allocation11 + $0x598] sm:$0xff] }
 0x1b8   :  { %5160 = vmatprep.subr.bf16.mxu1 %v5095_v9  ;;  %v5133_v9 = vpack.c.bf16 %v821_v6, %v819_v5  ;;  %v5135_v10 = vpack.c.bf16 %v826_v8, %v824_v7  ;;  %v1012_v5 = vld [vmem:[#allocation11 + $0x6b0] sm:$0xff]  ;;  %v1015_v6 = vld [vmem:[#allocation11 + $0x6c8] sm:$0xff]  ;;  %v1017_v7 = vld [vmem:[#allocation11 + $0x6d8] sm:$0xff] }
 0x1ba   :  { %5098 = vmatpush1.bf16.msra.mxu0 %v5097_v14 }
 0x1bb   :  { %5162 = vmatpush1.bf16.msra.mxu1 %v5097_v14  ;;  %5100 = vmatprep.subr.bf16.mxu0 %v5099_v15  ;;  %v830_v14 = vld [vmem:[#allocation11 + $0x5b8] sm:$0xff] }
 0x1bc   :  { %5164 = vmatprep.subr.bf16.mxu1 %v5099_v15  ;;  %v5137_v15 = vpack.c.bf16 %v825_v12, %v823_v11  ;;  %v5139_v16 = vpack.c.bf16 %v830_v14, %v828_v13  ;;  %v1016_v11 = vld [vmem:[#allocation11 + $0x6d0] sm:$0xff]  ;;  %v1019_v12 = vld [vmem:[#allocation11 + $0x6e8] sm:$0xff]  ;;  %v1021_v13 = vld [vmem:[#allocation11 + $0x6f8] sm:$0xff] }
 0x1be   :  { %5102 = vmatpush1.bf16.msra.mxu0 %v5101_v20 }
 0x1bf   :  { %5166 = vmatpush1.bf16.msra.mxu1 %v5101_v20  ;;  %5104 = vmatprep.subr.bf16.mxu0 %v5103_v21  ;;  %v834_v20 = vld [vmem:[#allocation11 + $0x5d8] sm:$0xff] }
 0x1c0   :  { %5168 = vmatprep.subr.bf16.mxu1 %v5103_v21  ;;  %v5141_v21 = vpack.c.bf16 %v829_v18, %v827_v17  ;;  %v5143_v22 = vpack.c.bf16 %v834_v20, %v832_v19  ;;  %v1020_v17 = vld [vmem:[#allocation11 + $0x6f0] sm:$0xff]  ;;  %v1023_v18 = vld [vmem:[#allocation11 + $0x708] sm:$0xff]  ;;  %v1025_v19 = vld [vmem:[#allocation11 + $0x718] sm:$0xff] }
 0x1c2   :  { %5106 = vmatpush1.bf16.msra.mxu0 %v5105_v26 }
 0x1c3   :  { %5170 = vmatpush1.bf16.msra.mxu1 %v5105_v26  ;;  %5108 = vmatprep.subr.bf16.mxu0 %v5107_v29  ;;  %v838_v26 = vld [vmem:[#allocation11 + $0x5f8] sm:$0xff] }
 0x1c4   :  { %5172 = vmatprep.subr.bf16.mxu1 %v5107_v29  ;;  %v5145_v29 = vpack.c.bf16 %v833_v24, %v831_v23  ;;  %v5147_v32 = vpack.c.bf16 %v838_v26, %v836_v25  ;;  %v1024_v23 = vld [vmem:[#allocation11 + $0x710] sm:$0xff]  ;;  %v1027_v24 = vld [vmem:[#allocation11 + $0x728] sm:$0xff]  ;;  %v1029_v25 = vld [vmem:[#allocation11 + $0x738] sm:$0xff] }
 0x1c6   :  { %5110 = vmatpush1.bf16.msra.mxu0 %v5109_v36 }
 0x1c7   :  { %5174 = vmatpush1.bf16.msra.mxu1 %v5109_v36  ;;  %5112 = vmatprep.subr.bf16.mxu0 %v5111_v37  ;;  %v993_v36 = vld [vmem:[#allocation11 + $0x618] sm:$0xff] }
 0x1c8   :  { %5176 = vmatprep.subr.bf16.mxu1 %v5111_v37  ;;  %v5149_v37 = vpack.c.bf16 %v837_v34, %v835_v33  ;;  %v5215_v38 = vpack.c.bf16 %v993_v36, %v991_v35  ;;  %v1028_v33 = vld [vmem:[#allocation11 + $0x730] sm:$0xff]  ;;  %v1031_v34 = vld [vmem:[#allocation11 + $0x748] sm:$0xff]  ;;  %v1033_v35 = vld [vmem:[#allocation11 + $0x758] sm:$0xff] }
 0x1ca   :  { %5114 = vmatpush1.bf16.msra.mxu0 %v5113_v42 }
 0x1cb   :  { %5178 = vmatpush1.bf16.msra.mxu1 %v5113_v42  ;;  %5116 = vmatprep.subr.bf16.mxu0 %v5115_v43  ;;  %v997_v42 = vld [vmem:[#allocation11 + $0x638] sm:$0xff] }
 0x1cc   :  { %5180 = vmatprep.subr.bf16.mxu1 %v5115_v43  ;;  %v5217_v43 = vpack.c.bf16 %v992_v40, %v990_v39  ;;  %v5219_v46 = vpack.c.bf16 %v997_v42, %v995_v41  ;;  %v1032_v39 = vld [vmem:[#allocation11 + $0x750] sm:$0xff]  ;;  %v1035_v40 = vld [vmem:[#allocation11 + $0x768] sm:$0xff]  ;;  %v1037_v41 = vld [vmem:[#allocation11 + $0x778] sm:$0xff] }
 0x1ce   :  { %5118 = vmatpush1.bf16.msra.mxu0 %v5117_v48 }
 0x1cf   :  { %5182 = vmatpush1.bf16.msra.mxu1 %v5117_v48  ;;  %5120 = vmatprep.subr.bf16.mxu0 %v5119_v49  ;;  %v1001_v48 = vld [vmem:[#allocation11 + $0x658] sm:$0xff] }
 0x1d0   :  { %5184 = vmatprep.subr.bf16.mxu1 %v5119_v49  ;;  %v5221_v49 = vpack.c.bf16 %v996_v45, %v994_v44  ;;  %v5223_v50 = vpack.c.bf16 %v1001_v48, %v999_v47  ;;  %v1034_v44 = vld [vmem:[#allocation11 + $0x760] sm:$0xff]  ;;  %v1036_v45 = vld [vmem:[#allocation11 + $0x770] sm:$0xff]  ;;  %v1041_v47 = vld [vmem:[#allocation11 + $0x798] sm:$0xff] }
 0x1d1   :  { %v5261_v48 = vpack.c.bf16 %v1036_v45, %v1034_v44  ;;  %v1227_v44 = vld [vmem:[#allocation11 + $0x8b0] sm:$0xff]  ;;  %v1230_v45 = vld [vmem:[#allocation11 + $0x8c8] sm:$0xff] }
 0x1d2   :  { %5122 = vmatpush1.bf16.msra.mxu0 %v5121_v54 }
 0x1d3   :  { %5186 = vmatpush1.bf16.msra.mxu1 %v5121_v54  ;;  %5124 = vmatprep.subr.bf16.mxu0 %v5123_v55  ;;  %v1005_v54 = vld [vmem:[#allocation11 + $0x678] sm:$0xff] }
 0x1d4   :  { %5188 = vmatprep.subr.bf16.mxu1 %v5123_v55  ;;  %v5225_v55 = vpack.c.bf16 %v1000_v52, %v998_v51  ;;  %v5227_v56 = vpack.c.bf16 %v1005_v54, %v1003_v53  ;;  %v1040_v51 = vld [vmem:[#allocation11 + $0x790] sm:$0xff]  ;;  %v1043_v52 = vld [vmem:[#allocation11 + $0x7a8] sm:$0xff]  ;;  %v1045_v53 = vld [vmem:[#allocation11 + $0x7b8] sm:$0xff] }
 0x1d6   :  { %5126 = vmatpush1.bf16.msra.mxu0 %v5125_v60 }
 0x1d7   :  { %5190 = vmatpush1.bf16.msra.mxu1 %v5125_v60  ;;  %5128 = vmatprep.subr.bf16.mxu0 %v5127_v61  ;;  %v5229_v60 = vpack.c.bf16 %v1004_v58, %v1002_v57  ;;  %v1044_v57 = vld [vmem:[#allocation11 + $0x7b0] sm:$0xff]  ;;  %v1047_v58 = vld [vmem:[#allocation11 + $0x7c8] sm:$0xff] }
 0x1d8   :  { %5192 = vmatprep.subr.bf16.mxu1 %v5127_v61 }
 0x1da   :  { %5130 = vmatpush1.bf16.msra.mxu0 %v5129_v3 }
 0x1db   :  { %5194 = vmatpush1.bf16.msra.mxu1 %v5129_v3  ;;  %5132 = vmatprep.subr.bf16.mxu0 %v5131_v4  ;;  %v5235_v3 = vpack.c.bf16 %v1013_v1, %v1011_v63  ;;  %v1053_v63 = vld [vmem:[#allocation11 + $0x7f8] sm:$0xff] }
 0x1dc   :  { %5196 = vmatprep.subr.bf16.mxu1 %v5131_v4  ;;  %v1010_v4 = vld [vmem:[#allocation11 + $0x6a0] sm:$0xff] }
 0x1dd   :  { %v5237_v8 = vpack.c.bf16 %v1012_v5, %v1010_v4  ;;  %v1052_v4 = vld [vmem:[#allocation11 + $0x7f0] sm:$0xff]  ;;  %v1206_v5 = vld [vmem:[#allocation11 + $0x808] sm:$0xff] }
 0x1de   :  { %5134 = vmatpush1.bf16.msra.mxu0 %v5133_v9 }
 0x1df   :  { %5198 = vmatpush1.bf16.msra.mxu1 %v5133_v9  ;;  %5136 = vmatprep.subr.bf16.mxu0 %v5135_v10  ;;  %v5239_v9 = vpack.c.bf16 %v1017_v7, %v1015_v6  ;;  %v1208_v6 = vld [vmem:[#allocation11 + $0x818] sm:$0xff] }
 0x1e0   :  { %5200 = vmatprep.subr.bf16.mxu1 %v5135_v10  ;;  %v1014_v10 = vld [vmem:[#allocation11 + $0x6c0] sm:$0xff] }
 0x1e1   :  { %v5241_v14 = vpack.c.bf16 %v1016_v11, %v1014_v10  ;;  %v1207_v10 = vld [vmem:[#allocation11 + $0x810] sm:$0xff]  ;;  %v1210_v11 = vld [vmem:[#allocation11 + $0x828] sm:$0xff] }
 0x1e2   :  { %5138 = vmatpush1.bf16.msra.mxu0 %v5137_v15 }
 0x1e3   :  { %5202 = vmatpush1.bf16.msra.mxu1 %v5137_v15  ;;  %5140 = vmatprep.subr.bf16.mxu0 %v5139_v16  ;;  %v5243_v15 = vpack.c.bf16 %v1021_v13, %v1019_v12  ;;  %v1212_v12 = vld [vmem:[#allocation11 + $0x838] sm:$0xff] }
 0x1e4   :  { %5204 = vmatprep.subr.bf16.mxu1 %v5139_v16  ;;  %v1018_v16 = vld [vmem:[#allocation11 + $0x6e0] sm:$0xff] }
 0x1e5   :  { %v5245_v20 = vpack.c.bf16 %v1020_v17, %v1018_v16  ;;  %v5347_v16 = vpack.c.bf16 %v1212_v12, %v1210_v11  ;;  %v1214_v17 = vld [vmem:[#allocation11 + $0x848] sm:$0xff]  ;;  %v1245_v12 = vld [vmem:[#allocation11 + $0x940] sm:$0xff] }
 0x1e6   :  { %5142 = vmatpush1.bf16.msra.mxu0 %v5141_v21 }
 0x1e7   :  { %5206 = vmatpush1.bf16.msra.mxu1 %v5141_v21  ;;  %5144 = vmatprep.subr.bf16.mxu0 %v5143_v22  ;;  %v5247_v21 = vpack.c.bf16 %v1025_v19, %v1023_v18  ;;  %v1216_v18 = vld [vmem:[#allocation11 + $0x858] sm:$0xff] }
 0x1e8   :  { %5208 = vmatprep.subr.bf16.mxu1 %v5143_v22  ;;  %v1022_v22 = vld [vmem:[#allocation11 + $0x700] sm:$0xff]  ;;  %v7580_v19 = vld [vmem:[#allocation2 + $0x8] sm:$0xff] }
 0x1e9   :  { %v5249_v26 = vpack.c.bf16 %v1024_v23, %v1022_v22  ;;  %v5351_v22 = vpack.c.bf16 %v1216_v18, %v1214_v17  ;;  %v1213_v23 = vld [vmem:[#allocation11 + $0x840] sm:$0xff] }
 0x1ea   :  { %5146 = vmatpush1.bf16.msra.mxu0 %v5145_v29  ;;  %v1249_v18 = vld [vmem:[#allocation11 + $0x960] sm:$0xff] }
 0x1eb   :  { %5210 = vmatpush1.bf16.msra.mxu1 %v5145_v29  ;;  %5148 = vmatprep.subr.bf16.mxu0 %v5147_v32  ;;  %v5251_v29 = vpack.c.bf16 %v1029_v25, %v1027_v24  ;;  %v1215_v24 = vld [vmem:[#allocation11 + $0x850] sm:$0xff]  ;;  %v1218_v25 = vld [vmem:[#allocation11 + $0x868] sm:$0xff] }
 0x1ec   :  { %5212 = vmatprep.subr.bf16.mxu1 %v5147_v32  ;;  %v1026_v32 = vld [vmem:[#allocation11 + $0x720] sm:$0xff] }
 0x1ed   :  { %v5253_v36 = vpack.c.bf16 %v1028_v33, %v1026_v32  ;;  %v1219_v32 = vld [vmem:[#allocation11 + $0x870] sm:$0xff]  ;;  %v1222_v33 = vld [vmem:[#allocation11 + $0x888] sm:$0xff] }
 0x1ee   :  { %5150 = vmatpush1.bf16.msra.mxu0 %v5149_v37 }
 0x1ef   :  { %5214 = vmatpush1.bf16.msra.mxu1 %v5149_v37  ;;  %5216 = vmatprep.subr.bf16.mxu0 %v5215_v38  ;;  %v5255_v37 = vpack.c.bf16 %v1033_v35, %v1031_v34  ;;  %v1224_v34 = vld [vmem:[#allocation11 + $0x898] sm:$0xff] }
 0x1f0   :  { %5280 = vmatprep.subr.bf16.mxu1 %v5215_v38  ;;  %v1030_v38 = vld [vmem:[#allocation11 + $0x740] sm:$0xff] }
 0x1f1   :  { %906 = vmatmul.mubr.f32.vlgmr.msra.gmra.mrb[6].mxu0 %v7563_v31  ;;  %v5257_v42 = vpack.c.bf16 %v1032_v39, %v1030_v38  ;;  %v1223_v38 = vld [vmem:[#allocation11 + $0x890] sm:$0xff]  ;;  %v1226_v39 = vld [vmem:[#allocation11 + $0x8a8] sm:$0xff] }
 0x1f2   :  { %981 = vmatmul.mubr.f32.vlgmr.msra.gmra.mrb[6].mxu1 %v7558_v28  ;;  %5218 = vmatpush1.bf16.msra.mxu0 %v5217_v43 }
 0x1f3   :  { %1120 = vmatprep.mubr.f32.mxu0 %v7556_v27  ;;  %5282 = vmatpush1.bf16.msra.mxu1 %v5217_v43  ;;  %v1009_v27 = vld [vmem:[#allocation11 + $0x698] sm:$0xff]  ;;  %v5259_v43 = vpack.c.bf16 %v1037_v41, %v1035_v40 }
 0x1f4   :  { %1195 = vmatprep.mubr.f32.mxu1 %v7561_v30  ;;  %5220 = vmatprep.subr.bf16.mxu0 %v5219_v46  ;;  %v5231_v61 = vpack.c.bf16 %v1009_v27, %v1007_v59  ;;  %v1006_v30 = vld [vmem:[#allocation11 + $0x680] sm:$0xff]  ;;  %v1049_v59 = vld [vmem:[#allocation11 + $0x7d8] sm:$0xff] }
 0x1f5   :  { %5284 = vmatprep.subr.bf16.mxu1 %v5219_v46  ;;  %v5233_v2 = vpack.c.bf16 %v1008_v62, %v1006_v30  ;;  %v1039_v46 = vld [vmem:[#allocation11 + $0x788] sm:$0xff]  ;;  %v1048_v30 = vld [vmem:[#allocation11 + $0x7d0] sm:$0xff]  ;;  %v1228_v40 = vld [vmem:[#allocation11 + $0x8b8] sm:$0xff] }
 0x1f6   :  { %5222 = vmatpush1.bf16.msra.mxu0 %v5221_v49  ;;  %v1051_v62 = vld [vmem:[#allocation11 + $0x7e8] sm:$0xff] }
 0x1f7   :  { %5286 = vmatpush1.bf16.msra.mxu1 %v5221_v49  ;;  %5224 = vmatprep.subr.bf16.mxu0 %v5223_v50  ;;  %v5263_v49 = vpack.c.bf16 %v1041_v47, %v1039_v46  ;;  %v1232_v46 = vld [vmem:[#allocation11 + $0x8d8] sm:$0xff] }
 0x1f8   :  { %5288 = vmatprep.subr.bf16.mxu1 %v5223_v50  ;;  %v1038_v50 = vld [vmem:[#allocation11 + $0x780] sm:$0xff] }
 0x1f9   :  { %v5265_v54 = vpack.c.bf16 %v1040_v51, %v1038_v50  ;;  %v1231_v50 = vld [vmem:[#allocation11 + $0x8d0] sm:$0xff] }
 0x1fa   :  { %5226 = vmatpush1.bf16.msra.mxu0 %v5225_v55 }
 0x1fb   :  { %5290 = vmatpush1.bf16.msra.mxu1 %v5225_v55  ;;  %5228 = vmatprep.subr.bf16.mxu0 %v5227_v56  ;;  %v5267_v55 = vpack.c.bf16 %v1045_v53, %v1043_v52  ;;  %v1234_v52 = vld [vmem:[#allocation11 + $0x8e8] sm:$0xff]  ;;  %v1236_v53 = vld [vmem:[#allocation11 + $0x8f8] sm:$0xff] }
 0x1fc   :  { %5292 = vmatprep.subr.bf16.mxu1 %v5227_v56  ;;  %v1042_v56 = vld [vmem:[#allocation11 + $0x7a0] sm:$0xff] }
 0x1fd   :  { %v5269_v27 = vpack.c.bf16 %v1044_v57, %v1042_v56 }
 0x1fe   :  { %5230 = vmatpush1.bf16.msra.mxu0 %v5229_v60 }
 0x1ff   :  { %5294 = vmatpush1.bf16.msra.mxu1 %v5229_v60  ;;  %5232 = vmatprep.subr.bf16.mxu0 %v5231_v61  ;;  %v5271_v60 = vpack.c.bf16 %v1049_v59, %v1047_v58  ;;  %v5371_v58 = vpack.c.bf16 %v1236_v53, %v1234_v52  ;;  %v1233_v59 = vld [vmem:[#allocation11 + $0x8e0] sm:$0xff] }
 0x200   :  { %5296 = vmatprep.subr.bf16.mxu1 %v5231_v61  ;;  %v1046_v61 = vld [vmem:[#allocation11 + $0x7c0] sm:$0xff] }
 0x201   :  { %v5273_v1 = vpack.c.bf16 %v1048_v30, %v1046_v61  ;;  %v1240_v61 = vld [vmem:[#allocation11 + $0x918] sm:$0xff]  ;;  %v1420_v53 = vld [vmem:[#allocation11 + $0xa00] sm:$0xff] }
 0x202   :  { %5234 = vmatpush1.bf16.msra.mxu0 %v5233_v2 }
 0x203   :  { %5298 = vmatpush1.bf16.msra.mxu1 %v5233_v2  ;;  %5236 = vmatprep.subr.bf16.mxu0 %v5235_v3  ;;  %v5275_v2 = vpack.c.bf16 %v1053_v63, %v1051_v62  ;;  %v1237_v63 = vld [vmem:[#allocation11 + $0x900] sm:$0xff] }
 0x204   :  { %5300 = vmatprep.subr.bf16.mxu1 %v5235_v3  ;;  %v1050_v3 = vld [vmem:[#allocation11 + $0x7e0] sm:$0xff] }
 0x205   :  { %v5277_v7 = vpack.c.bf16 %v1052_v4, %v1050_v3  ;;  %v1244_v3 = vld [vmem:[#allocation11 + $0x938] sm:$0xff] }
 0x206   :  { %5238 = vmatpush1.bf16.msra.mxu0 %v5237_v8 }
 0x207   :  { %5302 = vmatpush1.bf16.msra.mxu1 %v5237_v8  ;;  %5240 = vmatprep.subr.bf16.mxu0 %v5239_v9  ;;  %v5343_v8 = vpack.c.bf16 %v1208_v6, %v1206_v5  ;;  %v1241_v6 = vld [vmem:[#allocation11 + $0x920] sm:$0xff] }
 0x208   :  { %5304 = vmatprep.subr.bf16.mxu1 %v5239_v9  ;;  %v1205_v9 = vld [vmem:[#allocation11 + $0x800] sm:$0xff] }
 0x209   :  { %v5345_v13 = vpack.c.bf16 %v1207_v10, %v1205_v9  ;;  %v1248_v9 = vld [vmem:[#allocation11 + $0x958] sm:$0xff] }
 0x20a   :  { %5242 = vmatpush1.bf16.msra.mxu0 %v5241_v14 }
 0x20b   :  { %5306 = vmatpush1.bf16.msra.mxu1 %v5241_v14  ;;  %5244 = vmatprep.subr.bf16.mxu0 %v5243_v15  ;;  %v1209_v14 = vld [vmem:[#allocation11 + $0x820] sm:$0xff] }
 0x20c   :  { %5308 = vmatprep.subr.bf16.mxu1 %v5243_v15  ;;  %v1211_v15 = vld [vmem:[#allocation11 + $0x830] sm:$0xff] }
 0x20e   :  { %5246 = vmatpush1.bf16.msra.mxu0 %v5245_v20 }
 0x20f   :  { %5310 = vmatpush1.bf16.msra.mxu1 %v5245_v20  ;;  %5248 = vmatprep.subr.bf16.mxu0 %v5247_v21  ;;  %v5349_v20 = vpack.c.bf16 %v1211_v15, %v1209_v14  ;;  %v1250_v14 = vld [vmem:[#allocation11 + $0x968] sm:$0xff]  ;;  %v1252_v15 = vld [vmem:[#allocation11 + $0x978] sm:$0xff] }
 0x210   :  { %5312 = vmatprep.subr.bf16.mxu1 %v5247_v21  ;;  %v7583_v21 = vld [vmem:[#allocation2 + $0x18] sm:$0xff]  ;;  %v5387_v17 = vpack.c.bf16 %v1252_v15, %v1250_v14  ;;  %v1439_v14 = vld [vmem:[#allocation11 + $0xa98] sm:$0xff] }
 0x212   :  { %5250 = vmatpush1.bf16.msra.mxu0 %v5249_v26 }
 0x213   :  { %5314 = vmatpush1.bf16.msra.mxu1 %v5249_v26  ;;  %5252 = vmatprep.subr.bf16.mxu0 %v5251_v29  ;;  %v1220_v26 = vld [vmem:[#allocation11 + $0x878] sm:$0xff] }
 0x214   :  { %5316 = vmatprep.subr.bf16.mxu1 %v5251_v29  ;;  %v1217_v29 = vld [vmem:[#allocation11 + $0x860] sm:$0xff] }
 0x215   :  { %v5357_v35 = vpack.c.bf16 %v1219_v32, %v1217_v29  ;;  %v1260_v29 = vld [vmem:[#allocation11 + $0x9b8] sm:$0xff] }
 0x216   :  { %5254 = vmatpush1.bf16.msra.mxu0 %v5253_v36 }
 0x217   :  { %5318 = vmatpush1.bf16.msra.mxu1 %v5253_v36  ;;  %5256 = vmatprep.subr.bf16.mxu0 %v5255_v37  ;;  %v5359_v36 = vpack.c.bf16 %v1224_v34, %v1222_v33  ;;  %v1257_v34 = vld [vmem:[#allocation11 + $0x9a0] sm:$0xff] }
 0x218   :  { %5320 = vmatprep.subr.bf16.mxu1 %v5255_v37  ;;  %v1221_v37 = vld [vmem:[#allocation11 + $0x880] sm:$0xff] }
 0x219   :  { %v5361_v41 = vpack.c.bf16 %v1223_v38, %v1221_v37  ;;  %v1264_v37 = vld [vmem:[#allocation11 + $0x9d8] sm:$0xff] }
 0x21a   :  { %5258 = vmatpush1.bf16.msra.mxu0 %v5257_v42 }
 0x21b   :  { %5322 = vmatpush1.bf16.msra.mxu1 %v5257_v42  ;;  %5260 = vmatprep.subr.bf16.mxu0 %v5259_v43  ;;  %v5363_v42 = vpack.c.bf16 %v1228_v40, %v1226_v39  ;;  %v1261_v40 = vld [vmem:[#allocation11 + $0x9c0] sm:$0xff] }
 0x21c   :  { %5324 = vmatprep.subr.bf16.mxu1 %v5259_v43  ;;  %v1225_v43 = vld [vmem:[#allocation11 + $0x8a0] sm:$0xff] }
 0x21d   :  { %v5365_v47 = vpack.c.bf16 %v1227_v44, %v1225_v43  ;;  %v1268_v43 = vld [vmem:[#allocation11 + $0x9f8] sm:$0xff] }
 0x21e   :  { %5262 = vmatpush1.bf16.msra.mxu0 %v5261_v48 }
 0x21f   :  { %5326 = vmatpush1.bf16.msra.mxu1 %v5261_v48  ;;  %5264 = vmatprep.subr.bf16.mxu0 %v5263_v49  ;;  %v5367_v48 = vpack.c.bf16 %v1232_v46, %v1230_v45  ;;  %v1265_v46 = vld [vmem:[#allocation11 + $0x9e0] sm:$0xff] }
 0x220   :  { %5328 = vmatprep.subr.bf16.mxu1 %v5263_v49  ;;  %v1229_v49 = vld [vmem:[#allocation11 + $0x8c0] sm:$0xff] }
 0x221   :  { %v5369_v57 = vpack.c.bf16 %v1231_v50, %v1229_v49  ;;  %v1423_v49 = vld [vmem:[#allocation11 + $0xa18] sm:$0xff] }
 0x222   :  { %5266 = vmatpush1.bf16.msra.mxu0 %v5265_v54 }
 0x223   :  { %5330 = vmatpush1.bf16.msra.mxu1 %v5265_v54  ;;  %5268 = vmatprep.subr.bf16.mxu0 %v5267_v55 }
 0x224   :  { %5332 = vmatprep.subr.bf16.mxu1 %v5267_v55 }
 0x226   :  { %5270 = vmatpush1.bf16.msra.mxu0 %v5269_v27 }
 0x227   :  { %5334 = vmatpush1.bf16.msra.mxu1 %v5269_v27  ;;  %5272 = vmatprep.subr.bf16.mxu0 %v5271_v60  ;;  %v1235_v27 = vld [vmem:[#allocation11 + $0x8f0] sm:$0xff] }
 0x228   :  { %5336 = vmatprep.subr.bf16.mxu1 %v5271_v60  ;;  %v1238_v60 = vld [vmem:[#allocation11 + $0x908] sm:$0xff]  ;;  %v5373_v30 = vpack.c.bf16 %v1235_v27, %v1233_v59  ;;  %v1427_v59 = vld [vmem:[#allocation11 + $0xa38] sm:$0xff] }
 0x229   :  { %v5375_v62 = vpack.c.bf16 %v1240_v61, %v1238_v60  ;;  %v1424_v60 = vld [vmem:[#allocation11 + $0xa20] sm:$0xff]  ;;  %v1426_v61 = vld [vmem:[#allocation11 + $0xa30] sm:$0xff] }
 0x22a   :  { %5274 = vmatpush1.bf16.msra.mxu0 %v5273_v1 }
 0x22b   :  { %5338 = vmatpush1.bf16.msra.mxu1 %v5273_v1  ;;  %5276 = vmatprep.subr.bf16.mxu0 %v5275_v2  ;;  %v1239_v1 = vld [vmem:[#allocation11 + $0x910] sm:$0xff] }
 0x22c   :  { %5340 = vmatprep.subr.bf16.mxu1 %v5275_v2  ;;  %v1242_v2 = vld [vmem:[#allocation11 + $0x928] sm:$0xff]  ;;  %v5377_v4 = vpack.c.bf16 %v1239_v1, %v1237_v63  ;;  %v1431_v1 = vld [vmem:[#allocation11 + $0xa58] sm:$0xff] }
 0x22d   :  { %v5379_v5 = vpack.c.bf16 %v1244_v3, %v1242_v2  ;;  %v1429_v63 = vld [vmem:[#allocation11 + $0xa48] sm:$0xff]  ;;  %v7597_v2 = vld [vmem:[#allocation2 + $0x10] sm:$0xff]  ;;  %v5477_v3 = vpack.c.bf16 %v1426_v61, %v1424_v60 }
 0x22e   :  { %5278 = vmatpush1.bf16.msra.mxu0 %v5277_v7 }
 0x22f   :  { %5342 = vmatpush1.bf16.msra.mxu1 %v5277_v7  ;;  %5344 = vmatprep.subr.bf16.mxu0 %v5343_v8  ;;  %v1243_v7 = vld [vmem:[#allocation11 + $0x930] sm:$0xff] }
 0x230   :  { %5408 = vmatprep.subr.bf16.mxu1 %v5343_v8  ;;  %v1246_v8 = vld [vmem:[#allocation11 + $0x948] sm:$0xff]  ;;  %v5381_v10 = vpack.c.bf16 %v1243_v7, %v1241_v6  ;;  %v1430_v6 = vld [vmem:[#allocation11 + $0xa50] sm:$0xff] }
 0x231   :  { %1121 = vmatmul.mubr.f32.vlgmr.msra.gmra.mrb[8].mxu0 %v7563_v31  ;;  %v5355_v31 = vpack.c.bf16 %v1220_v26, %v1218_v25  ;;  %v5383_v11 = vpack.c.bf16 %v1248_v9, %v1246_v8  ;;  %v1253_v26 = vld [vmem:[#allocation11 + $0x980] sm:$0xff]  ;;  %v1433_v7 = vld [vmem:[#allocation11 + $0xa68] sm:$0xff]  ;;  %v1435_v8 = vld [vmem:[#allocation11 + $0xa78] sm:$0xff] }
 0x232   :  { %1196 = vmatmul.mubr.f32.vlgmr.msra.gmra.mrb[8].mxu1 %v7558_v28  ;;  %5346 = vmatpush1.bf16.msra.mxu0 %v5345_v13  ;;  %v5353_v28 = vpack.c.bf16 %v1215_v24, %v1213_v23  ;;  %v1256_v23 = vld [vmem:[#allocation11 + $0x998] sm:$0xff] }
 0x233   :  { %1335 = vmatprep.mubr.f32.mxu0 %v7580_v19  ;;  %5410 = vmatpush1.bf16.msra.mxu1 %v5345_v13  ;;  %v1247_v13 = vld [vmem:[#allocation11 + $0x950] sm:$0xff] }
 0x234   :  { %1410 = vmatprep.mubr.f32.mxu1 %v7583_v21  ;;  %5348 = vmatprep.subr.bf16.mxu0 %v5347_v16 }
 0x235   :  { %5412 = vmatprep.subr.bf16.mxu1 %v5347_v16  ;;  %v5385_v16 = vpack.c.bf16 %v1247_v13, %v1245_v12  ;;  %v1434_v12 = vld [vmem:[#allocation11 + $0xa70] sm:$0xff]  ;;  %v1437_v13 = vld [vmem:[#allocation11 + $0xa88] sm:$0xff] }
 0x236   :  { %5350 = vmatpush1.bf16.msra.mxu0 %v5349_v20 }
 0x237   :  { %5414 = vmatpush1.bf16.msra.mxu1 %v5349_v20  ;;  %5352 = vmatprep.subr.bf16.mxu0 %v5351_v22  ;;  %v1251_v20 = vld [vmem:[#allocation11 + $0x970] sm:$0xff] }
 0x238   :  { %5416 = vmatprep.subr.bf16.mxu1 %v5351_v22  ;;  %v1254_v22 = vld [vmem:[#allocation11 + $0x988] sm:$0xff]  ;;  %v5389_v24 = vpack.c.bf16 %v1251_v20, %v1249_v18  ;;  %v1438_v18 = vld [vmem:[#allocation11 + $0xa90] sm:$0xff] }
 0x239   :  { %v5391_v25 = vpack.c.bf16 %v1256_v23, %v1254_v22  ;;  %v1441_v20 = vld [vmem:[#allocation11 + $0xaa8] sm:$0xff]  ;;  %v1443_v22 = vld [vmem:[#allocation11 + $0xab8] sm:$0xff] }
 0x23a   :  { %5354 = vmatpush1.bf16.msra.mxu0 %v5353_v28 }
 0x23b   :  { %5418 = vmatpush1.bf16.msra.mxu1 %v5353_v28  ;;  %5356 = vmatprep.subr.bf16.mxu0 %v5355_v31  ;;  %v1255_v28 = vld [vmem:[#allocation11 + $0x990] sm:$0xff] }
 0x23c   :  { %5420 = vmatprep.subr.bf16.mxu1 %v5355_v31  ;;  %v1258_v31 = vld [vmem:[#allocation11 + $0x9a8] sm:$0xff]  ;;  %v5393_v32 = vpack.c.bf16 %v1255_v28, %v1253_v26  ;;  %v1442_v26 = vld [vmem:[#allocation11 + $0xab0] sm:$0xff] }
 0x23d   :  { %v5395_v33 = vpack.c.bf16 %v1260_v29, %v1258_v31  ;;  %v1445_v28 = vld [vmem:[#allocation11 + $0xac8] sm:$0xff]  ;;  %v1447_v31 = vld [vmem:[#allocation11 + $0xad8] sm:$0xff] }
 0x23e   :  { %5358 = vmatpush1.bf16.msra.mxu0 %v5357_v35 }
 0x23f   :  { %5422 = vmatpush1.bf16.msra.mxu1 %v5357_v35  ;;  %5360 = vmatprep.subr.bf16.mxu0 %v5359_v36  ;;  %v1259_v35 = vld [vmem:[#allocation11 + $0x9b0] sm:$0xff] }
 0x240   :  { %5424 = vmatprep.subr.bf16.mxu1 %v5359_v36  ;;  %v1262_v36 = vld [vmem:[#allocation11 + $0x9c8] sm:$0xff]  ;;  %v5397_v38 = vpack.c.bf16 %v1259_v35, %v1257_v34  ;;  %v1446_v34 = vld [vmem:[#allocation11 + $0xad0] sm:$0xff] }
 0x241   :  { %v5399_v39 = vpack.c.bf16 %v1264_v37, %v1262_v36  ;;  %v1449_v36 = vld [vmem:[#allocation11 + $0xae8] sm:$0xff]  ;;  %v1451_v37 = vld [vmem:[#allocation11 + $0xaf8] sm:$0xff] }
 0x242   :  { %5362 = vmatpush1.bf16.msra.mxu0 %v5361_v41 }
 0x243   :  { %5426 = vmatpush1.bf16.msra.mxu1 %v5361_v41  ;;  %5364 = vmatprep.subr.bf16.mxu0 %v5363_v42  ;;  %v1263_v41 = vld [vmem:[#allocation11 + $0x9d0] sm:$0xff] }
 0x244   :  { %v7586_v51 = vpop.f32.mrb[2].mxu0  ;;  %5428 = vmatprep.subr.bf16.mxu1 %v5363_v42  ;;  %v1266_v42 = vld [vmem:[#allocation11 + $0x9e8] sm:$0xff]  ;;  %v5401_v44 = vpack.c.bf16 %v1263_v41, %v1261_v40 }
 0x245   :  { %v7588_v54 = vpop.f32.mrb[2].mxu1  ;;  %v7590_v55 = vpop.f32.mrb[3].mxu0  ;;  %v5403_v45 = vpack.c.bf16 %v1268_v43, %v1266_v42 }
 0x246   :  { %v7592_v56 = vpop.f32.mrb[3].mxu1  ;;  %5366 = vmatpush1.bf16.msra.mxu0 %v5365_v47 }
 0x247   :  { %5430 = vmatpush1.bf16.msra.mxu1 %v5365_v47  ;;  %5368 = vmatprep.subr.bf16.mxu0 %v5367_v48  ;;  %v1267_v47 = vld [vmem:[#allocation11 + $0x9f0] sm:$0xff] }
 0x248   :  { %5432 = vmatprep.subr.bf16.mxu1 %v5367_v48  ;;  %v1421_v48 = vld [vmem:[#allocation11 + $0xa08] sm:$0xff]  ;;  %v5405_v50 = vpack.c.bf16 %v1267_v47, %v1265_v46  ;;  %v5499_v46 = vpack.c.bf16 %v1451_v37, %v1449_v36  ;;  %v1448_v47 = vld [vmem:[#allocation11 + $0xae0] sm:$0xff]  ;;  %v1478_v36 = vld [vmem:[#allocation11 + $0xbd0] sm:$0xff] }
 0x249   :  { %v5471_v52 = vpack.c.bf16 %v1423_v49, %v1421_v48  ;;  %v1450_v48 = vld [vmem:[#allocation11 + $0xaf0] sm:$0xff]  ;;  %v1453_v49 = vld [vmem:[#allocation11 + $0xb08] sm:$0xff] }
 0x24a   :  { %5370 = vmatpush1.bf16.msra.mxu0 %v5369_v57  ;;  %v1481_v37 = vld [vmem:[#allocation11 + $0xbe8] sm:$0xff] }
 0x24b   :  { %5434 = vmatpush1.bf16.msra.mxu1 %v5369_v57  ;;  %5372 = vmatprep.subr.bf16.mxu0 %v5371_v58  ;;  %v1422_v57 = vld [vmem:[#allocation11 + $0xa10] sm:$0xff] }
 0x24c   :  { %5436 = vmatprep.subr.bf16.mxu1 %v5371_v58  ;;  %v1425_v58 = vld [vmem:[#allocation11 + $0xa28] sm:$0xff]  ;;  %v5473_v27 = vpack.c.bf16 %v1422_v57, %v1420_v53  ;;  %v1452_v57 = vld [vmem:[#allocation11 + $0xb00] sm:$0xff] }
 0x24e   :  { %5374 = vmatpush1.bf16.msra.mxu0 %v5373_v30 }
 0x24f   :  { %5438 = vmatpush1.bf16.msra.mxu1 %v5373_v30  ;;  %5376 = vmatprep.subr.bf16.mxu0 %v5375_v62  ;;  %v7594_v30 = vld [vmem:[#allocation2] sm:$0xff] }
 0x250   :  { %5440 = vmatprep.subr.bf16.mxu1 %v5375_v62  ;;  %v5475_v62 = vpack.c.bf16 %v1427_v59, %v1425_v58  ;;  %v1454_v58 = vld [vmem:[#allocation11 + $0xb10] sm:$0xff]  ;;  %v1457_v59 = vld [vmem:[#allocation11 + $0xb28] sm:$0xff] }
 0x251   :  { %v5505_v60 = vpack.c.bf16 %v1454_v58, %v1452_v57  ;;  %v1635_v58 = vld [vmem:[#allocation11 + $0xc00] sm:$0xff] }
 0x252   :  { %5378 = vmatpush1.bf16.msra.mxu0 %v5377_v4 }
 0x253   :  { %5442 = vmatpush1.bf16.msra.mxu1 %v5377_v4  ;;  %5380 = vmatprep.subr.bf16.mxu0 %v5379_v5  ;;  %v5479_v4 = vpack.c.bf16 %v1431_v1, %v1429_v63  ;;  %v1458_v63 = vld [vmem:[#allocation11 + $0xb30] sm:$0xff]  ;;  %v1461_v1 = vld [vmem:[#allocation11 + $0xb48] sm:$0xff] }
 0x254   :  { %5444 = vmatprep.subr.bf16.mxu1 %v5379_v5  ;;  %v1428_v5 = vld [vmem:[#allocation11 + $0xa40] sm:$0xff] }
 0x255   :  { %v5481_v9 = vpack.c.bf16 %v1430_v6, %v1428_v5  ;;  %v1460_v6 = vld [vmem:[#allocation11 + $0xb40] sm:$0xff] }
 0x256   :  { %5382 = vmatpush1.bf16.msra.mxu0 %v5381_v10 }
 0x257   :  { %5446 = vmatpush1.bf16.msra.mxu1 %v5381_v10  ;;  %5384 = vmatprep.subr.bf16.mxu0 %v5383_v11  ;;  %v5483_v10 = vpack.c.bf16 %v1435_v8, %v1433_v7  ;;  %v1462_v7 = vld [vmem:[#allocation11 + $0xb50] sm:$0xff]  ;;  %v1465_v8 = vld [vmem:[#allocation11 + $0xb68] sm:$0xff] }
 0x258   :  { %5448 = vmatprep.subr.bf16.mxu1 %v5383_v11  ;;  %v1432_v11 = vld [vmem:[#allocation11 + $0xa60] sm:$0xff] }
 0x259   :  { %v5485_v15 = vpack.c.bf16 %v1434_v12, %v1432_v11  ;;  %v1464_v12 = vld [vmem:[#allocation11 + $0xb60] sm:$0xff] }
 0x25a   :  { %5386 = vmatpush1.bf16.msra.mxu0 %v5385_v16 }
 0x25b   :  { %5450 = vmatpush1.bf16.msra.mxu1 %v5385_v16  ;;  %5388 = vmatprep.subr.bf16.mxu0 %v5387_v17  ;;  %v5487_v16 = vpack.c.bf16 %v1439_v14, %v1437_v13  ;;  %v1466_v13 = vld [vmem:[#allocation11 + $0xb70] sm:$0xff]  ;;  %v1469_v14 = vld [vmem:[#allocation11 + $0xb88] sm:$0xff] }
 0x25c   :  { %5452 = vmatprep.subr.bf16.mxu1 %v5387_v17  ;;  %v1436_v17 = vld [vmem:[#allocation11 + $0xa80] sm:$0xff] }
 0x25d   :  { %v5489_v23 = vpack.c.bf16 %v1438_v18, %v1436_v17  ;;  %v1468_v18 = vld [vmem:[#allocation11 + $0xb80] sm:$0xff] }
 0x25e   :  { %5390 = vmatpush1.bf16.msra.mxu0 %v5389_v24 }
 0x25f   :  { %5454 = vmatpush1.bf16.msra.mxu1 %v5389_v24  ;;  %5392 = vmatprep.subr.bf16.mxu0 %v5391_v25  ;;  %v5491_v24 = vpack.c.bf16 %v1443_v22, %v1441_v20  ;;  %v1470_v20 = vld [vmem:[#allocation11 + $0xb90] sm:$0xff]  ;;  %v1473_v22 = vld [vmem:[#allocation11 + $0xba8] sm:$0xff] }
 0x260   :  { %5456 = vmatprep.subr.bf16.mxu1 %v5391_v25  ;;  %v1440_v25 = vld [vmem:[#allocation11 + $0xaa0] sm:$0xff] }
 0x261   :  { %v5493_v29 = vpack.c.bf16 %v1442_v26, %v1440_v25  ;;  %v1472_v26 = vld [vmem:[#allocation11 + $0xba0] sm:$0xff] }
 0x262   :  { %5394 = vmatpush1.bf16.msra.mxu0 %v5393_v32 }
 0x263   :  { %5458 = vmatpush1.bf16.msra.mxu1 %v5393_v32  ;;  %5396 = vmatprep.subr.bf16.mxu0 %v5395_v33  ;;  %v5495_v32 = vpack.c.bf16 %v1447_v31, %v1445_v28  ;;  %v1474_v28 = vld [vmem:[#allocation11 + $0xbb0] sm:$0xff]  ;;  %v1477_v31 = vld [vmem:[#allocation11 + $0xbc8] sm:$0xff] }
 0x264   :  { %5460 = vmatprep.subr.bf16.mxu1 %v5395_v33  ;;  %v1444_v33 = vld [vmem:[#allocation11 + $0xac0] sm:$0xff] }
 0x266   :  { %5398 = vmatpush1.bf16.msra.mxu0 %v5397_v38 }
 0x267   :  { %5462 = vmatpush1.bf16.msra.mxu1 %v5397_v38  ;;  %5400 = vmatprep.subr.bf16.mxu0 %v5399_v39 }
 0x268   :  { %5464 = vmatprep.subr.bf16.mxu1 %v5399_v39 }
 0x26a   :  { %5402 = vmatpush1.bf16.msra.mxu0 %v5401_v44 }
 0x26b   :  { %5466 = vmatpush1.bf16.msra.mxu1 %v5401_v44  ;;  %5404 = vmatprep.subr.bf16.mxu0 %v5403_v45  ;;  %v5497_v44 = vpack.c.bf16 %v1446_v34, %v1444_v33  ;;  %v1476_v34 = vld [vmem:[#allocation11 + $0xbc0] sm:$0xff] }
 0x26c   :  { %5468 = vmatprep.subr.bf16.mxu1 %v5403_v45 }
 0x26e   :  { %5406 = vmatpush1.bf16.msra.mxu0 %v5405_v50 }
 0x26f   :  { %5470 = vmatpush1.bf16.msra.mxu1 %v5405_v50  ;;  %5472 = vmatprep.subr.bf16.mxu0 %v5471_v52  ;;  %v1455_v50 = vld [vmem:[#allocation11 + $0xb18] sm:$0xff] }
 0x270   :  { %5536 = vmatprep.subr.bf16.mxu1 %v5471_v52  ;;  %v5501_v52 = vpack.c.bf16 %v1450_v48, %v1448_v47  ;;  %v5503_v53 = vpack.c.bf16 %v1455_v50, %v1453_v49  ;;  %v1480_v48 = vld [vmem:[#allocation11 + $0xbe0] sm:$0xff]  ;;  %v1482_v49 = vld [vmem:[#allocation11 + $0xbf0] sm:$0xff]  ;;  %v1636_v50 = vld [vmem:[#allocation11 + $0xc08] sm:$0xff] }
 0x271   :  { %1336 = vmatmul.mubr.f32.vlgmr.msra.gmra.mrb[10].mxu0 %v7594_v30 }
 0x272   :  { %1411 = vmatmul.mubr.f32.vlgmr.msra.gmra.mrb[10].mxu1 %v7597_v2  ;;  %5474 = vmatpush1.bf16.msra.mxu0 %v5473_v27 }
 0x273   :  { %1550 = vmatprep.mubr.f32.mxu0 %v7580_v19  ;;  %5538 = vmatpush1.bf16.msra.mxu1 %v5473_v27  ;;  %v1459_v27 = vld [vmem:[#allocation11 + $0xb38] sm:$0xff] }
 0x274   :  { %1625 = vmatprep.mubr.f32.mxu1 %v7583_v21  ;;  %5476 = vmatprep.subr.bf16.mxu0 %v5475_v62  ;;  %v5507_v61 = vpack.c.bf16 %v1459_v27, %v1457_v59  ;;  %v1637_v59 = vld [vmem:[#allocation11 + $0xc10] sm:$0xff]  ;;  %v1640_v27 = vld [vmem:[#allocation11 + $0xc28] sm:$0xff] }
 0x275   :  { %5540 = vmatprep.subr.bf16.mxu1 %v5475_v62  ;;  %v1456_v62 = vld [vmem:[#allocation11 + $0xb20] sm:$0xff] }
 0x276   :  { %5478 = vmatpush1.bf16.msra.mxu0 %v5477_v3 }
 0x277   :  { %5542 = vmatpush1.bf16.msra.mxu1 %v5477_v3  ;;  %5480 = vmatprep.subr.bf16.mxu0 %v5479_v4  ;;  %v1463_v3 = vld [vmem:[#allocation11 + $0xb58] sm:$0xff] }
 0x278   :  { %5544 = vmatprep.subr.bf16.mxu1 %v5479_v4  ;;  %v5509_v4 = vpack.c.bf16 %v1458_v63, %v1456_v62  ;;  %v5511_v5 = vpack.c.bf16 %v1463_v3, %v1461_v1  ;;  %v1639_v62 = vld [vmem:[#allocation11 + $0xc20] sm:$0xff]  ;;  %v1641_v63 = vld [vmem:[#allocation11 + $0xc30] sm:$0xff]  ;;  %v1644_v3 = vld [vmem:[#allocation11 + $0xc48] sm:$0xff] }
 0x27a   :  { %5482 = vmatpush1.bf16.msra.mxu0 %v5481_v9 }
 0x27b   :  { %5546 = vmatpush1.bf16.msra.mxu1 %v5481_v9  ;;  %5484 = vmatprep.subr.bf16.mxu0 %v5483_v10  ;;  %v1467_v9 = vld [vmem:[#allocation11 + $0xb78] sm:$0xff] }
 0x27c   :  { %5548 = vmatprep.subr.bf16.mxu1 %v5483_v10  ;;  %v5513_v10 = vpack.c.bf16 %v1462_v7, %v1460_v6  ;;  %v5515_v11 = vpack.c.bf16 %v1467_v9, %v1465_v8  ;;  %v1643_v7 = vld [vmem:[#allocation11 + $0xc40] sm:$0xff]  ;;  %v1645_v8 = vld [vmem:[#allocation11 + $0xc50] sm:$0xff]  ;;  %v1648_v9 = vld [vmem:[#allocation11 + $0xc68] sm:$0xff] }
 0x27e   :  { %5486 = vmatpush1.bf16.msra.mxu0 %v5485_v15 }
 0x27f   :  { %5550 = vmatpush1.bf16.msra.mxu1 %v5485_v15  ;;  %5488 = vmatprep.subr.bf16.mxu0 %v5487_v16  ;;  %v1471_v15 = vld [vmem:[#allocation11 + $0xb98] sm:$0xff] }
 0x280   :  { %5552 = vmatprep.subr.bf16.mxu1 %v5487_v16  ;;  %v5517_v16 = vpack.c.bf16 %v1466_v13, %v1464_v12  ;;  %v5519_v17 = vpack.c.bf16 %v1471_v15, %v1469_v14  ;;  %v1647_v13 = vld [vmem:[#allocation11 + $0xc60] sm:$0xff]  ;;  %v1649_v14 = vld [vmem:[#allocation11 + $0xc70] sm:$0xff]  ;;  %v1652_v15 = vld [vmem:[#allocation11 + $0xc88] sm:$0xff] }
 0x282   :  { %5490 = vmatpush1.bf16.msra.mxu0 %v5489_v23 }
 0x283   :  { %5554 = vmatpush1.bf16.msra.mxu1 %v5489_v23  ;;  %5492 = vmatprep.subr.bf16.mxu0 %v5491_v24  ;;  %v1475_v23 = vld [vmem:[#allocation11 + $0xbb8] sm:$0xff] }
 0x284   :  { %v7602_v35 = vpop.f32.mrb[4].mxu0  ;;  %5556 = vmatprep.subr.bf16.mxu1 %v5491_v24  ;;  %v5521_v24 = vpack.c.bf16 %v1470_v20, %v1468_v18  ;;  %v5523_v25 = vpack.c.bf16 %v1475_v23, %v1473_v22  ;;  %v1653_v18 = vld [vmem:[#allocation11 + $0xc90] sm:$0xff]  ;;  %v1656_v20 = vld [vmem:[#allocation11 + $0xca8] sm:$0xff]  ;;  %v1658_v22 = vld [vmem:[#allocation11 + $0xcb8] sm:$0xff] }
 0x285   :  { %v5985_v38 = vpack.c.bf16 %v7602_v35, %v7586_v51  ;;  %v7606_v39 = vpop.f32.mrb[4].mxu1  ;;  %v7608_v40 = vpop.f32.mrb[5].mxu0 }
 0x286   :  { %v6001_v41 = vpack.c.bf16 %v7606_v39, %v7588_v54  ;;  %v5983_v42 = vpack.c.bf16 %v7608_v40, %v7590_v55  ;;  %v7614_v43 = vpop.f32.mrb[5].mxu1  ;;  %5494 = vmatpush1.bf16.msra.mxu0 %v5493_v29 }
 0x287   :  { %v5999_v45 = vpack.c.bf16 %v7614_v43, %v7592_v56  ;;  %5558 = vmatpush1.bf16.msra.mxu1 %v5493_v29  ;;  %5496 = vmatprep.subr.bf16.mxu0 %v5495_v32  ;;  %v1479_v29 = vld [vmem:[#allocation11 + $0xbd8] sm:$0xff] }
 0x288   :  { %5560 = vmatprep.subr.bf16.mxu1 %v5495_v32  ;;  %v5525_v32 = vpack.c.bf16 %v1474_v28, %v1472_v26  ;;  %v5527_v33 = vpack.c.bf16 %v1479_v29, %v1477_v31  ;;  %v1657_v26 = vld [vmem:[#allocation11 + $0xcb0] sm:$0xff]  ;;  %v1660_v28 = vld [vmem:[#allocation11 + $0xcc8] sm:$0xff]  ;;  %v1662_v31 = vld [vmem:[#allocation11 + $0xcd8] sm:$0xff] }
 0x28a   :  { %5498 = vmatpush1.bf16.msra.mxu0 %v5497_v44 }
 0x28b   :  { %5562 = vmatpush1.bf16.msra.mxu1 %v5497_v44  ;;  %5500 = vmatprep.subr.bf16.mxu0 %v5499_v46  ;;  %v1483_v44 = vld [vmem:[#allocation11 + $0xbf8] sm:$0xff] }
 0x28c   :  { %5564 = vmatprep.subr.bf16.mxu1 %v5499_v46  ;;  %v5529_v46 = vpack.c.bf16 %v1478_v36, %v1476_v34  ;;  %v5531_v47 = vpack.c.bf16 %v1483_v44, %v1481_v37  ;;  %v1661_v34 = vld [vmem:[#allocation11 + $0xcd0] sm:$0xff]  ;;  %v1664_v37 = vld [vmem:[#allocation11 + $0xce8] sm:$0xff]  ;;  %v1666_v44 = vld [vmem:[#allocation11 + $0xcf8] sm:$0xff] }
 0x28e   :  { %5502 = vmatpush1.bf16.msra.mxu0 %v5501_v52 }
 0x28f   :  { %5566 = vmatpush1.bf16.msra.mxu1 %v5501_v52  ;;  %5504 = vmatprep.subr.bf16.mxu0 %v5503_v53  ;;  %v1638_v52 = vld [vmem:[#allocation11 + $0xc18] sm:$0xff] }
 0x290   :  { %5568 = vmatprep.subr.bf16.mxu1 %v5503_v53  ;;  %v5533_v53 = vpack.c.bf16 %v1482_v49, %v1480_v48  ;;  %v5599_v57 = vpack.c.bf16 %v1638_v52, %v1636_v50  ;;  %v5627_v50 = vpack.c.bf16 %v1666_v44, %v1664_v37  ;;  %v1663_v52 = vld [vmem:[#allocation11 + $0xce0] sm:$0xff] }
 0x291   :  { %v1691_v44 = vld [vmem:[#allocation11 + $0xdc0] sm:$0xff] }
 0x292   :  { %5506 = vmatpush1.bf16.msra.mxu0 %v5505_v60 }
 0x293   :  { %5570 = vmatpush1.bf16.msra.mxu1 %v5505_v60  ;;  %5508 = vmatprep.subr.bf16.mxu0 %v5507_v61  ;;  %v1642_v60 = vld [vmem:[#allocation11 + $0xc38] sm:$0xff] }
 0x294   :  { %5572 = vmatprep.subr.bf16.mxu1 %v5507_v61  ;;  %v5601_v61 = vpack.c.bf16 %v1637_v59, %v1635_v58  ;;  %v5603_v1 = vpack.c.bf16 %v1642_v60, %v1640_v27  ;;  %v1670_v58 = vld [vmem:[#allocation11 + $0xd18] sm:$0xff]  ;;  %v1667_v60 = vld [vmem:[#allocation11 + $0xd00] sm:$0xff] }
 0x296   :  { %5510 = vmatpush1.bf16.msra.mxu0 %v5509_v4 }
 0x297   :  { %5574 = vmatpush1.bf16.msra.mxu1 %v5509_v4  ;;  %5512 = vmatprep.subr.bf16.mxu0 %v5511_v5  ;;  %v1646_v4 = vld [vmem:[#allocation11 + $0xc58] sm:$0xff] }
 0x298   :  { %5576 = vmatprep.subr.bf16.mxu1 %v5511_v5  ;;  %v5605_v5 = vpack.c.bf16 %v1641_v63, %v1639_v62  ;;  %v5607_v6 = vpack.c.bf16 %v1646_v4, %v1644_v3  ;;  %v1672_v62 = vld [vmem:[#allocation11 + $0xd28] sm:$0xff]  ;;  %v1674_v63 = vld [vmem:[#allocation11 + $0xd38] sm:$0xff]  ;;  %v1671_v4 = vld [vmem:[#allocation11 + $0xd20] sm:$0xff] }
 0x299   :  { %v5635_v3 = vpack.c.bf16 %v1674_v63, %v1672_v62  ;;  %v1850_v63 = vld [vmem:[#allocation11 + $0xe00] sm:$0xff] }
 0x29a   :  { %5514 = vmatpush1.bf16.msra.mxu0 %v5513_v10 }
 0x29b   :  { %5578 = vmatpush1.bf16.msra.mxu1 %v5513_v10  ;;  %5516 = vmatprep.subr.bf16.mxu0 %v5515_v11  ;;  %v1650_v10 = vld [vmem:[#allocation11 + $0xc78] sm:$0xff] }
 0x29c   :  { %5580 = vmatprep.subr.bf16.mxu1 %v5515_v11  ;;  %v5609_v11 = vpack.c.bf16 %v1645_v8, %v1643_v7  ;;  %v5611_v12 = vpack.c.bf16 %v1650_v10, %v1648_v9  ;;  %v1678_v7 = vld [vmem:[#allocation11 + $0xd58] sm:$0xff]  ;;  %v1675_v10 = vld [vmem:[#allocation11 + $0xd40] sm:$0xff] }
 0x29e   :  { %5518 = vmatpush1.bf16.msra.mxu0 %v5517_v16 }
 0x29f   :  { %5582 = vmatpush1.bf16.msra.mxu1 %v5517_v16  ;;  %5520 = vmatprep.subr.bf16.mxu0 %v5519_v17  ;;  %v5613_v16 = vpack.c.bf16 %v1649_v14, %v1647_v13  ;;  %v1682_v13 = vld [vmem:[#allocation11 + $0xd78] sm:$0xff] }
 0x2a0   :  { %5584 = vmatprep.subr.bf16.mxu1 %v5519_v17 }
 0x2a2   :  { %5522 = vmatpush1.bf16.msra.mxu0 %v5521_v24 }
 0x2a3   :  { %5586 = vmatpush1.bf16.msra.mxu1 %v5521_v24  ;;  %5524 = vmatprep.subr.bf16.mxu0 %v5523_v25  ;;  %v5619_v24 = vpack.c.bf16 %v1658_v22, %v1656_v20  ;;  %v1683_v22 = vld [vmem:[#allocation11 + $0xd80] sm:$0xff] }
 0x2a4   :  { %5588 = vmatprep.subr.bf16.mxu1 %v5523_v25  ;;  %v1655_v25 = vld [vmem:[#allocation11 + $0xca0] sm:$0xff] }
 0x2a5   :  { %v5621_v29 = vpack.c.bf16 %v1657_v26, %v1655_v25  ;;  %v1690_v25 = vld [vmem:[#allocation11 + $0xdb8] sm:$0xff] }
 0x2a6   :  { %5526 = vmatpush1.bf16.msra.mxu0 %v5525_v32 }
 0x2a7   :  { %5590 = vmatpush1.bf16.msra.mxu1 %v5525_v32  ;;  %5528 = vmatprep.subr.bf16.mxu0 %v5527_v33  ;;  %v5623_v32 = vpack.c.bf16 %v1662_v31, %v1660_v28  ;;  %v1687_v31 = vld [vmem:[#allocation11 + $0xda0] sm:$0xff] }
 0x2a8   :  { %5592 = vmatprep.subr.bf16.mxu1 %v5527_v33  ;;  %v1659_v33 = vld [vmem:[#allocation11 + $0xcc0] sm:$0xff] }
 0x2a9   :  { %v5625_v49 = vpack.c.bf16 %v1661_v34, %v1659_v33  ;;  %v1694_v33 = vld [vmem:[#allocation11 + $0xdd8] sm:$0xff] }
 0x2aa   :  { %5530 = vmatpush1.bf16.msra.mxu0 %v5529_v46 }
 0x2ab   :  { %5594 = vmatpush1.bf16.msra.mxu1 %v5529_v46  ;;  %5532 = vmatprep.subr.bf16.mxu0 %v5531_v47 }
 0x2ac   :  { %5596 = vmatprep.subr.bf16.mxu1 %v5531_v47 }
 0x2ae   :  { %5534 = vmatpush1.bf16.msra.mxu0 %v5533_v53 }
 0x2af   :  { %5598 = vmatpush1.bf16.msra.mxu1 %v5533_v53  ;;  %5600 = vmatprep.subr.bf16.mxu0 %v5599_v57  ;;  %v1665_v53 = vld [vmem:[#allocation11 + $0xcf0] sm:$0xff] }
 0x2b0   :  { %5664 = vmatprep.subr.bf16.mxu1 %v5599_v57  ;;  %v1668_v57 = vld [vmem:[#allocation11 + $0xd08] sm:$0xff]  ;;  %v5629_v59 = vpack.c.bf16 %v1665_v53, %v1663_v52  ;;  %v1698_v52 = vld [vmem:[#allocation11 + $0xdf8] sm:$0xff] }
 0x2b1   :  { %1551 = vmatmul.mubr.f32.vlgmr.msra.gmra.mrb[12].mxu0 %v7594_v30  ;;  %v5631_v27 = vpack.c.bf16 %v1670_v58, %v1668_v57  ;;  %v1695_v58 = vld [vmem:[#allocation11 + $0xde0] sm:$0xff] }
 0x2b2   :  { %1626 = vmatmul.mubr.f32.vlgmr.msra.gmra.mrb[12].mxu1 %v7597_v2  ;;  %5602 = vmatpush1.bf16.msra.mxu0 %v5601_v61 }
 0x2b3   :  { %1765 = vmatprep.mubr.f32.mxu0 %v7580_v19  ;;  %5666 = vmatpush1.bf16.msra.mxu1 %v5601_v61  ;;  %v1654_v19 = vld [vmem:[#allocation11 + $0xc98] sm:$0xff]  ;;  %v1669_v61 = vld [vmem:[#allocation11 + $0xd10] sm:$0xff] }
 0x2b4   :  { %1840 = vmatprep.mubr.f32.mxu1 %v7583_v21  ;;  %5604 = vmatprep.subr.bf16.mxu0 %v5603_v1  ;;  %v5615_v17 = vpack.c.bf16 %v1654_v19, %v1652_v15  ;;  %v1651_v21 = vld [vmem:[#allocation11 + $0xc80] sm:$0xff] }
 0x2b5   :  { %5668 = vmatprep.subr.bf16.mxu1 %v5603_v1  ;;  %v5617_v23 = vpack.c.bf16 %v1653_v18, %v1651_v21  ;;  %v5633_v1 = vpack.c.bf16 %v1669_v61, %v1667_v60  ;;  %v1679_v19 = vld [vmem:[#allocation11 + $0xd60] sm:$0xff]  ;;  %v1686_v21 = vld [vmem:[#allocation11 + $0xd98] sm:$0xff] }
 0x2b6   :  { %5606 = vmatpush1.bf16.msra.mxu0 %v5605_v5  ;;  %v1853_v60 = vld [vmem:[#allocation11 + $0xe18] sm:$0xff] }
 0x2b7   :  { %5670 = vmatpush1.bf16.msra.mxu1 %v5605_v5  ;;  %5608 = vmatprep.subr.bf16.mxu0 %v5607_v6  ;;  %v1673_v5 = vld [vmem:[#allocation11 + $0xd30] sm:$0xff] }
 0x2b8   :  { %5672 = vmatprep.subr.bf16.mxu1 %v5607_v6  ;;  %v1676_v6 = vld [vmem:[#allocation11 + $0xd48] sm:$0xff]  ;;  %v5637_v8 = vpack.c.bf16 %v1673_v5, %v1671_v4  ;;  %v1857_v4 = vld [vmem:[#allocation11 + $0xe38] sm:$0xff] }
 0x2b9   :  { %v5639_v9 = vpack.c.bf16 %v1678_v7, %v1676_v6  ;;  %v1854_v6 = vld [vmem:[#allocation11 + $0xe20] sm:$0xff]  ;;  %v1856_v7 = vld [vmem:[#allocation11 + $0xe30] sm:$0xff] }
 0x2ba   :  { %5610 = vmatpush1.bf16.msra.mxu0 %v5609_v11 }
 0x2bb   :  { %5674 = vmatpush1.bf16.msra.mxu1 %v5609_v11  ;;  %5612 = vmatprep.subr.bf16.mxu0 %v5611_v12  ;;  %v1677_v11 = vld [vmem:[#allocation11 + $0xd50] sm:$0xff] }
 0x2bc   :  { %5676 = vmatprep.subr.bf16.mxu1 %v5611_v12  ;;  %v1680_v12 = vld [vmem:[#allocation11 + $0xd68] sm:$0xff]  ;;  %v5641_v14 = vpack.c.bf16 %v1677_v11, %v1675_v10  ;;  %v1861_v10 = vld [vmem:[#allocation11 + $0xe58] sm:$0xff] }
 0x2bd   :  { %v5643_v15 = vpack.c.bf16 %v1682_v13, %v1680_v12  ;;  %v7632_v11 = vld [vmem:[#allocation2 + $0x8] sm:$0xff]  ;;  %v5733_v12 = vpack.c.bf16 %v1856_v7, %v1854_v6  ;;  %v7635_v13 = vld [vmem:[#allocation2 + $0x18] sm:$0xff] }
 0x2be   :  { %5614 = vmatpush1.bf16.msra.mxu0 %v5613_v16  ;;  %v1878_v6 = vld [vmem:[#allocation11 + $0xee0] sm:$0xff]  ;;  %v1880_v7 = vld [vmem:[#allocation11 + $0xef0] sm:$0xff] }
 0x2bf   :  { %5678 = vmatpush1.bf16.msra.mxu1 %v5613_v16  ;;  %5616 = vmatprep.subr.bf16.mxu0 %v5615_v17  ;;  %v1681_v16 = vld [vmem:[#allocation11 + $0xd70] sm:$0xff] }
 0x2c0   :  { %5680 = vmatprep.subr.bf16.mxu1 %v5615_v17  ;;  %v1684_v17 = vld [vmem:[#allocation11 + $0xd88] sm:$0xff]  ;;  %v5645_v18 = vpack.c.bf16 %v1681_v16, %v1679_v19  ;;  %v1860_v19 = vld [vmem:[#allocation11 + $0xe50] sm:$0xff] }
 0x2c1   :  { %v5647_v20 = vpack.c.bf16 %v1686_v21, %v1684_v17  ;;  %v1863_v16 = vld [vmem:[#allocation11 + $0xe68] sm:$0xff]  ;;  %v1865_v17 = vld [vmem:[#allocation11 + $0xe78] sm:$0xff]  ;;  %v1862_v21 = vld [vmem:[#allocation11 + $0xe60] sm:$0xff] }
 0x2c2   :  { %5618 = vmatpush1.bf16.msra.mxu0 %v5617_v23 }
 0x2c3   :  { %5682 = vmatpush1.bf16.msra.mxu1 %v5617_v23  ;;  %5620 = vmatprep.subr.bf16.mxu0 %v5619_v24  ;;  %v1685_v23 = vld [vmem:[#allocation11 + $0xd90] sm:$0xff] }
 0x2c4   :  { %v7622_v36 = vpop.f32.mrb[6].mxu0  ;;  %5684 = vmatprep.subr.bf16.mxu1 %v5619_v24  ;;  %v1688_v24 = vld [vmem:[#allocation11 + $0xda8] sm:$0xff]  ;;  %v5649_v26 = vpack.c.bf16 %v1685_v23, %v1683_v22  ;;  %v1869_v22 = vld [vmem:[#allocation11 + $0xe98] sm:$0xff] }
 0x2c5   :  { %v7624_v46 = vpop.f32.mrb[6].mxu1  ;;  %v7626_v47 = vpop.f32.mrb[7].mxu0  ;;  %v5651_v28 = vpack.c.bf16 %v1690_v25, %v1688_v24  ;;  %v1866_v25 = vld [vmem:[#allocation11 + $0xe80] sm:$0xff] }
 0x2c6   :  { %v7628_v48 = vpop.f32.mrb[7].mxu1  ;;  %5622 = vmatpush1.bf16.msra.mxu0 %v5621_v29 }
 0x2c7   :  { %5686 = vmatpush1.bf16.msra.mxu1 %v5621_v29  ;;  %5624 = vmatprep.subr.bf16.mxu0 %v5623_v32  ;;  %v1689_v29 = vld [vmem:[#allocation11 + $0xdb0] sm:$0xff] }
 0x2c8   :  { %5688 = vmatprep.subr.bf16.mxu1 %v5623_v32  ;;  %v1692_v32 = vld [vmem:[#allocation11 + $0xdc8] sm:$0xff]  ;;  %v5653_v34 = vpack.c.bf16 %v1689_v29, %v1687_v31  ;;  %v1873_v31 = vld [vmem:[#allocation11 + $0xeb8] sm:$0xff] }
 0x2c9   :  { %v5655_v37 = vpack.c.bf16 %v1694_v33, %v1692_v32  ;;  %v1870_v33 = vld [vmem:[#allocation11 + $0xea0] sm:$0xff] }
 0x2ca   :  { %5626 = vmatpush1.bf16.msra.mxu0 %v5625_v49 }
 0x2cb   :  { %5690 = vmatpush1.bf16.msra.mxu1 %v5625_v49  ;;  %5628 = vmatprep.subr.bf16.mxu0 %v5627_v50  ;;  %v1693_v49 = vld [vmem:[#allocation11 + $0xdd0] sm:$0xff] }
 0x2cc   :  { %5692 = vmatprep.subr.bf16.mxu1 %v5627_v50  ;;  %v1696_v50 = vld [vmem:[#allocation11 + $0xde8] sm:$0xff]  ;;  %v5657_v53 = vpack.c.bf16 %v1693_v49, %v1691_v44  ;;  %v1877_v44 = vld [vmem:[#allocation11 + $0xed8] sm:$0xff] }
 0x2cd   :  { %v5659_v57 = vpack.c.bf16 %v1698_v52, %v1696_v50  ;;  %v1874_v52 = vld [vmem:[#allocation11 + $0xec0] sm:$0xff] }
 0x2ce   :  { %5630 = vmatpush1.bf16.msra.mxu0 %v5629_v59 }
 0x2cf   :  { %5694 = vmatpush1.bf16.msra.mxu1 %v5629_v59  ;;  %5632 = vmatprep.subr.bf16.mxu0 %v5631_v27  ;;  %v1697_v59 = vld [vmem:[#allocation11 + $0xdf0] sm:$0xff] }
 0x2d0   :  { %5696 = vmatprep.subr.bf16.mxu1 %v5631_v27  ;;  %v1851_v27 = vld [vmem:[#allocation11 + $0xe08] sm:$0xff]  ;;  %v5661_v61 = vpack.c.bf16 %v1697_v59, %v1695_v58  ;;  %v1881_v59 = vld [vmem:[#allocation11 + $0xef8] sm:$0xff] }
 0x2d1   :  { %v5727_v62 = vpack.c.bf16 %v1853_v60, %v1851_v27  ;;  %v1879_v58 = vld [vmem:[#allocation11 + $0xee8] sm:$0xff] }
 0x2d2   :  { %5634 = vmatpush1.bf16.msra.mxu0 %v5633_v1 }
 0x2d3   :  { %5698 = vmatpush1.bf16.msra.mxu1 %v5633_v1  ;;  %5636 = vmatprep.subr.bf16.mxu0 %v5635_v3  ;;  %v1852_v1 = vld [vmem:[#allocation11 + $0xe10] sm:$0xff] }
 0x2d4   :  { %5700 = vmatprep.subr.bf16.mxu1 %v5635_v3  ;;  %v1855_v3 = vld [vmem:[#allocation11 + $0xe28] sm:$0xff]  ;;  %v5729_v5 = vpack.c.bf16 %v1852_v1, %v1850_v63 }
 0x2d6   :  { %5638 = vmatpush1.bf16.msra.mxu0 %v5637_v8 }
 0x2d7   :  { %5702 = vmatpush1.bf16.msra.mxu1 %v5637_v8  ;;  %5640 = vmatprep.subr.bf16.mxu0 %v5639_v9  ;;  %v5731_v8 = vpack.c.bf16 %v1857_v4, %v1855_v3 }
 0x2d8   :  { %5704 = vmatprep.subr.bf16.mxu1 %v5639_v9  ;;  %v1859_v9 = vld [vmem:[#allocation11 + $0xe48] sm:$0xff] }
 0x2da   :  { %5642 = vmatpush1.bf16.msra.mxu0 %v5641_v14 }
 0x2db   :  { %5706 = vmatpush1.bf16.msra.mxu1 %v5641_v14  ;;  %5644 = vmatprep.subr.bf16.mxu0 %v5643_v15  ;;  %v5735_v14 = vpack.c.bf16 %v1861_v10, %v1859_v9  ;;  %v1885_v9 = vld [vmem:[#allocation11 + $0xf18] sm:$0xff]  ;;  %v5757_v10 = vpack.c.bf16 %v1880_v7, %v1878_v6  ;;  %v1904_v6 = vld [vmem:[#allocation11 + $0xfb0] sm:$0xff]  ;;  %v1907_v7 = vld [vmem:[#allocation11 + $0xfc8] sm:$0xff] }
 0x2dc   :  { %5708 = vmatprep.subr.bf16.mxu1 %v5643_v15  ;;  %v1858_v15 = vld [vmem:[#allocation11 + $0xe40] sm:$0xff] }
 0x2de   :  { %5646 = vmatpush1.bf16.msra.mxu0 %v5645_v18 }
 0x2df   :  { %5710 = vmatpush1.bf16.msra.mxu1 %v5645_v18  ;;  %5648 = vmatprep.subr.bf16.mxu0 %v5647_v20  ;;  %v1864_v18 = vld [vmem:[#allocation11 + $0xe70] sm:$0xff] }
 0x2e0   :  { %5712 = vmatprep.subr.bf16.mxu1 %v5647_v20  ;;  %v1867_v20 = vld [vmem:[#allocation11 + $0xe88] sm:$0xff]  ;;  %v5741_v23 = vpack.c.bf16 %v1864_v18, %v1862_v21  ;;  %v1888_v21 = vld [vmem:[#allocation11 + $0xf30] sm:$0xff] }
 0x2e1   :  { %v5743_v24 = vpack.c.bf16 %v1869_v22, %v1867_v20  ;;  %v1891_v18 = vld [vmem:[#allocation11 + $0xf48] sm:$0xff]  ;;  %v1893_v20 = vld [vmem:[#allocation11 + $0xf58] sm:$0xff] }
 0x2e2   :  { %5650 = vmatpush1.bf16.msra.mxu0 %v5649_v26 }
 0x2e3   :  { %5714 = vmatpush1.bf16.msra.mxu1 %v5649_v26  ;;  %5652 = vmatprep.subr.bf16.mxu0 %v5651_v28  ;;  %v1868_v26 = vld [vmem:[#allocation11 + $0xe90] sm:$0xff] }
 0x2e4   :  { %5716 = vmatprep.subr.bf16.mxu1 %v5651_v28  ;;  %v1871_v28 = vld [vmem:[#allocation11 + $0xea8] sm:$0xff]  ;;  %v5745_v29 = vpack.c.bf16 %v1868_v26, %v1866_v25  ;;  %v1892_v25 = vld [vmem:[#allocation11 + $0xf50] sm:$0xff] }
 0x2e5   :  { %v5747_v32 = vpack.c.bf16 %v1873_v31, %v1871_v28  ;;  %v1895_v26 = vld [vmem:[#allocation11 + $0xf68] sm:$0xff]  ;;  %v1897_v28 = vld [vmem:[#allocation11 + $0xf78] sm:$0xff] }
 0x2e6   :  { %5654 = vmatpush1.bf16.msra.mxu0 %v5653_v34 }
 0x2e7   :  { %5718 = vmatpush1.bf16.msra.mxu1 %v5653_v34  ;;  %5656 = vmatprep.subr.bf16.mxu0 %v5655_v37  ;;  %v1872_v34 = vld [vmem:[#allocation11 + $0xeb0] sm:$0xff] }
 0x2e8   :  { %5720 = vmatprep.subr.bf16.mxu1 %v5655_v37  ;;  %v1875_v37 = vld [vmem:[#allocation11 + $0xec8] sm:$0xff]  ;;  %v5749_v49 = vpack.c.bf16 %v1872_v34, %v1870_v33  ;;  %v1896_v33 = vld [vmem:[#allocation11 + $0xf70] sm:$0xff] }
 0x2e9   :  { %v5751_v50 = vpack.c.bf16 %v1877_v44, %v1875_v37  ;;  %v1899_v34 = vld [vmem:[#allocation11 + $0xf88] sm:$0xff]  ;;  %v1901_v37 = vld [vmem:[#allocation11 + $0xf98] sm:$0xff] }
 0x2ea   :  { %5658 = vmatpush1.bf16.msra.mxu0 %v5657_v53 }
 0x2eb   :  { %5722 = vmatpush1.bf16.msra.mxu1 %v5657_v53  ;;  %5660 = vmatprep.subr.bf16.mxu0 %v5659_v57  ;;  %v1876_v53 = vld [vmem:[#allocation11 + $0xed0] sm:$0xff] }
 0x2ec   :  { %5724 = vmatprep.subr.bf16.mxu1 %v5659_v57  ;;  %v5753_v3 = vpack.c.bf16 %v1876_v53, %v1874_v52  ;;  %v1900_v52 = vld [vmem:[#allocation11 + $0xf90] sm:$0xff]  ;;  %v1903_v53 = vld [vmem:[#allocation11 + $0xfa8] sm:$0xff] }
 0x2ee   :  { %5662 = vmatpush1.bf16.msra.mxu0 %v5661_v61 }
 0x2ef   :  { %5726 = vmatpush1.bf16.msra.mxu1 %v5661_v61  ;;  %5728 = vmatprep.subr.bf16.mxu0 %v5727_v62 }
 0x2f0   :  { %5792 = vmatprep.subr.bf16.mxu1 %v5727_v62 }
 0x2f1   :  { %1766 = vmatmul.mubr.f32.vlgmr.msra.gmra.mrb[14].mxu0 %v7594_v30  ;;  %v5737_v30 = vpack.c.bf16 %v1860_v19, %v1858_v15  ;;  %v1884_v15 = vld [vmem:[#allocation11 + $0xf10] sm:$0xff]  ;;  %v1887_v19 = vld [vmem:[#allocation11 + $0xf28] sm:$0xff] }
 0x2f2   :  { %1841 = vmatmul.mubr.f32.vlgmr.msra.gmra.mrb[14].mxu1 %v7597_v2  ;;  %5730 = vmatpush1.bf16.msra.mxu0 %v5729_v5  ;;  %v5739_v2 = vpack.c.bf16 %v1865_v17, %v1863_v16  ;;  %v1889_v16 = vld [vmem:[#allocation11 + $0xf38] sm:$0xff] }
 0x2f3   :  { %1980 = vmatprep.mubr.f32.mxu0 %v7632_v11  ;;  %5794 = vmatpush1.bf16.msra.mxu1 %v5729_v5  ;;  %v5755_v5 = vpack.c.bf16 %v1881_v59, %v1879_v58  ;;  %v1905_v58 = vld [vmem:[#allocation11 + $0xfb8] sm:$0xff] }
 0x2f4   :  { %2055 = vmatprep.mubr.f32.mxu1 %v7635_v13  ;;  %5732 = vmatprep.subr.bf16.mxu0 %v5731_v8 }
 0x2f5   :  { %5796 = vmatprep.subr.bf16.mxu1 %v5731_v8  ;;  %v1883_v8 = vld [vmem:[#allocation11 + $0xf08] sm:$0xff] }
 0x2f6   :  { %5734 = vmatpush1.bf16.msra.mxu0 %v5733_v12 }
 0x2f7   :  { %5798 = vmatpush1.bf16.msra.mxu1 %v5733_v12  ;;  %5736 = vmatprep.subr.bf16.mxu0 %v5735_v14  ;;  %v5759_v12 = vpack.c.bf16 %v1885_v9, %v1883_v8  ;;  %v1909_v8 = vld [vmem:[#allocation11 + $0xfd8] sm:$0xff] }
 0x2f8   :  { %5800 = vmatprep.subr.bf16.mxu1 %v5735_v14  ;;  %v1882_v14 = vld [vmem:[#allocation11 + $0xf00] sm:$0xff] }
 0x2f9   :  { %v5761_v17 = vpack.c.bf16 %v1884_v15, %v1882_v14  ;;  %v1908_v14 = vld [vmem:[#allocation11 + $0xfd0] sm:$0xff]  ;;  %v1911_v15 = vld [vmem:[#allocation11 + $0xfe8] sm:$0xff] }
 0x2fa   :  { %5738 = vmatpush1.bf16.msra.mxu0 %v5737_v30 }
 0x2fb   :  { %5802 = vmatpush1.bf16.msra.mxu1 %v5737_v30  ;;  %5740 = vmatprep.subr.bf16.mxu0 %v5739_v2  ;;  %v5763_v30 = vpack.c.bf16 %v1889_v16, %v1887_v19  ;;  %v1913_v19 = vld [vmem:[#allocation11 + $0xff8] sm:$0xff] }
 0x2fc   :  { %5804 = vmatprep.subr.bf16.mxu1 %v5739_v2  ;;  %v1886_v2 = vld [vmem:[#allocation11 + $0xf20] sm:$0xff] }
 0x2fd   :  { %v5765_v22 = vpack.c.bf16 %v1888_v21, %v1886_v2  ;;  %v1912_v2 = vld [vmem:[#allocation11 + $0xff0] sm:$0xff]  ;;  %v2066_v21 = vld [vmem:[#allocation11 + $0x1008] sm:$0xff] }
 0x2fe   :  { %5742 = vmatpush1.bf16.msra.mxu0 %v5741_v23 }
 0x2ff   :  { %5806 = vmatpush1.bf16.msra.mxu1 %v5741_v23  ;;  %5744 = vmatprep.subr.bf16.mxu0 %v5743_v24  ;;  %v5767_v23 = vpack.c.bf16 %v1893_v20, %v1891_v18  ;;  %v2068_v18 = vld [vmem:[#allocation11 + $0x1018] sm:$0xff] }
 0x300   :  { %5808 = vmatprep.subr.bf16.mxu1 %v5743_v24  ;;  %v1890_v24 = vld [vmem:[#allocation11 + $0xf40] sm:$0xff] }
 0x301   :  { %v5769_v31 = vpack.c.bf16 %v1892_v25, %v1890_v24  ;;  %v2067_v24 = vld [vmem:[#allocation11 + $0x1010] sm:$0xff]  ;;  %v2070_v25 = vld [vmem:[#allocation11 + $0x1028] sm:$0xff] }
 0x302   :  { %5746 = vmatpush1.bf16.msra.mxu0 %v5745_v29 }
 0x303   :  { %5810 = vmatpush1.bf16.msra.mxu1 %v5745_v29  ;;  %5748 = vmatprep.subr.bf16.mxu0 %v5747_v32  ;;  %v5771_v29 = vpack.c.bf16 %v1897_v28, %v1895_v26  ;;  %v2072_v26 = vld [vmem:[#allocation11 + $0x1038] sm:$0xff] }
 0x304   :  { %v7638_v57 = vpop.f32.mrb[8].mxu0  ;;  %5812 = vmatprep.subr.bf16.mxu1 %v5747_v32  ;;  %v1894_v32 = vld [vmem:[#allocation11 + $0xf60] sm:$0xff] }
 0x305   :  { %v5989_v27 = vpack.c.bf16 %v7638_v57, %v7622_v36  ;;  %v7642_v60 = vpop.f32.mrb[8].mxu1  ;;  %v7644_v61 = vpop.f32.mrb[9].mxu0  ;;  %v5773_v44 = vpack.c.bf16 %v1896_v33, %v1894_v32  ;;  %v7654_v32 = vld [vmem:[#allocation2] sm:$0xff]  ;;  %v5859_v33 = vpack.c.bf16 %v2072_v26, %v2070_v25  ;;  %v2096_v26 = vld [vmem:[#allocation11 + $0x10f8] sm:$0xff] }
 0x306   :  { %v6005_v62 = vpack.c.bf16 %v7642_v60, %v7624_v46  ;;  %v5987_v63 = vpack.c.bf16 %v7644_v61, %v7626_v47  ;;  %v7650_v1 = vpop.f32.mrb[9].mxu1  ;;  %5750 = vmatpush1.bf16.msra.mxu0 %v5749_v49  ;;  %v2094_v25 = vld [vmem:[#allocation11 + $0x10e8] sm:$0xff] }
 0x307   :  { %v6003_v4 = vpack.c.bf16 %v7650_v1, %v7628_v48  ;;  %5814 = vmatpush1.bf16.msra.mxu1 %v5749_v49  ;;  %5752 = vmatprep.subr.bf16.mxu0 %v5751_v50  ;;  %v5775_v49 = vpack.c.bf16 %v1901_v37, %v1899_v34  ;;  %v2074_v34 = vld [vmem:[#allocation11 + $0x1048] sm:$0xff]  ;;  %v2076_v37 = vld [vmem:[#allocation11 + $0x1058] sm:$0xff] }
 0x308   :  { %5816 = vmatprep.subr.bf16.mxu1 %v5751_v50  ;;  %v1898_v50 = vld [vmem:[#allocation11 + $0xf80] sm:$0xff] }
 0x309   :  { %v5777_v59 = vpack.c.bf16 %v1900_v52, %v1898_v50  ;;  %v5863_v50 = vpack.c.bf16 %v2076_v37, %v2074_v34  ;;  %v2073_v52 = vld [vmem:[#allocation11 + $0x1040] sm:$0xff]  ;;  %v5883_v34 = vpack.c.bf16 %v2096_v26, %v2094_v25 }
 0x30a   :  { %5754 = vmatpush1.bf16.msra.mxu0 %v5753_v3  ;;  %v2093_v37 = vld [vmem:[#allocation11 + $0x10e0] sm:$0xff] }
 0x30b   :  { %5818 = vmatpush1.bf16.msra.mxu1 %v5753_v3  ;;  %5756 = vmatprep.subr.bf16.mxu0 %v5755_v5  ;;  %v5779_v3 = vpack.c.bf16 %v1905_v58, %v1903_v53  ;;  %v2075_v53 = vld [vmem:[#allocation11 + $0x1050] sm:$0xff]  ;;  %v2078_v58 = vld [vmem:[#allocation11 + $0x1068] sm:$0xff]  ;;  %v2113_v26 = vld [vmem:[#allocation11 + $0x1180] sm:$0xff] }
 0x30c   :  { %5820 = vmatprep.subr.bf16.mxu1 %v5755_v5  ;;  %v1902_v5 = vld [vmem:[#allocation11 + $0xfa0] sm:$0xff] }
 0x30d   :  { %v5781_v9 = vpack.c.bf16 %v1904_v6, %v1902_v5  ;;  %v2077_v6 = vld [vmem:[#allocation11 + $0x1060] sm:$0xff] }
 0x30e   :  { %5758 = vmatpush1.bf16.msra.mxu0 %v5757_v10 }
 0x30f   :  { %5822 = vmatpush1.bf16.msra.mxu1 %v5757_v10  ;;  %5760 = vmatprep.subr.bf16.mxu0 %v5759_v12  ;;  %v5783_v10 = vpack.c.bf16 %v1909_v8, %v1907_v7  ;;  %v2079_v7 = vld [vmem:[#allocation11 + $0x1070] sm:$0xff]  ;;  %v2082_v8 = vld [vmem:[#allocation11 + $0x1088] sm:$0xff] }
 0x310   :  { %5824 = vmatprep.subr.bf16.mxu1 %v5759_v12  ;;  %v1906_v12 = vld [vmem:[#allocation11 + $0xfc0] sm:$0xff] }
 0x311   :  { %v5785_v16 = vpack.c.bf16 %v1908_v14, %v1906_v12  ;;  %v2083_v12 = vld [vmem:[#allocation11 + $0x1090] sm:$0xff]  ;;  %v2086_v14 = vld [vmem:[#allocation11 + $0x10a8] sm:$0xff] }
 0x312   :  { %5762 = vmatpush1.bf16.msra.mxu0 %v5761_v17 }
 0x313   :  { %5826 = vmatpush1.bf16.msra.mxu1 %v5761_v17  ;;  %5764 = vmatprep.subr.bf16.mxu0 %v5763_v30  ;;  %v5787_v17 = vpack.c.bf16 %v1913_v19, %v1911_v15  ;;  %v2088_v15 = vld [vmem:[#allocation11 + $0x10b8] sm:$0xff] }
 0x314   :  { %5828 = vmatprep.subr.bf16.mxu1 %v5763_v30  ;;  %v1910_v30 = vld [vmem:[#allocation11 + $0xfe0] sm:$0xff] }
 0x315   :  { %v5789_v20 = vpack.c.bf16 %v1912_v2, %v1910_v30  ;;  %v2087_v30 = vld [vmem:[#allocation11 + $0x10b0] sm:$0xff]  ;;  %v2090_v2 = vld [vmem:[#allocation11 + $0x10c8] sm:$0xff] }
 0x316   :  { %5766 = vmatpush1.bf16.msra.mxu0 %v5765_v22 }
 0x317   :  { %5830 = vmatpush1.bf16.msra.mxu1 %v5765_v22  ;;  %5768 = vmatprep.subr.bf16.mxu0 %v5767_v23  ;;  %v5855_v22 = vpack.c.bf16 %v2068_v18, %v2066_v21  ;;  %v2092_v21 = vld [vmem:[#allocation11 + $0x10d8] sm:$0xff] }
 0x318   :  { %5832 = vmatprep.subr.bf16.mxu1 %v5767_v23  ;;  %v2065_v23 = vld [vmem:[#allocation11 + $0x1000] sm:$0xff] }
 0x319   :  { %v5857_v28 = vpack.c.bf16 %v2067_v24, %v2065_v23  ;;  %v2091_v23 = vld [vmem:[#allocation11 + $0x10d0] sm:$0xff] }
 0x31a   :  { %5770 = vmatpush1.bf16.msra.mxu0 %v5769_v31 }
 0x31b   :  { %5834 = vmatpush1.bf16.msra.mxu1 %v5769_v31  ;;  %5772 = vmatprep.subr.bf16.mxu0 %v5771_v29  ;;  %v2069_v31 = vld [vmem:[#allocation11 + $0x1020] sm:$0xff] }
 0x31c   :  { %5836 = vmatprep.subr.bf16.mxu1 %v5771_v29  ;;  %v2071_v29 = vld [vmem:[#allocation11 + $0x1030] sm:$0xff] }
 0x31e   :  { %5774 = vmatpush1.bf16.msra.mxu0 %v5773_v44 }
 0x31f   :  { %5838 = vmatpush1.bf16.msra.mxu1 %v5773_v44  ;;  %5776 = vmatprep.subr.bf16.mxu0 %v5775_v49  ;;  %v7657_v44 = vld [vmem:[#allocation2 + $0x10] sm:$0xff] }
 0x320   :  { %5840 = vmatprep.subr.bf16.mxu1 %v5775_v49  ;;  %v5861_v49 = vpack.c.bf16 %v2071_v29, %v2069_v31 }
 0x322   :  { %5778 = vmatpush1.bf16.msra.mxu0 %v5777_v59 }
 0x323   :  { %5842 = vmatpush1.bf16.msra.mxu1 %v5777_v59  ;;  %5780 = vmatprep.subr.bf16.mxu0 %v5779_v3  ;;  %v2080_v59 = vld [vmem:[#allocation11 + $0x1078] sm:$0xff] }
 0x324   :  { %5844 = vmatprep.subr.bf16.mxu1 %v5779_v3  ;;  %v5865_v3 = vpack.c.bf16 %v2075_v53, %v2073_v52  ;;  %v5867_v5 = vpack.c.bf16 %v2080_v59, %v2078_v58  ;;  %v2100_v52 = vld [vmem:[#allocation11 + $0x1118] sm:$0xff]  ;;  %v2097_v59 = vld [vmem:[#allocation11 + $0x1100] sm:$0xff] }
 0x326   :  { %5782 = vmatpush1.bf16.msra.mxu0 %v5781_v9 }
 0x327   :  { %5846 = vmatpush1.bf16.msra.mxu1 %v5781_v9  ;;  %5784 = vmatprep.subr.bf16.mxu0 %v5783_v10  ;;  %v5869_v9 = vpack.c.bf16 %v2079_v7, %v2077_v6  ;;  %v2104_v6 = vld [vmem:[#allocation11 + $0x1138] sm:$0xff] }
 0x328   :  { %5848 = vmatprep.subr.bf16.mxu1 %v5783_v10 }
 0x32a   :  { %5786 = vmatpush1.bf16.msra.mxu0 %v5785_v16 }
 0x32b   :  { %5850 = vmatpush1.bf16.msra.mxu1 %v5785_v16  ;;  %5788 = vmatprep.subr.bf16.mxu0 %v5787_v17  ;;  %v5875_v16 = vpack.c.bf16 %v2088_v15, %v2086_v14  ;;  %v2105_v15 = vld [vmem:[#allocation11 + $0x1140] sm:$0xff] }
 0x32c   :  { %5852 = vmatprep.subr.bf16.mxu1 %v5787_v17  ;;  %v2085_v17 = vld [vmem:[#allocation11 + $0x10a0] sm:$0xff] }
 0x32d   :  { %v5877_v18 = vpack.c.bf16 %v2087_v30, %v2085_v17  ;;  %v2112_v17 = vld [vmem:[#allocation11 + $0x1178] sm:$0xff] }
 0x32e   :  { %5790 = vmatpush1.bf16.msra.mxu0 %v5789_v20 }
 0x32f   :  { %5854 = vmatpush1.bf16.msra.mxu1 %v5789_v20  ;;  %5856 = vmatprep.subr.bf16.mxu0 %v5855_v22  ;;  %v5879_v20 = vpack.c.bf16 %v2092_v21, %v2090_v2  ;;  %v2109_v21 = vld [vmem:[#allocation11 + $0x1160] sm:$0xff] }
 0x330   :  { %5920 = vmatprep.subr.bf16.mxu1 %v5855_v22  ;;  %v2089_v22 = vld [vmem:[#allocation11 + $0x10c0] sm:$0xff] }
 0x331   :  { %1981 = vmatmul.mubr.f32.vlgmr.msra.gmra.mrb[16].mxu0 %v7654_v32 }
 0x332   :  { %2056 = vmatmul.mubr.f32.vlgmr.msra.gmra.mrb[16].mxu1 %v7657_v44  ;;  %5858 = vmatpush1.bf16.msra.mxu0 %v5857_v28 }
 0x333   :  { %2195 = vmatprep.mubr.f32.mxu0 %v7632_v11  ;;  %5922 = vmatpush1.bf16.msra.mxu1 %v5857_v28  ;;  %v2084_v11 = vld [vmem:[#allocation11 + $0x1098] sm:$0xff] }
 0x334   :  { %2270 = vmatprep.mubr.f32.mxu1 %v7635_v13  ;;  %5860 = vmatprep.subr.bf16.mxu0 %v5859_v33  ;;  %v5871_v10 = vpack.c.bf16 %v2084_v11, %v2082_v8  ;;  %v2081_v13 = vld [vmem:[#allocation11 + $0x1080] sm:$0xff] }
 0x335   :  { %5924 = vmatprep.subr.bf16.mxu1 %v5859_v33  ;;  %v5873_v19 = vpack.c.bf16 %v2083_v12, %v2081_v13  ;;  %v5881_v33 = vpack.c.bf16 %v2091_v23, %v2089_v22  ;;  %v2101_v11 = vld [vmem:[#allocation11 + $0x1120] sm:$0xff]  ;;  %v2108_v13 = vld [vmem:[#allocation11 + $0x1158] sm:$0xff] }
 0x336   :  { %5862 = vmatpush1.bf16.msra.mxu0 %v5861_v49  ;;  %v2116_v22 = vld [vmem:[#allocation11 + $0x1198] sm:$0xff] }
 0x337   :  { %5926 = vmatpush1.bf16.msra.mxu1 %v5861_v49  ;;  %5864 = vmatprep.subr.bf16.mxu0 %v5863_v50  ;;  %v2095_v49 = vld [vmem:[#allocation11 + $0x10f0] sm:$0xff] }
 0x338   :  { %5928 = vmatprep.subr.bf16.mxu1 %v5863_v50  ;;  %v2098_v50 = vld [vmem:[#allocation11 + $0x1108] sm:$0xff]  ;;  %v5885_v53 = vpack.c.bf16 %v2095_v49, %v2093_v37  ;;  %v2120_v37 = vld [vmem:[#allocation11 + $0x11b8] sm:$0xff] }
 0x339   :  { %v5887_v58 = vpack.c.bf16 %v2100_v52, %v2098_v50  ;;  %v2117_v52 = vld [vmem:[#allocation11 + $0x11a0] sm:$0xff] }
 0x33a   :  { %5866 = vmatpush1.bf16.msra.mxu0 %v5865_v3 }
 0x33b   :  { %5930 = vmatpush1.bf16.msra.mxu1 %v5865_v3  ;;  %5868 = vmatprep.subr.bf16.mxu0 %v5867_v5  ;;  %v2099_v3 = vld [vmem:[#allocation11 + $0x1110] sm:$0xff] }
 0x33c   :  { %5932 = vmatprep.subr.bf16.mxu1 %v5867_v5  ;;  %v2102_v5 = vld [vmem:[#allocation11 + $0x1128] sm:$0xff]  ;;  %v5889_v7 = vpack.c.bf16 %v2099_v3, %v2097_v59  ;;  %v2124_v59 = vld [vmem:[#allocation11 + $0x11d8] sm:$0xff] }
 0x33d   :  { %v5891_v8 = vpack.c.bf16 %v2104_v6, %v2102_v5  ;;  %v2121_v6 = vld [vmem:[#allocation11 + $0x11c0] sm:$0xff] }
 0x33e   :  { %5870 = vmatpush1.bf16.msra.mxu0 %v5869_v9 }
 0x33f   :  { %5934 = vmatpush1.bf16.msra.mxu1 %v5869_v9  ;;  %5872 = vmatprep.subr.bf16.mxu0 %v5871_v10  ;;  %v2103_v9 = vld [vmem:[#allocation11 + $0x1130] sm:$0xff] }
 0x340   :  { %5936 = vmatprep.subr.bf16.mxu1 %v5871_v10  ;;  %v2106_v10 = vld [vmem:[#allocation11 + $0x1148] sm:$0xff]  ;;  %v5893_v12 = vpack.c.bf16 %v2103_v9, %v2101_v11  ;;  %v2128_v11 = vld [vmem:[#allocation11 + $0x11f8] sm:$0xff] }
 0x341   :  { %v5895_v14 = vpack.c.bf16 %v2108_v13, %v2106_v10  ;;  %v2125_v13 = vld [vmem:[#allocation11 + $0x11e0] sm:$0xff] }
 0x342   :  { %5874 = vmatpush1.bf16.msra.mxu0 %v5873_v19 }
 0x343   :  { %5938 = vmatpush1.bf16.msra.mxu1 %v5873_v19  ;;  %5876 = vmatprep.subr.bf16.mxu0 %v5875_v16  ;;  %v2107_v19 = vld [vmem:[#allocation11 + $0x1150] sm:$0xff] }
 0x344   :  { %v7662_v24 = vpop.f32.mrb[10].mxu0  ;;  %5940 = vmatprep.subr.bf16.mxu1 %v5875_v16  ;;  %v2110_v16 = vld [vmem:[#allocation11 + $0x1168] sm:$0xff]  ;;  %v5897_v30 = vpack.c.bf16 %v2107_v19, %v2105_v15 }
 0x345   :  { %v7664_v28 = vpop.f32.mrb[10].mxu1  ;;  %v7666_v31 = vpop.f32.mrb[11].mxu0  ;;  %v5899_v2 = vpack.c.bf16 %v2112_v17, %v2110_v16 }
 0x346   :  { %v7668_v29 = vpop.f32.mrb[11].mxu1  ;;  %5878 = vmatpush1.bf16.msra.mxu0 %v5877_v18 }
 0x347   :  { %5942 = vmatpush1.bf16.msra.mxu1 %v5877_v18  ;;  %5880 = vmatprep.subr.bf16.mxu0 %v5879_v20  ;;  %v2111_v18 = vld [vmem:[#allocation11 + $0x1170] sm:$0xff] }
 0x348   :  { %5944 = vmatprep.subr.bf16.mxu1 %v5879_v20  ;;  %v2114_v20 = vld [vmem:[#allocation11 + $0x1188] sm:$0xff]  ;;  %v5901_v23 = vpack.c.bf16 %v2111_v18, %v2109_v21 }
 0x349   :  { %v5903_v25 = vpack.c.bf16 %v2116_v22, %v2114_v20 }
 0x34a   :  { %5882 = vmatpush1.bf16.msra.mxu0 %v5881_v33 }
 0x34b   :  { %5946 = vmatpush1.bf16.msra.mxu1 %v5881_v33  ;;  %5884 = vmatprep.subr.bf16.mxu0 %v5883_v34  ;;  %v2115_v33 = vld [vmem:[#allocation11 + $0x1190] sm:$0xff] }
 0x34c   :  { %5948 = vmatprep.subr.bf16.mxu1 %v5883_v34  ;;  %v2118_v34 = vld [vmem:[#allocation11 + $0x11a8] sm:$0xff]  ;;  %v5905_v49 = vpack.c.bf16 %v2115_v33, %v2113_v26 }
 0x34d   :  { %v5907_v50 = vpack.c.bf16 %v2120_v37, %v2118_v34 }
 0x34e   :  { %5886 = vmatpush1.bf16.msra.mxu0 %v5885_v53 }
 0x34f   :  { %5950 = vmatpush1.bf16.msra.mxu1 %v5885_v53  ;;  %5888 = vmatprep.subr.bf16.mxu0 %v5887_v58  ;;  %v2119_v53 = vld [vmem:[#allocation11 + $0x11b0] sm:$0xff] }
 0x350   :  { %5952 = vmatprep.subr.bf16.mxu1 %v5887_v58  ;;  %v2122_v58 = vld [vmem:[#allocation11 + $0x11c8] sm:$0xff]  ;;  %v5909_v3 = vpack.c.bf16 %v2119_v53, %v2117_v52  ;;  %v2542_v53 = vld [vmem:[#allocation11 + $0x18] sm:$0xff] }
 0x351   :  { %v5911_v5 = vpack.c.bf16 %v2124_v59, %v2122_v58  ;;  %v2540_v52 = vld [vmem:[#allocation11 + $0x8] sm:$0xff]  ;;  %v2539_v58 = vld [vmem:[#allocation11] sm:$0xff] }
 0x352   :  { %5890 = vmatpush1.bf16.msra.mxu0 %v5889_v7  ;;  %v6015_v59 = vpack.c.bf16 %v2542_v53, %v2540_v52  ;;  %v2572_v53 = vld [vmem:[#allocation11 + $0x108] sm:$0xff] }
 0x353   :  { %5954 = vmatpush1.bf16.msra.mxu1 %v5889_v7  ;;  %5892 = vmatprep.subr.bf16.mxu0 %v5891_v8  ;;  %v2123_v7 = vld [vmem:[#allocation11 + $0x11d0] sm:$0xff] }
 0x354   :  { %5956 = vmatprep.subr.bf16.mxu1 %v5891_v8  ;;  %v2126_v8 = vld [vmem:[#allocation11 + $0x11e8] sm:$0xff]  ;;  %v5913_v9 = vpack.c.bf16 %v2123_v7, %v2121_v6  ;;  %v2546_v6 = vld [vmem:[#allocation11 + $0x38] sm:$0xff] }
 0x355   :  { %v5915_v10 = vpack.c.bf16 %v2128_v11, %v2126_v8  ;;  %v2543_v11 = vld [vmem:[#allocation11 + $0x20] sm:$0xff] }
 0x356   :  { %5894 = vmatpush1.bf16.msra.mxu0 %v5893_v12 }
 0x357   :  { %5958 = vmatpush1.bf16.msra.mxu1 %v5893_v12  ;;  %5896 = vmatprep.subr.bf16.mxu0 %v5895_v14  ;;  %v2127_v12 = vld [vmem:[#allocation11 + $0x11f0] sm:$0xff] }
 0x358   :  { %5960 = vmatprep.subr.bf16.mxu1 %v5895_v14  ;;  %v5917_v14 = vpack.c.bf16 %v2127_v12, %v2125_v13  ;;  %v2550_v13 = vld [vmem:[#allocation11 + $0x58] sm:$0xff] }
 0x35a   :  { %5898 = vmatpush1.bf16.msra.mxu0 %v5897_v30 }
 0x35b   :  { %5962 = vmatpush1.bf16.msra.mxu1 %v5897_v30  ;;  %5900 = vmatprep.subr.bf16.mxu0 %v5899_v2 }
 0x35c   :  { %5964 = vmatprep.subr.bf16.mxu1 %v5899_v2 }
 0x35e   :  { %5902 = vmatpush1.bf16.msra.mxu0 %v5901_v23 }
 0x35f   :  { %5966 = vmatpush1.bf16.msra.mxu1 %v5901_v23  ;;  %5904 = vmatprep.subr.bf16.mxu0 %v5903_v25 }
 0x360   :  { %5968 = vmatprep.subr.bf16.mxu1 %v5903_v25 }
 0x362   :  { %5906 = vmatpush1.bf16.msra.mxu0 %v5905_v49 }
 0x363   :  { %5970 = vmatpush1.bf16.msra.mxu1 %v5905_v49  ;;  %5908 = vmatprep.subr.bf16.mxu0 %v5907_v50 }
 0x364   :  { %5972 = vmatprep.subr.bf16.mxu1 %v5907_v50  ;;  %v7411_v50 = vmov 0  }
 0x365   :  { %7196 = vset.pattern.permute.xlu1 %v7411_v50  ;;  %7197 = vset.pattern.permute.xlu0 %v7411_v50  ;;  %v2494_v50 = vld [vmem:[%s7822_s6] sm:$0xf] }
 0x366   :  { %5910 = vmatpush1.bf16.msra.mxu0 %v5909_v3 }
 0x367   :  { %5974 = vmatpush1.bf16.msra.mxu1 %v5909_v3  ;;  %5912 = vmatprep.subr.bf16.mxu0 %v5911_v5  ;;  %v2541_v3 = vld [vmem:[#allocation11 + $0x10] sm:$0xff] }
 0x368   :  { %5976 = vmatprep.subr.bf16.mxu1 %v5911_v5  ;;  %v2544_v5 = vld [vmem:[#allocation11 + $0x28] sm:$0xff]  ;;  %v6017_v7 = vpack.c.bf16 %v2541_v3, %v2539_v58  ;;  %v2574_v58 = vld [vmem:[#allocation11 + $0x118] sm:$0xff] }
 0x369   :  { %v6019_v8 = vpack.c.bf16 %v2546_v6, %v2544_v5  ;;  %v6047_v3 = vpack.c.bf16 %v2574_v58, %v2572_v53  ;;  %v2573_v5 = vld [vmem:[#allocation11 + $0x110] sm:$0xff] }
 0x36a   :  { %5914 = vmatpush1.bf16.msra.mxu0 %v5913_v9 }
 0x36b   :  { %5978 = vmatpush1.bf16.msra.mxu1 %v5913_v9  ;;  %5916 = vmatprep.subr.bf16.mxu0 %v5915_v10  ;;  %v2545_v9 = vld [vmem:[#allocation11 + $0x30] sm:$0xff] }
 0x36c   :  { %5980 = vmatprep.subr.bf16.mxu1 %v5915_v10  ;;  %v2548_v10 = vld [vmem:[#allocation11 + $0x48] sm:$0xff]  ;;  %v6021_v12 = vpack.c.bf16 %v2545_v9, %v2543_v11  ;;  %v2578_v11 = vld [vmem:[#allocation11 + $0x138] sm:$0xff] }
 0x36e   :  { %5918 = vmatpush1.bf16.msra.mxu0 %v5917_v14 }
 0x36f   :  { %5982 = vmatpush1.bf16.msra.mxu1 %v5917_v14  ;;  %5984 = vmatprep.subr.bf16.mxu0 %v5983_v42  ;;  %v6023_v14 = vpack.c.bf16 %v2550_v13, %v2548_v10  ;;  %v2575_v10 = vld [vmem:[#allocation11 + $0x120] sm:$0xff]  ;;  %v2577_v13 = vld [vmem:[#allocation11 + $0x130] sm:$0xff] }
 0x370   :  { %6000 = vmatprep.subr.bf16.mxu1 %v5999_v45 }
 0x371   :  { %2196 = vmatmul.mubr.f32.vlgmr.msra.gmra.mrb[18].mxu0 %v7654_v32 }
 0x372   :  { %2271 = vmatmul.mubr.f32.vlgmr.msra.gmra.mrb[18].mxu1 %v7657_v44  ;;  %5986 = vmatpush1.bf16.msra.mxu0 %v5985_v38 }
 0x373   :  { %6002 = vmatpush1.bf16.msra.mxu1 %v6001_v41  ;;  %5988 = vmatprep.subr.bf16.mxu0 %v5987_v63 }
 0x374   :  { %6004 = vmatprep.subr.bf16.mxu1 %v6003_v4  ;;  %2384 = vmatprep.mubr.f32.mxu0 %v7410_v0  ;;  %v2279_v4 = vld [vmem:[#allocation13] sm:$0xf] }
 0x375   :  { %2455 = vmatprep.mubr.f32.mxu1 %v7410_v0 }
 0x376   :  { %5990 = vmatpush1.bf16.msra.mxu0 %v5989_v27 }
 0x377   :  { %6006 = vmatpush1.bf16.msra.mxu1 %v6005_v62 }
 0x384   :  { %v1552_v51 = vpop.f32.mrb[12].mxu0 }
 0x385   :  { %v5993_v54 = vpack.c.bf16 %v1552_v51, %v7662_v24  ;;  %v1627_v55 = vpop.f32.mrb[12].mxu1  ;;  %v1554_v56 = vpop.f32.mrb[13].mxu0  ;;  %v2547_v51 = vld [vmem:[#allocation11 + $0x40] sm:$0xff] }
 0x386   :  { %v6009_v35 = vpack.c.bf16 %v1627_v55, %v7664_v28  ;;  %v5991_v38 = vpack.c.bf16 %v1554_v56, %v7666_v31  ;;  %v1629_v39 = vpop.f32.mrb[13].mxu1  ;;  %v2552_v55 = vld [vmem:[#allocation11 + $0x68] sm:$0xff]  ;;  %v2554_v56 = vld [vmem:[#allocation11 + $0x78] sm:$0xff] }
 0x387   :  { %v6007_v40 = vpack.c.bf16 %v1629_v39, %v7668_v29  ;;  %v2551_v39 = vld [vmem:[#allocation11 + $0x60] sm:$0xff] }
 0x388   :  { %5992 = vmatprep.subr.bf16.mxu0 %v5991_v38  ;;  %v6027_v38 = vpack.c.bf16 %v2554_v56, %v2552_v55  ;;  %v2579_v55 = vld [vmem:[#allocation11 + $0x140] sm:$0xff]  ;;  %v2581_v56 = vld [vmem:[#allocation11 + $0x150] sm:$0xff] }
 0x389   :  { %6008 = vmatprep.subr.bf16.mxu1 %v6007_v40  ;;  %5994 = vmatpush1.bf16.msra.mxu0 %v5993_v54  ;;  %v2549_v54 = vld [vmem:[#allocation11 + $0x50] sm:$0xff] }
 0x38a   :  { %6010 = vmatpush1.bf16.msra.mxu1 %v6009_v35  ;;  %v6025_v35 = vpack.c.bf16 %v2549_v54, %v2547_v51  ;;  %v2553_v40 = vld [vmem:[#allocation11 + $0x70] sm:$0xff]  ;;  %v2582_v51 = vld [vmem:[#allocation11 + $0x158] sm:$0xff] }
 0x3c4   :  { %v1767_v41 = vpop.f32.mrb[14].mxu0 }
 0x3c5   :  { %v1842_v42 = vpop.f32.mrb[14].mxu1  ;;  %v1769_v43 = vpop.f32.mrb[15].mxu0 }
 0x3c6   :  { %v1844_v45 = vpop.f32.mrb[15].mxu1 }
 0x404   :  { %v1982_v36 = vpop.f32.mrb[16].mxu0 }
 0x405   :  { %v5997_v46 = vpack.c.bf16 %v1982_v36, %v1767_v41  ;;  %v2057_v47 = vpop.f32.mrb[16].mxu1  ;;  %v1984_v48 = vpop.f32.mrb[17].mxu0  ;;  %v2556_v41 = vld [vmem:[#allocation11 + $0x88] sm:$0xff]  ;;  %v2555_v36 = vld [vmem:[#allocation11 + $0x80] sm:$0xff] }
 0x406   :  { %v6013_v57 = vpack.c.bf16 %v2057_v47, %v1842_v42  ;;  %v5995_v27 = vpack.c.bf16 %v1984_v48, %v1769_v43  ;;  %v2059_v60 = vpop.f32.mrb[17].mxu1  ;;  %v2558_v42 = vld [vmem:[#allocation11 + $0x98] sm:$0xff]  ;;  %v6029_v43 = vpack.c.bf16 %v2553_v40, %v2551_v39  ;;  %v2560_v47 = vld [vmem:[#allocation11 + $0xa8] sm:$0xff] }
 0x407   :  { %v6011_v61 = vpack.c.bf16 %v2059_v60, %v1844_v45  ;;  %v6031_v45 = vpack.c.bf16 %v2558_v42, %v2556_v41  ;;  %v2562_v48 = vld [vmem:[#allocation11 + $0xb8] sm:$0xff]  ;;  %v2559_v60 = vld [vmem:[#allocation11 + $0xa0] sm:$0xff]  ;;  %v2585_v42 = vld [vmem:[#allocation11 + $0x170] sm:$0xff] }
 0x408   :  { %5996 = vmatprep.subr.bf16.mxu0 %v5995_v27  ;;  %v6035_v27 = vpack.c.bf16 %v2562_v48, %v2560_v47  ;;  %v2586_v39 = vld [vmem:[#allocation11 + $0x178] sm:$0xff]  ;;  %v2583_v41 = vld [vmem:[#allocation11 + $0x160] sm:$0xff]  ;;  %v2589_v48 = vld [vmem:[#allocation11 + $0x190] sm:$0xff] }
 0x409   :  { %6012 = vmatprep.subr.bf16.mxu1 %v6011_v61  ;;  %5998 = vmatpush1.bf16.msra.mxu0 %v5997_v46  ;;  %v2557_v46 = vld [vmem:[#allocation11 + $0x90] sm:$0xff]  ;;  %v2587_v47 = vld [vmem:[#allocation11 + $0x180] sm:$0xff] }
 0x40a   :  { %6014 = vmatpush1.bf16.msra.mxu1 %v6013_v57  ;;  %v6033_v57 = vpack.c.bf16 %v2557_v46, %v2555_v36  ;;  %v2561_v61 = vld [vmem:[#allocation11 + $0xb0] sm:$0xff]  ;;  %v2590_v36 = vld [vmem:[#allocation11 + $0x198] sm:$0xff] }
 0x444   :  { %v2197_v62 = vpop.f32.mrb[18].mxu0 }
 0x445   :  { %v2272_v63 = vpop.f32.mrb[18].mxu1  ;;  %v2199_v1 = vpop.f32.mrb[19].mxu0 }
 0x446   :  { %v2274_v32 = vpop.f32.mrb[19].mxu1  ;;  %2336 = vmatprep.subr.mxu0 %v2199_v1  ;;  %v6037_v1 = vpack.c.bf16 %v2561_v61, %v2559_v60  ;;  %v2594_v60 = vld [vmem:[#allocation11 + $0x1b8] sm:$0xff] }
 0x447   :  { %2407 = vmatprep.subr.mxu1 %v2274_v32  ;;  %2337 = vmatpush1.msra.mxu0 %v2197_v62  ;;  %v2564_v62 = vld [vmem:[#allocation11 + $0xc8] sm:$0xff]  ;;  %v2563_v32 = vld [vmem:[#allocation11 + $0xc0] sm:$0xff] }
 0x448   :  { %2408 = vmatpush1.msra.mxu1 %v2272_v63  ;;  %4759 = vmatmul.mubr.msk.f32.vlgmr.msra.gmra.mrb[20].mxu0 %vm2316_vm0, %v2279_v4  ;;  %v2566_v63 = vld [vmem:[#allocation11 + $0xd8] sm:$0xff] }
 0x449   :  { %4760 = vmatmul.mubr.msk.f32.vlgmr.msra.gmra.mrb[20].mxu1 %vm2316_vm0, %v2279_v4  ;;  %6016 = vmatprep.subr.bf16.mxu0 %v6015_v59  ;;  %v6039_v4 = vpack.c.bf16 %v2566_v63, %v2564_v62  ;;  %v2591_v62 = vld [vmem:[#allocation11 + $0x1a0] sm:$0xff]  ;;  %v2593_v63 = vld [vmem:[#allocation11 + $0x1b0] sm:$0xff] }
 0x44a   :  { %6080 = vmatprep.subr.bf16.mxu1 %v6015_v59  ;;  %6018 = vmatpush1.bf16.msra.mxu0 %v6017_v7  ;;  %v2571_v59 = vld [vmem:[#allocation11 + $0x100] sm:$0xff] }
 0x44b   :  { %6082 = vmatpush1.bf16.msra.mxu1 %v6017_v7  ;;  %6020 = vmatprep.subr.bf16.mxu0 %v6019_v8  ;;  %v6049_v7 = vpack.c.bf16 %v2573_v5, %v2571_v59 }
 0x44c   :  { %6084 = vmatprep.subr.bf16.mxu1 %v6019_v8  ;;  %v2576_v8 = vld [vmem:[#allocation11 + $0x128] sm:$0xff] }
 0x44d   :  { %v6051_v9 = vpack.c.bf16 %v2578_v11, %v2576_v8 }
 0x44e   :  { %6022 = vmatpush1.bf16.msra.mxu0 %v6021_v12 }
 0x44f   :  { %6086 = vmatpush1.bf16.msra.mxu1 %v6021_v12  ;;  %6024 = vmatprep.subr.bf16.mxu0 %v6023_v14  ;;  %v6053_v12 = vpack.c.bf16 %v2577_v13, %v2575_v10 }
 0x450   :  { %6088 = vmatprep.subr.bf16.mxu1 %v6023_v14  ;;  %v2580_v14 = vld [vmem:[#allocation11 + $0x148] sm:$0xff] }
 0x451   :  { %v6055_v54 = vpack.c.bf16 %v2582_v51, %v2580_v14 }
 0x452   :  { %6026 = vmatpush1.bf16.msra.mxu0 %v6025_v35 }
 0x453   :  { %6090 = vmatpush1.bf16.msra.mxu1 %v6025_v35  ;;  %6028 = vmatprep.subr.bf16.mxu0 %v6027_v38  ;;  %v6057_v35 = vpack.c.bf16 %v2581_v56, %v2579_v55  ;;  %v2751_v55 = vld [vmem:[#allocation11 + $0x210] sm:$0xff] }
 0x454   :  { %6092 = vmatprep.subr.bf16.mxu1 %v6027_v38  ;;  %v2584_v38 = vld [vmem:[#allocation11 + $0x168] sm:$0xff] }
 0x455   :  { %v6059_v40 = vpack.c.bf16 %v2586_v39, %v2584_v38  ;;  %v2754_v38 = vld [vmem:[#allocation11 + $0x228] sm:$0xff]  ;;  %v2756_v39 = vld [vmem:[#allocation11 + $0x238] sm:$0xff] }
 0x456   :  { %6030 = vmatpush1.bf16.msra.mxu0 %v6029_v43 }
 0x457   :  { %6094 = vmatpush1.bf16.msra.mxu1 %v6029_v43  ;;  %6032 = vmatprep.subr.bf16.mxu0 %v6031_v45  ;;  %v6061_v43 = vpack.c.bf16 %v2585_v42, %v2583_v41  ;;  %v2753_v41 = vld [vmem:[#allocation11 + $0x220] sm:$0xff]  ;;  %v2755_v42 = vld [vmem:[#allocation11 + $0x230] sm:$0xff] }
 0x458   :  { %6096 = vmatprep.subr.bf16.mxu1 %v6031_v45  ;;  %v2588_v45 = vld [vmem:[#allocation11 + $0x188] sm:$0xff] }
 0x459   :  { %v6063_v46 = vpack.c.bf16 %v2590_v36, %v2588_v45  ;;  %v2758_v45 = vld [vmem:[#allocation11 + $0x248] sm:$0xff]  ;;  %v2760_v36 = vld [vmem:[#allocation11 + $0x258] sm:$0xff] }
 0x45a   :  { %6034 = vmatpush1.bf16.msra.mxu0 %v6033_v57 }
 0x45b   :  { %6098 = vmatpush1.bf16.msra.mxu1 %v6033_v57  ;;  %6036 = vmatprep.subr.bf16.mxu0 %v6035_v27  ;;  %v6065_v57 = vpack.c.bf16 %v2589_v48, %v2587_v47  ;;  %v6147_v47 = vpack.c.bf16 %v2756_v39, %v2754_v38  ;;  %v6149_v48 = vpack.c.bf16 %v2755_v42, %v2753_v41  ;;  %v2794_v38 = vld [vmem:[#allocation11 + $0x368] sm:$0xff]  ;;  %v2796_v39 = vld [vmem:[#allocation11 + $0x378] sm:$0xff] }
 0x45c   :  { %6100 = vmatprep.subr.bf16.mxu1 %v6035_v27  ;;  %v2592_v27 = vld [vmem:[#allocation11 + $0x1a8] sm:$0xff]  ;;  %v6187_v42 = vpack.c.bf16 %v2796_v39, %v2794_v38  ;;  %v2989_v38 = vld [vmem:[#allocation11 + $0x490] sm:$0xff] }
 0x45d   :  { %v6067_v61 = vpack.c.bf16 %v2594_v60, %v2592_v27  ;;  %v2757_v27 = vld [vmem:[#allocation11 + $0x240] sm:$0xff]  ;;  %v2759_v60 = vld [vmem:[#allocation11 + $0x250] sm:$0xff]  ;;  %v2992_v39 = vld [vmem:[#allocation11 + $0x4a8] sm:$0xff] }
 0x45e   :  { %6038 = vmatpush1.bf16.msra.mxu0 %v6037_v1 }
 0x45f   :  { %6102 = vmatpush1.bf16.msra.mxu1 %v6037_v1  ;;  %6040 = vmatprep.subr.bf16.mxu0 %v6039_v4  ;;  %v6069_v1 = vpack.c.bf16 %v2593_v63, %v2591_v62  ;;  %v2764_v62 = vld [vmem:[#allocation11 + $0x278] sm:$0xff]  ;;  %v6153_v63 = vpack.c.bf16 %v2759_v60, %v2757_v27  ;;  %v2797_v60 = vld [vmem:[#allocation11 + $0x380] sm:$0xff] }
 0x460   :  { %6104 = vmatprep.subr.bf16.mxu1 %v6039_v4  ;;  %v2596_v4 = vld [vmem:[#allocation11 + $0x1c8] sm:$0xff] }
 0x51b   :  { %v7702_v44 = vpop.f32.mrb[20].mxu0 }
 0x51c   :  { %v2463_v24 = vsel %vm2462_vm1, %v7702_v44, 0.0  ;;  %v2474_v28 = vmul.f32 %v7702_v44, %v7702_v44  ;;  %v7708_v31 = vpop.f32.mrb[21].mxu0  ;;  %v7710_v29 = vpop.f32.mrb[20].mxu1 }
 0x51d   :  { %v2464_v15 = vsel %vm2462_vm1, %v7708_v31, 0.0  ;;  %v2475_v19 = vmul.f32 %v7708_v31, %v7708_v31  ;;  %v2476_v16 = vmul.f32 %v7710_v29, %v7710_v29  ;;  %v7718_v17 = vpop.f32.mrb[21].mxu1  ;;  %v2466_v30 = vsel %vm2462_vm1, %v7710_v29, 0.0 }
 0x51e   :  { %v2478_v2 = vsel %vm2462_vm1, %v2474_v28, 0.0  ;;  %v2465_v21 = vadd.f32 %v2464_v15, %v2463_v24  ;;  %v2477_v20 = vmul.f32 %v7718_v17, %v7718_v17  ;;  %v2468_v26 = vsel %vm2462_vm1, %v7718_v17, 0.0  ;;  %v2565_v24 = vld [vmem:[#allocation11 + $0xd0] sm:$0xff]  ;;  %v2568_v28 = vld [vmem:[#allocation11 + $0xe8] sm:$0xff]  ;;  %v2570_v15 = vld [vmem:[#allocation11 + $0xf8] sm:$0xff] }
 0x51f   :  { %v2479_v18 = vsel %vm2462_vm1, %v2475_v19, 0.0  ;;  %v2481_v22 = vsel %vm2462_vm1, %v2476_v16, 0.0  ;;  %v6041_v19 = vpack.c.bf16 %v2565_v24, %v2563_v32  ;;  %v6043_v16 = vpack.c.bf16 %v2570_v15, %v2568_v28  ;;  %v2598_v32 = vld [vmem:[#allocation11 + $0x1d8] sm:$0xff]  ;;  %v2595_v24 = vld [vmem:[#allocation11 + $0x1c0] sm:$0xff]  ;;  %v2597_v15 = vld [vmem:[#allocation11 + $0x1d0] sm:$0xff] }
 0x520   :  { %v2467_v23 = vadd.f32 %v2466_v30, %v2465_v21  ;;  %v2480_v25 = vadd.f32 %v2479_v18, %v2478_v2  ;;  %v2483_v37 = vsel %vm2462_vm1, %v2477_v20, 0.0  ;;  %v2567_v30 = vld [vmem:[#allocation11 + $0xe0] sm:$0xff]  ;;  %v2569_v2 = vld [vmem:[#allocation11 + $0xf0] sm:$0xff]  ;;  %v6071_v28 = vpack.c.bf16 %v2598_v32, %v2596_v4 }
 0x521   :  { %6042 = vmatpush1.bf16.msra.mxu0 %v6041_v19  ;;  %6106 = vmatpush1.bf16.msra.mxu1 %v6041_v19  ;;  %v6045_v21 = vpack.c.bf16 %v2569_v2, %v2567_v30  ;;  %v2600_v19 = vld [vmem:[#allocation11 + $0x1e8] sm:$0xff]  ;;  %v6073_v30 = vpack.c.bf16 %v2597_v15, %v2595_v24  ;;  %v2761_v4 = vld [vmem:[#allocation11 + $0x260] sm:$0xff]  ;;  %v2763_v32 = vld [vmem:[#allocation11 + $0x270] sm:$0xff] }
 0x522   :  { %v2469_v33 = vadd.f32 %v2468_v26, %v2467_v23  ;;  %v2482_v34 = vadd.f32 %v2481_v22, %v2480_v25  ;;  %6044 = vmatprep.subr.bf16.mxu0 %v6043_v16  ;;  %6108 = vmatprep.subr.bf16.mxu1 %v6043_v16  ;;  %v2602_v16 = vld [vmem:[#allocation11 + $0x1f8] sm:$0xff]  ;;  %v2766_v24 = vld [vmem:[#allocation11 + $0x288] sm:$0xff]  ;;  %v6157_v15 = vpack.c.bf16 %v2763_v32, %v2761_v4  ;;  %v2801_v32 = vld [vmem:[#allocation11 + $0x3a0] sm:$0xff] }
 0x523   :  { %v6075_v2 = vpack.c.bf16 %v2602_v16, %v2600_v19  ;;  %v2765_v16 = vld [vmem:[#allocation11 + $0x280] sm:$0xff] }
 0x524   :  { %2470 = vadd.xlane.f32.xlu0 %v2469_v33  ;;  %v2484_v49 = vadd.f32 %v2483_v37, %v2482_v34  ;;  %v2490_v34 = vld [vmem:[%s7821_s5] sm:$0xf] }
 0x525   :  { %6046 = vmatpush1.bf16.msra.mxu0 %v6045_v21  ;;  %6110 = vmatpush1.bf16.msra.mxu1 %v6045_v21  ;;  %v2599_v21 = vld [vmem:[#allocation11 + $0x1e0] sm:$0xff] }
 0x526   :  { %6048 = vmatprep.subr.bf16.mxu0 %v6047_v3  ;;  %6112 = vmatprep.subr.bf16.mxu1 %v6047_v3 }
 0x528   :  { %2485 = vadd.xlane.f32.xlu0 %v2484_v49 }
 0x529   :  { %6050 = vmatpush1.bf16.msra.mxu0 %v6049_v7  ;;  %6114 = vmatpush1.bf16.msra.mxu1 %v6049_v7 }
 0x52a   :  { %6052 = vmatprep.subr.bf16.mxu0 %v6051_v9  ;;  %6116 = vmatprep.subr.bf16.mxu1 %v6051_v9 }
 0x52d   :  { %6054 = vmatpush1.bf16.msra.mxu0 %v6053_v12  ;;  %6118 = vmatpush1.bf16.msra.mxu1 %v6053_v12 }
 0x52e   :  { %6056 = vmatprep.subr.bf16.mxu0 %v6055_v54  ;;  %6120 = vmatprep.subr.bf16.mxu1 %v6055_v54  ;;  %v2749_v54 = vld [vmem:[#allocation11 + $0x200] sm:$0xff] }
 0x531   :  { %6058 = vmatpush1.bf16.msra.mxu0 %v6057_v35  ;;  %6122 = vmatpush1.bf16.msra.mxu1 %v6057_v35  ;;  %v6145_v35 = vpack.c.bf16 %v2751_v55, %v2749_v54  ;;  %v2789_v55 = vld [vmem:[#allocation11 + $0x340] sm:$0xff] }
 0x532   :  { %6060 = vmatprep.subr.bf16.mxu0 %v6059_v40  ;;  %6124 = vmatprep.subr.bf16.mxu1 %v6059_v40 }
 0x535   :  { %6062 = vmatpush1.bf16.msra.mxu0 %v6061_v43  ;;  %6126 = vmatpush1.bf16.msra.mxu1 %v6061_v43 }
 0x536   :  { %6064 = vmatprep.subr.bf16.mxu0 %v6063_v46  ;;  %6128 = vmatprep.subr.bf16.mxu1 %v6063_v46 }
 0x539   :  { %6066 = vmatpush1.bf16.msra.mxu0 %v6065_v57  ;;  %6130 = vmatpush1.bf16.msra.mxu1 %v6065_v57  ;;  %v6151_v57 = vpack.c.bf16 %v2760_v36, %v2758_v45  ;;  %v2793_v45 = vld [vmem:[#allocation11 + $0x360] sm:$0xff]  ;;  %v2795_v36 = vld [vmem:[#allocation11 + $0x370] sm:$0xff] }
 0x53a   :  { %6068 = vmatprep.subr.bf16.mxu0 %v6067_v61  ;;  %6132 = vmatprep.subr.bf16.mxu1 %v6067_v61  ;;  %v2762_v61 = vld [vmem:[#allocation11 + $0x268] sm:$0xff] }
 0x53d   :  { %6070 = vmatpush1.bf16.msra.mxu0 %v6069_v1  ;;  %6134 = vmatpush1.bf16.msra.mxu1 %v6069_v1  ;;  %v6155_v1 = vpack.c.bf16 %v2764_v62, %v2762_v61  ;;  %v2799_v61 = vld [vmem:[#allocation11 + $0x390] sm:$0xff]  ;;  %v2802_v62 = vld [vmem:[#allocation11 + $0x3a8] sm:$0xff] }
 0x53e   :  { %6072 = vmatprep.subr.bf16.mxu0 %v6071_v28  ;;  %6136 = vmatprep.subr.bf16.mxu1 %v6071_v28  ;;  %v2768_v28 = vld [vmem:[#allocation11 + $0x298] sm:$0xff] }
 0x53f   :  { %v6159_v19 = vpack.c.bf16 %v2768_v28, %v2766_v24  ;;  %v2803_v24 = vld [vmem:[#allocation11 + $0x3b0] sm:$0xff]  ;;  %v2806_v28 = vld [vmem:[#allocation11 + $0x3c8] sm:$0xff] }
 0x541   :  { %6074 = vmatpush1.bf16.msra.mxu0 %v6073_v30  ;;  %6138 = vmatpush1.bf16.msra.mxu1 %v6073_v30  ;;  %v2767_v30 = vld [vmem:[#allocation11 + $0x290] sm:$0xff] }
 0x542   :  { %6076 = vmatprep.subr.bf16.mxu0 %v6075_v2  ;;  %6140 = vmatprep.subr.bf16.mxu1 %v6075_v2  ;;  %v2770_v2 = vld [vmem:[#allocation11 + $0x2a8] sm:$0xff] }
 0x5b1   :  { %v2471_v18 = vpop.xlane.xlu0 %2470 }
 0x5b2   :  { %v2473_v20 = vmul.f32 0.001953125, %v2471_v18  ;;  %v2601_v18 = vld [vmem:[#allocation11 + $0x1f0] sm:$0xff] }
 0x5b4   :  { %v2488_v23 = vmul.f32 %v2473_v20, %v2473_v20 }
 0x5b5   :  { %v2486_v22 = vpop.xlane.xlu0 %2485 }
 0x5b6   :  { %v2487_v25 = vmul.f32 0.001953125, %v2486_v22  ;;  %v2750_v22 = vld [vmem:[#allocation11 + $0x208] sm:$0xff] }
 0x5b8   :  { %v2489_v26 = vsub.f32 %v2487_v25, %v2488_v23  ;;  %v2752_v23 = vld [vmem:[#allocation11 + $0x218] sm:$0xff] }
 0x5b9   :  { %v6143_v25 = vpack.c.bf16 %v2752_v23, %v2750_v22  ;;  %v2769_v22 = vld [vmem:[#allocation11 + $0x2a0] sm:$0xff]  ;;  %v2771_v23 = vld [vmem:[#allocation11 + $0x2b0] sm:$0xff] }
 0x5ba   :  { %v2491_v33 = vadd.f32 1e-05, %v2489_v26 }
 0x5bc   :  { %7200 = vrsqrt.f32 %v2491_v33 }
 0x5c6   :  { %v7201_v37 = vpop.eup %7200 }
 0x5c7   :  { %v2493_v49 = vmul.f32 %v7201_v37, %v2490_v34 }
 0x5c9   :  { %2499 = vperm.xlu1 %7196, %v2493_v49   ;;  %v2495_v52 = vmul.f32 %v2493_v49, %v2473_v20  ;;  %v6077_v20 = vpack.c.bf16 %v2601_v18, %v2599_v21  ;;  %v2772_v21 = vld [vmem:[#allocation11 + $0x2b8] sm:$0xff]  ;;  %v6161_v18 = vpack.c.bf16 %v2767_v30, %v2765_v16  ;;  %v2805_v30 = vld [vmem:[#allocation11 + $0x3c0] sm:$0xff] }
 0x5cb   :  { %v2496_v6 = vsub.f32 %v2494_v50, %v2495_v52  ;;  %6078 = vmatpush1.bf16.msra.mxu0 %v6077_v20  ;;  %6142 = vmatpush1.bf16.msra.mxu1 %v6077_v20  ;;  %v6163_v20 = vpack.c.bf16 %v2772_v21, %v2770_v2  ;;  %v2807_v2 = vld [vmem:[#allocation11 + $0x3d0] sm:$0xff]  ;;  %v2810_v21 = vld [vmem:[#allocation11 + $0x3e8] sm:$0xff] }
 0x5cc   :  { %6144 = vmatprep.subr.bf16.mxu0 %v6143_v25  ;;  %6208 = vmatprep.subr.bf16.mxu1 %v6143_v25  ;;  %v2774_v25 = vld [vmem:[#allocation11 + $0x2c8] sm:$0xff] }
 0x5cd   :  { %2508 = vperm.xlu1 %7196, %v2496_v6  }
 0x648   :  { %v2500_v26 = vpop.permute.xlu1 %2499 }
 0x649   :  { %v2502_v33 = vmul.f32 %v2500_v26, %v7702_v44  ;;  %v2503_v34 = vmul.f32 %v2500_v26, %v7708_v31  ;;  %v2504_v37 = vmul.f32 %v2500_v26, %v7710_v29  ;;  %v2505_v49 = vmul.f32 %v2500_v26, %v7718_v17  ;;  %v2776_v26 = vld [vmem:[#allocation11 + $0x2d8] sm:$0xff] }
 0x64c   :  { %v2509_v50 = vpop.permute.xlu1 %2508 }
 0x64d   :  { %v2511_v52 = vadd.f32 %v2509_v50, %v2502_v33  ;;  %v2512_v53 = vadd.f32 %v2509_v50, %v2503_v34  ;;  %v2513_v58 = vadd.f32 %v2509_v50, %v2504_v37  ;;  %v2514_v59 = vadd.f32 %v2509_v50, %v2505_v49  ;;  %v2773_v37 = vld [vmem:[#allocation11 + $0x2c0] sm:$0xff]  ;;  %v2775_v49 = vld [vmem:[#allocation11 + $0x2d0] sm:$0xff]  ;;  %v2778_v50 = vld [vmem:[#allocation11 + $0x2e8] sm:$0xff] }
 0x64e   :  { %v6165_v33 = vpack.c.bf16 %v2771_v23, %v2769_v22  ;;  %v6167_v34 = vpack.c.bf16 %v2776_v26, %v2774_v25  ;;  %v2809_v23 = vld [vmem:[#allocation11 + $0x3e0] sm:$0xff]  ;;  %v2811_v25 = vld [vmem:[#allocation11 + $0x3f0] sm:$0xff]  ;;  %v2972_v26 = vld [vmem:[#allocation11 + $0x408] sm:$0xff] }
 0x64f   :  { %v2515_v3 = vsub.f32 0.0, %v2511_v52  ;;  %v2516_v5 = vsub.f32 0.0, %v2512_v53  ;;  %v2517_v6 = vsub.f32 0.0, %v2513_v58  ;;  %v2518_v7 = vsub.f32 0.0, %v2514_v59  ;;  %v2780_v52 = vld [vmem:[#allocation11 + $0x2f8] sm:$0xff]  ;;  %v2777_v59 = vld [vmem:[#allocation11 + $0x2e0] sm:$0xff] }
 0x650   :  { %v6169_v53 = vpack.c.bf16 %v2775_v49, %v2773_v37  ;;  %v6171_v58 = vpack.c.bf16 %v2780_v52, %v2778_v50  ;;  %v2971_v49 = vld [vmem:[#allocation11 + $0x400] sm:$0xff]  ;;  %v2973_v50 = vld [vmem:[#allocation11 + $0x410] sm:$0xff]  ;;  %v2976_v52 = vld [vmem:[#allocation11 + $0x428] sm:$0xff] }
 0x651   :  { %v2519_v8 = vmul.f32 1.442695, %v2515_v3  ;;  %v2521_v11 = vmul.f32 1.442695, %v2516_v5  ;;  %v2523_v9 = vmul.f32 1.442695, %v2517_v6 }
 0x652   :  { %v2525_v10 = vmul.f32 1.442695, %v2518_v7  ;;  %v2779_v3 = vld [vmem:[#allocation11 + $0x2f0] sm:$0xff]  ;;  %v2782_v5 = vld [vmem:[#allocation11 + $0x308] sm:$0xff]  ;;  %v2784_v6 = vld [vmem:[#allocation11 + $0x318] sm:$0xff] }
 0x653   :  { %7202 = vpow2.f32 %v2519_v8  ;;  %v6173_v7 = vpack.c.bf16 %v2779_v3, %v2777_v59  ;;  %v6175_v8 = vpack.c.bf16 %v2784_v6, %v2782_v5  ;;  %v2975_v3 = vld [vmem:[#allocation11 + $0x420] sm:$0xff]  ;;  %v2977_v5 = vld [vmem:[#allocation11 + $0x430] sm:$0xff]  ;;  %v2980_v6 = vld [vmem:[#allocation11 + $0x448] sm:$0xff] }
 0x654   :  { %7204 = vpow2.f32 %v2521_v11  ;;  %v2781_v11 = vld [vmem:[#allocation11 + $0x300] sm:$0xff] }
 0x655   :  { %7206 = vpow2.f32 %v2523_v9  ;;  %v2783_v9 = vld [vmem:[#allocation11 + $0x310] sm:$0xff] }
 0x656   :  { %7208 = vpow2.f32 %v2525_v10  ;;  %v2786_v10 = vld [vmem:[#allocation11 + $0x328] sm:$0xff] }
 0x65d   :  { %v7203_v44 = vpop.eup %7202 }
 0x65e   :  { %v7205_v31 = vpop.eup %7204  ;;  %v2527_v29 = vadd.f32 1.0, %v7203_v44  ;;  %v2788_v44 = vld [vmem:[#allocation11 + $0x338] sm:$0xff] }
 0x65f   :  { %v7207_v17 = vpop.eup %7206  ;;  %v2528_v13 = vadd.f32 1.0, %v7205_v31  ;;  %v6177_v31 = vpack.c.bf16 %v2783_v9, %v2781_v11  ;;  %v2979_v9 = vld [vmem:[#allocation11 + $0x440] sm:$0xff] }
 0x660   :  { %v7209_v12 = vpop.eup %7208  ;;  %v2529_v14 = vadd.f32 1.0, %v7207_v17  ;;  %7210 = vrcp.f32 %v2527_v29  ;;  %v6179_v29 = vpack.c.bf16 %v2788_v44, %v2786_v10  ;;  %v2785_v17 = vld [vmem:[#allocation11 + $0x320] sm:$0xff]  ;;  %v2981_v10 = vld [vmem:[#allocation11 + $0x450] sm:$0xff]  ;;  %v2984_v44 = vld [vmem:[#allocation11 + $0x468] sm:$0xff] }
 0x661   :  { %v2530_v51 = vadd.f32 1.0, %v7209_v12  ;;  %7212 = vrcp.f32 %v2528_v13  ;;  %v2787_v13 = vld [vmem:[#allocation11 + $0x330] sm:$0xff]  ;;  %v2790_v12 = vld [vmem:[#allocation11 + $0x348] sm:$0xff] }
 0x662   :  { %7214 = vrcp.f32 %v2529_v14  ;;  %v2792_v14 = vld [vmem:[#allocation11 + $0x358] sm:$0xff] }
 0x663   :  { %7216 = vrcp.f32 %v2530_v51  ;;  %v6181_v51 = vpack.c.bf16 %v2787_v13, %v2785_v17  ;;  %v6183_v54 = vpack.c.bf16 %v2792_v14, %v2790_v12  ;;  %v2983_v13 = vld [vmem:[#allocation11 + $0x460] sm:$0xff]  ;;  %v2985_v12 = vld [vmem:[#allocation11 + $0x470] sm:$0xff]  ;;  %v2988_v14 = vld [vmem:[#allocation11 + $0x488] sm:$0xff] }
 0x66a   :  { %v7740_v56 = vpop.eup %7210 }
 0x66b   :  { %v7742_v40 = vpop.eup %7212 }
 0x66c   :  { %v7744_v43 = vpop.eup %7214  ;;  %2667 = vmatprep.mubr.f32.mxu0 %v7742_v40 }
 0x66d   :  { %v7747_v46 = vpop.eup %7216  ;;  %2668 = vmatmul.mubr.f32.vlgmr.msra.gmra.mrb[22].mxu0 %v7740_v56 }
 0x66e   :  { %2740 = vmatprep.mubr.f32.mxu1 %v7747_v46  ;;  %6146 = vmatpush1.bf16.msra.mxu0 %v6145_v35 }
 0x66f   :  { %2741 = vmatmul.mubr.f32.vlgmr.msra.gmra.mrb[22].mxu1 %v7744_v43  ;;  %2877 = vmatprep.mubr.f32.mxu0 %v7742_v40 }
 0x670   :  { %6210 = vmatpush1.bf16.msra.mxu1 %v6145_v35  ;;  %2956 = vmatprep.mubr.f32.mxu1 %v7747_v46  ;;  %v2791_v35 = vld [vmem:[#allocation11 + $0x350] sm:$0xff] }
 0x671   :  { %6148 = vmatprep.subr.bf16.mxu0 %v6147_v47  ;;  %6212 = vmatprep.subr.bf16.mxu1 %v6147_v47  ;;  %v6185_v41 = vpack.c.bf16 %v2791_v35, %v2789_v55  ;;  %v2798_v47 = vld [vmem:[#allocation11 + $0x388] sm:$0xff]  ;;  %v2987_v35 = vld [vmem:[#allocation11 + $0x480] sm:$0xff] }
 0x672   :  { %6150 = vmatpush1.bf16.msra.mxu0 %v6149_v48 }
 0x673   :  { %6152 = vmatprep.subr.bf16.mxu0 %v6151_v57 }
 0x674   :  { %6214 = vmatpush1.bf16.msra.mxu1 %v6149_v48  ;;  %v2800_v48 = vld [vmem:[#allocation11 + $0x398] sm:$0xff] }
 0x675   :  { %6216 = vmatprep.subr.bf16.mxu1 %v6151_v57  ;;  %v6189_v57 = vpack.c.bf16 %v2795_v36, %v2793_v45  ;;  %v6191_v27 = vpack.c.bf16 %v2800_v48, %v2798_v47  ;;  %v2991_v36 = vld [vmem:[#allocation11 + $0x4a0] sm:$0xff]  ;;  %v2993_v47 = vld [vmem:[#allocation11 + $0x4b0] sm:$0xff]  ;;  %v2996_v48 = vld [vmem:[#allocation11 + $0x4c8] sm:$0xff] }
 0x676   :  { %6154 = vmatpush1.bf16.msra.mxu0 %v6153_v63 }
 0x677   :  { %6156 = vmatprep.subr.bf16.mxu0 %v6155_v1 }
 0x678   :  { %6218 = vmatpush1.bf16.msra.mxu1 %v6153_v63  ;;  %v2804_v63 = vld [vmem:[#allocation11 + $0x3b8] sm:$0xff] }
 0x679   :  { %6220 = vmatprep.subr.bf16.mxu1 %v6155_v1  ;;  %v6193_v1 = vpack.c.bf16 %v2799_v61, %v2797_v60  ;;  %v6195_v4 = vpack.c.bf16 %v2804_v63, %v2802_v62  ;;  %v2995_v61 = vld [vmem:[#allocation11 + $0x4c0] sm:$0xff]  ;;  %v2997_v62 = vld [vmem:[#allocation11 + $0x4d0] sm:$0xff]  ;;  %v3000_v63 = vld [vmem:[#allocation11 + $0x4e8] sm:$0xff] }
 0x67a   :  { %6158 = vmatpush1.bf16.msra.mxu0 %v6157_v15 }
 0x67b   :  { %6160 = vmatprep.subr.bf16.mxu0 %v6159_v19 }
 0x67c   :  { %6222 = vmatpush1.bf16.msra.mxu1 %v6157_v15  ;;  %v2808_v15 = vld [vmem:[#allocation11 + $0x3d8] sm:$0xff] }
 0x67d   :  { %6224 = vmatprep.subr.bf16.mxu1 %v6159_v19  ;;  %v6197_v19 = vpack.c.bf16 %v2803_v24, %v2801_v32  ;;  %v6199_v16 = vpack.c.bf16 %v2808_v15, %v2806_v28  ;;  %v2999_v24 = vld [vmem:[#allocation11 + $0x4e0] sm:$0xff]  ;;  %v3001_v28 = vld [vmem:[#allocation11 + $0x4f0] sm:$0xff]  ;;  %v3004_v15 = vld [vmem:[#allocation11 + $0x508] sm:$0xff] }
 0x67e   :  { %6162 = vmatpush1.bf16.msra.mxu0 %v6161_v18 }
 0x67f   :  { %6164 = vmatprep.subr.bf16.mxu0 %v6163_v20 }
 0x680   :  { %6226 = vmatpush1.bf16.msra.mxu1 %v6161_v18  ;;  %v2812_v18 = vld [vmem:[#allocation11 + $0x3f8] sm:$0xff] }
 0x681   :  { %6228 = vmatprep.subr.bf16.mxu1 %v6163_v20  ;;  %v6201_v20 = vpack.c.bf16 %v2807_v2, %v2805_v30  ;;  %v6203_v22 = vpack.c.bf16 %v2812_v18, %v2810_v21  ;;  %v3003_v2 = vld [vmem:[#allocation11 + $0x500] sm:$0xff]  ;;  %v3005_v21 = vld [vmem:[#allocation11 + $0x510] sm:$0xff]  ;;  %v3008_v18 = vld [vmem:[#allocation11 + $0x528] sm:$0xff] }
 0x682   :  { %6166 = vmatpush1.bf16.msra.mxu0 %v6165_v33 }
 0x683   :  { %6168 = vmatprep.subr.bf16.mxu0 %v6167_v34 }
 0x684   :  { %6230 = vmatpush1.bf16.msra.mxu1 %v6165_v33  ;;  %v2974_v33 = vld [vmem:[#allocation11 + $0x418] sm:$0xff] }
 0x685   :  { %6232 = vmatprep.subr.bf16.mxu1 %v6167_v34  ;;  %v6205_v34 = vpack.c.bf16 %v2811_v25, %v2809_v23  ;;  %v6271_v37 = vpack.c.bf16 %v2974_v33, %v2972_v26  ;;  %v3007_v25 = vld [vmem:[#allocation11 + $0x520] sm:$0xff]  ;;  %v3009_v26 = vld [vmem:[#allocation11 + $0x530] sm:$0xff]  ;;  %v3012_v33 = vld [vmem:[#allocation11 + $0x548] sm:$0xff] }
 0x686   :  { %6170 = vmatpush1.bf16.msra.mxu0 %v6169_v53 }
 0x687   :  { %6172 = vmatprep.subr.bf16.mxu0 %v6171_v58 }
 0x688   :  { %6234 = vmatpush1.bf16.msra.mxu1 %v6169_v53  ;;  %v2978_v53 = vld [vmem:[#allocation11 + $0x438] sm:$0xff] }
 0x689   :  { %6236 = vmatprep.subr.bf16.mxu1 %v6171_v58  ;;  %v6273_v58 = vpack.c.bf16 %v2973_v50, %v2971_v49  ;;  %v6275_v59 = vpack.c.bf16 %v2978_v53, %v2976_v52  ;;  %v3011_v50 = vld [vmem:[#allocation11 + $0x540] sm:$0xff]  ;;  %v3013_v52 = vld [vmem:[#allocation11 + $0x550] sm:$0xff]  ;;  %v3016_v53 = vld [vmem:[#allocation11 + $0x568] sm:$0xff] }
 0x68a   :  { %6174 = vmatpush1.bf16.msra.mxu0 %v6173_v7 }
 0x68b   :  { %6176 = vmatprep.subr.bf16.mxu0 %v6175_v8 }
 0x68c   :  { %6238 = vmatpush1.bf16.msra.mxu1 %v6173_v7  ;;  %v2982_v7 = vld [vmem:[#allocation11 + $0x458] sm:$0xff] }
 0x68d   :  { %6240 = vmatprep.subr.bf16.mxu1 %v6175_v8  ;;  %v6277_v8 = vpack.c.bf16 %v2977_v5, %v2975_v3  ;;  %v6279_v11 = vpack.c.bf16 %v2982_v7, %v2980_v6  ;;  %v3015_v5 = vld [vmem:[#allocation11 + $0x560] sm:$0xff]  ;;  %v3017_v6 = vld [vmem:[#allocation11 + $0x570] sm:$0xff]  ;;  %v3020_v7 = vld [vmem:[#allocation11 + $0x588] sm:$0xff] }
 0x68e   :  { %6178 = vmatpush1.bf16.msra.mxu0 %v6177_v31 }
 0x68f   :  { %6180 = vmatprep.subr.bf16.mxu0 %v6179_v29 }
 0x690   :  { %6242 = vmatpush1.bf16.msra.mxu1 %v6177_v31  ;;  %v2986_v31 = vld [vmem:[#allocation11 + $0x478] sm:$0xff] }
 0x691   :  { %6244 = vmatprep.subr.bf16.mxu1 %v6179_v29  ;;  %v6281_v29 = vpack.c.bf16 %v2981_v10, %v2979_v9  ;;  %v6283_v17 = vpack.c.bf16 %v2986_v31, %v2984_v44  ;;  %v3019_v10 = vld [vmem:[#allocation11 + $0x580] sm:$0xff]  ;;  %v3021_v44 = vld [vmem:[#allocation11 + $0x590] sm:$0xff]  ;;  %v3024_v31 = vld [vmem:[#allocation11 + $0x5a8] sm:$0xff] }
 0x692   :  { %6182 = vmatpush1.bf16.msra.mxu0 %v6181_v51 }
 0x693   :  { %6184 = vmatprep.subr.bf16.mxu0 %v6183_v54 }
 0x694   :  { %6246 = vmatpush1.bf16.msra.mxu1 %v6181_v51  ;;  %v2990_v51 = vld [vmem:[#allocation11 + $0x498] sm:$0xff] }
 0x695   :  { %6248 = vmatprep.subr.bf16.mxu1 %v6183_v54  ;;  %v6285_v54 = vpack.c.bf16 %v2985_v12, %v2983_v13  ;;  %v6287_v55 = vpack.c.bf16 %v2990_v51, %v2988_v14  ;;  %v3023_v12 = vld [vmem:[#allocation11 + $0x5a0] sm:$0xff]  ;;  %v3025_v14 = vld [vmem:[#allocation11 + $0x5b0] sm:$0xff]  ;;  %v3028_v51 = vld [vmem:[#allocation11 + $0x5c8] sm:$0xff] }
 0x696   :  { %6186 = vmatpush1.bf16.msra.mxu0 %v6185_v41 }
 0x697   :  { %6188 = vmatprep.subr.bf16.mxu0 %v6187_v42 }
 0x698   :  { %6250 = vmatpush1.bf16.msra.mxu1 %v6185_v41  ;;  %v2994_v41 = vld [vmem:[#allocation11 + $0x4b8] sm:$0xff] }
 0x699   :  { %6252 = vmatprep.subr.bf16.mxu1 %v6187_v42  ;;  %v6289_v42 = vpack.c.bf16 %v2989_v38, %v2987_v35  ;;  %v6291_v45 = vpack.c.bf16 %v2994_v41, %v2992_v39  ;;  %v3027_v38 = vld [vmem:[#allocation11 + $0x5c0] sm:$0xff]  ;;  %v3029_v39 = vld [vmem:[#allocation11 + $0x5d0] sm:$0xff]  ;;  %v3032_v41 = vld [vmem:[#allocation11 + $0x5e8] sm:$0xff] }
 0x69a   :  { %6190 = vmatpush1.bf16.msra.mxu0 %v6189_v57 }
 0x69b   :  { %6192 = vmatprep.subr.bf16.mxu0 %v6191_v27 }
 0x69c   :  { %6254 = vmatpush1.bf16.msra.mxu1 %v6189_v57  ;;  %v2998_v57 = vld [vmem:[#allocation11 + $0x4d8] sm:$0xff] }
 0x69d   :  { %6256 = vmatprep.subr.bf16.mxu1 %v6191_v27  ;;  %v6293_v27 = vpack.c.bf16 %v2993_v47, %v2991_v36  ;;  %v6295_v60 = vpack.c.bf16 %v2998_v57, %v2996_v48  ;;  %v3031_v47 = vld [vmem:[#allocation11 + $0x5e0] sm:$0xff]  ;;  %v3033_v48 = vld [vmem:[#allocation11 + $0x5f0] sm:$0xff]  ;;  %v3182_v57 = vld [vmem:[#allocation11 + $0x608] sm:$0xff] }
 0x69e   :  { %6194 = vmatpush1.bf16.msra.mxu0 %v6193_v1 }
 0x69f   :  { %6196 = vmatprep.subr.bf16.mxu0 %v6195_v4 }
 0x6a0   :  { %6258 = vmatpush1.bf16.msra.mxu1 %v6193_v1  ;;  %v3002_v1 = vld [vmem:[#allocation11 + $0x4f8] sm:$0xff] }
 0x6a1   :  { %6260 = vmatprep.subr.bf16.mxu1 %v6195_v4  ;;  %v6297_v4 = vpack.c.bf16 %v2997_v62, %v2995_v61  ;;  %v6299_v32 = vpack.c.bf16 %v3002_v1, %v3000_v63  ;;  %v3181_v62 = vld [vmem:[#allocation11 + $0x600] sm:$0xff]  ;;  %v3183_v63 = vld [vmem:[#allocation11 + $0x610] sm:$0xff]  ;;  %v3186_v1 = vld [vmem:[#allocation11 + $0x628] sm:$0xff] }
 0x6a2   :  { %6198 = vmatpush1.bf16.msra.mxu0 %v6197_v19 }
 0x6a3   :  { %6200 = vmatprep.subr.bf16.mxu0 %v6199_v16 }
 0x6a4   :  { %6262 = vmatpush1.bf16.msra.mxu1 %v6197_v19  ;;  %v3006_v19 = vld [vmem:[#allocation11 + $0x518] sm:$0xff] }
 0x6a5   :  { %6264 = vmatprep.subr.bf16.mxu1 %v6199_v16  ;;  %v6301_v16 = vpack.c.bf16 %v3001_v28, %v2999_v24  ;;  %v6303_v30 = vpack.c.bf16 %v3006_v19, %v3004_v15  ;;  %v3185_v28 = vld [vmem:[#allocation11 + $0x620] sm:$0xff]  ;;  %v3187_v15 = vld [vmem:[#allocation11 + $0x630] sm:$0xff]  ;;  %v3190_v19 = vld [vmem:[#allocation11 + $0x648] sm:$0xff] }
 0x6a6   :  { %6202 = vmatpush1.bf16.msra.mxu0 %v6201_v20 }
 0x6a7   :  { %6204 = vmatprep.subr.bf16.mxu0 %v6203_v22 }
 0x6a8   :  { %6266 = vmatpush1.bf16.msra.mxu1 %v6201_v20  ;;  %v3010_v20 = vld [vmem:[#allocation11 + $0x538] sm:$0xff] }
 0x6a9   :  { %6268 = vmatprep.subr.bf16.mxu1 %v6203_v22  ;;  %v6305_v22 = vpack.c.bf16 %v3005_v21, %v3003_v2  ;;  %v6307_v23 = vpack.c.bf16 %v3010_v20, %v3008_v18  ;;  %v3189_v21 = vld [vmem:[#allocation11 + $0x640] sm:$0xff]  ;;  %v3191_v18 = vld [vmem:[#allocation11 + $0x650] sm:$0xff]  ;;  %v3194_v20 = vld [vmem:[#allocation11 + $0x668] sm:$0xff] }
 0x6aa   :  { %6206 = vmatpush1.bf16.msra.mxu0 %v6205_v34 }
 0x6ab   :  { %6272 = vmatprep.subr.bf16.mxu0 %v6271_v37 }
 0x6ac   :  { %6270 = vmatpush1.bf16.msra.mxu1 %v6205_v34  ;;  %v3014_v34 = vld [vmem:[#allocation11 + $0x558] sm:$0xff] }
 0x6ad   :  { %2878 = vmatmul.mubr.f32.vlgmr.msra.gmra.mrb[24].mxu0 %v7740_v56  ;;  %6336 = vmatprep.subr.bf16.mxu1 %v6271_v37  ;;  %v6309_v37 = vpack.c.bf16 %v3009_v26, %v3007_v25  ;;  %v6311_v49 = vpack.c.bf16 %v3014_v34, %v3012_v33  ;;  %v3193_v26 = vld [vmem:[#allocation11 + $0x660] sm:$0xff]  ;;  %v3195_v33 = vld [vmem:[#allocation11 + $0x670] sm:$0xff]  ;;  %v3198_v34 = vld [vmem:[#allocation11 + $0x688] sm:$0xff] }
 0x6ae   :  { %6274 = vmatpush1.bf16.msra.mxu0 %v6273_v58  ;;  %3099 = vmatprep.mubr.f32.mxu0 %v7742_v40 }
 0x6af   :  { %2957 = vmatmul.mubr.f32.vlgmr.msra.gmra.mrb[24].mxu1 %v7744_v43  ;;  %6276 = vmatprep.subr.bf16.mxu0 %v6275_v59 }
 0x6b0   :  { %6338 = vmatpush1.bf16.msra.mxu1 %v6273_v58  ;;  %3172 = vmatprep.mubr.f32.mxu1 %v7747_v46  ;;  %v3018_v58 = vld [vmem:[#allocation11 + $0x578] sm:$0xff] }
 0x6b1   :  { %6340 = vmatprep.subr.bf16.mxu1 %v6275_v59  ;;  %v6313_v59 = vpack.c.bf16 %v3013_v52, %v3011_v50  ;;  %v6315_v3 = vpack.c.bf16 %v3018_v58, %v3016_v53  ;;  %v3197_v52 = vld [vmem:[#allocation11 + $0x680] sm:$0xff]  ;;  %v3199_v53 = vld [vmem:[#allocation11 + $0x690] sm:$0xff]  ;;  %v3202_v58 = vld [vmem:[#allocation11 + $0x6a8] sm:$0xff] }
 0x6b2   :  { %6278 = vmatpush1.bf16.msra.mxu0 %v6277_v8 }
 0x6b3   :  { %6280 = vmatprep.subr.bf16.mxu0 %v6279_v11 }
 0x6b4   :  { %6342 = vmatpush1.bf16.msra.mxu1 %v6277_v8  ;;  %v3022_v8 = vld [vmem:[#allocation11 + $0x598] sm:$0xff] }
 0x6b5   :  { %6344 = vmatprep.subr.bf16.mxu1 %v6279_v11  ;;  %v6317_v11 = vpack.c.bf16 %v3017_v6, %v3015_v5  ;;  %v6319_v9 = vpack.c.bf16 %v3022_v8, %v3020_v7  ;;  %v3201_v6 = vld [vmem:[#allocation11 + $0x6a0] sm:$0xff]  ;;  %v3203_v7 = vld [vmem:[#allocation11 + $0x6b0] sm:$0xff]  ;;  %v3206_v8 = vld [vmem:[#allocation11 + $0x6c8] sm:$0xff] }
 0x6b6   :  { %6282 = vmatpush1.bf16.msra.mxu0 %v6281_v29 }
 0x6b7   :  { %6284 = vmatprep.subr.bf16.mxu0 %v6283_v17 }
 0x6b8   :  { %6346 = vmatpush1.bf16.msra.mxu1 %v6281_v29  ;;  %v3026_v29 = vld [vmem:[#allocation11 + $0x5b8] sm:$0xff] }
 0x6b9   :  { %6348 = vmatprep.subr.bf16.mxu1 %v6283_v17  ;;  %v6321_v17 = vpack.c.bf16 %v3021_v44, %v3019_v10  ;;  %v6323_v13 = vpack.c.bf16 %v3026_v29, %v3024_v31  ;;  %v3205_v44 = vld [vmem:[#allocation11 + $0x6c0] sm:$0xff]  ;;  %v3207_v31 = vld [vmem:[#allocation11 + $0x6d0] sm:$0xff]  ;;  %v3210_v29 = vld [vmem:[#allocation11 + $0x6e8] sm:$0xff] }
 0x6ba   :  { %6286 = vmatpush1.bf16.msra.mxu0 %v6285_v54 }
 0x6bb   :  { %6288 = vmatprep.subr.bf16.mxu0 %v6287_v55 }
 0x6bc   :  { %6350 = vmatpush1.bf16.msra.mxu1 %v6285_v54  ;;  %v3030_v54 = vld [vmem:[#allocation11 + $0x5d8] sm:$0xff] }
 0x6bd   :  { %6352 = vmatprep.subr.bf16.mxu1 %v6287_v55  ;;  %v6325_v55 = vpack.c.bf16 %v3025_v14, %v3023_v12  ;;  %v6327_v35 = vpack.c.bf16 %v3030_v54, %v3028_v51  ;;  %v3209_v14 = vld [vmem:[#allocation11 + $0x6e0] sm:$0xff]  ;;  %v3211_v51 = vld [vmem:[#allocation11 + $0x6f0] sm:$0xff]  ;;  %v3214_v54 = vld [vmem:[#allocation11 + $0x708] sm:$0xff] }
 0x6be   :  { %6290 = vmatpush1.bf16.msra.mxu0 %v6289_v42 }
 0x6bf   :  { %6292 = vmatprep.subr.bf16.mxu0 %v6291_v45 }
 0x6c0   :  { %6354 = vmatpush1.bf16.msra.mxu1 %v6289_v42  ;;  %v3034_v42 = vld [vmem:[#allocation11 + $0x5f8] sm:$0xff] }
 0x6c1   :  { %6356 = vmatprep.subr.bf16.mxu1 %v6291_v45  ;;  %v6329_v45 = vpack.c.bf16 %v3029_v39, %v3027_v38  ;;  %v6331_v36 = vpack.c.bf16 %v3034_v42, %v3032_v41  ;;  %v3213_v39 = vld [vmem:[#allocation11 + $0x700] sm:$0xff]  ;;  %v3215_v41 = vld [vmem:[#allocation11 + $0x710] sm:$0xff]  ;;  %v3218_v42 = vld [vmem:[#allocation11 + $0x728] sm:$0xff] }
 0x6c2   :  { %6294 = vmatpush1.bf16.msra.mxu0 %v6293_v27 }
 0x6c3   :  { %6296 = vmatprep.subr.bf16.mxu0 %v6295_v60 }
 0x6c4   :  { %6358 = vmatpush1.bf16.msra.mxu1 %v6293_v27  ;;  %v3184_v27 = vld [vmem:[#allocation11 + $0x618] sm:$0xff] }
 0x6c5   :  { %6360 = vmatprep.subr.bf16.mxu1 %v6295_v60  ;;  %v6333_v60 = vpack.c.bf16 %v3033_v48, %v3031_v47  ;;  %v6399_v61 = vpack.c.bf16 %v3184_v27, %v3182_v57  ;;  %v3217_v48 = vld [vmem:[#allocation11 + $0x720] sm:$0xff]  ;;  %v3219_v57 = vld [vmem:[#allocation11 + $0x730] sm:$0xff]  ;;  %v3222_v27 = vld [vmem:[#allocation11 + $0x748] sm:$0xff] }
 0x6c6   :  { %6298 = vmatpush1.bf16.msra.mxu0 %v6297_v4 }
 0x6c7   :  { %6300 = vmatprep.subr.bf16.mxu0 %v6299_v32 }
 0x6c8   :  { %6362 = vmatpush1.bf16.msra.mxu1 %v6297_v4  ;;  %v3188_v4 = vld [vmem:[#allocation11 + $0x638] sm:$0xff] }
 0x6c9   :  { %6364 = vmatprep.subr.bf16.mxu1 %v6299_v32  ;;  %v6401_v32 = vpack.c.bf16 %v3183_v63, %v3181_v62  ;;  %v6403_v24 = vpack.c.bf16 %v3188_v4, %v3186_v1  ;;  %v3221_v63 = vld [vmem:[#allocation11 + $0x740] sm:$0xff]  ;;  %v3223_v1 = vld [vmem:[#allocation11 + $0x750] sm:$0xff]  ;;  %v3226_v4 = vld [vmem:[#allocation11 + $0x768] sm:$0xff] }
 0x6ca   :  { %6302 = vmatpush1.bf16.msra.mxu0 %v6301_v16 }
 0x6cb   :  { %6304 = vmatprep.subr.bf16.mxu0 %v6303_v30 }
 0x6cc   :  { %6366 = vmatpush1.bf16.msra.mxu1 %v6301_v16  ;;  %v3192_v16 = vld [vmem:[#allocation11 + $0x658] sm:$0xff] }
 0x6cd   :  { %6368 = vmatprep.subr.bf16.mxu1 %v6303_v30  ;;  %v6405_v30 = vpack.c.bf16 %v3187_v15, %v3185_v28  ;;  %v6407_v2 = vpack.c.bf16 %v3192_v16, %v3190_v19  ;;  %v3225_v15 = vld [vmem:[#allocation11 + $0x760] sm:$0xff]  ;;  %v3227_v19 = vld [vmem:[#allocation11 + $0x770] sm:$0xff]  ;;  %v3230_v16 = vld [vmem:[#allocation11 + $0x788] sm:$0xff] }
 0x6ce   :  { %6306 = vmatpush1.bf16.msra.mxu0 %v6305_v22 }
 0x6cf   :  { %6308 = vmatprep.subr.bf16.mxu0 %v6307_v23 }
 0x6d0   :  { %6370 = vmatpush1.bf16.msra.mxu1 %v6305_v22  ;;  %v3196_v22 = vld [vmem:[#allocation11 + $0x678] sm:$0xff] }
 0x6d1   :  { %6372 = vmatprep.subr.bf16.mxu1 %v6307_v23  ;;  %v6409_v23 = vpack.c.bf16 %v3191_v18, %v3189_v21  ;;  %v6411_v25 = vpack.c.bf16 %v3196_v22, %v3194_v20  ;;  %v3229_v18 = vld [vmem:[#allocation11 + $0x780] sm:$0xff]  ;;  %v3231_v20 = vld [vmem:[#allocation11 + $0x790] sm:$0xff]  ;;  %v3234_v22 = vld [vmem:[#allocation11 + $0x7a8] sm:$0xff] }
 0x6d2   :  { %6310 = vmatpush1.bf16.msra.mxu0 %v6309_v37 }
 0x6d3   :  { %6312 = vmatprep.subr.bf16.mxu0 %v6311_v49 }
 0x6d4   :  { %6374 = vmatpush1.bf16.msra.mxu1 %v6309_v37  ;;  %v3200_v37 = vld [vmem:[#allocation11 + $0x698] sm:$0xff] }
 0x6d5   :  { %6376 = vmatprep.subr.bf16.mxu1 %v6311_v49  ;;  %v6413_v49 = vpack.c.bf16 %v3195_v33, %v3193_v26  ;;  %v6415_v50 = vpack.c.bf16 %v3200_v37, %v3198_v34  ;;  %v3233_v33 = vld [vmem:[#allocation11 + $0x7a0] sm:$0xff]  ;;  %v3235_v34 = vld [vmem:[#allocation11 + $0x7b0] sm:$0xff]  ;;  %v3238_v37 = vld [vmem:[#allocation11 + $0x7c8] sm:$0xff] }
 0x6d6   :  { %6314 = vmatpush1.bf16.msra.mxu0 %v6313_v59 }
 0x6d7   :  { %6316 = vmatprep.subr.bf16.mxu0 %v6315_v3 }
 0x6d8   :  { %6378 = vmatpush1.bf16.msra.mxu1 %v6313_v59  ;;  %v3204_v59 = vld [vmem:[#allocation11 + $0x6b8] sm:$0xff] }
 0x6d9   :  { %6380 = vmatprep.subr.bf16.mxu1 %v6315_v3  ;;  %v6417_v3 = vpack.c.bf16 %v3199_v53, %v3197_v52  ;;  %v6419_v5 = vpack.c.bf16 %v3204_v59, %v3202_v58  ;;  %v3237_v53 = vld [vmem:[#allocation11 + $0x7c0] sm:$0xff]  ;;  %v3239_v58 = vld [vmem:[#allocation11 + $0x7d0] sm:$0xff]  ;;  %v3242_v59 = vld [vmem:[#allocation11 + $0x7e8] sm:$0xff] }
 0x6da   :  { %6318 = vmatpush1.bf16.msra.mxu0 %v6317_v11 }
 0x6db   :  { %6320 = vmatprep.subr.bf16.mxu0 %v6319_v9 }
 0x6dc   :  { %6382 = vmatpush1.bf16.msra.mxu1 %v6317_v11  ;;  %v3208_v11 = vld [vmem:[#allocation11 + $0x6d8] sm:$0xff] }
 0x6dd   :  { %6384 = vmatprep.subr.bf16.mxu1 %v6319_v9  ;;  %v6421_v9 = vpack.c.bf16 %v3203_v7, %v3201_v6  ;;  %v6423_v10 = vpack.c.bf16 %v3208_v11, %v3206_v8  ;;  %v3241_v7 = vld [vmem:[#allocation11 + $0x7e0] sm:$0xff]  ;;  %v3243_v8 = vld [vmem:[#allocation11 + $0x7f0] sm:$0xff]  ;;  %v3404_v11 = vld [vmem:[#allocation11 + $0x808] sm:$0xff] }
 0x6de   :  { %6322 = vmatpush1.bf16.msra.mxu0 %v6321_v17 }
 0x6df   :  { %6324 = vmatprep.subr.bf16.mxu0 %v6323_v13 }
 0x6e0   :  { %6386 = vmatpush1.bf16.msra.mxu1 %v6321_v17  ;;  %v3212_v17 = vld [vmem:[#allocation11 + $0x6f8] sm:$0xff] }
 0x6e1   :  { %6388 = vmatprep.subr.bf16.mxu1 %v6323_v13  ;;  %v6425_v13 = vpack.c.bf16 %v3207_v31, %v3205_v44  ;;  %v6427_v12 = vpack.c.bf16 %v3212_v17, %v3210_v29  ;;  %v3403_v31 = vld [vmem:[#allocation11 + $0x800] sm:$0xff]  ;;  %v3405_v29 = vld [vmem:[#allocation11 + $0x810] sm:$0xff]  ;;  %v3408_v17 = vld [vmem:[#allocation11 + $0x828] sm:$0xff] }
 0x6e2   :  { %6326 = vmatpush1.bf16.msra.mxu0 %v6325_v55 }
 0x6e3   :  { %6328 = vmatprep.subr.bf16.mxu0 %v6327_v35 }
 0x6e4   :  { %6390 = vmatpush1.bf16.msra.mxu1 %v6325_v55  ;;  %v3216_v55 = vld [vmem:[#allocation11 + $0x718] sm:$0xff] }
 0x6e5   :  { %6392 = vmatprep.subr.bf16.mxu1 %v6327_v35  ;;  %v6429_v35 = vpack.c.bf16 %v3211_v51, %v3209_v14  ;;  %v6431_v38 = vpack.c.bf16 %v3216_v55, %v3214_v54  ;;  %v3407_v51 = vld [vmem:[#allocation11 + $0x820] sm:$0xff]  ;;  %v3409_v54 = vld [vmem:[#allocation11 + $0x830] sm:$0xff]  ;;  %v3412_v55 = vld [vmem:[#allocation11 + $0x848] sm:$0xff] }
 0x6e6   :  { %6330 = vmatpush1.bf16.msra.mxu0 %v6329_v45 }
 0x6e7   :  { %6332 = vmatprep.subr.bf16.mxu0 %v6331_v36 }
 0x6e8   :  { %6394 = vmatpush1.bf16.msra.mxu1 %v6329_v45  ;;  %v3220_v45 = vld [vmem:[#allocation11 + $0x738] sm:$0xff] }
 0x6e9   :  { %6396 = vmatprep.subr.bf16.mxu1 %v6331_v36  ;;  %v6433_v36 = vpack.c.bf16 %v3215_v41, %v3213_v39  ;;  %v6435_v47 = vpack.c.bf16 %v3220_v45, %v3218_v42  ;;  %v3411_v41 = vld [vmem:[#allocation11 + $0x840] sm:$0xff]  ;;  %v3413_v42 = vld [vmem:[#allocation11 + $0x850] sm:$0xff]  ;;  %v3416_v45 = vld [vmem:[#allocation11 + $0x868] sm:$0xff] }
 0x6ea   :  { %6334 = vmatpush1.bf16.msra.mxu0 %v6333_v60 }
 0x6eb   :  { %6400 = vmatprep.subr.bf16.mxu0 %v6399_v61 }
 0x6ec   :  { %6398 = vmatpush1.bf16.msra.mxu1 %v6333_v60  ;;  %v3224_v60 = vld [vmem:[#allocation11 + $0x758] sm:$0xff] }
 0x6ed   :  { %3100 = vmatmul.mubr.f32.vlgmr.msra.gmra.mrb[26].mxu0 %v7740_v56  ;;  %6464 = vmatprep.subr.bf16.mxu1 %v6399_v61  ;;  %v6437_v61 = vpack.c.bf16 %v3219_v57, %v3217_v48  ;;  %v6439_v62 = vpack.c.bf16 %v3224_v60, %v3222_v27  ;;  %v3415_v57 = vld [vmem:[#allocation11 + $0x860] sm:$0xff]  ;;  %v3417_v27 = vld [vmem:[#allocation11 + $0x870] sm:$0xff]  ;;  %v3420_v60 = vld [vmem:[#allocation11 + $0x888] sm:$0xff] }
 0x6ee   :  { %6402 = vmatpush1.bf16.msra.mxu0 %v6401_v32  ;;  %3309 = vmatprep.mubr.f32.mxu0 %v7742_v40 }
 0x6ef   :  { %3173 = vmatmul.mubr.f32.vlgmr.msra.gmra.mrb[26].mxu1 %v7744_v43  ;;  %6404 = vmatprep.subr.bf16.mxu0 %v6403_v24 }
 0x6f0   :  { %6466 = vmatpush1.bf16.msra.mxu1 %v6401_v32  ;;  %3388 = vmatprep.mubr.f32.mxu1 %v7747_v46  ;;  %v3228_v32 = vld [vmem:[#allocation11 + $0x778] sm:$0xff] }
 0x6f1   :  { %6468 = vmatprep.subr.bf16.mxu1 %v6403_v24  ;;  %v6441_v24 = vpack.c.bf16 %v3223_v1, %v3221_v63  ;;  %v6443_v28 = vpack.c.bf16 %v3228_v32, %v3226_v4  ;;  %v3419_v1 = vld [vmem:[#allocation11 + $0x880] sm:$0xff]  ;;  %v3421_v4 = vld [vmem:[#allocation11 + $0x890] sm:$0xff]  ;;  %v3424_v32 = vld [vmem:[#allocation11 + $0x8a8] sm:$0xff] }
 0x6f2   :  { %6406 = vmatpush1.bf16.msra.mxu0 %v6405_v30 }
 0x6f3   :  { %6408 = vmatprep.subr.bf16.mxu0 %v6407_v2 }
 0x6f4   :  { %6470 = vmatpush1.bf16.msra.mxu1 %v6405_v30  ;;  %v3232_v30 = vld [vmem:[#allocation11 + $0x798] sm:$0xff] }
 0x6f5   :  { %6472 = vmatprep.subr.bf16.mxu1 %v6407_v2  ;;  %v6445_v2 = vpack.c.bf16 %v3227_v19, %v3225_v15  ;;  %v6447_v21 = vpack.c.bf16 %v3232_v30, %v3230_v16  ;;  %v3423_v19 = vld [vmem:[#allocation11 + $0x8a0] sm:$0xff]  ;;  %v3425_v16 = vld [vmem:[#allocation11 + $0x8b0] sm:$0xff]  ;;  %v3428_v30 = vld [vmem:[#allocation11 + $0x8c8] sm:$0xff] }
 0x6f6   :  { %6410 = vmatpush1.bf16.msra.mxu0 %v6409_v23 }
 0x6f7   :  { %6412 = vmatprep.subr.bf16.mxu0 %v6411_v25 }
 0x6f8   :  { %6474 = vmatpush1.bf16.msra.mxu1 %v6409_v23  ;;  %v3236_v23 = vld [vmem:[#allocation11 + $0x7b8] sm:$0xff] }
 0x6f9   :  { %6476 = vmatprep.subr.bf16.mxu1 %v6411_v25  ;;  %v6449_v25 = vpack.c.bf16 %v3231_v20, %v3229_v18  ;;  %v6451_v26 = vpack.c.bf16 %v3236_v23, %v3234_v22  ;;  %v3427_v20 = vld [vmem:[#allocation11 + $0x8c0] sm:$0xff]  ;;  %v3429_v22 = vld [vmem:[#allocation11 + $0x8d0] sm:$0xff] }
 0x6fa   :  { %6414 = vmatpush1.bf16.msra.mxu0 %v6413_v49 }
 0x6fb   :  { %6416 = vmatprep.subr.bf16.mxu0 %v6415_v50 }
 0x6fc   :  { %6478 = vmatpush1.bf16.msra.mxu1 %v6413_v49  ;;  %v3240_v49 = vld [vmem:[#allocation11 + $0x7d8] sm:$0xff] }
 0x6fd   :  { %6480 = vmatprep.subr.bf16.mxu1 %v6415_v50  ;;  %v6453_v50 = vpack.c.bf16 %v3235_v34, %v3233_v33  ;;  %v6455_v52 = vpack.c.bf16 %v3240_v49, %v3238_v37  ;;  %v6553_v37 = vpack.c.bf16 %v3429_v22, %v3427_v20  ;;  %v3465_v20 = vld [vmem:[#allocation11 + $0x9f0] sm:$0xff]  ;;  %v3614_v22 = vld [vmem:[#allocation11 + $0xa08] sm:$0xff] }
 0x6fe   :  { %6418 = vmatpush1.bf16.msra.mxu0 %v6417_v3 }
 0x6ff   :  { %6420 = vmatprep.subr.bf16.mxu0 %v6419_v5 }
 0x700   :  { %6482 = vmatpush1.bf16.msra.mxu1 %v6417_v3  ;;  %v3244_v3 = vld [vmem:[#allocation11 + $0x7f8] sm:$0xff] }
 0x701   :  { %6484 = vmatprep.subr.bf16.mxu1 %v6419_v5  ;;  %v6457_v5 = vpack.c.bf16 %v3239_v58, %v3237_v53  ;;  %v6459_v6 = vpack.c.bf16 %v3244_v3, %v3242_v59  ;;  %v3433_v53 = vld [vmem:[#allocation11 + $0x8f0] sm:$0xff]  ;;  %v3436_v58 = vld [vmem:[#allocation11 + $0x908] sm:$0xff]  ;;  %v3438_v59 = vld [vmem:[#allocation11 + $0x918] sm:$0xff] }
 0x702   :  { %6422 = vmatpush1.bf16.msra.mxu0 %v6421_v9 }
 0x703   :  { %6424 = vmatprep.subr.bf16.mxu0 %v6423_v10 }
 0x704   :  { %6486 = vmatpush1.bf16.msra.mxu1 %v6421_v9  ;;  %v3406_v9 = vld [vmem:[#allocation11 + $0x818] sm:$0xff] }
 0x705   :  { %6488 = vmatprep.subr.bf16.mxu1 %v6423_v10  ;;  %v6461_v10 = vpack.c.bf16 %v3243_v8, %v3241_v7  ;;  %v6527_v44 = vpack.c.bf16 %v3406_v9, %v3404_v11  ;;  %v3437_v7 = vld [vmem:[#allocation11 + $0x910] sm:$0xff]  ;;  %v3440_v8 = vld [vmem:[#allocation11 + $0x928] sm:$0xff]  ;;  %v3442_v11 = vld [vmem:[#allocation11 + $0x938] sm:$0xff] }
 0x706   :  { %6426 = vmatpush1.bf16.msra.mxu0 %v6425_v13 }
 0x707   :  { %6428 = vmatprep.subr.bf16.mxu0 %v6427_v12 }
 0x708   :  { %6490 = vmatpush1.bf16.msra.mxu1 %v6425_v13  ;;  %v3410_v13 = vld [vmem:[#allocation11 + $0x838] sm:$0xff] }
 0x709   :  { %6492 = vmatprep.subr.bf16.mxu1 %v6427_v12  ;;  %v6529_v12 = vpack.c.bf16 %v3405_v29, %v3403_v31  ;;  %v6531_v14 = vpack.c.bf16 %v3410_v13, %v3408_v17  ;;  %v3441_v31 = vld [vmem:[#allocation11 + $0x930] sm:$0xff]  ;;  %v3444_v29 = vld [vmem:[#allocation11 + $0x948] sm:$0xff]  ;;  %v3446_v17 = vld [vmem:[#allocation11 + $0x958] sm:$0xff] }
 0x70a   :  { %6430 = vmatpush1.bf16.msra.mxu0 %v6429_v35 }
 0x70b   :  { %6432 = vmatprep.subr.bf16.mxu0 %v6431_v38 }
 0x70c   :  { %6494 = vmatpush1.bf16.msra.mxu1 %v6429_v35  ;;  %v3414_v35 = vld [vmem:[#allocation11 + $0x858] sm:$0xff] }
 0x70d   :  { %6496 = vmatprep.subr.bf16.mxu1 %v6431_v38  ;;  %v6533_v38 = vpack.c.bf16 %v3409_v54, %v3407_v51  ;;  %v6535_v39 = vpack.c.bf16 %v3414_v35, %v3412_v55  ;;  %v3445_v51 = vld [vmem:[#allocation11 + $0x950] sm:$0xff]  ;;  %v3448_v54 = vld [vmem:[#allocation11 + $0x968] sm:$0xff]  ;;  %v3450_v55 = vld [vmem:[#allocation11 + $0x978] sm:$0xff] }
 0x70e   :  { %6434 = vmatpush1.bf16.msra.mxu0 %v6433_v36 }
 0x70f   :  { %6436 = vmatprep.subr.bf16.mxu0 %v6435_v47 }
 0x710   :  { %6498 = vmatpush1.bf16.msra.mxu1 %v6433_v36  ;;  %v3418_v36 = vld [vmem:[#allocation11 + $0x878] sm:$0xff] }
 0x711   :  { %6500 = vmatprep.subr.bf16.mxu1 %v6435_v47  ;;  %v6537_v47 = vpack.c.bf16 %v3413_v42, %v3411_v41  ;;  %v6539_v48 = vpack.c.bf16 %v3418_v36, %v3416_v45  ;;  %v3449_v41 = vld [vmem:[#allocation11 + $0x970] sm:$0xff]  ;;  %v3452_v42 = vld [vmem:[#allocation11 + $0x988] sm:$0xff]  ;;  %v3454_v45 = vld [vmem:[#allocation11 + $0x998] sm:$0xff] }
 0x712   :  { %6438 = vmatpush1.bf16.msra.mxu0 %v6437_v61 }
 0x713   :  { %6440 = vmatprep.subr.bf16.mxu0 %v6439_v62 }
 0x714   :  { %6502 = vmatpush1.bf16.msra.mxu1 %v6437_v61  ;;  %v3422_v61 = vld [vmem:[#allocation11 + $0x898] sm:$0xff] }
 0x715   :  { %6504 = vmatprep.subr.bf16.mxu1 %v6439_v62  ;;  %v6541_v62 = vpack.c.bf16 %v3417_v27, %v3415_v57  ;;  %v6543_v63 = vpack.c.bf16 %v3422_v61, %v3420_v60  ;;  %v3453_v57 = vld [vmem:[#allocation11 + $0x990] sm:$0xff]  ;;  %v3456_v27 = vld [vmem:[#allocation11 + $0x9a8] sm:$0xff]  ;;  %v3458_v60 = vld [vmem:[#allocation11 + $0x9b8] sm:$0xff] }
 0x716   :  { %6442 = vmatpush1.bf16.msra.mxu0 %v6441_v24 }
 0x717   :  { %6444 = vmatprep.subr.bf16.mxu0 %v6443_v28 }
 0x718   :  { %6506 = vmatpush1.bf16.msra.mxu1 %v6441_v24  ;;  %v3426_v24 = vld [vmem:[#allocation11 + $0x8b8] sm:$0xff] }
 0x719   :  { %6508 = vmatprep.subr.bf16.mxu1 %v6443_v28  ;;  %v6545_v28 = vpack.c.bf16 %v3421_v4, %v3419_v1  ;;  %v6547_v15 = vpack.c.bf16 %v3426_v24, %v3424_v32  ;;  %v3457_v1 = vld [vmem:[#allocation11 + $0x9b0] sm:$0xff]  ;;  %v3460_v4 = vld [vmem:[#allocation11 + $0x9c8] sm:$0xff]  ;;  %v3462_v32 = vld [vmem:[#allocation11 + $0x9d8] sm:$0xff] }
 0x71a   :  { %6446 = vmatpush1.bf16.msra.mxu0 %v6445_v2 }
 0x71b   :  { %6448 = vmatprep.subr.bf16.mxu0 %v6447_v21 }
 0x71c   :  { %6510 = vmatpush1.bf16.msra.mxu1 %v6445_v2  ;;  %v3430_v2 = vld [vmem:[#allocation11 + $0x8d8] sm:$0xff] }
 0x71d   :  { %6512 = vmatprep.subr.bf16.mxu1 %v6447_v21  ;;  %v6549_v21 = vpack.c.bf16 %v3425_v16, %v3423_v19  ;;  %v6551_v18 = vpack.c.bf16 %v3430_v2, %v3428_v30  ;;  %v3461_v19 = vld [vmem:[#allocation11 + $0x9d0] sm:$0xff]  ;;  %v3464_v16 = vld [vmem:[#allocation11 + $0x9e8] sm:$0xff]  ;;  %v3466_v30 = vld [vmem:[#allocation11 + $0x9f8] sm:$0xff] }
 0x71e   :  { %6450 = vmatpush1.bf16.msra.mxu0 %v6449_v25 }
 0x71f   :  { %6452 = vmatprep.subr.bf16.mxu0 %v6451_v26 }
 0x720   :  { %6514 = vmatpush1.bf16.msra.mxu1 %v6449_v25  ;;  %v3432_v25 = vld [vmem:[#allocation11 + $0x8e8] sm:$0xff] }
 0x721   :  { %6516 = vmatprep.subr.bf16.mxu1 %v6451_v26  ;;  %v3434_v26 = vld [vmem:[#allocation11 + $0x8f8] sm:$0xff] }
 0x722   :  { %6454 = vmatpush1.bf16.msra.mxu0 %v6453_v50 }
 0x723   :  { %6456 = vmatprep.subr.bf16.mxu0 %v6455_v52 }
 0x724   :  { %6518 = vmatpush1.bf16.msra.mxu1 %v6453_v50  ;;  %v6555_v50 = vpack.c.bf16 %v3434_v26, %v3432_v25 }
 0x725   :  { %6520 = vmatprep.subr.bf16.mxu1 %v6455_v52  ;;  %v3431_v52 = vld [vmem:[#allocation11 + $0x8e0] sm:$0xff] }
 0x726   :  { %6458 = vmatpush1.bf16.msra.mxu0 %v6457_v5  ;;  %v6557_v3 = vpack.c.bf16 %v3433_v53, %v3431_v52  ;;  %v3617_v53 = vld [vmem:[#allocation11 + $0xa20] sm:$0xff] }
 0x727   :  { %6460 = vmatprep.subr.bf16.mxu0 %v6459_v6 }
 0x728   :  { %6522 = vmatpush1.bf16.msra.mxu1 %v6457_v5  ;;  %v6559_v5 = vpack.c.bf16 %v3438_v59, %v3436_v58  ;;  %v3619_v58 = vld [vmem:[#allocation11 + $0xa30] sm:$0xff]  ;;  %v3622_v59 = vld [vmem:[#allocation11 + $0xa48] sm:$0xff] }
 0x729   :  { %6524 = vmatprep.subr.bf16.mxu1 %v6459_v6  ;;  %v3435_v6 = vld [vmem:[#allocation11 + $0x900] sm:$0xff] }
 0x72a   :  { %6462 = vmatpush1.bf16.msra.mxu0 %v6461_v10  ;;  %v6561_v9 = vpack.c.bf16 %v3437_v7, %v3435_v6  ;;  %v3621_v7 = vld [vmem:[#allocation11 + $0xa40] sm:$0xff] }
 0x72b   :  { %6528 = vmatprep.subr.bf16.mxu0 %v6527_v44 }
 0x72c   :  { %6526 = vmatpush1.bf16.msra.mxu1 %v6461_v10  ;;  %v6563_v10 = vpack.c.bf16 %v3442_v11, %v3440_v8  ;;  %v3623_v8 = vld [vmem:[#allocation11 + $0xa50] sm:$0xff]  ;;  %v3626_v11 = vld [vmem:[#allocation11 + $0xa68] sm:$0xff] }
 0x72d   :  { %3310 = vmatmul.mubr.f32.vlgmr.msra.gmra.mrb[28].mxu0 %v7740_v56  ;;  %6592 = vmatprep.subr.bf16.mxu1 %v6527_v44  ;;  %v3439_v44 = vld [vmem:[#allocation11 + $0x920] sm:$0xff] }
 0x72e   :  { %6530 = vmatpush1.bf16.msra.mxu0 %v6529_v12  ;;  %3531 = vmatprep.mubr.f32.mxu0 %v7742_v40  ;;  %v6565_v13 = vpack.c.bf16 %v3441_v31, %v3439_v44  ;;  %v3625_v31 = vld [vmem:[#allocation11 + $0xa60] sm:$0xff] }
 0x72f   :  { %3389 = vmatmul.mubr.f32.vlgmr.msra.gmra.mrb[28].mxu1 %v7744_v43  ;;  %6532 = vmatprep.subr.bf16.mxu0 %v6531_v14 }
 0x730   :  { %6594 = vmatpush1.bf16.msra.mxu1 %v6529_v12  ;;  %3604 = vmatprep.mubr.f32.mxu1 %v7747_v46  ;;  %v6567_v12 = vpack.c.bf16 %v3446_v17, %v3444_v29  ;;  %v3627_v29 = vld [vmem:[#allocation11 + $0xa70] sm:$0xff]  ;;  %v3630_v17 = vld [vmem:[#allocation11 + $0xa88] sm:$0xff] }
 0x731   :  { %6596 = vmatprep.subr.bf16.mxu1 %v6531_v14  ;;  %v3443_v14 = vld [vmem:[#allocation11 + $0x940] sm:$0xff] }
 0x732   :  { %6534 = vmatpush1.bf16.msra.mxu0 %v6533_v38  ;;  %v6569_v35 = vpack.c.bf16 %v3445_v51, %v3443_v14  ;;  %v3629_v51 = vld [vmem:[#allocation11 + $0xa80] sm:$0xff] }
 0x733   :  { %6536 = vmatprep.subr.bf16.mxu0 %v6535_v39 }
 0x734   :  { %6598 = vmatpush1.bf16.msra.mxu1 %v6533_v38  ;;  %v6571_v38 = vpack.c.bf16 %v3450_v55, %v3448_v54  ;;  %v3631_v54 = vld [vmem:[#allocation11 + $0xa90] sm:$0xff]  ;;  %v3634_v55 = vld [vmem:[#allocation11 + $0xaa8] sm:$0xff] }
 0x735   :  { %6600 = vmatprep.subr.bf16.mxu1 %v6535_v39  ;;  %v3447_v39 = vld [vmem:[#allocation11 + $0x960] sm:$0xff] }
 0x736   :  { %6538 = vmatpush1.bf16.msra.mxu0 %v6537_v47  ;;  %v6573_v36 = vpack.c.bf16 %v3449_v41, %v3447_v39  ;;  %v3633_v41 = vld [vmem:[#allocation11 + $0xaa0] sm:$0xff] }
 0x737   :  { %6540 = vmatprep.subr.bf16.mxu0 %v6539_v48 }
 0x738   :  { %6602 = vmatpush1.bf16.msra.mxu1 %v6537_v47  ;;  %v6575_v47 = vpack.c.bf16 %v3454_v45, %v3452_v42  ;;  %v3635_v42 = vld [vmem:[#allocation11 + $0xab0] sm:$0xff]  ;;  %v3638_v45 = vld [vmem:[#allocation11 + $0xac8] sm:$0xff] }
 0x739   :  { %6604 = vmatprep.subr.bf16.mxu1 %v6539_v48  ;;  %v3451_v48 = vld [vmem:[#allocation11 + $0x980] sm:$0xff] }
 0x73a   :  { %6542 = vmatpush1.bf16.msra.mxu0 %v6541_v62  ;;  %v6577_v61 = vpack.c.bf16 %v3453_v57, %v3451_v48  ;;  %v3637_v57 = vld [vmem:[#allocation11 + $0xac0] sm:$0xff] }
 0x73b   :  { %6544 = vmatprep.subr.bf16.mxu0 %v6543_v63 }
 0x73c   :  { %6606 = vmatpush1.bf16.msra.mxu1 %v6541_v62  ;;  %v6579_v62 = vpack.c.bf16 %v3458_v60, %v3456_v27  ;;  %v3639_v27 = vld [vmem:[#allocation11 + $0xad0] sm:$0xff] }
 0x73d   :  { %6608 = vmatprep.subr.bf16.mxu1 %v6543_v63  ;;  %v3455_v63 = vld [vmem:[#allocation11 + $0x9a0] sm:$0xff] }
 0x73e   :  { %6546 = vmatpush1.bf16.msra.mxu0 %v6545_v28  ;;  %v6581_v24 = vpack.c.bf16 %v3457_v1, %v3455_v63 }
 0x73f   :  { %6548 = vmatprep.subr.bf16.mxu0 %v6547_v15 }
 0x740   :  { %6610 = vmatpush1.bf16.msra.mxu1 %v6545_v28  ;;  %v2669_v23 = vpop.f32.mrb[22].mxu0  ;;  %v6583_v28 = vpack.c.bf16 %v3462_v32, %v3460_v4 }
 0x741   :  { %2674 = vst [vmem:[#allocation4] sm:$0xf] %v2669_v23  ;;  %6612 = vmatprep.subr.bf16.mxu1 %v6547_v15  ;;  %v2671_v33 = vpop.f32.mrb[23].mxu0  ;;  %v3459_v15 = vld [vmem:[#allocation11 + $0x9c0] sm:$0xff]  ;;  %v3616_v23 = vld [vmem:[#allocation11 + $0xa18] sm:$0xff] }
 0x742   :  { %v2742_v34 = vpop.f32.mrb[22].mxu1  ;;  %2675 = vst [vmem:[#allocation4 + $0x8] sm:$0xf] %v2671_v33  ;;  %6550 = vmatpush1.bf16.msra.mxu0 %v6549_v21  ;;  %v6585_v2 = vpack.c.bf16 %v3461_v19, %v3459_v15  ;;  %v6655_v26 = vpack.c.bf16 %v3616_v23, %v3614_v22  ;;  %v3613_v33 = vld [vmem:[#allocation11 + $0xa00] sm:$0xff] }
 0x743   :  { %2747 = vst [vmem:[#allocation4 + $0x10] sm:$0xf] %v2742_v34  ;;  %v2744_v49 = vpop.f32.mrb[23].mxu1  ;;  %6552 = vmatprep.subr.bf16.mxu0 %v6551_v18  ;;  %v3615_v34 = vld [vmem:[#allocation11 + $0xa10] sm:$0xff]  ;;  %v3645_v23 = vld [vmem:[#allocation11 + $0xb00] sm:$0xff] }
 0x744   :  { %2748 = vst [vmem:[#allocation4 + $0x18] sm:$0xf] %v2744_v49  ;;  %6614 = vmatpush1.bf16.msra.mxu1 %v6549_v21  ;;  %v6587_v21 = vpack.c.bf16 %v3466_v30, %v3464_v16  ;;  %v3620_v49 = vld [vmem:[#allocation11 + $0xa38] sm:$0xff]  ;;  %v3641_v16 = vld [vmem:[#allocation11 + $0xae0] sm:$0xff]  ;;  %v3643_v30 = vld [vmem:[#allocation11 + $0xaf0] sm:$0xff] }
 0x745   :  { %6616 = vmatprep.subr.bf16.mxu1 %v6551_v18  ;;  %v3463_v18 = vld [vmem:[#allocation11 + $0x9e0] sm:$0xff] }
 0x746   :  { %6554 = vmatpush1.bf16.msra.mxu0 %v6553_v37  ;;  %v6589_v25 = vpack.c.bf16 %v3465_v20, %v3463_v18  ;;  %v3648_v18 = vld [vmem:[#allocation11 + $0xb18] sm:$0xff]  ;;  %v6685_v20 = vpack.c.bf16 %v3643_v30, %v3641_v16 }
 0x747   :  { %6556 = vmatprep.subr.bf16.mxu0 %v6555_v50 }
 0x748   :  { %6618 = vmatpush1.bf16.msra.mxu1 %v6553_v37  ;;  %v3618_v37 = vld [vmem:[#allocation11 + $0xa28] sm:$0xff] }
 0x749   :  { %6620 = vmatprep.subr.bf16.mxu1 %v6555_v50  ;;  %v6657_v50 = vpack.c.bf16 %v3615_v34, %v3613_v33  ;;  %v6659_v52 = vpack.c.bf16 %v3620_v49, %v3618_v37  ;;  %v3652_v33 = vld [vmem:[#allocation11 + $0xb38] sm:$0xff]  ;;  %v3649_v49 = vld [vmem:[#allocation11 + $0xb20] sm:$0xff] }
 0x74a   :  { %6558 = vmatpush1.bf16.msra.mxu0 %v6557_v3 }
 0x74b   :  { %6560 = vmatprep.subr.bf16.mxu0 %v6559_v5 }
 0x74c   :  { %6622 = vmatpush1.bf16.msra.mxu1 %v6557_v3  ;;  %v3624_v3 = vld [vmem:[#allocation11 + $0xa58] sm:$0xff] }
 0x74d   :  { %6624 = vmatprep.subr.bf16.mxu1 %v6559_v5  ;;  %v6661_v5 = vpack.c.bf16 %v3619_v58, %v3617_v53  ;;  %v6663_v6 = vpack.c.bf16 %v3624_v3, %v3622_v59  ;;  %v3656_v53 = vld [vmem:[#allocation11 + $0xb58] sm:$0xff]  ;;  %v3653_v3 = vld [vmem:[#allocation11 + $0xb40] sm:$0xff] }
 0x74e   :  { %6562 = vmatpush1.bf16.msra.mxu0 %v6561_v9 }
 0x74f   :  { %6564 = vmatprep.subr.bf16.mxu0 %v6563_v10 }
 0x750   :  { %6626 = vmatpush1.bf16.msra.mxu1 %v6561_v9  ;;  %v3628_v9 = vld [vmem:[#allocation11 + $0xa78] sm:$0xff] }
 0x751   :  { %6628 = vmatprep.subr.bf16.mxu1 %v6563_v10  ;;  %v6665_v10 = vpack.c.bf16 %v3623_v8, %v3621_v7  ;;  %v6667_v44 = vpack.c.bf16 %v3628_v9, %v3626_v11  ;;  %v3660_v7 = vld [vmem:[#allocation11 + $0xb78] sm:$0xff]  ;;  %v3657_v9 = vld [vmem:[#allocation11 + $0xb60] sm:$0xff] }
 0x752   :  { %6566 = vmatpush1.bf16.msra.mxu0 %v6565_v13 }
 0x753   :  { %6568 = vmatprep.subr.bf16.mxu0 %v6567_v12 }
 0x754   :  { %6630 = vmatpush1.bf16.msra.mxu1 %v6565_v13  ;;  %v3632_v13 = vld [vmem:[#allocation11 + $0xa98] sm:$0xff] }
 0x755   :  { %6632 = vmatprep.subr.bf16.mxu1 %v6567_v12  ;;  %v6669_v12 = vpack.c.bf16 %v3627_v29, %v3625_v31  ;;  %v6671_v14 = vpack.c.bf16 %v3632_v13, %v3630_v17  ;;  %v3664_v31 = vld [vmem:[#allocation11 + $0xb98] sm:$0xff]  ;;  %v3661_v13 = vld [vmem:[#allocation11 + $0xb80] sm:$0xff] }
 0x756   :  { %6570 = vmatpush1.bf16.msra.mxu0 %v6569_v35 }
 0x757   :  { %6572 = vmatprep.subr.bf16.mxu0 %v6571_v38 }
 0x758   :  { %6634 = vmatpush1.bf16.msra.mxu1 %v6569_v35  ;;  %v3636_v35 = vld [vmem:[#allocation11 + $0xab8] sm:$0xff] }
 0x759   :  { %6636 = vmatprep.subr.bf16.mxu1 %v6571_v38  ;;  %v6673_v38 = vpack.c.bf16 %v3631_v54, %v3629_v51  ;;  %v6675_v39 = vpack.c.bf16 %v3636_v35, %v3634_v55  ;;  %v3668_v51 = vld [vmem:[#allocation11 + $0xbb8] sm:$0xff]  ;;  %v3665_v35 = vld [vmem:[#allocation11 + $0xba0] sm:$0xff] }
 0x75a   :  { %6574 = vmatpush1.bf16.msra.mxu0 %v6573_v36 }
 0x75b   :  { %6576 = vmatprep.subr.bf16.mxu0 %v6575_v47 }
 0x75c   :  { %6638 = vmatpush1.bf16.msra.mxu1 %v6573_v36  ;;  %v3640_v36 = vld [vmem:[#allocation11 + $0xad8] sm:$0xff] }
 0x75d   :  { %6640 = vmatprep.subr.bf16.mxu1 %v6575_v47  ;;  %v6677_v47 = vpack.c.bf16 %v3635_v42, %v3633_v41  ;;  %v6679_v48 = vpack.c.bf16 %v3640_v36, %v3638_v45  ;;  %v3672_v41 = vld [vmem:[#allocation11 + $0xbd8] sm:$0xff]  ;;  %v3669_v36 = vld [vmem:[#allocation11 + $0xbc0] sm:$0xff] }
 0x75e   :  { %6578 = vmatpush1.bf16.msra.mxu0 %v6577_v61 }
 0x75f   :  { %6580 = vmatprep.subr.bf16.mxu0 %v6579_v62 }
 0x760   :  { %6642 = vmatpush1.bf16.msra.mxu1 %v6577_v61  ;;  %v3642_v61 = vld [vmem:[#allocation11 + $0xae8] sm:$0xff] }
 0x761   :  { %6644 = vmatprep.subr.bf16.mxu1 %v6579_v62  ;;  %v3644_v62 = vld [vmem:[#allocation11 + $0xaf8] sm:$0xff] }
 0x762   :  { %6582 = vmatpush1.bf16.msra.mxu0 %v6581_v24  ;;  %v6683_v19 = vpack.c.bf16 %v3644_v62, %v3642_v61  ;;  %v3673_v61 = vld [vmem:[#allocation11 + $0xbe0] sm:$0xff]  ;;  %v3675_v62 = vld [vmem:[#allocation11 + $0xbf0] sm:$0xff] }
 0x763   :  { %6584 = vmatprep.subr.bf16.mxu0 %v6583_v28 }
 0x764   :  { %6646 = vmatpush1.bf16.msra.mxu1 %v6581_v24  ;;  %v6681_v24 = vpack.c.bf16 %v3639_v27, %v3637_v57  ;;  %v3676_v57 = vld [vmem:[#allocation11 + $0xbf8] sm:$0xff] }
 0x765   :  { %6648 = vmatprep.subr.bf16.mxu1 %v6583_v28 }
 0x766   :  { %6586 = vmatpush1.bf16.msra.mxu0 %v6585_v2 }
 0x767   :  { %6588 = vmatprep.subr.bf16.mxu0 %v6587_v21 }
 0x768   :  { %6650 = vmatpush1.bf16.msra.mxu1 %v6585_v2 }
 0x769   :  { %6652 = vmatprep.subr.bf16.mxu1 %v6587_v21  ;;  %v3646_v21 = vld [vmem:[#allocation11 + $0xb08] sm:$0xff] }
 0x76a   :  { %6590 = vmatpush1.bf16.msra.mxu0 %v6589_v25  ;;  %v6687_v22 = vpack.c.bf16 %v3648_v18, %v3646_v21  ;;  %v3841_v21 = vld [vmem:[#allocation11 + $0xc30] sm:$0xff]  ;;  %v3844_v18 = vld [vmem:[#allocation11 + $0xc48] sm:$0xff] }
 0x76b   :  { %6656 = vmatprep.subr.bf16.mxu0 %v6655_v26 }
 0x76c   :  { %6654 = vmatpush1.bf16.msra.mxu1 %v6589_v25  ;;  %v3647_v25 = vld [vmem:[#allocation11 + $0xb10] sm:$0xff] }
 0x76d   :  { %3532 = vmatmul.mubr.f32.vlgmr.msra.gmra.mrb[30].mxu0 %v7740_v56  ;;  %6720 = vmatprep.subr.bf16.mxu1 %v6655_v26  ;;  %v3650_v26 = vld [vmem:[#allocation11 + $0xb28] sm:$0xff]  ;;  %v6689_v34 = vpack.c.bf16 %v3647_v25, %v3645_v23  ;;  %v3843_v25 = vld [vmem:[#allocation11 + $0xc40] sm:$0xff] }
 0x76e   :  { %6658 = vmatpush1.bf16.msra.mxu0 %v6657_v50  ;;  %3741 = vmatprep.mubr.f32.mxu0 %v7742_v40  ;;  %v6691_v37 = vpack.c.bf16 %v3652_v33, %v3650_v26  ;;  %v3845_v26 = vld [vmem:[#allocation11 + $0xc50] sm:$0xff]  ;;  %v3848_v33 = vld [vmem:[#allocation11 + $0xc68] sm:$0xff] }
 0x76f   :  { %3605 = vmatmul.mubr.f32.vlgmr.msra.gmra.mrb[30].mxu1 %v7744_v43  ;;  %6660 = vmatprep.subr.bf16.mxu0 %v6659_v52 }
 0x770   :  { %6722 = vmatpush1.bf16.msra.mxu1 %v6657_v50  ;;  %3820 = vmatprep.mubr.f32.mxu1 %v7747_v46  ;;  %v3651_v50 = vld [vmem:[#allocation11 + $0xb30] sm:$0xff] }
 0x771   :  { %6724 = vmatprep.subr.bf16.mxu1 %v6659_v52  ;;  %v3654_v52 = vld [vmem:[#allocation11 + $0xb48] sm:$0xff]  ;;  %v6693_v58 = vpack.c.bf16 %v3651_v50, %v3649_v49  ;;  %v3847_v50 = vld [vmem:[#allocation11 + $0xc60] sm:$0xff] }
 0x772   :  { %6662 = vmatpush1.bf16.msra.mxu0 %v6661_v5  ;;  %v6695_v59 = vpack.c.bf16 %v3656_v53, %v3654_v52  ;;  %v3849_v52 = vld [vmem:[#allocation11 + $0xc70] sm:$0xff]  ;;  %v3852_v53 = vld [vmem:[#allocation11 + $0xc88] sm:$0xff] }
 0x773   :  { %6664 = vmatprep.subr.bf16.mxu0 %v6663_v6 }
 0x774   :  { %6726 = vmatpush1.bf16.msra.mxu1 %v6661_v5  ;;  %v3655_v5 = vld [vmem:[#allocation11 + $0xb50] sm:$0xff] }
 0x775   :  { %6728 = vmatprep.subr.bf16.mxu1 %v6663_v6  ;;  %v3658_v6 = vld [vmem:[#allocation11 + $0xb68] sm:$0xff]  ;;  %v6697_v8 = vpack.c.bf16 %v3655_v5, %v3653_v3  ;;  %v3851_v5 = vld [vmem:[#allocation11 + $0xc80] sm:$0xff] }
 0x776   :  { %6666 = vmatpush1.bf16.msra.mxu0 %v6665_v10  ;;  %v6699_v11 = vpack.c.bf16 %v3660_v7, %v3658_v6  ;;  %v3853_v6 = vld [vmem:[#allocation11 + $0xc90] sm:$0xff]  ;;  %v3856_v7 = vld [vmem:[#allocation11 + $0xca8] sm:$0xff] }
 0x777   :  { %6668 = vmatprep.subr.bf16.mxu0 %v6667_v44 }
 0x778   :  { %6730 = vmatpush1.bf16.msra.mxu1 %v6665_v10  ;;  %v3659_v10 = vld [vmem:[#allocation11 + $0xb70] sm:$0xff] }
 0x779   :  { %6732 = vmatprep.subr.bf16.mxu1 %v6667_v44  ;;  %v3662_v44 = vld [vmem:[#allocation11 + $0xb88] sm:$0xff]  ;;  %v6701_v29 = vpack.c.bf16 %v3659_v10, %v3657_v9  ;;  %v3855_v10 = vld [vmem:[#allocation11 + $0xca0] sm:$0xff] }
 0x77a   :  { %6670 = vmatpush1.bf16.msra.mxu0 %v6669_v12  ;;  %v6703_v17 = vpack.c.bf16 %v3664_v31, %v3662_v44  ;;  %v3857_v44 = vld [vmem:[#allocation11 + $0xcb0] sm:$0xff]  ;;  %v3860_v31 = vld [vmem:[#allocation11 + $0xcc8] sm:$0xff] }
 0x77b   :  { %6672 = vmatprep.subr.bf16.mxu0 %v6671_v14 }
 0x77c   :  { %6734 = vmatpush1.bf16.msra.mxu1 %v6669_v12  ;;  %v3663_v12 = vld [vmem:[#allocation11 + $0xb90] sm:$0xff] }
 0x77d   :  { %6736 = vmatprep.subr.bf16.mxu1 %v6671_v14  ;;  %v3666_v14 = vld [vmem:[#allocation11 + $0xba8] sm:$0xff]  ;;  %v6705_v54 = vpack.c.bf16 %v3663_v12, %v3661_v13  ;;  %v3859_v12 = vld [vmem:[#allocation11 + $0xcc0] sm:$0xff] }
 0x77e   :  { %6674 = vmatpush1.bf16.msra.mxu0 %v6673_v38  ;;  %v6707_v55 = vpack.c.bf16 %v3668_v51, %v3666_v14  ;;  %v3861_v14 = vld [vmem:[#allocation11 + $0xcd0] sm:$0xff] }
 0x77f   :  { %6676 = vmatprep.subr.bf16.mxu0 %v6675_v39 }
 0x780   :  { %6738 = vmatpush1.bf16.msra.mxu1 %v6673_v38  ;;  %v2879_v60 = vpop.f32.mrb[24].mxu0  ;;  %v3667_v38 = vld [vmem:[#allocation11 + $0xbb0] sm:$0xff] }
 0x781   :  { %v2886_v63 = vrot.slane %v2879_v60, 4  ;;  %v2881_v1 = vpop.f32.mrb[25].mxu0  ;;  %6740 = vmatprep.subr.bf16.mxu1 %v6675_v39  ;;  %v3670_v39 = vld [vmem:[#allocation11 + $0xbc8] sm:$0xff]  ;;  %v6709_v42 = vpack.c.bf16 %v3667_v38, %v3665_v35 }
 0x782   :  { %v2958_v4 = vpop.f32.mrb[24].mxu1  ;;  %v2887_v32 = vrot.slane %v2881_v1, 4  ;;  %6678 = vmatpush1.bf16.msra.mxu0 %v6677_v47  ;;  %v6711_v45 = vpack.c.bf16 %v3672_v41, %v3670_v39  ;;  %v3838_v1 = vld [vmem:[#allocation11 + $0xc18] sm:$0xff]  ;;  %v6809_v39 = vpack.c.bf16 %v3861_v14, %v3859_v12  ;;  %v3897_v12 = vld [vmem:[#allocation11 + $0xdf0] sm:$0xff]  ;;  %v4046_v14 = vld [vmem:[#allocation11 + $0xe08] sm:$0xff] }
 0x783   :  { %2890 = vst [vmem:[#allocation4] sm:$0xf0] %v2886_v63  ;;  %v2965_v28 = vrot.slane %v2958_v4, 4  ;;  %v2960_v15 = vpop.f32.mrb[25].mxu1  ;;  %6680 = vmatprep.subr.bf16.mxu0 %v6679_v48  ;;  %v3836_v63 = vld [vmem:[#allocation11 + $0xc08] sm:$0xff]  ;;  %v6717_v4 = vpack.c.bf16 %v3675_v62, %v3673_v61  ;;  %v3869_v61 = vld [vmem:[#allocation11 + $0xd10] sm:$0xff] }
 0x784   :  { %2891 = vst [vmem:[#allocation4 + $0x8] sm:$0xf0] %v2887_v32  ;;  %v2966_v2 = vrot.slane %v2960_v15, 4  ;;  %6742 = vmatpush1.bf16.msra.mxu1 %v6677_v47  ;;  %v3671_v47 = vld [vmem:[#allocation11 + $0xbd0] sm:$0xff]  ;;  %v6783_v32 = vpack.c.bf16 %v3838_v1, %v3836_v63  ;;  %v3840_v15 = vld [vmem:[#allocation11 + $0xc28] sm:$0xff]  ;;  %v3874_v63 = vld [vmem:[#allocation11 + $0xd38] sm:$0xff] }
 0x785   :  { %2969 = vst [vmem:[#allocation4 + $0x10] sm:$0xf0] %v2965_v28  ;;  %6744 = vmatprep.subr.bf16.mxu1 %v6679_v48  ;;  %v3674_v48 = vld [vmem:[#allocation11 + $0xbe8] sm:$0xff]  ;;  %v6713_v27 = vpack.c.bf16 %v3671_v47, %v3669_v36  ;;  %v3837_v28 = vld [vmem:[#allocation11 + $0xc10] sm:$0xff] }
 0x786   :  { %2970 = vst [vmem:[#allocation4 + $0x18] sm:$0xf0] %v2966_v2  ;;  %6682 = vmatpush1.bf16.msra.mxu0 %v6681_v24  ;;  %v6715_v60 = vpack.c.bf16 %v3676_v57, %v3674_v48  ;;  %v3839_v2 = vld [vmem:[#allocation11 + $0xc20] sm:$0xff]  ;;  %v3865_v36 = vld [vmem:[#allocation11 + $0xcf0] sm:$0xff]  ;;  %v3868_v47 = vld [vmem:[#allocation11 + $0xd08] sm:$0xff] }
 0x787   :  { %6684 = vmatprep.subr.bf16.mxu0 %v6683_v19  ;;  %v3870_v48 = vld [vmem:[#allocation11 + $0xd18] sm:$0xff]  ;;  %v3872_v62 = vld [vmem:[#allocation11 + $0xd28] sm:$0xff] }
 0x788   :  { %6746 = vmatpush1.bf16.msra.mxu1 %v6681_v24  ;;  %v3835_v24 = vld [vmem:[#allocation11 + $0xc00] sm:$0xff] }
 0x789   :  { %6748 = vmatprep.subr.bf16.mxu1 %v6683_v19  ;;  %v3842_v19 = vld [vmem:[#allocation11 + $0xc38] sm:$0xff]  ;;  %v6785_v16 = vpack.c.bf16 %v3837_v28, %v3835_v24  ;;  %v3873_v24 = vld [vmem:[#allocation11 + $0xd30] sm:$0xff]  ;;  %v3876_v28 = vld [vmem:[#allocation11 + $0xd48] sm:$0xff] }
 0x78a   :  { %6686 = vmatpush1.bf16.msra.mxu0 %v6685_v20  ;;  %v6787_v30 = vpack.c.bf16 %v3842_v19, %v3840_v15  ;;  %v3878_v15 = vld [vmem:[#allocation11 + $0xd58] sm:$0xff] }
 0x78b   :  { %6688 = vmatprep.subr.bf16.mxu0 %v6687_v22 }
 0x78c   :  { %6750 = vmatpush1.bf16.msra.mxu1 %v6685_v20  ;;  %v3846_v20 = vld [vmem:[#allocation11 + $0xc58] sm:$0xff] }
 0x78d   :  { %6752 = vmatprep.subr.bf16.mxu1 %v6687_v22  ;;  %v6789_v22 = vpack.c.bf16 %v3841_v21, %v3839_v2  ;;  %v6791_v23 = vpack.c.bf16 %v3846_v20, %v3844_v18  ;;  %v3877_v2 = vld [vmem:[#allocation11 + $0xd50] sm:$0xff]  ;;  %v3880_v21 = vld [vmem:[#allocation11 + $0xd68] sm:$0xff]  ;;  %v3882_v18 = vld [vmem:[#allocation11 + $0xd78] sm:$0xff] }
 0x78e   :  { %6690 = vmatpush1.bf16.msra.mxu0 %v6689_v34 }
 0x78f   :  { %6692 = vmatprep.subr.bf16.mxu0 %v6691_v37 }
 0x790   :  { %6754 = vmatpush1.bf16.msra.mxu1 %v6689_v34  ;;  %v3850_v34 = vld [vmem:[#allocation11 + $0xc78] sm:$0xff] }
 0x791   :  { %6756 = vmatprep.subr.bf16.mxu1 %v6691_v37  ;;  %v6793_v37 = vpack.c.bf16 %v3845_v26, %v3843_v25  ;;  %v6795_v49 = vpack.c.bf16 %v3850_v34, %v3848_v33  ;;  %v3881_v25 = vld [vmem:[#allocation11 + $0xd70] sm:$0xff]  ;;  %v3884_v26 = vld [vmem:[#allocation11 + $0xd88] sm:$0xff]  ;;  %v3886_v33 = vld [vmem:[#allocation11 + $0xd98] sm:$0xff] }
 0x792   :  { %6694 = vmatpush1.bf16.msra.mxu0 %v6693_v58 }
 0x793   :  { %6696 = vmatprep.subr.bf16.mxu0 %v6695_v59 }
 0x794   :  { %6758 = vmatpush1.bf16.msra.mxu1 %v6693_v58  ;;  %v3854_v58 = vld [vmem:[#allocation11 + $0xc98] sm:$0xff] }
 0x795   :  { %6760 = vmatprep.subr.bf16.mxu1 %v6695_v59  ;;  %v6797_v59 = vpack.c.bf16 %v3849_v52, %v3847_v50  ;;  %v6799_v3 = vpack.c.bf16 %v3854_v58, %v3852_v53  ;;  %v3885_v50 = vld [vmem:[#allocation11 + $0xd90] sm:$0xff]  ;;  %v3888_v52 = vld [vmem:[#allocation11 + $0xda8] sm:$0xff]  ;;  %v3890_v53 = vld [vmem:[#allocation11 + $0xdb8] sm:$0xff] }
 0x796   :  { %6698 = vmatpush1.bf16.msra.mxu0 %v6697_v8 }
 0x797   :  { %6700 = vmatprep.subr.bf16.mxu0 %v6699_v11 }
 0x798   :  { %6762 = vmatpush1.bf16.msra.mxu1 %v6697_v8  ;;  %v3858_v8 = vld [vmem:[#allocation11 + $0xcb8] sm:$0xff] }
 0x799   :  { %6764 = vmatprep.subr.bf16.mxu1 %v6699_v11  ;;  %v6801_v11 = vpack.c.bf16 %v3853_v6, %v3851_v5  ;;  %v6803_v9 = vpack.c.bf16 %v3858_v8, %v3856_v7  ;;  %v3889_v5 = vld [vmem:[#allocation11 + $0xdb0] sm:$0xff]  ;;  %v3892_v6 = vld [vmem:[#allocation11 + $0xdc8] sm:$0xff]  ;;  %v3894_v7 = vld [vmem:[#allocation11 + $0xdd8] sm:$0xff] }
 0x79a   :  { %6702 = vmatpush1.bf16.msra.mxu0 %v6701_v29 }
 0x79b   :  { %6704 = vmatprep.subr.bf16.mxu0 %v6703_v17 }
 0x79c   :  { %6766 = vmatpush1.bf16.msra.mxu1 %v6701_v29  ;;  %v3862_v29 = vld [vmem:[#allocation11 + $0xcd8] sm:$0xff] }
 0x79d   :  { %6768 = vmatprep.subr.bf16.mxu1 %v6703_v17  ;;  %v6805_v17 = vpack.c.bf16 %v3857_v44, %v3855_v10  ;;  %v6807_v13 = vpack.c.bf16 %v3862_v29, %v3860_v31  ;;  %v3893_v10 = vld [vmem:[#allocation11 + $0xdd0] sm:$0xff]  ;;  %v3896_v44 = vld [vmem:[#allocation11 + $0xde8] sm:$0xff]  ;;  %v3898_v31 = vld [vmem:[#allocation11 + $0xdf8] sm:$0xff] }
 0x79e   :  { %6706 = vmatpush1.bf16.msra.mxu0 %v6705_v54 }
 0x79f   :  { %6708 = vmatprep.subr.bf16.mxu0 %v6707_v55 }
 0x7a0   :  { %6770 = vmatpush1.bf16.msra.mxu1 %v6705_v54  ;;  %v3864_v54 = vld [vmem:[#allocation11 + $0xce8] sm:$0xff] }
 0x7a1   :  { %6772 = vmatprep.subr.bf16.mxu1 %v6707_v55  ;;  %v3866_v55 = vld [vmem:[#allocation11 + $0xcf8] sm:$0xff] }
 0x7a2   :  { %6710 = vmatpush1.bf16.msra.mxu0 %v6709_v42 }
 0x7a3   :  { %6712 = vmatprep.subr.bf16.mxu0 %v6711_v45 }
 0x7a4   :  { %6774 = vmatpush1.bf16.msra.mxu1 %v6709_v42  ;;  %v6811_v42 = vpack.c.bf16 %v3866_v55, %v3864_v54 }
 0x7a5   :  { %6776 = vmatprep.subr.bf16.mxu1 %v6711_v45  ;;  %v3863_v45 = vld [vmem:[#allocation11 + $0xce0] sm:$0xff] }
 0x7a6   :  { %6714 = vmatpush1.bf16.msra.mxu0 %v6713_v27  ;;  %v6813_v57 = vpack.c.bf16 %v3865_v36, %v3863_v45  ;;  %v4049_v36 = vld [vmem:[#allocation11 + $0xe20] sm:$0xff] }
 0x7a7   :  { %6716 = vmatprep.subr.bf16.mxu0 %v6715_v60 }
 0x7a8   :  { %6778 = vmatpush1.bf16.msra.mxu1 %v6713_v27  ;;  %v6815_v27 = vpack.c.bf16 %v3870_v48, %v3868_v47  ;;  %v4051_v47 = vld [vmem:[#allocation11 + $0xe30] sm:$0xff]  ;;  %v4054_v48 = vld [vmem:[#allocation11 + $0xe48] sm:$0xff] }
 0x7a9   :  { %6780 = vmatprep.subr.bf16.mxu1 %v6715_v60  ;;  %v3867_v60 = vld [vmem:[#allocation11 + $0xd00] sm:$0xff] }
 0x7aa   :  { %6718 = vmatpush1.bf16.msra.mxu0 %v6717_v4  ;;  %v6817_v1 = vpack.c.bf16 %v3869_v61, %v3867_v60  ;;  %v4053_v61 = vld [vmem:[#allocation11 + $0xe40] sm:$0xff] }
 0x7ab   :  { %6784 = vmatprep.subr.bf16.mxu0 %v6783_v32 }
 0x7ac   :  { %6782 = vmatpush1.bf16.msra.mxu1 %v6717_v4  ;;  %v6819_v4 = vpack.c.bf16 %v3874_v63, %v3872_v62  ;;  %v4055_v62 = vld [vmem:[#allocation11 + $0xe50] sm:$0xff]  ;;  %v4058_v63 = vld [vmem:[#allocation11 + $0xe68] sm:$0xff] }
 0x7ad   :  { %3742 = vmatmul.mubr.f32.vlgmr.msra.gmra.mrb[32].mxu0 %v7740_v56  ;;  %6848 = vmatprep.subr.bf16.mxu1 %v6783_v32  ;;  %v3871_v32 = vld [vmem:[#allocation11 + $0xd20] sm:$0xff] }
 0x7ae   :  { %6786 = vmatpush1.bf16.msra.mxu0 %v6785_v16  ;;  %3963 = vmatprep.mubr.f32.mxu0 %v7742_v40  ;;  %v6821_v19 = vpack.c.bf16 %v3873_v24, %v3871_v32  ;;  %v4057_v24 = vld [vmem:[#allocation11 + $0xe60] sm:$0xff] }
 0x7af   :  { %3821 = vmatmul.mubr.f32.vlgmr.msra.gmra.mrb[32].mxu1 %v7744_v43  ;;  %6788 = vmatprep.subr.bf16.mxu0 %v6787_v30 }
 0x7b0   :  { %6850 = vmatpush1.bf16.msra.mxu1 %v6785_v16  ;;  %4036 = vmatprep.mubr.f32.mxu1 %v7747_v46  ;;  %v6823_v16 = vpack.c.bf16 %v3878_v15, %v3876_v28  ;;  %v4059_v28 = vld [vmem:[#allocation11 + $0xe70] sm:$0xff]  ;;  %v4062_v15 = vld [vmem:[#allocation11 + $0xe88] sm:$0xff] }
 0x7b1   :  { %6852 = vmatprep.subr.bf16.mxu1 %v6787_v30  ;;  %v3875_v30 = vld [vmem:[#allocation11 + $0xd40] sm:$0xff] }
 0x7b2   :  { %6790 = vmatpush1.bf16.msra.mxu0 %v6789_v22  ;;  %v6825_v20 = vpack.c.bf16 %v3877_v2, %v3875_v30  ;;  %v4061_v2 = vld [vmem:[#allocation11 + $0xe80] sm:$0xff] }
 0x7b3   :  { %6792 = vmatprep.subr.bf16.mxu0 %v6791_v23 }
 0x7b4   :  { %6854 = vmatpush1.bf16.msra.mxu1 %v6789_v22  ;;  %v6827_v22 = vpack.c.bf16 %v3882_v18, %v3880_v21  ;;  %v4063_v21 = vld [vmem:[#allocation11 + $0xe90] sm:$0xff]  ;;  %v4066_v18 = vld [vmem:[#allocation11 + $0xea8] sm:$0xff] }
 0x7b5   :  { %6856 = vmatprep.subr.bf16.mxu1 %v6791_v23  ;;  %v3879_v23 = vld [vmem:[#allocation11 + $0xd60] sm:$0xff] }
 0x7b6   :  { %6794 = vmatpush1.bf16.msra.mxu0 %v6793_v37  ;;  %v6829_v34 = vpack.c.bf16 %v3881_v25, %v3879_v23  ;;  %v4065_v25 = vld [vmem:[#allocation11 + $0xea0] sm:$0xff] }
 0x7b7   :  { %6796 = vmatprep.subr.bf16.mxu0 %v6795_v49 }
 0x7b8   :  { %6858 = vmatpush1.bf16.msra.mxu1 %v6793_v37  ;;  %v6831_v37 = vpack.c.bf16 %v3886_v33, %v3884_v26  ;;  %v4067_v26 = vld [vmem:[#allocation11 + $0xeb0] sm:$0xff]  ;;  %v4070_v33 = vld [vmem:[#allocation11 + $0xec8] sm:$0xff] }
 0x7b9   :  { %6860 = vmatprep.subr.bf16.mxu1 %v6795_v49  ;;  %v3883_v49 = vld [vmem:[#allocation11 + $0xd80] sm:$0xff] }
 0x7ba   :  { %6798 = vmatpush1.bf16.msra.mxu0 %v6797_v59  ;;  %v6833_v58 = vpack.c.bf16 %v3885_v50, %v3883_v49  ;;  %v4069_v50 = vld [vmem:[#allocation11 + $0xec0] sm:$0xff] }
 0x7bb   :  { %6800 = vmatprep.subr.bf16.mxu0 %v6799_v3 }
 0x7bc   :  { %6862 = vmatpush1.bf16.msra.mxu1 %v6797_v59  ;;  %v6835_v59 = vpack.c.bf16 %v3890_v53, %v3888_v52  ;;  %v4071_v52 = vld [vmem:[#allocation11 + $0xed0] sm:$0xff] }
 0x7bd   :  { %6864 = vmatprep.subr.bf16.mxu1 %v6799_v3  ;;  %v3887_v3 = vld [vmem:[#allocation11 + $0xda0] sm:$0xff] }
 0x7be   :  { %6802 = vmatpush1.bf16.msra.mxu0 %v6801_v11  ;;  %v6837_v8 = vpack.c.bf16 %v3889_v5, %v3887_v3 }
 0x7bf   :  { %6804 = vmatprep.subr.bf16.mxu0 %v6803_v9 }
 0x7c0   :  { %6866 = vmatpush1.bf16.msra.mxu1 %v6801_v11  ;;  %v3101_v51 = vpop.f32.mrb[26].mxu0  ;;  %v6839_v11 = vpack.c.bf16 %v3894_v7, %v3892_v6 }
 0x7c1   :  { %3106 = vst [vmem:[#allocation4 + $0x20] sm:$0xf] %v3101_v51  ;;  %v3103_v35 = vpop.f32.mrb[27].mxu0  ;;  %6868 = vmatprep.subr.bf16.mxu1 %v6803_v9  ;;  %v3891_v9 = vld [vmem:[#allocation11 + $0xdc0] sm:$0xff]  ;;  %v4048_v51 = vld [vmem:[#allocation11 + $0xe18] sm:$0xff] }
 0x7c2   :  { %v3174_v38 = vpop.f32.mrb[26].mxu1  ;;  %3107 = vst [vmem:[#allocation4 + $0x28] sm:$0xf] %v3103_v35  ;;  %6806 = vmatpush1.bf16.msra.mxu0 %v6805_v17  ;;  %v6841_v29 = vpack.c.bf16 %v3893_v10, %v3891_v9  ;;  %v6911_v55 = vpack.c.bf16 %v4048_v51, %v4046_v14  ;;  %v4045_v35 = vld [vmem:[#allocation11 + $0xe00] sm:$0xff] }
 0x7c3   :  { %3179 = vst [vmem:[#allocation4 + $0x30] sm:$0xf] %v3174_v38  ;;  %v3176_v41 = vpop.f32.mrb[27].mxu1  ;;  %6808 = vmatprep.subr.bf16.mxu0 %v6807_v13  ;;  %v4047_v38 = vld [vmem:[#allocation11 + $0xe10] sm:$0xff]  ;;  %v4077_v51 = vld [vmem:[#allocation11 + $0xf00] sm:$0xff] }
 0x7c4   :  { %3180 = vst [vmem:[#allocation4 + $0x38] sm:$0xf] %v3176_v41  ;;  %6870 = vmatpush1.bf16.msra.mxu1 %v6805_v17  ;;  %v6843_v17 = vpack.c.bf16 %v3898_v31, %v3896_v44  ;;  %v4052_v41 = vld [vmem:[#allocation11 + $0xe38] sm:$0xff]  ;;  %v4073_v44 = vld [vmem:[#allocation11 + $0xee0] sm:$0xff]  ;;  %v4075_v31 = vld [vmem:[#allocation11 + $0xef0] sm:$0xff] }
 0x7c5   :  { %6872 = vmatprep.subr.bf16.mxu1 %v6807_v13  ;;  %v3895_v13 = vld [vmem:[#allocation11 + $0xde0] sm:$0xff] }
 0x7c6   :  { %6810 = vmatpush1.bf16.msra.mxu0 %v6809_v39  ;;  %v6845_v54 = vpack.c.bf16 %v3897_v12, %v3895_v13  ;;  %v4080_v13 = vld [vmem:[#allocation11 + $0xf18] sm:$0xff]  ;;  %v6941_v12 = vpack.c.bf16 %v4075_v31, %v4073_v44 }
 0x7c7   :  { %6812 = vmatprep.subr.bf16.mxu0 %v6811_v42 }
 0x7c8   :  { %6874 = vmatpush1.bf16.msra.mxu1 %v6809_v39  ;;  %v4050_v39 = vld [vmem:[#allocation11 + $0xe28] sm:$0xff] }
 0x7c9   :  { %6876 = vmatprep.subr.bf16.mxu1 %v6811_v42  ;;  %v6913_v42 = vpack.c.bf16 %v4047_v38, %v4045_v35  ;;  %v6915_v45 = vpack.c.bf16 %v4052_v41, %v4050_v39  ;;  %v4084_v35 = vld [vmem:[#allocation11 + $0xf38] sm:$0xff]  ;;  %v4081_v41 = vld [vmem:[#allocation11 + $0xf20] sm:$0xff] }
 0x7ca   :  { %6814 = vmatpush1.bf16.msra.mxu0 %v6813_v57 }
 0x7cb   :  { %6816 = vmatprep.subr.bf16.mxu0 %v6815_v27 }
 0x7cc   :  { %6878 = vmatpush1.bf16.msra.mxu1 %v6813_v57  ;;  %v4056_v57 = vld [vmem:[#allocation11 + $0xe58] sm:$0xff] }
 0x7cd   :  { %6880 = vmatprep.subr.bf16.mxu1 %v6815_v27  ;;  %v6917_v27 = vpack.c.bf16 %v4051_v47, %v4049_v36  ;;  %v6919_v60 = vpack.c.bf16 %v4056_v57, %v4054_v48  ;;  %v4088_v36 = vld [vmem:[#allocation11 + $0xf58] sm:$0xff]  ;;  %v4085_v57 = vld [vmem:[#allocation11 + $0xf40] sm:$0xff] }
 0x7ce   :  { %6818 = vmatpush1.bf16.msra.mxu0 %v6817_v1 }
 0x7cf   :  { %6820 = vmatprep.subr.bf16.mxu0 %v6819_v4 }
 0x7d0   :  { %6882 = vmatpush1.bf16.msra.mxu1 %v6817_v1  ;;  %v4060_v1 = vld [vmem:[#allocation11 + $0xe78] sm:$0xff] }
 0x7d1   :  { %6884 = vmatprep.subr.bf16.mxu1 %v6819_v4  ;;  %v6921_v4 = vpack.c.bf16 %v4055_v62, %v4053_v61  ;;  %v6923_v32 = vpack.c.bf16 %v4060_v1, %v4058_v63  ;;  %v4092_v61 = vld [vmem:[#allocation11 + $0xf78] sm:$0xff]  ;;  %v4089_v1 = vld [vmem:[#allocation11 + $0xf60] sm:$0xff] }
 0x7d2   :  { %6822 = vmatpush1.bf16.msra.mxu0 %v6821_v19 }
 0x7d3   :  { %6824 = vmatprep.subr.bf16.mxu0 %v6823_v16 }
 0x7d4   :  { %6886 = vmatpush1.bf16.msra.mxu1 %v6821_v19  ;;  %v4064_v19 = vld [vmem:[#allocation11 + $0xe98] sm:$0xff] }
 0x7d5   :  { %6888 = vmatprep.subr.bf16.mxu1 %v6823_v16  ;;  %v6925_v16 = vpack.c.bf16 %v4059_v28, %v4057_v24  ;;  %v6927_v30 = vpack.c.bf16 %v4064_v19, %v4062_v15  ;;  %v4096_v24 = vld [vmem:[#allocation11 + $0xf98] sm:$0xff]  ;;  %v4093_v19 = vld [vmem:[#allocation11 + $0xf80] sm:$0xff] }
 0x7d6   :  { %6826 = vmatpush1.bf16.msra.mxu0 %v6825_v20 }
 0x7d7   :  { %6828 = vmatprep.subr.bf16.mxu0 %v6827_v22 }
 0x7d8   :  { %6890 = vmatpush1.bf16.msra.mxu1 %v6825_v20  ;;  %v4068_v20 = vld [vmem:[#allocation11 + $0xeb8] sm:$0xff] }
 0x7d9   :  { %6892 = vmatprep.subr.bf16.mxu1 %v6827_v22  ;;  %v6929_v22 = vpack.c.bf16 %v4063_v21, %v4061_v2  ;;  %v6931_v23 = vpack.c.bf16 %v4068_v20, %v4066_v18  ;;  %v4100_v2 = vld [vmem:[#allocation11 + $0xfb8] sm:$0xff]  ;;  %v4097_v20 = vld [vmem:[#allocation11 + $0xfa0] sm:$0xff] }
 0x7da   :  { %6830 = vmatpush1.bf16.msra.mxu0 %v6829_v34 }
 0x7db   :  { %6832 = vmatprep.subr.bf16.mxu0 %v6831_v37 }
 0x7dc   :  { %6894 = vmatpush1.bf16.msra.mxu1 %v6829_v34  ;;  %v4072_v34 = vld [vmem:[#allocation11 + $0xed8] sm:$0xff] }
 0x7dd   :  { %6896 = vmatprep.subr.bf16.mxu1 %v6831_v37  ;;  %v6933_v37 = vpack.c.bf16 %v4067_v26, %v4065_v25  ;;  %v6935_v49 = vpack.c.bf16 %v4072_v34, %v4070_v33  ;;  %v4104_v25 = vld [vmem:[#allocation11 + $0xfd8] sm:$0xff]  ;;  %v4101_v34 = vld [vmem:[#allocation11 + $0xfc0] sm:$0xff] }
 0x7de   :  { %6834 = vmatpush1.bf16.msra.mxu0 %v6833_v58 }
 0x7df   :  { %6836 = vmatprep.subr.bf16.mxu0 %v6835_v59 }
 0x7e0   :  { %6898 = vmatpush1.bf16.msra.mxu1 %v6833_v58  ;;  %v4074_v58 = vld [vmem:[#allocation11 + $0xee8] sm:$0xff] }
 0x7e1   :  { %6900 = vmatprep.subr.bf16.mxu1 %v6835_v59  ;;  %v4076_v59 = vld [vmem:[#allocation11 + $0xef8] sm:$0xff] }
 0x7e2   :  { %6838 = vmatpush1.bf16.msra.mxu0 %v6837_v8  ;;  %v6939_v10 = vpack.c.bf16 %v4076_v59, %v4074_v58  ;;  %v4105_v58 = vld [vmem:[#allocation11 + $0xfe0] sm:$0xff]  ;;  %v4107_v59 = vld [vmem:[#allocation11 + $0xff0] sm:$0xff] }
 0x7e3   :  { %6840 = vmatprep.subr.bf16.mxu0 %v6839_v11 }
 0x7e4   :  { %6902 = vmatpush1.bf16.msra.mxu1 %v6837_v8  ;;  %v6937_v8 = vpack.c.bf16 %v4071_v52, %v4069_v50  ;;  %v4108_v50 = vld [vmem:[#allocation11 + $0xff8] sm:$0xff] }
 0x7e5   :  { %6904 = vmatprep.subr.bf16.mxu1 %v6839_v11 }
 0x7e6   :  { %6842 = vmatpush1.bf16.msra.mxu0 %v6841_v29 }
 0x7e7   :  { %6844 = vmatprep.subr.bf16.mxu0 %v6843_v17 }
 0x7e8   :  { %6906 = vmatpush1.bf16.msra.mxu1 %v6841_v29 }
 0x7e9   :  { %6908 = vmatprep.subr.bf16.mxu1 %v6843_v17  ;;  %v4078_v17 = vld [vmem:[#allocation11 + $0xf08] sm:$0xff] }
 0x7ea   :  { %6846 = vmatpush1.bf16.msra.mxu0 %v6845_v54  ;;  %v6943_v14 = vpack.c.bf16 %v4080_v13, %v4078_v17  ;;  %v4273_v17 = vld [vmem:[#allocation11 + $0x1030] sm:$0xff]  ;;  %v4276_v13 = vld [vmem:[#allocation11 + $0x1048] sm:$0xff] }
 0x7eb   :  { %6912 = vmatprep.subr.bf16.mxu0 %v6911_v55 }
 0x7ec   :  { %6910 = vmatpush1.bf16.msra.mxu1 %v6845_v54  ;;  %v4079_v54 = vld [vmem:[#allocation11 + $0xf10] sm:$0xff] }
 0x7ed   :  { %3964 = vmatmul.mubr.f32.vlgmr.msra.gmra.mrb[34].mxu0 %v7740_v56  ;;  %6976 = vmatprep.subr.bf16.mxu1 %v6911_v55  ;;  %v4082_v55 = vld [vmem:[#allocation11 + $0xf28] sm:$0xff]  ;;  %v6945_v38 = vpack.c.bf16 %v4079_v54, %v4077_v51  ;;  %v4275_v54 = vld [vmem:[#allocation11 + $0x1040] sm:$0xff] }
 0x7ee   :  { %6914 = vmatpush1.bf16.msra.mxu0 %v6913_v42  ;;  %4173 = vmatprep.mubr.f32.mxu0 %v7742_v40  ;;  %v6947_v39 = vpack.c.bf16 %v4084_v35, %v4082_v55  ;;  %v4277_v55 = vld [vmem:[#allocation11 + $0x1050] sm:$0xff]  ;;  %v4280_v35 = vld [vmem:[#allocation11 + $0x1068] sm:$0xff] }
 0x7ef   :  { %4037 = vmatmul.mubr.f32.vlgmr.msra.gmra.mrb[34].mxu1 %v7744_v43  ;;  %6916 = vmatprep.subr.bf16.mxu0 %v6915_v45 }
 0x7f0   :  { %6978 = vmatpush1.bf16.msra.mxu1 %v6913_v42  ;;  %4252 = vmatprep.mubr.f32.mxu1 %v7747_v46  ;;  %v4083_v42 = vld [vmem:[#allocation11 + $0xf30] sm:$0xff] }
 0x7f1   :  { %6980 = vmatprep.subr.bf16.mxu1 %v6915_v45  ;;  %v4086_v45 = vld [vmem:[#allocation11 + $0xf48] sm:$0xff]  ;;  %v6949_v47 = vpack.c.bf16 %v4083_v42, %v4081_v41  ;;  %v4279_v42 = vld [vmem:[#allocation11 + $0x1060] sm:$0xff] }
 0x7f2   :  { %6918 = vmatpush1.bf16.msra.mxu0 %v6917_v27  ;;  %v6951_v48 = vpack.c.bf16 %v4088_v36, %v4086_v45  ;;  %v4281_v45 = vld [vmem:[#allocation11 + $0x1070] sm:$0xff]  ;;  %v4286_v36 = vld [vmem:[#allocation11 + $0x1098] sm:$0xff] }
 0x7f3   :  { %6920 = vmatprep.subr.bf16.mxu0 %v6919_v60 }
 0x7f4   :  { %6982 = vmatpush1.bf16.msra.mxu1 %v6917_v27  ;;  %v4087_v27 = vld [vmem:[#allocation11 + $0xf50] sm:$0xff] }
 0x7f5   :  { %6984 = vmatprep.subr.bf16.mxu1 %v6919_v60  ;;  %v4090_v60 = vld [vmem:[#allocation11 + $0xf68] sm:$0xff]  ;;  %v6953_v62 = vpack.c.bf16 %v4087_v27, %v4085_v57  ;;  %v4283_v57 = vld [vmem:[#allocation11 + $0x1080] sm:$0xff]  ;;  %v4285_v27 = vld [vmem:[#allocation11 + $0x1090] sm:$0xff] }
 0x7f6   :  { %6922 = vmatpush1.bf16.msra.mxu0 %v6921_v4  ;;  %v6955_v63 = vpack.c.bf16 %v4092_v61, %v4090_v60  ;;  %v4290_v60 = vld [vmem:[#allocation11 + $0x10b8] sm:$0xff]  ;;  %v7057_v61 = vpack.c.bf16 %v4285_v27, %v4283_v57 }
 0x7f7   :  { %6924 = vmatprep.subr.bf16.mxu0 %v6923_v32  ;;  %v4326_v57 = vld [vmem:[#allocation11 + $0x11d8] sm:$0xff] }
 0x7f8   :  { %6986 = vmatpush1.bf16.msra.mxu1 %v6921_v4  ;;  %v4091_v4 = vld [vmem:[#allocation11 + $0xf70] sm:$0xff] }
 0x7f9   :  { %6988 = vmatprep.subr.bf16.mxu1 %v6923_v32  ;;  %v4094_v32 = vld [vmem:[#allocation11 + $0xf88] sm:$0xff]  ;;  %v6957_v28 = vpack.c.bf16 %v4091_v4, %v4089_v1  ;;  %v4289_v1 = vld [vmem:[#allocation11 + $0x10b0] sm:$0xff] }
 0x7fa   :  { %6926 = vmatpush1.bf16.msra.mxu0 %v6925_v16  ;;  %v6959_v15 = vpack.c.bf16 %v4096_v24, %v4094_v32  ;;  %v4292_v4 = vld [vmem:[#allocation11 + $0x10c8] sm:$0xff]  ;;  %v4294_v32 = vld [vmem:[#allocation11 + $0x10d8] sm:$0xff] }
 0x7fb   :  { %6928 = vmatprep.subr.bf16.mxu0 %v6927_v30 }
 0x7fc   :  { %6990 = vmatpush1.bf16.msra.mxu1 %v6925_v16  ;;  %v4095_v16 = vld [vmem:[#allocation11 + $0xf90] sm:$0xff] }
 0x7fd   :  { %6992 = vmatprep.subr.bf16.mxu1 %v6927_v30  ;;  %v4098_v30 = vld [vmem:[#allocation11 + $0xfa8] sm:$0xff]  ;;  %v6961_v21 = vpack.c.bf16 %v4095_v16, %v4093_v19  ;;  %v4293_v19 = vld [vmem:[#allocation11 + $0x10d0] sm:$0xff] }
 0x7fe   :  { %6930 = vmatpush1.bf16.msra.mxu0 %v6929_v22  ;;  %v6963_v18 = vpack.c.bf16 %v4100_v2, %v4098_v30  ;;  %v4296_v30 = vld [vmem:[#allocation11 + $0x10e8] sm:$0xff]  ;;  %v4298_v2 = vld [vmem:[#allocation11 + $0x10f8] sm:$0xff] }
 0x7ff   :  { %6932 = vmatprep.subr.bf16.mxu0 %v6931_v23 }
 0x800   :  { %6994 = vmatpush1.bf16.msra.mxu1 %v6929_v22  ;;  %v3311_v53 = vpop.f32.mrb[28].mxu0  ;;  %v4099_v22 = vld [vmem:[#allocation11 + $0xfb0] sm:$0xff] }
 0x801   :  { %v3318_v3 = vrot.slane %v3311_v53, 4  ;;  %v3313_v5 = vpop.f32.mrb[29].mxu0  ;;  %6996 = vmatprep.subr.bf16.mxu1 %v6931_v23  ;;  %v4102_v23 = vld [vmem:[#allocation11 + $0xfc8] sm:$0xff]  ;;  %v6965_v26 = vpack.c.bf16 %v4099_v22, %v4097_v20 }
 0x802   :  { %v3390_v6 = vpop.f32.mrb[28].mxu1  ;;  %v3319_v7 = vrot.slane %v3313_v5, 4  ;;  %6934 = vmatpush1.bf16.msra.mxu0 %v6933_v37  ;;  %v6967_v33 = vpack.c.bf16 %v4104_v25, %v4102_v23  ;;  %v4270_v5 = vld [vmem:[#allocation11 + $0x1018] sm:$0xff]  ;;  %v7067_v23 = vpack.c.bf16 %v4298_v2, %v4296_v30  ;;  %v4295_v25 = vld [vmem:[#allocation11 + $0x10e0] sm:$0xff] }
 0x803   :  { %3322 = vst [vmem:[#allocation4 + $0x20] sm:$0xf0] %v3318_v3  ;;  %v3397_v11 = vrot.slane %v3390_v6, 4  ;;  %v3392_v9 = vpop.f32.mrb[29].mxu1  ;;  %6936 = vmatprep.subr.bf16.mxu0 %v6935_v49  ;;  %v4268_v3 = vld [vmem:[#allocation11 + $0x1008] sm:$0xff]  ;;  %v6973_v6 = vpack.c.bf16 %v4107_v59, %v4105_v58  ;;  %v4306_v58 = vld [vmem:[#allocation11 + $0x1138] sm:$0xff] }
 0x804   :  { %3323 = vst [vmem:[#allocation4 + $0x28] sm:$0xf0] %v3319_v7  ;;  %v3398_v29 = vrot.slane %v3392_v9, 4  ;;  %6998 = vmatpush1.bf16.msra.mxu1 %v6933_v37  ;;  %v4103_v37 = vld [vmem:[#allocation11 + $0xfd0] sm:$0xff]  ;;  %v7039_v7 = vpack.c.bf16 %v4270_v5, %v4268_v3  ;;  %v4272_v9 = vld [vmem:[#allocation11 + $0x1028] sm:$0xff]  ;;  %v4303_v5 = vld [vmem:[#allocation11 + $0x1120] sm:$0xff] }
 0x805   :  { %3401 = vst [vmem:[#allocation4 + $0x30] sm:$0xf0] %v3397_v11  ;;  %7000 = vmatprep.subr.bf16.mxu1 %v6935_v49  ;;  %v4106_v49 = vld [vmem:[#allocation11 + $0xfe8] sm:$0xff]  ;;  %v6969_v52 = vpack.c.bf16 %v4103_v37, %v4101_v34  ;;  %v4269_v11 = vld [vmem:[#allocation11 + $0x1010] sm:$0xff]  ;;  %v4302_v34 = vld [vmem:[#allocation11 + $0x1118] sm:$0xff] }
 0x806   :  { %3402 = vst [vmem:[#allocation4 + $0x38] sm:$0xf0] %v3398_v29  ;;  %6938 = vmatpush1.bf16.msra.mxu0 %v6937_v8  ;;  %v6971_v53 = vpack.c.bf16 %v4108_v50, %v4106_v49  ;;  %v4271_v29 = vld [vmem:[#allocation11 + $0x1020] sm:$0xff] }
 0x807   :  { %6940 = vmatprep.subr.bf16.mxu0 %v6939_v10  ;;  %v4299_v50 = vld [vmem:[#allocation11 + $0x1100] sm:$0xff] }
 0x808   :  { %7002 = vmatpush1.bf16.msra.mxu1 %v6937_v8  ;;  %v4267_v8 = vld [vmem:[#allocation11 + $0x1000] sm:$0xff] }
 0x809   :  { %7004 = vmatprep.subr.bf16.mxu1 %v6939_v10  ;;  %v4274_v10 = vld [vmem:[#allocation11 + $0x1038] sm:$0xff]  ;;  %v7041_v44 = vpack.c.bf16 %v4269_v11, %v4267_v8 }
 0x80a   :  { %6942 = vmatpush1.bf16.msra.mxu0 %v6941_v12  ;;  %v7043_v31 = vpack.c.bf16 %v4274_v10, %v4272_v9  ;;  %v4310_v8 = vld [vmem:[#allocation11 + $0x1158] sm:$0xff]  ;;  %v4307_v10 = vld [vmem:[#allocation11 + $0x1140] sm:$0xff]  ;;  %v4482_v2 = vld [vmem:[#allocation4 + $0x20] sm:$0xff] }
 0x80b   :  { %6944 = vmatprep.subr.bf16.mxu0 %v6943_v14 }
 0x80c   :  { %7006 = vmatpush1.bf16.msra.mxu1 %v6941_v12  ;;  %v4278_v12 = vld [vmem:[#allocation11 + $0x1058] sm:$0xff] }
 0x80d   :  { %7008 = vmatprep.subr.bf16.mxu1 %v6943_v14  ;;  %v7045_v14 = vpack.c.bf16 %v4273_v17, %v4271_v29  ;;  %v7047_v51 = vpack.c.bf16 %v4278_v12, %v4276_v13  ;;  %v4314_v29 = vld [vmem:[#allocation11 + $0x1178] sm:$0xff]  ;;  %v4311_v12 = vld [vmem:[#allocation11 + $0x1160] sm:$0xff] }
 0x80e   :  { %6946 = vmatpush1.bf16.msra.mxu0 %v6945_v38 }
 0x80f   :  { %6948 = vmatprep.subr.bf16.mxu0 %v6947_v39 }
 0x810   :  { %7010 = vmatpush1.bf16.msra.mxu1 %v6945_v38  ;;  %v4282_v38 = vld [vmem:[#allocation11 + $0x1078] sm:$0xff] }
 0x811   :  { %7012 = vmatprep.subr.bf16.mxu1 %v6947_v39  ;;  %v7049_v39 = vpack.c.bf16 %v4277_v55, %v4275_v54  ;;  %v7051_v41 = vpack.c.bf16 %v4282_v38, %v4280_v35  ;;  %v4318_v54 = vld [vmem:[#allocation11 + $0x1198] sm:$0xff]  ;;  %v4315_v38 = vld [vmem:[#allocation11 + $0x1180] sm:$0xff] }
 0x812   :  { %6950 = vmatpush1.bf16.msra.mxu0 %v6949_v47 }
 0x813   :  { %6952 = vmatprep.subr.bf16.mxu0 %v6951_v48 }
 0x814   :  { %7014 = vmatpush1.bf16.msra.mxu1 %v6949_v47  ;;  %v7053_v47 = vpack.c.bf16 %v4281_v45, %v4279_v42  ;;  %v4322_v42 = vld [vmem:[#allocation11 + $0x11b8] sm:$0xff] }
 0x815   :  { %7016 = vmatprep.subr.bf16.mxu1 %v6951_v48 }
 0x816   :  { %6954 = vmatpush1.bf16.msra.mxu0 %v6953_v62 }
 0x817   :  { %6956 = vmatprep.subr.bf16.mxu0 %v6955_v63 }
 0x818   :  { %7018 = vmatpush1.bf16.msra.mxu1 %v6953_v62 }
 0x819   :  { %7020 = vmatprep.subr.bf16.mxu1 %v6955_v63  ;;  %v4287_v63 = vld [vmem:[#allocation11 + $0x10a0] sm:$0xff] }
 0x81a   :  { %6958 = vmatpush1.bf16.msra.mxu0 %v6957_v28  ;;  %v7061_v24 = vpack.c.bf16 %v4289_v1, %v4287_v63  ;;  %v4330_v63 = vld [vmem:[#allocation11 + $0x11f8] sm:$0xff] }
 0x81b   :  { %6960 = vmatprep.subr.bf16.mxu0 %v6959_v15 }
 0x81c   :  { %7022 = vmatpush1.bf16.msra.mxu1 %v6957_v28  ;;  %v7063_v28 = vpack.c.bf16 %v4294_v32, %v4292_v4  ;;  %v4327_v32 = vld [vmem:[#allocation11 + $0x11e0] sm:$0xff] }
 0x81d   :  { %7024 = vmatprep.subr.bf16.mxu1 %v6959_v15  ;;  %v4291_v15 = vld [vmem:[#allocation11 + $0x10c0] sm:$0xff] }
 0x81e   :  { %6962 = vmatpush1.bf16.msra.mxu0 %v6961_v21  ;;  %v7065_v20 = vpack.c.bf16 %v4293_v19, %v4291_v15  ;;  %v4483_v15 = vld [vmem:[#allocation4 + $0x28] sm:$0xff] }
 0x81f   :  { %6964 = vmatprep.subr.bf16.mxu0 %v6963_v18  ;;  %v4479_v19 = vld [vmem:[#allocation4 + $0x8] sm:$0xff] }
 0x820   :  { %7026 = vmatpush1.bf16.msra.mxu1 %v6961_v21  ;;  %v7167_v30 = vpack.c.bf16 %v4483_v15, %v4479_v19 }
 0x821   :  { %7028 = vmatprep.subr.bf16.mxu1 %v6963_v18 }
 0x822   :  { %6966 = vmatpush1.bf16.msra.mxu0 %v6965_v26 }
 0x823   :  { %6968 = vmatprep.subr.bf16.mxu0 %v6967_v33 }
 0x824   :  { %7030 = vmatpush1.bf16.msra.mxu1 %v6965_v26  ;;  %v4297_v26 = vld [vmem:[#allocation11 + $0x10f0] sm:$0xff] }
 0x825   :  { %7032 = vmatprep.subr.bf16.mxu1 %v6967_v33  ;;  %v4300_v33 = vld [vmem:[#allocation11 + $0x1108] sm:$0xff]  ;;  %v7069_v37 = vpack.c.bf16 %v4297_v26, %v4295_v25  ;;  %v4480_v25 = vld [vmem:[#allocation4 + $0x10] sm:$0xff] }
 0x826   :  { %6970 = vmatpush1.bf16.msra.mxu0 %v6969_v52  ;;  %v7071_v49 = vpack.c.bf16 %v4302_v34, %v4300_v33 }
 0x827   :  { %6972 = vmatprep.subr.bf16.mxu0 %v6971_v53 }
 0x828   :  { %7034 = vmatpush1.bf16.msra.mxu1 %v6969_v52  ;;  %v4301_v52 = vld [vmem:[#allocation11 + $0x1110] sm:$0xff] }
 0x829   :  { %7036 = vmatprep.subr.bf16.mxu1 %v6971_v53  ;;  %v4304_v53 = vld [vmem:[#allocation11 + $0x1128] sm:$0xff]  ;;  %v7073_v59 = vpack.c.bf16 %v4301_v52, %v4299_v50 }
 0x82a   :  { %6974 = vmatpush1.bf16.msra.mxu0 %v6973_v6  ;;  %v7075_v3 = vpack.c.bf16 %v4306_v58, %v4304_v53 }
 0x82b   :  { %7040 = vmatprep.subr.bf16.mxu0 %v7039_v7 }
 0x82c   :  { %7038 = vmatpush1.bf16.msra.mxu1 %v6973_v6  ;;  %v4305_v6 = vld [vmem:[#allocation11 + $0x1130] sm:$0xff] }
 0x82d   :  { %4174 = vmatmul.mubr.f32.vlgmr.msra.gmra.mrb[36].mxu0 %v7740_v56  ;;  %7104 = vmatprep.subr.bf16.mxu1 %v7039_v7  ;;  %v4308_v7 = vld [vmem:[#allocation11 + $0x1148] sm:$0xff]  ;;  %v7077_v11 = vpack.c.bf16 %v4305_v6, %v4303_v5 }
 0x82e   :  { %7042 = vmatpush1.bf16.msra.mxu0 %v7041_v44  ;;  %4395 = vmatprep.mubr.f32.mxu0 %v7742_v40  ;;  %v4284_v40 = vld [vmem:[#allocation11 + $0x1088] sm:$0xff]  ;;  %v7079_v9 = vpack.c.bf16 %v4310_v8, %v4308_v7 }
 0x82f   :  { %4253 = vmatmul.mubr.f32.vlgmr.msra.gmra.mrb[36].mxu1 %v7744_v43  ;;  %7044 = vmatprep.subr.bf16.mxu0 %v7043_v31  ;;  %v7055_v48 = vpack.c.bf16 %v4286_v36, %v4284_v40  ;;  %v4319_v36 = vld [vmem:[#allocation11 + $0x11a0] sm:$0xff] }
 0x830   :  { %7106 = vmatpush1.bf16.msra.mxu1 %v7041_v44  ;;  %4468 = vmatprep.mubr.f32.mxu1 %v7747_v46  ;;  %v4288_v46 = vld [vmem:[#allocation11 + $0x10a8] sm:$0xff]  ;;  %v4309_v44 = vld [vmem:[#allocation11 + $0x1150] sm:$0xff] }
 0x831   :  { %7108 = vmatprep.subr.bf16.mxu1 %v7043_v31  ;;  %v7059_v62 = vpack.c.bf16 %v4290_v60, %v4288_v46  ;;  %v4312_v31 = vld [vmem:[#allocation11 + $0x1168] sm:$0xff]  ;;  %v7081_v17 = vpack.c.bf16 %v4309_v44, %v4307_v10  ;;  %v4323_v60 = vld [vmem:[#allocation11 + $0x11c0] sm:$0xff] }
 0x832   :  { %7046 = vmatpush1.bf16.msra.mxu0 %v7045_v14  ;;  %v7083_v13 = vpack.c.bf16 %v4314_v29, %v4312_v31 }
 0x833   :  { %7048 = vmatprep.subr.bf16.mxu0 %v7047_v51 }
 0x834   :  { %7110 = vmatpush1.bf16.msra.mxu1 %v7045_v14  ;;  %v4313_v14 = vld [vmem:[#allocation11 + $0x1170] sm:$0xff] }
 0x835   :  { %7112 = vmatprep.subr.bf16.mxu1 %v7047_v51  ;;  %v4316_v51 = vld [vmem:[#allocation11 + $0x1188] sm:$0xff]  ;;  %v7085_v55 = vpack.c.bf16 %v4313_v14, %v4311_v12 }
 0x836   :  { %7050 = vmatpush1.bf16.msra.mxu0 %v7049_v39  ;;  %v7087_v35 = vpack.c.bf16 %v4318_v54, %v4316_v51 }
 0x837   :  { %7052 = vmatprep.subr.bf16.mxu0 %v7051_v41 }
 0x838   :  { %7114 = vmatpush1.bf16.msra.mxu1 %v7049_v39  ;;  %v4317_v39 = vld [vmem:[#allocation11 + $0x1190] sm:$0xff] }
 0x839   :  { %7116 = vmatprep.subr.bf16.mxu1 %v7051_v41  ;;  %v4320_v41 = vld [vmem:[#allocation11 + $0x11a8] sm:$0xff]  ;;  %v7089_v45 = vpack.c.bf16 %v4317_v39, %v4315_v38 }
 0x83a   :  { %7054 = vmatpush1.bf16.msra.mxu0 %v7053_v47  ;;  %v7091_v40 = vpack.c.bf16 %v4322_v42, %v4320_v41 }
 0x83b   :  { %7056 = vmatprep.subr.bf16.mxu0 %v7055_v48 }
 0x83c   :  { %7118 = vmatpush1.bf16.msra.mxu1 %v7053_v47  ;;  %v4321_v47 = vld [vmem:[#allocation11 + $0x11b0] sm:$0xff] }
 0x83d   :  { %7120 = vmatprep.subr.bf16.mxu1 %v7055_v48  ;;  %v4324_v48 = vld [vmem:[#allocation11 + $0x11c8] sm:$0xff]  ;;  %v7093_v27 = vpack.c.bf16 %v4321_v47, %v4319_v36  ;;  %v4477_v36 = vld [vmem:[#allocation14] sm:$0xf] }
 0x83e   :  { %7058 = vmatpush1.bf16.msra.mxu0 %v7057_v61  ;;  %v7095_v46 = vpack.c.bf16 %v4326_v57, %v4324_v48 }
 0x83f   :  { %7060 = vmatprep.subr.bf16.mxu0 %v7059_v62 }
 0x840   :  { %7122 = vmatpush1.bf16.msra.mxu1 %v7057_v61  ;;  %v3533_v16 = vpop.f32.mrb[30].mxu0  ;;  %v4325_v61 = vld [vmem:[#allocation11 + $0x11d0] sm:$0xff] }
 0x841   :  { %3538 = vst [vmem:[#allocation4 + $0x40] sm:$0xf] %v3533_v16  ;;  %v3535_v21 = vpop.f32.mrb[31].mxu0  ;;  %7124 = vmatprep.subr.bf16.mxu1 %v7059_v62  ;;  %v4328_v62 = vld [vmem:[#allocation11 + $0x11e8] sm:$0xff]  ;;  %v7097_v1 = vpack.c.bf16 %v4325_v61, %v4323_v60 }
 0x842   :  { %v3606_v18 = vpop.f32.mrb[30].mxu1  ;;  %3539 = vst [vmem:[#allocation4 + $0x48] sm:$0xf] %v3535_v21  ;;  %7062 = vmatpush1.bf16.msra.mxu0 %v7061_v24  ;;  %v7099_v4 = vpack.c.bf16 %v4330_v63, %v4328_v62  ;;  %v4485_v16 = vld [vmem:[#allocation4 + $0x38] sm:$0xff] }
 0x843   :  { %3611 = vst [vmem:[#allocation4 + $0x50] sm:$0xf] %v3606_v18  ;;  %v3608_v22 = vpop.f32.mrb[31].mxu1  ;;  %7064 = vmatprep.subr.bf16.mxu0 %v7063_v28  ;;  %v4481_v21 = vld [vmem:[#allocation4 + $0x18] sm:$0xff] }
 0x844   :  { %3612 = vst [vmem:[#allocation4 + $0x58] sm:$0xf] %v3608_v22  ;;  %7126 = vmatpush1.bf16.msra.mxu1 %v7061_v24  ;;  %v4329_v24 = vld [vmem:[#allocation11 + $0x11f0] sm:$0xff]  ;;  %v7175_v18 = vpack.c.bf16 %v4485_v16, %v4481_v21  ;;  %v4484_v22 = vld [vmem:[#allocation4 + $0x30] sm:$0xff] }
 0x845   :  { %7128 = vmatprep.subr.bf16.mxu1 %v7063_v28  ;;  %v7101_v28 = vpack.c.bf16 %v4329_v24, %v4327_v32  ;;  %v7177_v26 = vpack.c.bf16 %v4484_v22, %v4480_v25 }
 0x846   :  { %7066 = vmatpush1.bf16.msra.mxu0 %v7065_v20 }
 0x847   :  { %7068 = vmatprep.subr.bf16.mxu0 %v7067_v23 }
 0x848   :  { %7130 = vmatpush1.bf16.msra.mxu1 %v7065_v20  ;;  %v4478_v20 = vld [vmem:[#allocation4] sm:$0xff] }
 0x849   :  { %7132 = vmatprep.subr.bf16.mxu1 %v7067_v23  ;;  %v7169_v23 = vpack.c.bf16 %v4482_v2, %v4478_v20 }
 0x84a   :  { %7070 = vmatpush1.bf16.msra.mxu0 %v7069_v37 }
 0x84b   :  { %7072 = vmatprep.subr.bf16.mxu0 %v7071_v49 }
 0x84c   :  { %7134 = vmatpush1.bf16.msra.mxu1 %v7069_v37 }
 0x84d   :  { %7136 = vmatprep.subr.bf16.mxu1 %v7071_v49 }
 0x84e   :  { %7074 = vmatpush1.bf16.msra.mxu0 %v7073_v59 }
 0x84f   :  { %7076 = vmatprep.subr.bf16.mxu0 %v7075_v3 }
 0x850   :  { %7138 = vmatpush1.bf16.msra.mxu1 %v7073_v59 }
 0x851   :  { %7140 = vmatprep.subr.bf16.mxu1 %v7075_v3 }
 0x852   :  { %7078 = vmatpush1.bf16.msra.mxu0 %v7077_v11 }
 0x853   :  { %7080 = vmatprep.subr.bf16.mxu0 %v7079_v9 }
 0x854   :  { %7142 = vmatpush1.bf16.msra.mxu1 %v7077_v11 }
 0x855   :  { %7144 = vmatprep.subr.bf16.mxu1 %v7079_v9 }
 0x856   :  { %7082 = vmatpush1.bf16.msra.mxu0 %v7081_v17 }
 0x857   :  { %7084 = vmatprep.subr.bf16.mxu0 %v7083_v13 }
 0x858   :  { %7146 = vmatpush1.bf16.msra.mxu1 %v7081_v17 }
 0x859   :  { %7148 = vmatprep.subr.bf16.mxu1 %v7083_v13 }
 0x85a   :  { %7086 = vmatpush1.bf16.msra.mxu0 %v7085_v55 }
 0x85b   :  { %7088 = vmatprep.subr.bf16.mxu0 %v7087_v35 }
 0x85c   :  { %7150 = vmatpush1.bf16.msra.mxu1 %v7085_v55 }
 0x85d   :  { %7152 = vmatprep.subr.bf16.mxu1 %v7087_v35 }
 0x85e   :  { %7090 = vmatpush1.bf16.msra.mxu0 %v7089_v45 }
 0x85f   :  { %7092 = vmatprep.subr.bf16.mxu0 %v7091_v40 }
 0x860   :  { %7154 = vmatpush1.bf16.msra.mxu1 %v7089_v45 }
 0x861   :  { %7156 = vmatprep.subr.bf16.mxu1 %v7091_v40 }
 0x862   :  { %7094 = vmatpush1.bf16.msra.mxu0 %v7093_v27 }
 0x863   :  { %7096 = vmatprep.subr.bf16.mxu0 %v7095_v46 }
 0x864   :  { %7158 = vmatpush1.bf16.msra.mxu1 %v7093_v27 }
 0x865   :  { %7160 = vmatprep.subr.bf16.mxu1 %v7095_v46 }
 0x866   :  { %7098 = vmatpush1.bf16.msra.mxu0 %v7097_v1 }
 0x867   :  { %7100 = vmatprep.subr.bf16.mxu0 %v7099_v4 }
 0x868   :  { %7162 = vmatpush1.bf16.msra.mxu1 %v7097_v1 }
 0x869   :  { %7164 = vmatprep.subr.bf16.mxu1 %v7099_v4 }
 0x86a   :  { %7102 = vmatpush1.bf16.msra.mxu0 %v7101_v28 }
 0x86b   :  { %7168 = vmatprep.subr.bf16.mxu0 %v7167_v30 }
 0x86c   :  { %7166 = vmatpush1.bf16.msra.mxu1 %v7101_v28 }
 0x86d   :  { %7176 = vmatprep.subr.bf16.mxu1 %v7175_v18  ;;  %4396 = vmatmul.mubr.f32.vlgmr.msra.gmra.mrb[38].mxu0 %v7740_v56 }
 0x86e   :  { %7170 = vmatpush1.bf16.msra.mxu0 %v7169_v23  ;;  %4578 = vmatprep.mubr.f32.mxu0 %v7410_v0 }
 0x86f   :  { %4469 = vmatmul.mubr.f32.vlgmr.msra.gmra.mrb[38].mxu1 %v7744_v43 }
 0x870   :  { %7178 = vmatpush1.bf16.msra.mxu1 %v7177_v26  ;;  %4649 = vmatprep.mubr.f32.mxu1 %v7410_v0 }
 0x880   :  { %v3743_v33 = vpop.f32.mrb[32].mxu0 }
 0x881   :  { %v3750_v34 = vrot.slane %v3743_v33, 4  ;;  %v3745_v37 = vpop.f32.mrb[33].mxu0 }
 0x882   :  { %v3822_v49 = vpop.f32.mrb[32].mxu1  ;;  %v3751_v50 = vrot.slane %v3745_v37, 4 }
 0x883   :  { %3754 = vst [vmem:[#allocation4 + $0x40] sm:$0xf0] %v3750_v34  ;;  %v3829_v52 = vrot.slane %v3822_v49, 4  ;;  %v3824_v53 = vpop.f32.mrb[33].mxu1 }
 0x884   :  { %3755 = vst [vmem:[#allocation4 + $0x48] sm:$0xf0] %v3751_v50  ;;  %v3830_v56 = vrot.slane %v3824_v53, 4  ;;  %v4682_v53 = vld [vmem:[%s7824_s8] sm:$0xf]  ;;  %s7412_s8 = smov [#allocation16]  }
 0x885   :  { %3833 = vst [vmem:[#allocation4 + $0x50] sm:$0xf0] %v3829_v52 }
 0x886   :  { %3834 = vst [vmem:[#allocation4 + $0x58] sm:$0xf0] %v3830_v56 }
 0x88a   :  { %v4486_v13 = vld [vmem:[#allocation4 + $0x40] sm:$0xff] }
 0x88b   :  { %v4487_v31 = vld [vmem:[#allocation4 + $0x48] sm:$0xff] }
 0x88c   :  { %v4488_v35 = vld [vmem:[#allocation4 + $0x50] sm:$0xff] }
 0x88d   :  { %v4489_v14 = vld [vmem:[#allocation4 + $0x58] sm:$0xff] }
 0x8c0   :  { %v3965_v58 = vpop.f32.mrb[34].mxu0 }
 0x8c1   :  { %3970 = vst [vmem:[#allocation4 + $0x60] sm:$0xf] %v3965_v58  ;;  %v3967_v59 = vpop.f32.mrb[35].mxu0 }
 0x8c2   :  { %v4038_v3 = vpop.f32.mrb[34].mxu1  ;;  %3971 = vst [vmem:[#allocation4 + $0x68] sm:$0xf] %v3967_v59  ;;  %v4686_v59 = vld [vmem:[%s7825_s9] sm:$0xf]  ;;  %s4747_s9 = sshll.u32 %s7412_s8, 4  ;;  %s4748_s9 = int_to_ptr.vmem [resolvable:$true] %s4747_s9 }
 0x8c3   :  { %4043 = vst [vmem:[#allocation4 + $0x70] sm:$0xf] %v4038_v3  ;;  %v4040_v43 = vpop.f32.mrb[35].mxu1  ;;  %s7368_s27 = scalar_lea.vmem %s4748_s9, 256  ;;  %p7373_p7 = scmp.lt.s32.totalorder %s4748_s9, %s4748_s9 }
 0x8c4   :  { %4044 = vst [vmem:[#allocation4 + $0x78] sm:$0xf] %v4040_v43  ;;  %p7369_p6 = scmp.ne.s32.totalorder %s4748_s9, %s7368_s27  ;;  %p7374_p8 = scmp.lt.s32.totalorder %s7368_s27, %s7368_s27 }
 0x8c6   :  { %p7375_p9 = por %p7374_p8, %p7373_p7 }
 0x8c8   :  { %p7376_p10 = pnand %p7375_p9, %p7369_p6 }
 0x900   :  { %v4175_v0 = vpop.f32.mrb[36].mxu0 }
 0x901   :  { %v4182_v5 = vrot.slane %v4175_v0, 4  ;;  %v4177_v6 = vpop.f32.mrb[37].mxu0 }
 0x902   :  { %v4254_v7 = vpop.f32.mrb[36].mxu1  ;;  %v4183_v8 = vrot.slane %v4177_v6, 4 }
 0x903   :  { %4186 = vst [vmem:[#allocation4 + $0x60] sm:$0xf0] %v4182_v5  ;;  %v4261_v11 = vrot.slane %v4254_v7, 4  ;;  %v4256_v9 = vpop.f32.mrb[37].mxu1 }
 0x904   :  { %4187 = vst [vmem:[#allocation4 + $0x68] sm:$0xf0] %v4183_v8  ;;  %v4262_v10 = vrot.slane %v4256_v9, 4 }
 0x905   :  { %4265 = vst [vmem:[#allocation4 + $0x70] sm:$0xf0] %v4261_v11 }
 0x906   :  { %4266 = vst [vmem:[#allocation4 + $0x78] sm:$0xf0] %v4262_v10 }
 0x90a   :  { %v4490_v44 = vld [vmem:[#allocation4 + $0x60] sm:$0xff] }
 0x90b   :  { %v4491_v29 = vld [vmem:[#allocation4 + $0x68] sm:$0xff]  ;;  %v7173_v54 = vpack.c.bf16 %v4490_v44, %v4486_v13 }
 0x90c   :  { %v7171_v17 = vpack.c.bf16 %v4491_v29, %v4487_v31  ;;  %v4492_v12 = vld [vmem:[#allocation4 + $0x70] sm:$0xff] }
 0x90d   :  { %v4493_v51 = vld [vmem:[#allocation4 + $0x78] sm:$0xff]  ;;  %v7181_v38 = vpack.c.bf16 %v4492_v12, %v4488_v35 }
 0x90e   :  { %7172 = vmatprep.subr.bf16.mxu0 %v7171_v17  ;;  %v7179_v55 = vpack.c.bf16 %v4493_v51, %v4489_v14 }
 0x90f   :  { %7174 = vmatpush1.bf16.msra.mxu0 %v7173_v54 }
 0x910   :  { %7180 = vmatprep.subr.bf16.mxu1 %v7179_v55 }
 0x911   :  { %7182 = vmatpush1.bf16.msra.mxu1 %v7181_v38 }
 0x940   :  { %v4397_v39 = vpop.f32.mrb[38].mxu0 }
 0x941   :  { %4402 = vst [vmem:[#allocation4 + $0x80] sm:$0xf] %v4397_v39  ;;  %v4399_v41 = vpop.f32.mrb[39].mxu0 }
 0x942   :  { %v4470_v42 = vpop.f32.mrb[38].mxu1  ;;  %4403 = vst [vmem:[#allocation4 + $0x88] sm:$0xf] %v4399_v41 }
 0x943   :  { %4475 = vst [vmem:[#allocation4 + $0x90] sm:$0xf] %v4470_v42  ;;  %v4472_v45 = vpop.f32.mrb[39].mxu1 }
 0x944   :  { %4476 = vst [vmem:[#allocation4 + $0x98] sm:$0xf] %v4472_v45 }
 0x948   :  { %v4494_v47 = vld [vmem:[#allocation4 + $0x80] sm:$0xf] }
 0x949   :  { %v4495_v40 = vld [vmem:[#allocation4 + $0x88] sm:$0xf] }
 0x94a   :  { %4761 = vmatprep.subr.msk.mxu0 %vm2462_vm1, %v4495_v40  ;;  %v4496_v57 = vld [vmem:[#allocation4 + $0x90] sm:$0xf] }
 0x94b   :  { %v4497_v48 = vld [vmem:[#allocation4 + $0x98] sm:$0xf]  ;;  %4762 = vmatpush1.msk.msra.mxu0 %vm2462_vm1, %v4494_v47 }
 0x94c   :  { %4764 = vmatprep.subr.msk.mxu1 %vm2462_vm1, %v4497_v48  ;;  %4763 = vmatmul.mubr.msk.f32.vlgmr.msra.gmra.mrb[40].mxu0 %vm4498_vm2, %v4477_v36 }
 0x94d   :  { %4765 = vmatpush1.msk.msra.mxu1 %vm2462_vm1, %v4496_v57 }
 0x94e   :  { %4766 = vmatmul.mubr.msk.f32.vlgmr.msra.gmra.mrb[40].mxu1 %vm4498_vm2, %v4477_v36 }
 0xa1f   :  { %v4580_v27 = vpop.f32.mrb[40].mxu0 }
 0xa20   :  { %v4656_v46 = vsel %vm2462_vm1, %v4580_v27, 0.0  ;;  %v4666_v60 = vmul.f32 %v4580_v27, %v4580_v27  ;;  %v4582_v61 = vpop.f32.mrb[41].mxu0 }
 0xa21   :  { %v4657_v62 = vsel %vm2462_vm1, %v4582_v61, 0.0  ;;  %v4667_v63 = vmul.f32 %v4582_v61, %v4582_v61  ;;  %v4651_v1 = vpop.f32.mrb[40].mxu1 }
 0xa22   :  { %v4670_v4 = vsel %vm2462_vm1, %v4666_v60, 0.0  ;;  %v4658_v32 = vadd.f32 %v4657_v62, %v4656_v46  ;;  %v4659_v24 = vsel %vm2462_vm1, %v4651_v1, 0.0  ;;  %v4668_v28 = vmul.f32 %v4651_v1, %v4651_v1  ;;  %v4653_v15 = vpop.f32.mrb[41].mxu1 }
 0xa23   :  { %v4671_v19 = vsel %vm2462_vm1, %v4667_v63, 0.0  ;;  %v4669_v16 = vmul.f32 %v4653_v15, %v4653_v15  ;;  %v4661_v18 = vsel %vm2462_vm1, %v4653_v15, 0.0 }
 0xa24   :  { %v4672_v30 = vadd.f32 %v4671_v19, %v4670_v4  ;;  %v4660_v2 = vadd.f32 %v4659_v24, %v4658_v32  ;;  %v4673_v21 = vsel %vm2462_vm1, %v4668_v28, 0.0 }
 0xa25   :  { %v4675_v23 = vsel %vm2462_vm1, %v4669_v16, 0.0 }
 0xa26   :  { %v4662_v20 = vadd.f32 %v4661_v18, %v4660_v2  ;;  %v4674_v22 = vadd.f32 %v4673_v21, %v4672_v30 }
 0xa28   :  { %4663 = vadd.xlane.f32.xlu0 %v4662_v20  ;;  %v4676_v25 = vadd.f32 %v4675_v23, %v4674_v22 }
 0xa2a   :  { %4677 = vadd.xlane.f32.xlu1 %v4676_v25 }
 0xab5   :  { %v4664_v26 = vpop.xlane.xlu0 %4663 }
 0xab6   :  { %v4665_v33 = vmul.f32 0.001953125, %v4664_v26 }
 0xab7   :  { %v4678_v34 = vpop.xlane.xlu1 %4677 }
 0xab8   :  { %v4680_v37 = vmul.f32 %v4665_v33, %v4665_v33  ;;  %v4679_v49 = vmul.f32 0.001953125, %v4678_v34 }
 0xaba   :  { %v4681_v50 = vsub.f32 %v4679_v49, %v4680_v37 }
 0xabc   :  { %v4683_v52 = vadd.f32 1e-05, %v4681_v50 }
 0xabe   :  { %7218 = vrsqrt.f32 %v4683_v52 }
 0xac8   :  { %v7219_v56 = vpop.eup %7218 }
 0xac9   :  { %v4685_v58 = vmul.f32 %v7219_v56, %v4682_v53 }
 0xacb   :  { %4691 = vperm.xlu0 %7197, %v4685_v58   ;;  %v4687_v3 = vmul.f32 %v4685_v58, %v4665_v33 }
 0xacd   :  { %v4688_v43 = vsub.f32 %v4686_v59, %v4687_v3 }
 0xacf   :  { %4700 = vperm.xlu1 %7196, %v4688_v43  }
 0xb4a   :  { %v4692_v0 = vpop.permute.xlu0 %4691 }
 0xb4b   :  { %v4694_v5 = vmul.f32 %v4692_v0, %v4580_v27  ;;  %v4695_v6 = vmul.f32 %v4692_v0, %v4582_v61  ;;  %v4696_v7 = vmul.f32 %v4692_v0, %v4651_v1  ;;  %v4697_v8 = vmul.f32 %v4692_v0, %v4653_v15 }
 0xb4e   :  { %v4701_v11 = vpop.permute.xlu1 %4700 }
 0xb4f   :  { %v4703_v9 = vadd.f32 %v4701_v11, %v4694_v5  ;;  %v4704_v10 = vadd.f32 %v4701_v11, %v4695_v6  ;;  %v4705_v44 = vadd.f32 %v4701_v11, %v4696_v7  ;;  %v4706_v31 = vadd.f32 %v4701_v11, %v4697_v8 }
 0xb51   :  { %v4707_v29 = vsub.f32 0.0, %v4703_v9  ;;  %v4708_v17 = vsub.f32 0.0, %v4704_v10  ;;  %v4709_v13 = vsub.f32 0.0, %v4705_v44  ;;  %v4710_v12 = vsub.f32 0.0, %v4706_v31 }
 0xb53   :  { %v4711_v14 = vmul.f32 1.442695, %v4707_v29  ;;  %v4713_v51 = vmul.f32 1.442695, %v4708_v17  ;;  %v4715_v54 = vmul.f32 1.442695, %v4709_v13 }
 0xb54   :  { %v4717_v55 = vmul.f32 1.442695, %v4710_v12 }
 0xb55   :  { %7220 = vpow2.f32 %v4711_v14 }
 0xb56   :  { %7222 = vpow2.f32 %v4713_v51 }
 0xb57   :  { %7224 = vpow2.f32 %v4715_v54 }
 0xb58   :  { %7226 = vpow2.f32 %v4717_v55 }
 0xb5f   :  { %v7221_v35 = vpop.eup %7220 }
 0xb60   :  { %v7223_v38 = vpop.eup %7222  ;;  %v4719_v39 = vadd.f32 1.0, %v7221_v35 }
 0xb61   :  { %v7225_v41 = vpop.eup %7224  ;;  %v4720_v42 = vadd.f32 1.0, %v7223_v38 }
 0xb62   :  { %v7227_v45 = vpop.eup %7226  ;;  %v4721_v40 = vadd.f32 1.0, %v7225_v41  ;;  %7228 = vrcp.f32 %v4719_v39 }
 0xb63   :  { %v4722_v36 = vadd.f32 1.0, %v7227_v45  ;;  %7230 = vrcp.f32 %v4720_v42 }
 0xb64   :  { %7232 = vrcp.f32 %v4721_v40 }
 0xb65   :  { %7234 = vrcp.f32 %v4722_v36 }
 0xb6c   :  { %v7229_v47 = vpop.eup %7228 }
 0xb6d   :  { %v7231_v48 = vpop.eup %7230 }
 0xb6e   :  { %v7233_v57 = vpop.eup %7232  ;;  %v4735_v27 = vcombine.low %v7229_v47, %v7231_v48 }
 0xb6f   :  { %v7235_v46 = vpop.eup %7234 }
 0xb70   :  { %v4736_v60 = vcombine.low %v7233_v57, %v7235_v46  ;;  %4739 = vst [vmem:[#allocation16] sm:$0xff] %v4735_v27 }
 0xb72   :  { %4740 = vst [vmem:[#allocation16 + $0x8] sm:$0xff] %v4736_v60 }
 0xb73   :  { %7379 = shalt.err (!%p7376_p10)
}
 0xb74   :  { %s7380_s3 = scalar_lea.hbm %s7826_s10, 256 }
 0xb75   :  { %p7381_p11 = scmp.ne.s32.totalorder %s7826_s10, %s7380_s3  ;;  %p7384_p12 = scmp.lt.u32.totalorder %s7380_s3, %s7826_s10 }
 0xb77   :  { %p7386_p13 = pnand %p7384_p12, %p7381_p11 }
 0xb79   :  { %7389 = shalt.err (!%p7386_p13)
}
 0xb7a   :  { %4750 = dma.vmem_to_hbm [thread:$0]  %s4748_s9, 256, %s7826_s10, [#allocation7]  }
 0xb7b   :  { %7398 = dma.done.wait [#allocation7], 256  }
 0xb7c   :  { %7399 = vsyncadd [#allocation7], 4294967040 }
 0xb7d   :  { %4754 = vsyncpa [#allocation6], 1 }
 0xb7e   :  { %4755 = vsyncpa [#allocation9], 1 }
 0xb7f   :  { %4756 = vsyncpa [#allocation12], 1 }
 0xb80   :  { %4757 = vsyncpa [#allocation15], 1 }
 0xb81   :  { %4758 = vsyncpa [#allocation7], 1 }

</bundles_post_ra>
